<compile_context>
chip_gen: v6e
topology: v6e:2x2x1
jax: 0.10.0
libtpu: 0.0.40
codegen_flags: <defaults>
</compile_context>

<pallas_src>
import jax
import jax.numpy as jnp
from jax import lax
from jax.experimental import pallas as pl
from jax.experimental.pallas import tpu as pltpu

S = 16                 # D = H = W spatial size (scaled down from 384)
P = S // 2             # pooled spatial size
HW = S * S             # 256 lanes; column index c = h*S + w
NUM_CONVS = 4


def cnn_kernel(x_ref, band_ref, mask_ref, bconv_ref, wfc_ref, bfc_ref, out_ref):
    f32 = jnp.float32
    relu = lambda t: jnp.maximum(t, 0.0)

    def shift_lanes(t, off):
        # result[..., c] = t[..., (c + off) % HW]   (circular; caller masks the wrapped lanes)
        return pltpu.roll(t, (-off) % HW, axis=1)

    def shift_rows(t, od):
        # result[d, :] = t[(d + od) % S, :]
        return pltpu.roll(t, (-od) % S, axis=0)

    def conv3d(src, c):
        # Conv3d(k=3, stride=1, padding=1) on the (S, HW) volume (row = d, col = h*S + w).
        # Depth taps + depth zero-padding live in banded 16x16 matrices (MXU); h/w taps are lane
        # rolls masked by the precomputed combined h/w masks.
        acc = None
        for oh in (-1, 0, 1):
            for ow in (-1, 0, 1):
                j = (oh + 1) * 3 + (ow + 1)
                if oh == 0 and ow == 0:
                    t = src
                else:
                    t = shift_lanes(src, oh * S + ow) * mask_ref[j]
                d = jnp.dot(band_ref[c * 9 + j], t,
                            preferred_element_type=f32,
                            precision=lax.Precision.HIGHEST)
                acc = d if acc is None else acc + d
        return acc + bconv_ref[c]

    # layer1 -> relu -> layer2 -> relu
    a = relu(conv3d(x_ref[...], 0))
    a = relu(conv3d(a, 1))
    # x1 = relu(layer3(x)); x = x + x1
    a = a + relu(conv3d(a, 2))
    # x2 = relu(layer4(x)); x = x + x2
    a = a + relu(conv3d(a, 3))

    # MaxPool3d(kernel=2, stride=2) via neighbour maxima.
    # NOTE: `m` is ONLY a valid pooled value at even (d,h,w) positions; the circular roll wrap
    # contaminates odd positions only, and the scattered FC weights read even positions only.
    # Keep those two facts in sync if the pool stride or the FC scatter ever changes.
    m = jnp.maximum(a, shift_lanes(a, 1))    # max over {w, w+1}
    m = jnp.maximum(m, shift_lanes(m, S))    # max over {h, h+1}
    m = jnp.maximum(m, shift_rows(m, 1))     # max over {d, d+1}
    m = relu(m)                              # ReLU after pooling (as in the module)

    # Linear(P^3 -> 3): fc weights were scattered onto even positions of the (S, HW) layout.
    for k in range(3):
        out_ref[0, k] = bfc_ref[k] + jnp.sum(wfc_ref[k] * m)


def _hw_masks():
    # (9, S, HW) combined h/w validity masks, one per (oh, ow) offset (center entry = all ones).
    col = jnp.arange(HW)
    h_of = (col // S).astype(jnp.int32)
    w_of = (col % S).astype(jnp.int32)
    rows = []
    for oh in (-1, 0, 1):
        for ow in (-1, 0, 1):
            m = jnp.ones((HW,), jnp.float32)
            if oh == 1:
                m = m * (h_of < S - 1).astype(jnp.float32)
            if oh == -1:
                m = m * (h_of > 0).astype(jnp.float32)
            if ow == 1:
                m = m * (w_of < S - 1).astype(jnp.float32)
            if ow == -1:
                m = m * (w_of > 0).astype(jnp.float32)
            rows.append(jnp.broadcast_to(m, (S, HW)))
    return jnp.stack(rows)


def _band_matrices(conv_w):
    # (NUM_CONVS*9, S, S) banded depth matrices:
    #   band[c*9 + (oh+1)*3 + (ow+1)][d_out, d_in] = w[c, d_in-d_out+1, oh+1, ow+1] for |d_in-d_out|<=1
    # Zeros outside the band implement the depth zero-padding of Conv3d(padding=1).
    eyes = jnp.stack([jnp.eye(S, k=-1, dtype=jnp.float32),
                      jnp.eye(S, k=0, dtype=jnp.float32),
                      jnp.eye(S, k=1, dtype=jnp.float32)])          # indexed by kd = od + 1
    band = jnp.einsum('ckhw,kab->chwab', conv_w.astype(jnp.float32), eyes)
    return band.reshape(NUM_CONVS * 9, S, S)


def forward(x, conv_w, conv_b, fc_w, fc_b):
    # x: (1, 1, S, S, S) NCDHW -> lane-dense (D, H*W) = (16, 256) layout (glue reshape).
    x2d = x.reshape(S, HW).astype(jnp.float32)
    band = _band_matrices(conv_w)                                   # (36, 16, 16)
    masks = _hw_masks()                                             # (9, 16, 256)
    # Scatter fc weights onto even (d,h,w) positions of the (S,S,S) grid -> (3, S, HW) lane-dense.
    wfc = fc_w.reshape(3, P, P, P).astype(jnp.float32)              # flat index dp*P*P + hp*P + wp
    wfc_scat = jnp.zeros((3, S, S, S), jnp.float32).at[:, ::2, ::2, ::2].set(wfc)
    wfc_scat = wfc_scat.reshape(3, S, HW)
    out = pl.pallas_call(
        cnn_kernel,
        out_shape=jax.ShapeDtypeStruct((1, 3), jnp.float32),
        in_specs=[
            pl.BlockSpec(memory_space=pltpu.MemorySpace.VMEM),    # x2d (16, 256)
            pl.BlockSpec(memory_space=pltpu.MemorySpace.VMEM),    # banded depth matrices (36,16,16)
            pl.BlockSpec(memory_space=pltpu.MemorySpace.VMEM),    # combined h/w masks (9,16,256)
            pl.BlockSpec(memory_space=pltpu.MemorySpace.SMEM),    # conv biases (4,)
            pl.BlockSpec(memory_space=pltpu.MemorySpace.VMEM),    # scattered fc weights (3,16,256)
            pl.BlockSpec(memory_space=pltpu.MemorySpace.SMEM),    # fc bias (3,)
        ],
        out_specs=pl.BlockSpec(memory_space=pltpu.MemorySpace.SMEM),
    )(x2d, band, masks, conv_b.astype(jnp.float32), wfc_scat, fc_b.astype(jnp.float32))
    return out


forward_jit = jax.jit(forward)


def reference(x, conv_w, conv_b, fc_w, fc_b):
    # Pure-JAX reference of the PyTorch forward (f32).
    relu = lambda t: jnp.maximum(t, 0.0)
    v = x[0, 0]

    def conv(v, w, b):
        vp = jnp.pad(v, 1)
        out = jnp.zeros_like(v) + b
        for kd in range(3):
            for kh in range(3):
                for kw in range(3):
                    out = out + w[kd, kh, kw] * vp[kd:kd + S, kh:kh + S, kw:kw + S]
        return out

    v = relu(conv(v, conv_w[0], conv_b[0]))
    v = relu(conv(v, conv_w[1], conv_b[1]))
    v = v + relu(conv(v, conv_w[2], conv_b[2]))
    v = v + relu(conv(v, conv_w[3], conv_b[3]))
    pooled = v.reshape(P, 2, P, 2, P, 2).max(axis=(1, 3, 5))
    pooled = relu(pooled)
    flat = pooled.reshape(1, P * P * P)
    return jnp.dot(flat, fc_w.T, precision=lax.Precision.HIGHEST) + fc_b


if __name__ == "__main__":
    key = jax.random.PRNGKey(0)
    k0, k1, k2, k3, k4 = jax.random.split(key, 5)
    x = jax.random.normal(k0, (1, 1, S, S, S), jnp.float32)
    conv_w = jax.random.normal(k1, (NUM_CONVS, 3, 3, 3), jnp.float32) * 0.15
    conv_b = jax.random.normal(k2, (NUM_CONVS,), jnp.float32) * 0.1
    fc_w = jax.random.normal(k3, (3, P * P * P), jnp.float32) * 0.05
    fc_b = jax.random.normal(k4, (3,), jnp.float32) * 0.1

    out = forward_jit(x, conv_w, conv_b, fc_w, fc_b)
    out = jax.block_until_ready(out)

    ref = reference(x, conv_w, conv_b, fc_w, fc_b)
    assert out.shape == (1, 3)
    assert jnp.allclose(out, ref, rtol=5e-2, atol=5e-2), (out, ref)
    print("KERNEL_OK")
</pallas_src>

<mosaic_0001>
module attributes {stable_mosaic.version = 11 : i64} {
  func.func @cnn_kernel(%arg0: memref<16x256xf32, #tpu.memory_space<vmem>>, %arg1: memref<36x16x16xf32, #tpu.memory_space<vmem>>, %arg2: memref<9x16x256xf32, #tpu.memory_space<vmem>>, %arg3: memref<4xf32, #tpu.memory_space<smem>>, %arg4: memref<3x16x256xf32, #tpu.memory_space<vmem>>, %arg5: memref<3xf32, #tpu.memory_space<smem>>, %arg6: memref<1x3xf32, #tpu.memory_space<smem>>) attributes {dimension_semantics = [], scalar_prefetch = 0 : i64, scratch_operands = 0 : i64, tpu.core_type = #tpu.core_type<tc>} {
    %c0 = arith.constant 0 : index
    %c0_0 = arith.constant 0 : index
    %0 = vector.load %arg0[%c0, %c0_0] : memref<16x256xf32, #tpu.memory_space<vmem>>, vector<16x256xf32>
    %c17_i32 = arith.constant 17 : i32
    %1 = tpu.dynamic_rotate %0 by %c17_i32 dim 1 : vector<16x256xf32>, i32 -> vector<16x256xf32>
    %c0_1 = arith.constant 0 : index
    %c0_2 = arith.constant 0 : index
    %c0_3 = arith.constant 0 : index
    %2 = vector.load %arg2[%c0_1, %c0_2, %c0_3] : memref<9x16x256xf32, #tpu.memory_space<vmem>>, vector<1x16x256xf32>
    %3 = vector.shape_cast %2 : vector<1x16x256xf32> to vector<16x256xf32>
    %4 = arith.mulf %1, %3 : vector<16x256xf32>
    %c0_4 = arith.constant 0 : index
    %c0_5 = arith.constant 0 : index
    %c0_6 = arith.constant 0 : index
    %5 = vector.load %arg1[%c0_4, %c0_5, %c0_6] : memref<36x16x16xf32, #tpu.memory_space<vmem>>, vector<1x16x16xf32>
    %6 = vector.shape_cast %5 : vector<1x16x16xf32> to vector<16x16xf32>
    %cst = arith.constant dense<0.000000e+00> : vector<16x256xf32>
    %7 = tpu.matmul %6, %4, %cst {dimension_numbers = #tpu.dot_dimension_numbers<[1], [0], [0], [1], [0, 0, 1, 1], [], []>, precision = #tpu.contract_precision<fp32>} : vector<16x16xf32>, vector<16x256xf32>, vector<16x256xf32> -> vector<16x256xf32>
    %c16_i32 = arith.constant 16 : i32
    %8 = tpu.dynamic_rotate %0 by %c16_i32 dim 1 : vector<16x256xf32>, i32 -> vector<16x256xf32>
    %c1 = arith.constant 1 : index
    %c0_7 = arith.constant 0 : index
    %c0_8 = arith.constant 0 : index
    %9 = vector.load %arg2[%c1, %c0_7, %c0_8] : memref<9x16x256xf32, #tpu.memory_space<vmem>>, vector<1x16x256xf32>
    %10 = vector.shape_cast %9 : vector<1x16x256xf32> to vector<16x256xf32>
    %11 = arith.mulf %8, %10 : vector<16x256xf32>
    %c1_9 = arith.constant 1 : index
    %c0_10 = arith.constant 0 : index
    %c0_11 = arith.constant 0 : index
    %12 = vector.load %arg1[%c1_9, %c0_10, %c0_11] : memref<36x16x16xf32, #tpu.memory_space<vmem>>, vector<1x16x16xf32>
    %13 = vector.shape_cast %12 : vector<1x16x16xf32> to vector<16x16xf32>
    %cst_12 = arith.constant dense<0.000000e+00> : vector<16x256xf32>
    %14 = tpu.matmul %13, %11, %cst_12 {dimension_numbers = #tpu.dot_dimension_numbers<[1], [0], [0], [1], [0, 0, 1, 1], [], []>, precision = #tpu.contract_precision<fp32>} : vector<16x16xf32>, vector<16x256xf32>, vector<16x256xf32> -> vector<16x256xf32>
    %15 = arith.addf %7, %14 : vector<16x256xf32>
    %c15_i32 = arith.constant 15 : i32
    %16 = tpu.dynamic_rotate %0 by %c15_i32 dim 1 : vector<16x256xf32>, i32 -> vector<16x256xf32>
    %c2 = arith.constant 2 : index
    %c0_13 = arith.constant 0 : index
    %c0_14 = arith.constant 0 : index
    %17 = vector.load %arg2[%c2, %c0_13, %c0_14] : memref<9x16x256xf32, #tpu.memory_space<vmem>>, vector<1x16x256xf32>
    %18 = vector.shape_cast %17 : vector<1x16x256xf32> to vector<16x256xf32>
    %19 = arith.mulf %16, %18 : vector<16x256xf32>
    %c2_15 = arith.constant 2 : index
    %c0_16 = arith.constant 0 : index
    %c0_17 = arith.constant 0 : index
    %20 = vector.load %arg1[%c2_15, %c0_16, %c0_17] : memref<36x16x16xf32, #tpu.memory_space<vmem>>, vector<1x16x16xf32>
    %21 = vector.shape_cast %20 : vector<1x16x16xf32> to vector<16x16xf32>
    %cst_18 = arith.constant dense<0.000000e+00> : vector<16x256xf32>
    %22 = tpu.matmul %21, %19, %cst_18 {dimension_numbers = #tpu.dot_dimension_numbers<[1], [0], [0], [1], [0, 0, 1, 1], [], []>, precision = #tpu.contract_precision<fp32>} : vector<16x16xf32>, vector<16x256xf32>, vector<16x256xf32> -> vector<16x256xf32>
    %23 = arith.addf %15, %22 : vector<16x256xf32>
    %c1_i32 = arith.constant 1 : i32
    %24 = tpu.dynamic_rotate %0 by %c1_i32 dim 1 : vector<16x256xf32>, i32 -> vector<16x256xf32>
    %c3 = arith.constant 3 : index
    %c0_19 = arith.constant 0 : index
    %c0_20 = arith.constant 0 : index
    %25 = vector.load %arg2[%c3, %c0_19, %c0_20] : memref<9x16x256xf32, #tpu.memory_space<vmem>>, vector<1x16x256xf32>
    %26 = vector.shape_cast %25 : vector<1x16x256xf32> to vector<16x256xf32>
    %27 = arith.mulf %24, %26 : vector<16x256xf32>
    %c3_21 = arith.constant 3 : index
    %c0_22 = arith.constant 0 : index
    %c0_23 = arith.constant 0 : index
    %28 = vector.load %arg1[%c3_21, %c0_22, %c0_23] : memref<36x16x16xf32, #tpu.memory_space<vmem>>, vector<1x16x16xf32>
    %29 = vector.shape_cast %28 : vector<1x16x16xf32> to vector<16x16xf32>
    %cst_24 = arith.constant dense<0.000000e+00> : vector<16x256xf32>
    %30 = tpu.matmul %29, %27, %cst_24 {dimension_numbers = #tpu.dot_dimension_numbers<[1], [0], [0], [1], [0, 0, 1, 1], [], []>, precision = #tpu.contract_precision<fp32>} : vector<16x16xf32>, vector<16x256xf32>, vector<16x256xf32> -> vector<16x256xf32>
    %31 = arith.addf %23, %30 : vector<16x256xf32>
    %c4 = arith.constant 4 : index
    %c0_25 = arith.constant 0 : index
    %c0_26 = arith.constant 0 : index
    %32 = vector.load %arg1[%c4, %c0_25, %c0_26] : memref<36x16x16xf32, #tpu.memory_space<vmem>>, vector<1x16x16xf32>
    %33 = vector.shape_cast %32 : vector<1x16x16xf32> to vector<16x16xf32>
    %cst_27 = arith.constant dense<0.000000e+00> : vector<16x256xf32>
    %34 = tpu.matmul %33, %0, %cst_27 {dimension_numbers = #tpu.dot_dimension_numbers<[1], [0], [0], [1], [0, 0, 1, 1], [], []>, precision = #tpu.contract_precision<fp32>} : vector<16x16xf32>, vector<16x256xf32>, vector<16x256xf32> -> vector<16x256xf32>
    %35 = arith.addf %31, %34 : vector<16x256xf32>
    %c255_i32 = arith.constant 255 : i32
    %36 = tpu.dynamic_rotate %0 by %c255_i32 dim 1 : vector<16x256xf32>, i32 -> vector<16x256xf32>
    %c5 = arith.constant 5 : index
    %c0_28 = arith.constant 0 : index
    %c0_29 = arith.constant 0 : index
    %37 = vector.load %arg2[%c5, %c0_28, %c0_29] : memref<9x16x256xf32, #tpu.memory_space<vmem>>, vector<1x16x256xf32>
    %38 = vector.shape_cast %37 : vector<1x16x256xf32> to vector<16x256xf32>
    %39 = arith.mulf %36, %38 : vector<16x256xf32>
    %c5_30 = arith.constant 5 : index
    %c0_31 = arith.constant 0 : index
    %c0_32 = arith.constant 0 : index
    %40 = vector.load %arg1[%c5_30, %c0_31, %c0_32] : memref<36x16x16xf32, #tpu.memory_space<vmem>>, vector<1x16x16xf32>
    %41 = vector.shape_cast %40 : vector<1x16x16xf32> to vector<16x16xf32>
    %cst_33 = arith.constant dense<0.000000e+00> : vector<16x256xf32>
    %42 = tpu.matmul %41, %39, %cst_33 {dimension_numbers = #tpu.dot_dimension_numbers<[1], [0], [0], [1], [0, 0, 1, 1], [], []>, precision = #tpu.contract_precision<fp32>} : vector<16x16xf32>, vector<16x256xf32>, vector<16x256xf32> -> vector<16x256xf32>
    %43 = arith.addf %35, %42 : vector<16x256xf32>
    %c241_i32 = arith.constant 241 : i32
    %44 = tpu.dynamic_rotate %0 by %c241_i32 dim 1 : vector<16x256xf32>, i32 -> vector<16x256xf32>
    %c6 = arith.constant 6 : index
    %c0_34 = arith.constant 0 : index
    %c0_35 = arith.constant 0 : index
    %45 = vector.load %arg2[%c6, %c0_34, %c0_35] : memref<9x16x256xf32, #tpu.memory_space<vmem>>, vector<1x16x256xf32>
    %46 = vector.shape_cast %45 : vector<1x16x256xf32> to vector<16x256xf32>
    %47 = arith.mulf %44, %46 : vector<16x256xf32>
    %c6_36 = arith.constant 6 : index
    %c0_37 = arith.constant 0 : index
    %c0_38 = arith.constant 0 : index
    %48 = vector.load %arg1[%c6_36, %c0_37, %c0_38] : memref<36x16x16xf32, #tpu.memory_space<vmem>>, vector<1x16x16xf32>
    %49 = vector.shape_cast %48 : vector<1x16x16xf32> to vector<16x16xf32>
    %cst_39 = arith.constant dense<0.000000e+00> : vector<16x256xf32>
    %50 = tpu.matmul %49, %47, %cst_39 {dimension_numbers = #tpu.dot_dimension_numbers<[1], [0], [0], [1], [0, 0, 1, 1], [], []>, precision = #tpu.contract_precision<fp32>} : vector<16x16xf32>, vector<16x256xf32>, vector<16x256xf32> -> vector<16x256xf32>
    %51 = arith.addf %43, %50 : vector<16x256xf32>
    %c240_i32 = arith.constant 240 : i32
    %52 = tpu.dynamic_rotate %0 by %c240_i32 dim 1 : vector<16x256xf32>, i32 -> vector<16x256xf32>
    %c7 = arith.constant 7 : index
    %c0_40 = arith.constant 0 : index
    %c0_41 = arith.constant 0 : index
    %53 = vector.load %arg2[%c7, %c0_40, %c0_41] : memref<9x16x256xf32, #tpu.memory_space<vmem>>, vector<1x16x256xf32>
    %54 = vector.shape_cast %53 : vector<1x16x256xf32> to vector<16x256xf32>
    %55 = arith.mulf %52, %54 : vector<16x256xf32>
    %c7_42 = arith.constant 7 : index
    %c0_43 = arith.constant 0 : index
    %c0_44 = arith.constant 0 : index
    %56 = vector.load %arg1[%c7_42, %c0_43, %c0_44] : memref<36x16x16xf32, #tpu.memory_space<vmem>>, vector<1x16x16xf32>
    %57 = vector.shape_cast %56 : vector<1x16x16xf32> to vector<16x16xf32>
    %cst_45 = arith.constant dense<0.000000e+00> : vector<16x256xf32>
    %58 = tpu.matmul %57, %55, %cst_45 {dimension_numbers = #tpu.dot_dimension_numbers<[1], [0], [0], [1], [0, 0, 1, 1], [], []>, precision = #tpu.contract_precision<fp32>} : vector<16x16xf32>, vector<16x256xf32>, vector<16x256xf32> -> vector<16x256xf32>
    %59 = arith.addf %51, %58 : vector<16x256xf32>
    %c239_i32 = arith.constant 239 : i32
    %60 = tpu.dynamic_rotate %0 by %c239_i32 dim 1 : vector<16x256xf32>, i32 -> vector<16x256xf32>
    %c8 = arith.constant 8 : index
    %c0_46 = arith.constant 0 : index
    %c0_47 = arith.constant 0 : index
    %61 = vector.load %arg2[%c8, %c0_46, %c0_47] : memref<9x16x256xf32, #tpu.memory_space<vmem>>, vector<1x16x256xf32>
    %62 = vector.shape_cast %61 : vector<1x16x256xf32> to vector<16x256xf32>
    %63 = arith.mulf %60, %62 : vector<16x256xf32>
    %c8_48 = arith.constant 8 : index
    %c0_49 = arith.constant 0 : index
    %c0_50 = arith.constant 0 : index
    %64 = vector.load %arg1[%c8_48, %c0_49, %c0_50] : memref<36x16x16xf32, #tpu.memory_space<vmem>>, vector<1x16x16xf32>
    %65 = vector.shape_cast %64 : vector<1x16x16xf32> to vector<16x16xf32>
    %cst_51 = arith.constant dense<0.000000e+00> : vector<16x256xf32>
    %66 = tpu.matmul %65, %63, %cst_51 {dimension_numbers = #tpu.dot_dimension_numbers<[1], [0], [0], [1], [0, 0, 1, 1], [], []>, precision = #tpu.contract_precision<fp32>} : vector<16x16xf32>, vector<16x256xf32>, vector<16x256xf32> -> vector<16x256xf32>
    %67 = arith.addf %59, %66 : vector<16x256xf32>
    %c0_52 = arith.constant 0 : index
    %68 = memref.load %arg3[%c0_52] : memref<4xf32, #tpu.memory_space<smem>>
    %69 = vector.broadcast %68 : f32 to vector<16x256xf32>
    %70 = arith.addf %67, %69 : vector<16x256xf32>
    %cst_53 = arith.constant 0.000000e+00 : f32
    %71 = vector.broadcast %cst_53 : f32 to vector<16x256xf32>
    %72 = arith.maximumf %70, %71 : vector<16x256xf32>
    %c17_i32_54 = arith.constant 17 : i32
    %73 = tpu.dynamic_rotate %72 by %c17_i32_54 dim 1 : vector<16x256xf32>, i32 -> vector<16x256xf32>
    %c0_55 = arith.constant 0 : index
    %c0_56 = arith.constant 0 : index
    %c0_57 = arith.constant 0 : index
    %74 = vector.load %arg2[%c0_55, %c0_56, %c0_57] : memref<9x16x256xf32, #tpu.memory_space<vmem>>, vector<1x16x256xf32>
    %75 = vector.shape_cast %74 : vector<1x16x256xf32> to vector<16x256xf32>
    %76 = arith.mulf %73, %75 : vector<16x256xf32>
    %c9 = arith.constant 9 : index
    %c0_58 = arith.constant 0 : index
    %c0_59 = arith.constant 0 : index
    %77 = vector.load %arg1[%c9, %c0_58, %c0_59] : memref<36x16x16xf32, #tpu.memory_space<vmem>>, vector<1x16x16xf32>
    %78 = vector.shape_cast %77 : vector<1x16x16xf32> to vector<16x16xf32>
    %cst_60 = arith.constant dense<0.000000e+00> : vector<16x256xf32>
    %79 = tpu.matmul %78, %76, %cst_60 {dimension_numbers = #tpu.dot_dimension_numbers<[1], [0], [0], [1], [0, 0, 1, 1], [], []>, precision = #tpu.contract_precision<fp32>} : vector<16x16xf32>, vector<16x256xf32>, vector<16x256xf32> -> vector<16x256xf32>
    %c16_i32_61 = arith.constant 16 : i32
    %80 = tpu.dynamic_rotate %72 by %c16_i32_61 dim 1 : vector<16x256xf32>, i32 -> vector<16x256xf32>
    %c1_62 = arith.constant 1 : index
    %c0_63 = arith.constant 0 : index
    %c0_64 = arith.constant 0 : index
    %81 = vector.load %arg2[%c1_62, %c0_63, %c0_64] : memref<9x16x256xf32, #tpu.memory_space<vmem>>, vector<1x16x256xf32>
    %82 = vector.shape_cast %81 : vector<1x16x256xf32> to vector<16x256xf32>
    %83 = arith.mulf %80, %82 : vector<16x256xf32>
    %c10 = arith.constant 10 : index
    %c0_65 = arith.constant 0 : index
    %c0_66 = arith.constant 0 : index
    %84 = vector.load %arg1[%c10, %c0_65, %c0_66] : memref<36x16x16xf32, #tpu.memory_space<vmem>>, vector<1x16x16xf32>
    %85 = vector.shape_cast %84 : vector<1x16x16xf32> to vector<16x16xf32>
    %cst_67 = arith.constant dense<0.000000e+00> : vector<16x256xf32>
    %86 = tpu.matmul %85, %83, %cst_67 {dimension_numbers = #tpu.dot_dimension_numbers<[1], [0], [0], [1], [0, 0, 1, 1], [], []>, precision = #tpu.contract_precision<fp32>} : vector<16x16xf32>, vector<16x256xf32>, vector<16x256xf32> -> vector<16x256xf32>
    %87 = arith.addf %79, %86 : vector<16x256xf32>
    %c15_i32_68 = arith.constant 15 : i32
    %88 = tpu.dynamic_rotate %72 by %c15_i32_68 dim 1 : vector<16x256xf32>, i32 -> vector<16x256xf32>
    %c2_69 = arith.constant 2 : index
    %c0_70 = arith.constant 0 : index
    %c0_71 = arith.constant 0 : index
    %89 = vector.load %arg2[%c2_69, %c0_70, %c0_71] : memref<9x16x256xf32, #tpu.memory_space<vmem>>, vector<1x16x256xf32>
    %90 = vector.shape_cast %89 : vector<1x16x256xf32> to vector<16x256xf32>
    %91 = arith.mulf %88, %90 : vector<16x256xf32>
    %c11 = arith.constant 11 : index
    %c0_72 = arith.constant 0 : index
    %c0_73 = arith.constant 0 : index
    %92 = vector.load %arg1[%c11, %c0_72, %c0_73] : memref<36x16x16xf32, #tpu.memory_space<vmem>>, vector<1x16x16xf32>
    %93 = vector.shape_cast %92 : vector<1x16x16xf32> to vector<16x16xf32>
    %cst_74 = arith.constant dense<0.000000e+00> : vector<16x256xf32>
    %94 = tpu.matmul %93, %91, %cst_74 {dimension_numbers = #tpu.dot_dimension_numbers<[1], [0], [0], [1], [0, 0, 1, 1], [], []>, precision = #tpu.contract_precision<fp32>} : vector<16x16xf32>, vector<16x256xf32>, vector<16x256xf32> -> vector<16x256xf32>
    %95 = arith.addf %87, %94 : vector<16x256xf32>
    %c1_i32_75 = arith.constant 1 : i32
    %96 = tpu.dynamic_rotate %72 by %c1_i32_75 dim 1 : vector<16x256xf32>, i32 -> vector<16x256xf32>
    %c3_76 = arith.constant 3 : index
    %c0_77 = arith.constant 0 : index
    %c0_78 = arith.constant 0 : index
    %97 = vector.load %arg2[%c3_76, %c0_77, %c0_78] : memref<9x16x256xf32, #tpu.memory_space<vmem>>, vector<1x16x256xf32>
    %98 = vector.shape_cast %97 : vector<1x16x256xf32> to vector<16x256xf32>
    %99 = arith.mulf %96, %98 : vector<16x256xf32>
    %c12 = arith.constant 12 : index
    %c0_79 = arith.constant 0 : index
    %c0_80 = arith.constant 0 : index
    %100 = vector.load %arg1[%c12, %c0_79, %c0_80] : memref<36x16x16xf32, #tpu.memory_space<vmem>>, vector<1x16x16xf32>
    %101 = vector.shape_cast %100 : vector<1x16x16xf32> to vector<16x16xf32>
    %cst_81 = arith.constant dense<0.000000e+00> : vector<16x256xf32>
    %102 = tpu.matmul %101, %99, %cst_81 {dimension_numbers = #tpu.dot_dimension_numbers<[1], [0], [0], [1], [0, 0, 1, 1], [], []>, precision = #tpu.contract_precision<fp32>} : vector<16x16xf32>, vector<16x256xf32>, vector<16x256xf32> -> vector<16x256xf32>
    %103 = arith.addf %95, %102 : vector<16x256xf32>
    %c13 = arith.constant 13 : index
    %c0_82 = arith.constant 0 : index
    %c0_83 = arith.constant 0 : index
    %104 = vector.load %arg1[%c13, %c0_82, %c0_83] : memref<36x16x16xf32, #tpu.memory_space<vmem>>, vector<1x16x16xf32>
    %105 = vector.shape_cast %104 : vector<1x16x16xf32> to vector<16x16xf32>
    %cst_84 = arith.constant dense<0.000000e+00> : vector<16x256xf32>
    %106 = tpu.matmul %105, %72, %cst_84 {dimension_numbers = #tpu.dot_dimension_numbers<[1], [0], [0], [1], [0, 0, 1, 1], [], []>, precision = #tpu.contract_precision<fp32>} : vector<16x16xf32>, vector<16x256xf32>, vector<16x256xf32> -> vector<16x256xf32>
    %107 = arith.addf %103, %106 : vector<16x256xf32>
    %c255_i32_85 = arith.constant 255 : i32
    %108 = tpu.dynamic_rotate %72 by %c255_i32_85 dim 1 : vector<16x256xf32>, i32 -> vector<16x256xf32>
    %c5_86 = arith.constant 5 : index
    %c0_87 = arith.constant 0 : index
    %c0_88 = arith.constant 0 : index
    %109 = vector.load %arg2[%c5_86, %c0_87, %c0_88] : memref<9x16x256xf32, #tpu.memory_space<vmem>>, vector<1x16x256xf32>
    %110 = vector.shape_cast %109 : vector<1x16x256xf32> to vector<16x256xf32>
    %111 = arith.mulf %108, %110 : vector<16x256xf32>
    %c14 = arith.constant 14 : index
    %c0_89 = arith.constant 0 : index
    %c0_90 = arith.constant 0 : index
    %112 = vector.load %arg1[%c14, %c0_89, %c0_90] : memref<36x16x16xf32, #tpu.memory_space<vmem>>, vector<1x16x16xf32>
    %113 = vector.shape_cast %112 : vector<1x16x16xf32> to vector<16x16xf32>
    %cst_91 = arith.constant dense<0.000000e+00> : vector<16x256xf32>
    %114 = tpu.matmul %113, %111, %cst_91 {dimension_numbers = #tpu.dot_dimension_numbers<[1], [0], [0], [1], [0, 0, 1, 1], [], []>, precision = #tpu.contract_precision<fp32>} : vector<16x16xf32>, vector<16x256xf32>, vector<16x256xf32> -> vector<16x256xf32>
    %115 = arith.addf %107, %114 : vector<16x256xf32>
    %c241_i32_92 = arith.constant 241 : i32
    %116 = tpu.dynamic_rotate %72 by %c241_i32_92 dim 1 : vector<16x256xf32>, i32 -> vector<16x256xf32>
    %c6_93 = arith.constant 6 : index
    %c0_94 = arith.constant 0 : index
    %c0_95 = arith.constant 0 : index
    %117 = vector.load %arg2[%c6_93, %c0_94, %c0_95] : memref<9x16x256xf32, #tpu.memory_space<vmem>>, vector<1x16x256xf32>
    %118 = vector.shape_cast %117 : vector<1x16x256xf32> to vector<16x256xf32>
    %119 = arith.mulf %116, %118 : vector<16x256xf32>
    %c15 = arith.constant 15 : index
    %c0_96 = arith.constant 0 : index
    %c0_97 = arith.constant 0 : index
    %120 = vector.load %arg1[%c15, %c0_96, %c0_97] : memref<36x16x16xf32, #tpu.memory_space<vmem>>, vector<1x16x16xf32>
    %121 = vector.shape_cast %120 : vector<1x16x16xf32> to vector<16x16xf32>
    %cst_98 = arith.constant dense<0.000000e+00> : vector<16x256xf32>
    %122 = tpu.matmul %121, %119, %cst_98 {dimension_numbers = #tpu.dot_dimension_numbers<[1], [0], [0], [1], [0, 0, 1, 1], [], []>, precision = #tpu.contract_precision<fp32>} : vector<16x16xf32>, vector<16x256xf32>, vector<16x256xf32> -> vector<16x256xf32>
    %123 = arith.addf %115, %122 : vector<16x256xf32>
    %c240_i32_99 = arith.constant 240 : i32
    %124 = tpu.dynamic_rotate %72 by %c240_i32_99 dim 1 : vector<16x256xf32>, i32 -> vector<16x256xf32>
    %c7_100 = arith.constant 7 : index
    %c0_101 = arith.constant 0 : index
    %c0_102 = arith.constant 0 : index
    %125 = vector.load %arg2[%c7_100, %c0_101, %c0_102] : memref<9x16x256xf32, #tpu.memory_space<vmem>>, vector<1x16x256xf32>
    %126 = vector.shape_cast %125 : vector<1x16x256xf32> to vector<16x256xf32>
    %127 = arith.mulf %124, %126 : vector<16x256xf32>
    %c16 = arith.constant 16 : index
    %c0_103 = arith.constant 0 : index
    %c0_104 = arith.constant 0 : index
    %128 = vector.load %arg1[%c16, %c0_103, %c0_104] : memref<36x16x16xf32, #tpu.memory_space<vmem>>, vector<1x16x16xf32>
    %129 = vector.shape_cast %128 : vector<1x16x16xf32> to vector<16x16xf32>
    %cst_105 = arith.constant dense<0.000000e+00> : vector<16x256xf32>
    %130 = tpu.matmul %129, %127, %cst_105 {dimension_numbers = #tpu.dot_dimension_numbers<[1], [0], [0], [1], [0, 0, 1, 1], [], []>, precision = #tpu.contract_precision<fp32>} : vector<16x16xf32>, vector<16x256xf32>, vector<16x256xf32> -> vector<16x256xf32>
    %131 = arith.addf %123, %130 : vector<16x256xf32>
    %c239_i32_106 = arith.constant 239 : i32
    %132 = tpu.dynamic_rotate %72 by %c239_i32_106 dim 1 : vector<16x256xf32>, i32 -> vector<16x256xf32>
    %c8_107 = arith.constant 8 : index
    %c0_108 = arith.constant 0 : index
    %c0_109 = arith.constant 0 : index
    %133 = vector.load %arg2[%c8_107, %c0_108, %c0_109] : memref<9x16x256xf32, #tpu.memory_space<vmem>>, vector<1x16x256xf32>
    %134 = vector.shape_cast %133 : vector<1x16x256xf32> to vector<16x256xf32>
    %135 = arith.mulf %132, %134 : vector<16x256xf32>
    %c17 = arith.constant 17 : index
    %c0_110 = arith.constant 0 : index
    %c0_111 = arith.constant 0 : index
    %136 = vector.load %arg1[%c17, %c0_110, %c0_111] : memref<36x16x16xf32, #tpu.memory_space<vmem>>, vector<1x16x16xf32>
    %137 = vector.shape_cast %136 : vector<1x16x16xf32> to vector<16x16xf32>
    %cst_112 = arith.constant dense<0.000000e+00> : vector<16x256xf32>
    %138 = tpu.matmul %137, %135, %cst_112 {dimension_numbers = #tpu.dot_dimension_numbers<[1], [0], [0], [1], [0, 0, 1, 1], [], []>, precision = #tpu.contract_precision<fp32>} : vector<16x16xf32>, vector<16x256xf32>, vector<16x256xf32> -> vector<16x256xf32>
    %139 = arith.addf %131, %138 : vector<16x256xf32>
    %c1_113 = arith.constant 1 : index
    %140 = memref.load %arg3[%c1_113] : memref<4xf32, #tpu.memory_space<smem>>
    %141 = vector.broadcast %140 : f32 to vector<16x256xf32>
    %142 = arith.addf %139, %141 : vector<16x256xf32>
    %cst_114 = arith.constant 0.000000e+00 : f32
    %143 = vector.broadcast %cst_114 : f32 to vector<16x256xf32>
    %144 = arith.maximumf %142, %143 : vector<16x256xf32>
    %c17_i32_115 = arith.constant 17 : i32
    %145 = tpu.dynamic_rotate %144 by %c17_i32_115 dim 1 : vector<16x256xf32>, i32 -> vector<16x256xf32>
    %c0_116 = arith.constant 0 : index
    %c0_117 = arith.constant 0 : index
    %c0_118 = arith.constant 0 : index
    %146 = vector.load %arg2[%c0_116, %c0_117, %c0_118] : memref<9x16x256xf32, #tpu.memory_space<vmem>>, vector<1x16x256xf32>
    %147 = vector.shape_cast %146 : vector<1x16x256xf32> to vector<16x256xf32>
    %148 = arith.mulf %145, %147 : vector<16x256xf32>
    %c18 = arith.constant 18 : index
    %c0_119 = arith.constant 0 : index
    %c0_120 = arith.constant 0 : index
    %149 = vector.load %arg1[%c18, %c0_119, %c0_120] : memref<36x16x16xf32, #tpu.memory_space<vmem>>, vector<1x16x16xf32>
    %150 = vector.shape_cast %149 : vector<1x16x16xf32> to vector<16x16xf32>
    %cst_121 = arith.constant dense<0.000000e+00> : vector<16x256xf32>
    %151 = tpu.matmul %150, %148, %cst_121 {dimension_numbers = #tpu.dot_dimension_numbers<[1], [0], [0], [1], [0, 0, 1, 1], [], []>, precision = #tpu.contract_precision<fp32>} : vector<16x16xf32>, vector<16x256xf32>, vector<16x256xf32> -> vector<16x256xf32>
    %c16_i32_122 = arith.constant 16 : i32
    %152 = tpu.dynamic_rotate %144 by %c16_i32_122 dim 1 : vector<16x256xf32>, i32 -> vector<16x256xf32>
    %c1_123 = arith.constant 1 : index
    %c0_124 = arith.constant 0 : index
    %c0_125 = arith.constant 0 : index
    %153 = vector.load %arg2[%c1_123, %c0_124, %c0_125] : memref<9x16x256xf32, #tpu.memory_space<vmem>>, vector<1x16x256xf32>
    %154 = vector.shape_cast %153 : vector<1x16x256xf32> to vector<16x256xf32>
    %155 = arith.mulf %152, %154 : vector<16x256xf32>
    %c19 = arith.constant 19 : index
    %c0_126 = arith.constant 0 : index
    %c0_127 = arith.constant 0 : index
    %156 = vector.load %arg1[%c19, %c0_126, %c0_127] : memref<36x16x16xf32, #tpu.memory_space<vmem>>, vector<1x16x16xf32>
    %157 = vector.shape_cast %156 : vector<1x16x16xf32> to vector<16x16xf32>
    %cst_128 = arith.constant dense<0.000000e+00> : vector<16x256xf32>
    %158 = tpu.matmul %157, %155, %cst_128 {dimension_numbers = #tpu.dot_dimension_numbers<[1], [0], [0], [1], [0, 0, 1, 1], [], []>, precision = #tpu.contract_precision<fp32>} : vector<16x16xf32>, vector<16x256xf32>, vector<16x256xf32> -> vector<16x256xf32>
    %159 = arith.addf %151, %158 : vector<16x256xf32>
    %c15_i32_129 = arith.constant 15 : i32
    %160 = tpu.dynamic_rotate %144 by %c15_i32_129 dim 1 : vector<16x256xf32>, i32 -> vector<16x256xf32>
    %c2_130 = arith.constant 2 : index
    %c0_131 = arith.constant 0 : index
    %c0_132 = arith.constant 0 : index
    %161 = vector.load %arg2[%c2_130, %c0_131, %c0_132] : memref<9x16x256xf32, #tpu.memory_space<vmem>>, vector<1x16x256xf32>
    %162 = vector.shape_cast %161 : vector<1x16x256xf32> to vector<16x256xf32>
    %163 = arith.mulf %160, %162 : vector<16x256xf32>
    %c20 = arith.constant 20 : index
    %c0_133 = arith.constant 0 : index
    %c0_134 = arith.constant 0 : index
    %164 = vector.load %arg1[%c20, %c0_133, %c0_134] : memref<36x16x16xf32, #tpu.memory_space<vmem>>, vector<1x16x16xf32>
    %165 = vector.shape_cast %164 : vector<1x16x16xf32> to vector<16x16xf32>
    %cst_135 = arith.constant dense<0.000000e+00> : vector<16x256xf32>
    %166 = tpu.matmul %165, %163, %cst_135 {dimension_numbers = #tpu.dot_dimension_numbers<[1], [0], [0], [1], [0, 0, 1, 1], [], []>, precision = #tpu.contract_precision<fp32>} : vector<16x16xf32>, vector<16x256xf32>, vector<16x256xf32> -> vector<16x256xf32>
    %167 = arith.addf %159, %166 : vector<16x256xf32>
    %c1_i32_136 = arith.constant 1 : i32
    %168 = tpu.dynamic_rotate %144 by %c1_i32_136 dim 1 : vector<16x256xf32>, i32 -> vector<16x256xf32>
    %c3_137 = arith.constant 3 : index
    %c0_138 = arith.constant 0 : index
    %c0_139 = arith.constant 0 : index
    %169 = vector.load %arg2[%c3_137, %c0_138, %c0_139] : memref<9x16x256xf32, #tpu.memory_space<vmem>>, vector<1x16x256xf32>
    %170 = vector.shape_cast %169 : vector<1x16x256xf32> to vector<16x256xf32>
    %171 = arith.mulf %168, %170 : vector<16x256xf32>
    %c21 = arith.constant 21 : index
    %c0_140 = arith.constant 0 : index
    %c0_141 = arith.constant 0 : index
    %172 = vector.load %arg1[%c21, %c0_140, %c0_141] : memref<36x16x16xf32, #tpu.memory_space<vmem>>, vector<1x16x16xf32>
    %173 = vector.shape_cast %172 : vector<1x16x16xf32> to vector<16x16xf32>
    %cst_142 = arith.constant dense<0.000000e+00> : vector<16x256xf32>
    %174 = tpu.matmul %173, %171, %cst_142 {dimension_numbers = #tpu.dot_dimension_numbers<[1], [0], [0], [1], [0, 0, 1, 1], [], []>, precision = #tpu.contract_precision<fp32>} : vector<16x16xf32>, vector<16x256xf32>, vector<16x256xf32> -> vector<16x256xf32>
    %175 = arith.addf %167, %174 : vector<16x256xf32>
    %c22 = arith.constant 22 : index
    %c0_143 = arith.constant 0 : index
    %c0_144 = arith.constant 0 : index
    %176 = vector.load %arg1[%c22, %c0_143, %c0_144] : memref<36x16x16xf32, #tpu.memory_space<vmem>>, vector<1x16x16xf32>
    %177 = vector.shape_cast %176 : vector<1x16x16xf32> to vector<16x16xf32>
    %cst_145 = arith.constant dense<0.000000e+00> : vector<16x256xf32>
    %178 = tpu.matmul %177, %144, %cst_145 {dimension_numbers = #tpu.dot_dimension_numbers<[1], [0], [0], [1], [0, 0, 1, 1], [], []>, precision = #tpu.contract_precision<fp32>} : vector<16x16xf32>, vector<16x256xf32>, vector<16x256xf32> -> vector<16x256xf32>
    %179 = arith.addf %175, %178 : vector<16x256xf32>
    %c255_i32_146 = arith.constant 255 : i32
    %180 = tpu.dynamic_rotate %144 by %c255_i32_146 dim 1 : vector<16x256xf32>, i32 -> vector<16x256xf32>
    %c5_147 = arith.constant 5 : index
    %c0_148 = arith.constant 0 : index
    %c0_149 = arith.constant 0 : index
    %181 = vector.load %arg2[%c5_147, %c0_148, %c0_149] : memref<9x16x256xf32, #tpu.memory_space<vmem>>, vector<1x16x256xf32>
    %182 = vector.shape_cast %181 : vector<1x16x256xf32> to vector<16x256xf32>
    %183 = arith.mulf %180, %182 : vector<16x256xf32>
    %c23 = arith.constant 23 : index
    %c0_150 = arith.constant 0 : index
    %c0_151 = arith.constant 0 : index
    %184 = vector.load %arg1[%c23, %c0_150, %c0_151] : memref<36x16x16xf32, #tpu.memory_space<vmem>>, vector<1x16x16xf32>
    %185 = vector.shape_cast %184 : vector<1x16x16xf32> to vector<16x16xf32>
    %cst_152 = arith.constant dense<0.000000e+00> : vector<16x256xf32>
    %186 = tpu.matmul %185, %183, %cst_152 {dimension_numbers = #tpu.dot_dimension_numbers<[1], [0], [0], [1], [0, 0, 1, 1], [], []>, precision = #tpu.contract_precision<fp32>} : vector<16x16xf32>, vector<16x256xf32>, vector<16x256xf32> -> vector<16x256xf32>
    %187 = arith.addf %179, %186 : vector<16x256xf32>
    %c241_i32_153 = arith.constant 241 : i32
    %188 = tpu.dynamic_rotate %144 by %c241_i32_153 dim 1 : vector<16x256xf32>, i32 -> vector<16x256xf32>
    %c6_154 = arith.constant 6 : index
    %c0_155 = arith.constant 0 : index
    %c0_156 = arith.constant 0 : index
    %189 = vector.load %arg2[%c6_154, %c0_155, %c0_156] : memref<9x16x256xf32, #tpu.memory_space<vmem>>, vector<1x16x256xf32>
    %190 = vector.shape_cast %189 : vector<1x16x256xf32> to vector<16x256xf32>
    %191 = arith.mulf %188, %190 : vector<16x256xf32>
    %c24 = arith.constant 24 : index
    %c0_157 = arith.constant 0 : index
    %c0_158 = arith.constant 0 : index
    %192 = vector.load %arg1[%c24, %c0_157, %c0_158] : memref<36x16x16xf32, #tpu.memory_space<vmem>>, vector<1x16x16xf32>
    %193 = vector.shape_cast %192 : vector<1x16x16xf32> to vector<16x16xf32>
    %cst_159 = arith.constant dense<0.000000e+00> : vector<16x256xf32>
    %194 = tpu.matmul %193, %191, %cst_159 {dimension_numbers = #tpu.dot_dimension_numbers<[1], [0], [0], [1], [0, 0, 1, 1], [], []>, precision = #tpu.contract_precision<fp32>} : vector<16x16xf32>, vector<16x256xf32>, vector<16x256xf32> -> vector<16x256xf32>
    %195 = arith.addf %187, %194 : vector<16x256xf32>
    %c240_i32_160 = arith.constant 240 : i32
    %196 = tpu.dynamic_rotate %144 by %c240_i32_160 dim 1 : vector<16x256xf32>, i32 -> vector<16x256xf32>
    %c7_161 = arith.constant 7 : index
    %c0_162 = arith.constant 0 : index
    %c0_163 = arith.constant 0 : index
    %197 = vector.load %arg2[%c7_161, %c0_162, %c0_163] : memref<9x16x256xf32, #tpu.memory_space<vmem>>, vector<1x16x256xf32>
    %198 = vector.shape_cast %197 : vector<1x16x256xf32> to vector<16x256xf32>
    %199 = arith.mulf %196, %198 : vector<16x256xf32>
    %c25 = arith.constant 25 : index
    %c0_164 = arith.constant 0 : index
    %c0_165 = arith.constant 0 : index
    %200 = vector.load %arg1[%c25, %c0_164, %c0_165] : memref<36x16x16xf32, #tpu.memory_space<vmem>>, vector<1x16x16xf32>
    %201 = vector.shape_cast %200 : vector<1x16x16xf32> to vector<16x16xf32>
    %cst_166 = arith.constant dense<0.000000e+00> : vector<16x256xf32>
    %202 = tpu.matmul %201, %199, %cst_166 {dimension_numbers = #tpu.dot_dimension_numbers<[1], [0], [0], [1], [0, 0, 1, 1], [], []>, precision = #tpu.contract_precision<fp32>} : vector<16x16xf32>, vector<16x256xf32>, vector<16x256xf32> -> vector<16x256xf32>
    %203 = arith.addf %195, %202 : vector<16x256xf32>
    %c239_i32_167 = arith.constant 239 : i32
    %204 = tpu.dynamic_rotate %144 by %c239_i32_167 dim 1 : vector<16x256xf32>, i32 -> vector<16x256xf32>
    %c8_168 = arith.constant 8 : index
    %c0_169 = arith.constant 0 : index
    %c0_170 = arith.constant 0 : index
    %205 = vector.load %arg2[%c8_168, %c0_169, %c0_170] : memref<9x16x256xf32, #tpu.memory_space<vmem>>, vector<1x16x256xf32>
    %206 = vector.shape_cast %205 : vector<1x16x256xf32> to vector<16x256xf32>
    %207 = arith.mulf %204, %206 : vector<16x256xf32>
    %c26 = arith.constant 26 : index
    %c0_171 = arith.constant 0 : index
    %c0_172 = arith.constant 0 : index
    %208 = vector.load %arg1[%c26, %c0_171, %c0_172] : memref<36x16x16xf32, #tpu.memory_space<vmem>>, vector<1x16x16xf32>
    %209 = vector.shape_cast %208 : vector<1x16x16xf32> to vector<16x16xf32>
    %cst_173 = arith.constant dense<0.000000e+00> : vector<16x256xf32>
    %210 = tpu.matmul %209, %207, %cst_173 {dimension_numbers = #tpu.dot_dimension_numbers<[1], [0], [0], [1], [0, 0, 1, 1], [], []>, precision = #tpu.contract_precision<fp32>} : vector<16x16xf32>, vector<16x256xf32>, vector<16x256xf32> -> vector<16x256xf32>
    %211 = arith.addf %203, %210 : vector<16x256xf32>
    %c2_174 = arith.constant 2 : index
    %212 = memref.load %arg3[%c2_174] : memref<4xf32, #tpu.memory_space<smem>>
    %213 = vector.broadcast %212 : f32 to vector<16x256xf32>
    %214 = arith.addf %211, %213 : vector<16x256xf32>
    %cst_175 = arith.constant 0.000000e+00 : f32
    %215 = vector.broadcast %cst_175 : f32 to vector<16x256xf32>
    %216 = arith.maximumf %214, %215 : vector<16x256xf32>
    %217 = arith.addf %144, %216 : vector<16x256xf32>
    %c17_i32_176 = arith.constant 17 : i32
    %218 = tpu.dynamic_rotate %217 by %c17_i32_176 dim 1 : vector<16x256xf32>, i32 -> vector<16x256xf32>
    %c0_177 = arith.constant 0 : index
    %c0_178 = arith.constant 0 : index
    %c0_179 = arith.constant 0 : index
    %219 = vector.load %arg2[%c0_177, %c0_178, %c0_179] : memref<9x16x256xf32, #tpu.memory_space<vmem>>, vector<1x16x256xf32>
    %220 = vector.shape_cast %219 : vector<1x16x256xf32> to vector<16x256xf32>
    %221 = arith.mulf %218, %220 : vector<16x256xf32>
    %c27 = arith.constant 27 : index
    %c0_180 = arith.constant 0 : index
    %c0_181 = arith.constant 0 : index
    %222 = vector.load %arg1[%c27, %c0_180, %c0_181] : memref<36x16x16xf32, #tpu.memory_space<vmem>>, vector<1x16x16xf32>
    %223 = vector.shape_cast %222 : vector<1x16x16xf32> to vector<16x16xf32>
    %cst_182 = arith.constant dense<0.000000e+00> : vector<16x256xf32>
    %224 = tpu.matmul %223, %221, %cst_182 {dimension_numbers = #tpu.dot_dimension_numbers<[1], [0], [0], [1], [0, 0, 1, 1], [], []>, precision = #tpu.contract_precision<fp32>} : vector<16x16xf32>, vector<16x256xf32>, vector<16x256xf32> -> vector<16x256xf32>
    %c16_i32_183 = arith.constant 16 : i32
    %225 = tpu.dynamic_rotate %217 by %c16_i32_183 dim 1 : vector<16x256xf32>, i32 -> vector<16x256xf32>
    %c1_184 = arith.constant 1 : index
    %c0_185 = arith.constant 0 : index
    %c0_186 = arith.constant 0 : index
    %226 = vector.load %arg2[%c1_184, %c0_185, %c0_186] : memref<9x16x256xf32, #tpu.memory_space<vmem>>, vector<1x16x256xf32>
    %227 = vector.shape_cast %226 : vector<1x16x256xf32> to vector<16x256xf32>
    %228 = arith.mulf %225, %227 : vector<16x256xf32>
    %c28 = arith.constant 28 : index
    %c0_187 = arith.constant 0 : index
    %c0_188 = arith.constant 0 : index
    %229 = vector.load %arg1[%c28, %c0_187, %c0_188] : memref<36x16x16xf32, #tpu.memory_space<vmem>>, vector<1x16x16xf32>
    %230 = vector.shape_cast %229 : vector<1x16x16xf32> to vector<16x16xf32>
    %cst_189 = arith.constant dense<0.000000e+00> : vector<16x256xf32>
    %231 = tpu.matmul %230, %228, %cst_189 {dimension_numbers = #tpu.dot_dimension_numbers<[1], [0], [0], [1], [0, 0, 1, 1], [], []>, precision = #tpu.contract_precision<fp32>} : vector<16x16xf32>, vector<16x256xf32>, vector<16x256xf32> -> vector<16x256xf32>
    %232 = arith.addf %224, %231 : vector<16x256xf32>
    %c15_i32_190 = arith.constant 15 : i32
    %233 = tpu.dynamic_rotate %217 by %c15_i32_190 dim 1 : vector<16x256xf32>, i32 -> vector<16x256xf32>
    %c2_191 = arith.constant 2 : index
    %c0_192 = arith.constant 0 : index
    %c0_193 = arith.constant 0 : index
    %234 = vector.load %arg2[%c2_191, %c0_192, %c0_193] : memref<9x16x256xf32, #tpu.memory_space<vmem>>, vector<1x16x256xf32>
    %235 = vector.shape_cast %234 : vector<1x16x256xf32> to vector<16x256xf32>
    %236 = arith.mulf %233, %235 : vector<16x256xf32>
    %c29 = arith.constant 29 : index
    %c0_194 = arith.constant 0 : index
    %c0_195 = arith.constant 0 : index
    %237 = vector.load %arg1[%c29, %c0_194, %c0_195] : memref<36x16x16xf32, #tpu.memory_space<vmem>>, vector<1x16x16xf32>
    %238 = vector.shape_cast %237 : vector<1x16x16xf32> to vector<16x16xf32>
    %cst_196 = arith.constant dense<0.000000e+00> : vector<16x256xf32>
    %239 = tpu.matmul %238, %236, %cst_196 {dimension_numbers = #tpu.dot_dimension_numbers<[1], [0], [0], [1], [0, 0, 1, 1], [], []>, precision = #tpu.contract_precision<fp32>} : vector<16x16xf32>, vector<16x256xf32>, vector<16x256xf32> -> vector<16x256xf32>
    %240 = arith.addf %232, %239 : vector<16x256xf32>
    %c1_i32_197 = arith.constant 1 : i32
    %241 = tpu.dynamic_rotate %217 by %c1_i32_197 dim 1 : vector<16x256xf32>, i32 -> vector<16x256xf32>
    %c3_198 = arith.constant 3 : index
    %c0_199 = arith.constant 0 : index
    %c0_200 = arith.constant 0 : index
    %242 = vector.load %arg2[%c3_198, %c0_199, %c0_200] : memref<9x16x256xf32, #tpu.memory_space<vmem>>, vector<1x16x256xf32>
    %243 = vector.shape_cast %242 : vector<1x16x256xf32> to vector<16x256xf32>
    %244 = arith.mulf %241, %243 : vector<16x256xf32>
    %c30 = arith.constant 30 : index
    %c0_201 = arith.constant 0 : index
    %c0_202 = arith.constant 0 : index
    %245 = vector.load %arg1[%c30, %c0_201, %c0_202] : memref<36x16x16xf32, #tpu.memory_space<vmem>>, vector<1x16x16xf32>
    %246 = vector.shape_cast %245 : vector<1x16x16xf32> to vector<16x16xf32>
    %cst_203 = arith.constant dense<0.000000e+00> : vector<16x256xf32>
    %247 = tpu.matmul %246, %244, %cst_203 {dimension_numbers = #tpu.dot_dimension_numbers<[1], [0], [0], [1], [0, 0, 1, 1], [], []>, precision = #tpu.contract_precision<fp32>} : vector<16x16xf32>, vector<16x256xf32>, vector<16x256xf32> -> vector<16x256xf32>
    %248 = arith.addf %240, %247 : vector<16x256xf32>
    %c31 = arith.constant 31 : index
    %c0_204 = arith.constant 0 : index
    %c0_205 = arith.constant 0 : index
    %249 = vector.load %arg1[%c31, %c0_204, %c0_205] : memref<36x16x16xf32, #tpu.memory_space<vmem>>, vector<1x16x16xf32>
    %250 = vector.shape_cast %249 : vector<1x16x16xf32> to vector<16x16xf32>
    %cst_206 = arith.constant dense<0.000000e+00> : vector<16x256xf32>
    %251 = tpu.matmul %250, %217, %cst_206 {dimension_numbers = #tpu.dot_dimension_numbers<[1], [0], [0], [1], [0, 0, 1, 1], [], []>, precision = #tpu.contract_precision<fp32>} : vector<16x16xf32>, vector<16x256xf32>, vector<16x256xf32> -> vector<16x256xf32>
    %252 = arith.addf %248, %251 : vector<16x256xf32>
    %c255_i32_207 = arith.constant 255 : i32
    %253 = tpu.dynamic_rotate %217 by %c255_i32_207 dim 1 : vector<16x256xf32>, i32 -> vector<16x256xf32>
    %c5_208 = arith.constant 5 : index
    %c0_209 = arith.constant 0 : index
    %c0_210 = arith.constant 0 : index
    %254 = vector.load %arg2[%c5_208, %c0_209, %c0_210] : memref<9x16x256xf32, #tpu.memory_space<vmem>>, vector<1x16x256xf32>
    %255 = vector.shape_cast %254 : vector<1x16x256xf32> to vector<16x256xf32>
    %256 = arith.mulf %253, %255 : vector<16x256xf32>
    %c32 = arith.constant 32 : index
    %c0_211 = arith.constant 0 : index
    %c0_212 = arith.constant 0 : index
    %257 = vector.load %arg1[%c32, %c0_211, %c0_212] : memref<36x16x16xf32, #tpu.memory_space<vmem>>, vector<1x16x16xf32>
    %258 = vector.shape_cast %257 : vector<1x16x16xf32> to vector<16x16xf32>
    %cst_213 = arith.constant dense<0.000000e+00> : vector<16x256xf32>
    %259 = tpu.matmul %258, %256, %cst_213 {dimension_numbers = #tpu.dot_dimension_numbers<[1], [0], [0], [1], [0, 0, 1, 1], [], []>, precision = #tpu.contract_precision<fp32>} : vector<16x16xf32>, vector<16x256xf32>, vector<16x256xf32> -> vector<16x256xf32>
    %260 = arith.addf %252, %259 : vector<16x256xf32>
    %c241_i32_214 = arith.constant 241 : i32
    %261 = tpu.dynamic_rotate %217 by %c241_i32_214 dim 1 : vector<16x256xf32>, i32 -> vector<16x256xf32>
    %c6_215 = arith.constant 6 : index
    %c0_216 = arith.constant 0 : index
    %c0_217 = arith.constant 0 : index
    %262 = vector.load %arg2[%c6_215, %c0_216, %c0_217] : memref<9x16x256xf32, #tpu.memory_space<vmem>>, vector<1x16x256xf32>
    %263 = vector.shape_cast %262 : vector<1x16x256xf32> to vector<16x256xf32>
    %264 = arith.mulf %261, %263 : vector<16x256xf32>
    %c33 = arith.constant 33 : index
    %c0_218 = arith.constant 0 : index
    %c0_219 = arith.constant 0 : index
    %265 = vector.load %arg1[%c33, %c0_218, %c0_219] : memref<36x16x16xf32, #tpu.memory_space<vmem>>, vector<1x16x16xf32>
    %266 = vector.shape_cast %265 : vector<1x16x16xf32> to vector<16x16xf32>
    %cst_220 = arith.constant dense<0.000000e+00> : vector<16x256xf32>
    %267 = tpu.matmul %266, %264, %cst_220 {dimension_numbers = #tpu.dot_dimension_numbers<[1], [0], [0], [1], [0, 0, 1, 1], [], []>, precision = #tpu.contract_precision<fp32>} : vector<16x16xf32>, vector<16x256xf32>, vector<16x256xf32> -> vector<16x256xf32>
    %268 = arith.addf %260, %267 : vector<16x256xf32>
    %c240_i32_221 = arith.constant 240 : i32
    %269 = tpu.dynamic_rotate %217 by %c240_i32_221 dim 1 : vector<16x256xf32>, i32 -> vector<16x256xf32>
    %c7_222 = arith.constant 7 : index
    %c0_223 = arith.constant 0 : index
    %c0_224 = arith.constant 0 : index
    %270 = vector.load %arg2[%c7_222, %c0_223, %c0_224] : memref<9x16x256xf32, #tpu.memory_space<vmem>>, vector<1x16x256xf32>
    %271 = vector.shape_cast %270 : vector<1x16x256xf32> to vector<16x256xf32>
    %272 = arith.mulf %269, %271 : vector<16x256xf32>
    %c34 = arith.constant 34 : index
    %c0_225 = arith.constant 0 : index
    %c0_226 = arith.constant 0 : index
    %273 = vector.load %arg1[%c34, %c0_225, %c0_226] : memref<36x16x16xf32, #tpu.memory_space<vmem>>, vector<1x16x16xf32>
    %274 = vector.shape_cast %273 : vector<1x16x16xf32> to vector<16x16xf32>
    %cst_227 = arith.constant dense<0.000000e+00> : vector<16x256xf32>
    %275 = tpu.matmul %274, %272, %cst_227 {dimension_numbers = #tpu.dot_dimension_numbers<[1], [0], [0], [1], [0, 0, 1, 1], [], []>, precision = #tpu.contract_precision<fp32>} : vector<16x16xf32>, vector<16x256xf32>, vector<16x256xf32> -> vector<16x256xf32>
    %276 = arith.addf %268, %275 : vector<16x256xf32>
    %c239_i32_228 = arith.constant 239 : i32
    %277 = tpu.dynamic_rotate %217 by %c239_i32_228 dim 1 : vector<16x256xf32>, i32 -> vector<16x256xf32>
    %c8_229 = arith.constant 8 : index
    %c0_230 = arith.constant 0 : index
    %c0_231 = arith.constant 0 : index
    %278 = vector.load %arg2[%c8_229, %c0_230, %c0_231] : memref<9x16x256xf32, #tpu.memory_space<vmem>>, vector<1x16x256xf32>
    %279 = vector.shape_cast %278 : vector<1x16x256xf32> to vector<16x256xf32>
    %280 = arith.mulf %277, %279 : vector<16x256xf32>
    %c35 = arith.constant 35 : index
    %c0_232 = arith.constant 0 : index
    %c0_233 = arith.constant 0 : index
    %281 = vector.load %arg1[%c35, %c0_232, %c0_233] : memref<36x16x16xf32, #tpu.memory_space<vmem>>, vector<1x16x16xf32>
    %282 = vector.shape_cast %281 : vector<1x16x16xf32> to vector<16x16xf32>
    %cst_234 = arith.constant dense<0.000000e+00> : vector<16x256xf32>
    %283 = tpu.matmul %282, %280, %cst_234 {dimension_numbers = #tpu.dot_dimension_numbers<[1], [0], [0], [1], [0, 0, 1, 1], [], []>, precision = #tpu.contract_precision<fp32>} : vector<16x16xf32>, vector<16x256xf32>, vector<16x256xf32> -> vector<16x256xf32>
    %284 = arith.addf %276, %283 : vector<16x256xf32>
    %c3_235 = arith.constant 3 : index
    %285 = memref.load %arg3[%c3_235] : memref<4xf32, #tpu.memory_space<smem>>
    %286 = vector.broadcast %285 : f32 to vector<16x256xf32>
    %287 = arith.addf %284, %286 : vector<16x256xf32>
    %cst_236 = arith.constant 0.000000e+00 : f32
    %288 = vector.broadcast %cst_236 : f32 to vector<16x256xf32>
    %289 = arith.maximumf %287, %288 : vector<16x256xf32>
    %290 = arith.addf %217, %289 : vector<16x256xf32>
    %c255_i32_237 = arith.constant 255 : i32
    %291 = tpu.dynamic_rotate %290 by %c255_i32_237 dim 1 : vector<16x256xf32>, i32 -> vector<16x256xf32>
    %292 = arith.maximumf %290, %291 : vector<16x256xf32>
    %c240_i32_238 = arith.constant 240 : i32
    %293 = tpu.dynamic_rotate %292 by %c240_i32_238 dim 1 : vector<16x256xf32>, i32 -> vector<16x256xf32>
    %294 = arith.maximumf %292, %293 : vector<16x256xf32>
    %c15_i32_239 = arith.constant 15 : i32
    %295 = tpu.dynamic_rotate %294 by %c15_i32_239 dim 0 : vector<16x256xf32>, i32 -> vector<16x256xf32>
    %296 = arith.maximumf %294, %295 : vector<16x256xf32>
    %cst_240 = arith.constant 0.000000e+00 : f32
    %297 = vector.broadcast %cst_240 : f32 to vector<16x256xf32>
    %298 = arith.maximumf %296, %297 : vector<16x256xf32>
    %c0_241 = arith.constant 0 : index
    %299 = memref.load %arg5[%c0_241] : memref<3xf32, #tpu.memory_space<smem>>
    %c0_242 = arith.constant 0 : index
    %c0_243 = arith.constant 0 : index
    %c0_244 = arith.constant 0 : index
    %300 = vector.load %arg4[%c0_242, %c0_243, %c0_244] : memref<3x16x256xf32, #tpu.memory_space<vmem>>, vector<1x16x256xf32>
    %301 = vector.shape_cast %300 : vector<1x16x256xf32> to vector<16x256xf32>
    %302 = arith.mulf %301, %298 : vector<16x256xf32>
    %303 = vector.shape_cast %302 : vector<16x256xf32> to vector<1x16x256xf32>
    %cst_245 = arith.constant dense<0.000000e+00> : vector<1xf32>
    %304 = vector.multi_reduction <add>, %303, %cst_245 [1, 2] : vector<1x16x256xf32> to vector<1xf32>
    %305 = vector.shape_cast %304 : vector<1xf32> to vector<1x1x1xf32>
    %306 = vector.extract %305[0, 0, 0] : f32 from vector<1x1x1xf32>
    %307 = arith.addf %299, %306 : f32
    %c0_246 = arith.constant 0 : index
    %c0_247 = arith.constant 0 : index
    %308 = memref.load %arg6[%c0_246, %c0_247] : memref<1x3xf32, #tpu.memory_space<smem>>
    memref.store %307, %arg6[%c0_246, %c0_247] : memref<1x3xf32, #tpu.memory_space<smem>>
    %c1_248 = arith.constant 1 : index
    %309 = memref.load %arg5[%c1_248] : memref<3xf32, #tpu.memory_space<smem>>
    %c1_249 = arith.constant 1 : index
    %c0_250 = arith.constant 0 : index
    %c0_251 = arith.constant 0 : index
    %310 = vector.load %arg4[%c1_249, %c0_250, %c0_251] : memref<3x16x256xf32, #tpu.memory_space<vmem>>, vector<1x16x256xf32>
    %311 = vector.shape_cast %310 : vector<1x16x256xf32> to vector<16x256xf32>
    %312 = arith.mulf %311, %298 : vector<16x256xf32>
    %313 = vector.shape_cast %312 : vector<16x256xf32> to vector<1x16x256xf32>
    %cst_252 = arith.constant dense<0.000000e+00> : vector<1xf32>
    %314 = vector.multi_reduction <add>, %313, %cst_252 [1, 2] : vector<1x16x256xf32> to vector<1xf32>
    %315 = vector.shape_cast %314 : vector<1xf32> to vector<1x1x1xf32>
    %316 = vector.extract %315[0, 0, 0] : f32 from vector<1x1x1xf32>
    %317 = arith.addf %309, %316 : f32
    %c0_253 = arith.constant 0 : index
    %c1_254 = arith.constant 1 : index
    %318 = memref.load %arg6[%c0_253, %c1_254] : memref<1x3xf32, #tpu.memory_space<smem>>
    memref.store %317, %arg6[%c0_253, %c1_254] : memref<1x3xf32, #tpu.memory_space<smem>>
    %c2_255 = arith.constant 2 : index
    %319 = memref.load %arg5[%c2_255] : memref<3xf32, #tpu.memory_space<smem>>
    %c2_256 = arith.constant 2 : index
    %c0_257 = arith.constant 0 : index
    %c0_258 = arith.constant 0 : index
    %320 = vector.load %arg4[%c2_256, %c0_257, %c0_258] : memref<3x16x256xf32, #tpu.memory_space<vmem>>, vector<1x16x256xf32>
    %321 = vector.shape_cast %320 : vector<1x16x256xf32> to vector<16x256xf32>
    %322 = arith.mulf %321, %298 : vector<16x256xf32>
    %323 = vector.shape_cast %322 : vector<16x256xf32> to vector<1x16x256xf32>
    %cst_259 = arith.constant dense<0.000000e+00> : vector<1xf32>
    %324 = vector.multi_reduction <add>, %323, %cst_259 [1, 2] : vector<1x16x256xf32> to vector<1xf32>
    %325 = vector.shape_cast %324 : vector<1xf32> to vector<1x1x1xf32>
    %326 = vector.extract %325[0, 0, 0] : f32 from vector<1x1x1xf32>
    %327 = arith.addf %319, %326 : f32
    %c0_260 = arith.constant 0 : index
    %c2_261 = arith.constant 2 : index
    %328 = memref.load %arg6[%c0_260, %c2_261] : memref<1x3xf32, #tpu.memory_space<smem>>
    memref.store %327, %arg6[%c0_260, %c2_261] : memref<1x3xf32, #tpu.memory_space<smem>>
    return
  }
}

</mosaic_0001>

<bundles_post_ra>
// kernel: forward.1
= control target key start
LH: loop header
LB: loop body
LE: loop exit
PB: predicated region body
PF: predicated region fallthrough
CT: control target
= control target key end

     0   :  { %11 = vsyncpa [#allocation4], 0  ;;  %s26964_s0 = inlined_call_operand.vmem [shape: f32[16,256], index: 0, kind: input, shape index: {}]   ;;  %s26965_s1 = inlined_call_operand.vmem [shape: f32[36,16,16], index: 1, kind: input, shape index: {}]   ;;  %s26966_s2 = inlined_call_operand.vmem [shape: f32[9,16,256], index: 2, kind: input, shape index: {}]   ;;  %s26967_s3 = inlined_call_operand.vmem [shape: f32[4], index: 3, kind: input, shape index: {}]   ;;  %s26968_s4 = inlined_call_operand.vmem [shape: f32[3,16,256], index: 4, kind: input, shape index: {}]   ;;  %s26969_s5 = inlined_call_operand.vmem [shape: f32[3], index: 5, kind: input, shape index: {}]   ;;  %s26970_s6 = inlined_call_operand.hbm [shape: f32[1,3], index: 6, kind: output, shape index: {}]  }
   0x1   :  { %12 = vsyncpa [#allocation6], 0 }
   0x2   :  { %13 = vsyncpa [#allocation3], 0  ;;  %s26_s23 = sshll.u32 %s26967_s3, 4  ;;  %s38_s26 = sshll.u32 %s26969_s5, 4  ;;  %s27_s23 = int_to_ptr.vmem [resolvable:$true] %s26_s23  ;;  %s39_s26 = int_to_ptr.vmem [resolvable:$true] %s38_s26 }
   0x3   :  { %s20903_s27 = scalar_lea.vmem %s27_s23, 16  ;;  %p20908_p1 = scmp.lt.s32.totalorder %s27_s23, %s27_s23 }
   0x4   :  { %p20904_p0 = scmp.ne.s32.totalorder %s27_s23, %s20903_s27  ;;  %p20909_p2 = scmp.lt.s32.totalorder %s20903_s27, %s20903_s27 }
   0x6   :  { %p20910_p3 = por %p20909_p2, %p20908_p1 }
   0x8   :  { %p20911_p4 = pnand %p20910_p3, %p20904_p0 }
   0xa   :  { %20914 = shalt.err (!%p20911_p4)
}
   0xb   :  { %s20941_s28 = smov [#allocation2]   ;;  %s20915_s29 = scalar_lea.vmem %s39_s26, 16 }
   0xc   :  { %29 = dma.vmem_to_smem %s27_s23, 16, %s20941_s28, [#allocation4]  }
   0xd   :  { %p20916_p5 = scmp.ne.s32.totalorder %s39_s26, %s20915_s29  ;;  %p20920_p6 = scmp.lt.s32.totalorder %s39_s26, %s39_s26 }
   0xe   :  { %p20921_p7 = scmp.lt.s32.totalorder %s20915_s29, %s20915_s29 }
  0x10   :  { %p20922_p8 = por %p20921_p7, %p20920_p6 }
  0x12   :  { %p20923_p9 = pnand %p20922_p8, %p20916_p5 }
  0x14   :  { %20926 = shalt.err (!%p20923_p9)
}
  0x15   :  { %s20942_s3 = smov [#allocation5]  }
  0x16   :  { %41 = dma.vmem_to_smem %s39_s26, 16, %s20942_s3, [#allocation6]  }
  0x17   :  { %20935 = dma.done.wait [#allocation4], 16  }
  0x18   :  { %20936 = vsyncadd [#allocation4], 4294967280 }
  0x19   :  { %20937 = dma.done.wait [#allocation6], 16  }
  0x1a   :  { %20938 = vsyncadd [#allocation6], 4294967280 }
  0x1b   :  { %48 = sfence }
  0x1c   :  { %v20997_v0 = vld [vmem:[%s26964_s0 + $0x10] sm:$0xff]  ;;  %v21002_v1 = vld [vmem:[%s26964_s0] sm:$0xff]  ;;  %s20943_s9 = smov 16   ;;  %v21011_v2 = vld [vmem:[%s26964_s0 + $0x18] sm:$0xff]  ;;  %v26972_v4 = vmov 0.0   ;;  %s20945_s14 = smov 17   ;;  %v26971_v10 = vlaneseq }
  0x1d   :  { %80 = vrot.lane.b32.xlu0 %v20997_v0, %s20943_s9  ;;  %78 = vrot.lane.b32.xlu1 %v21002_v1, %s20943_s9  ;;  %v21016_v3 = vld [vmem:[%s26964_s0 + $0x8] sm:$0xff]  ;;  %s20946_s0 = smov 15   ;;  %s20947_s15 = smov 1   ;;  %v20682_v5 = vld [vmem:[%s26965_s1 + $0x10] sm:$0xff]  ;;  %vm103_vm0 = vcmask 130048  }
  0x1e   :  { %178 = vmatprep.mubr.f32.mxu0 %v26972_v4  ;;  %285 = vmatprep.mubr.f32.mxu1 %v26972_v4  ;;  %s20948_s16 = smov 127   ;;  %s20949_s17 = smov 113   ;;  %v105_v6 = vsel %vm103_vm0, %v20682_v5, 0  ;;  %v20683_v7 = vld [vmem:[%s26965_s1 + $0x18] sm:$0xff]  ;;  %v21096_v13 = vand.u32 127, %v26971_v10  ;;  %v20680_v18 = vld [vmem:[%s26966_s2 + $0x30] sm:$0xff] }
  0x1f   :  { %s20950_s18 = smov 112   ;;  %s20951_s19 = smov 111   ;;  %v21087_v8 = vand.u32 4294901760, %v105_v6  ;;  %v108_v9 = vsel %vm103_vm0, %v20683_v7, 0  ;;  %v20681_v19 = vld [vmem:[%s26966_s2 + $0x38] sm:$0xff]  ;;  %v20678_v20 = vld [vmem:[%s26966_s2 + $0x20] sm:$0xff] }
  0x20   :  { %v21093_v12 = vand.u32 4294901760, %v108_v9  ;;  %26989 = vst [vmem:[#allocation11_spill] sm:$0xff] %v21096_v13  ;;  %vm86_vm1 = vcmp.lt.s32.totalorder %v21096_v13, 16  ;;  %v20679_v21 = vld [vmem:[%s26966_s2 + $0x28] sm:$0xff]  ;;  %vm63_vm2 = vcmp.lt.s32.totalorder %v21096_v13, 17  ;;  %v71_v47 = vld [vmem:[%s26966_s2 + $0x18] sm:$0xff] }
  0x21   :  { %84 = vrot.lane.b32.xlu0 %v21011_v2, %s20943_s9  ;;  %82 = vrot.lane.b32.xlu1 %v21016_v3, %s20943_s9  ;;  %v21091_v11 = vsub.f32 %v105_v6, %v21087_v8  ;;  %v76_v60 = vld [vmem:[%s26965_s1] sm:$0xff]  ;;  %v69_v63 = vld [vmem:[%s26966_s2 + $0x8] sm:$0xff]  ;;  %vm1204_vm3 = vcmp.lt.s32.totalorder %v21096_v13, 15  ;;  %vm1779_vm4 = vcmp.lt.s32.totalorder %v21096_v13, 1  ;;  %vm2907_vm5 = vcmp.lt.s32.totalorder %v21096_v13, 127  ;;  %s5199_s25 = sld [smem:[#allocation2]] }
  0x22   :  { %v21100_v17 = vsub.f32 %v108_v9, %v21093_v12  ;;  %v70_v6 = vld [vmem:[%s26966_s2 + $0x10] sm:$0xff]  ;;  %v68_v9 = vld [vmem:[%s26966_s2] sm:$0xff]  ;;  %vm3482_vm6 = vcmp.lt.s32.totalorder %v21096_v13, 113  ;;  %vm4057_vm7 = vcmp.lt.s32.totalorder %v21096_v13, 112  ;;  %vm4632_vm8 = vcmp.lt.s32.totalorder %v21096_v13, 111  ;;  %s20740_s5 = sld [smem:[#allocation2 + $0x1]] }
  0x23   :  { %v181_v16 = vand.u32 4294901760, %v21091_v11  ;;  %s20759_s12 = sld [smem:[#allocation2 + $0x2]] }
  0x24   :  { %v192_v25 = vand.u32 4294901760, %v21100_v17  ;;  %s20779_s8 = sld [smem:[#allocation5 + $0x1]] }
  0x25   :  { %55 = vrot.lane.b32.xlu0 %v20997_v0, %s20945_s14  ;;  %59 = vrot.lane.b32.xlu1 %v21011_v2, %s20945_s14  ;;  %v182_v24 = vsub.f32 %v21091_v11, %v181_v16  ;;  %s20784_s10 = sld [smem:[#allocation5 + $0x2]] }
  0x26   :  { %v193_v41 = vsub.f32 %v21100_v17, %v192_v25 }
  0x27   :  { %v183_v40 = vand.u32 4294901760, %v182_v24 }
  0x28   :  { %v194_v55 = vand.u32 4294901760, %v193_v41 }
  0x29   :  { %53 = vrot.lane.b32.xlu0 %v21002_v1, %s20945_s14  ;;  %57 = vrot.lane.b32.xlu1 %v21016_v3, %s20945_s14 }
  0x2d   :  { %1198 = vrot.lane.b32.xlu0 %v20997_v0, %s20946_s0  ;;  %1202 = vrot.lane.b32.xlu1 %v21011_v2, %s20946_s0 }
  0x31   :  { %1196 = vrot.lane.b32.xlu0 %v21002_v1, %s20946_s0  ;;  %1200 = vrot.lane.b32.xlu1 %v21016_v3, %s20946_s0 }
  0x35   :  { %1773 = vrot.lane.b32.xlu0 %v20997_v0, %s20947_s15  ;;  %1777 = vrot.lane.b32.xlu1 %v21011_v2, %s20947_s15 }
  0x39   :  { %1771 = vrot.lane.b32.xlu0 %v21002_v1, %s20947_s15  ;;  %1775 = vrot.lane.b32.xlu1 %v21016_v3, %s20947_s15 }
  0x3d   :  { %2901 = vrot.lane.b32.xlu0 %v20997_v0, %s20948_s16  ;;  %2905 = vrot.lane.b32.xlu1 %v21011_v2, %s20948_s16 }
  0x41   :  { %2899 = vrot.lane.b32.xlu0 %v21002_v1, %s20948_s16  ;;  %2903 = vrot.lane.b32.xlu1 %v21016_v3, %s20948_s16 }
  0x45   :  { %3476 = vrot.lane.b32.xlu0 %v20997_v0, %s20949_s17  ;;  %3480 = vrot.lane.b32.xlu1 %v21011_v2, %s20949_s17 }
  0x49   :  { %3474 = vrot.lane.b32.xlu0 %v21002_v1, %s20949_s17  ;;  %3478 = vrot.lane.b32.xlu1 %v21016_v3, %s20949_s17 }
  0x4d   :  { %4051 = vrot.lane.b32.xlu0 %v20997_v0, %s20950_s18  ;;  %4055 = vrot.lane.b32.xlu1 %v21011_v2, %s20950_s18 }
  0x51   :  { %4049 = vrot.lane.b32.xlu0 %v21002_v1, %s20950_s18  ;;  %4053 = vrot.lane.b32.xlu1 %v21016_v3, %s20950_s18 }
  0x55   :  { %4626 = vrot.lane.b32.xlu0 %v20997_v0, %s20951_s19  ;;  %4630 = vrot.lane.b32.xlu1 %v21011_v2, %s20951_s19 }
  0x59   :  { %4624 = vrot.lane.b32.xlu0 %v21002_v1, %s20951_s19  ;;  %4628 = vrot.lane.b32.xlu1 %v21016_v3, %s20951_s19 }
  0x8f   :  { %v81_v14 = vpop.permute.xlu0 %80  ;;  %v79_v15 = vpop.permute.xlu1 %78 }
  0x93   :  { %v85_v22 = vpop.permute.xlu0 %84  ;;  %v83_v23 = vpop.permute.xlu1 %82 }
  0x94   :  { %v88_v26 = vsel %vm86_vm1, %v81_v14, %v85_v22  ;;  %v90_v27 = vsel %vm86_vm1, %v85_v22, %v81_v14  ;;  %v87_v28 = vsel %vm86_vm1, %v79_v15, %v83_v23  ;;  %v89_v29 = vsel %vm86_vm1, %v83_v23, %v79_v15 }
  0x95   :  { %v98_v30 = vmul.f32 %v20680_v18, %v90_v27  ;;  %v99_v31 = vmul.f32 %v20681_v19, %v88_v26  ;;  %v96_v32 = vmul.f32 %v20678_v20, %v89_v29  ;;  %v97_v33 = vmul.f32 %v20679_v21, %v87_v28  ;;  %v77_v26 = vld [vmem:[%s26965_s1 + $0x8] sm:$0xff] }
  0x96   :  { %v651_v19 = vsel %vm103_vm0, %v76_v60, 0 }
  0x97   :  { %v21128_v34 = vand.u32 4294901760, %v99_v31  ;;  %v21130_v35 = vand.u32 4294901760, %v98_v30  ;;  %v21132_v36 = vand.u32 4294901760, %v97_v33  ;;  %v21134_v37 = vand.u32 4294901760, %v96_v32  ;;  %v56_v38 = vpop.permute.xlu0 %55  ;;  %v60_v39 = vpop.permute.xlu1 %59 }
  0x98   :  { %v65_v42 = vsel %vm63_vm2, %v56_v38, %v60_v39  ;;  %v67_v7 = vsel %vm63_vm2, %v60_v39, %v56_v38  ;;  %v21180_v24 = vand.u32 4294901760, %v651_v19 }
  0x99   :  { %v236_v43 = vsub.f32 %v98_v30, %v21130_v35  ;;  %v21143_v44 = vsub.f32 %v96_v32, %v21134_v37  ;;  %139 = vmatprep.subr.mxu0 %v21128_v34  ;;  %v230_v45 = vsub.f32 %v99_v31, %v21128_v34  ;;  %v242_v46 = vsub.f32 %v97_v33, %v21132_v36 }
  0x9a   :  { %141 = vmatpush1.msra.mxu0 %v21130_v35  ;;  %v75_v52 = vmul.f32 %v71_v47, %v65_v42  ;;  %v74_v22 = vmul.f32 %v70_v6, %v67_v7  ;;  %v654_v31 = vsel %vm103_vm0, %v77_v26, 0  ;;  %v21201_v32 = vsub.f32 %v651_v19, %v21180_v24 }
  0x9b   :  { %143 = vmatprep.subr.mxu0 %v21132_v36  ;;  %v231_v48 = vand.u32 4294901760, %v230_v45  ;;  %v237_v49 = vand.u32 4294901760, %v236_v43  ;;  %v243_v50 = vand.u32 4294901760, %v242_v46  ;;  %v249_v51 = vand.u32 4294901760, %v21143_v44  ;;  %v54_v53 = vpop.permute.xlu0 %53  ;;  %v58_v54 = vpop.permute.xlu1 %57 }
  0x9c   :  { %145 = vmatpush1.msra.mxu0 %v21134_v37  ;;  %v64_v5 = vsel %vm63_vm2, %v54_v53, %v58_v54  ;;  %v66_v14 = vsel %vm63_vm2, %v58_v54, %v54_v53  ;;  %v21176_v18 = vand.u32 4294901760, %v75_v52  ;;  %v21193_v29 = vand.u32 4294901760, %v74_v22 }
  0x9d   :  { %184 = vmatmul.mubr.f32.vlgmr.msra.gmra.mxu0 %v183_v40  ;;  %330 = vmatprep.subr.mxu0 %v230_v45  ;;  %v232_v56 = vsub.f32 %v230_v45, %v231_v48  ;;  %v238_v57 = vsub.f32 %v236_v43, %v237_v49  ;;  %v244_v58 = vsub.f32 %v242_v46, %v243_v50  ;;  %v21211_v39 = vand.u32 4294901760, %v654_v31 }
  0x9e   :  { %333 = vmatpush1.msra.mxu0 %v236_v43  ;;  %189 = vmatprep.mubr.f32.mxu0 %v26972_v4  ;;  %v250_v59 = vsub.f32 %v21143_v44, %v249_v51  ;;  %v73_v21 = vmul.f32 %v69_v63, %v64_v5  ;;  %v72_v23 = vmul.f32 %v68_v9, %v66_v14  ;;  %v727_v42 = vand.u32 4294901760, %v21201_v32  ;;  %v20684_v63 = vld [vmem:[%s26966_s2 + $0x40] sm:$0xff] }
  0x9f   :  { %336 = vmatprep.subr.mxu0 %v242_v46  ;;  %v233_v61 = vand.u32 4294901760, %v232_v56  ;;  %v239_v62 = vand.u32 4294901760, %v238_v57  ;;  %v245_v15 = vand.u32 4294901760, %v244_v58  ;;  %v21188_v27 = vsub.f32 %v75_v52, %v21176_v18 }
  0xa0   :  { %339 = vmatpush1.msra.mxu0 %v21143_v44  ;;  %v251_v20 = vand.u32 4294901760, %v250_v59  ;;  %v21191_v28 = vand.u32 4294901760, %v73_v21  ;;  %v21196_v30 = vand.u32 4294901760, %v72_v23  ;;  %v21214_v40 = vsub.f32 %v74_v22, %v21193_v29  ;;  %v20688_v59 = vld [vmem:[%s26965_s1 + $0x20] sm:$0xff] }
  0xa1   :  { %195 = vmatmul.mubr.f32.gmra.mxu0 %v194_v55  ;;  %234 = vmatprep.subr.mxu1 %v233_v61  ;;  %v777_v33 = vand.u32 4294901760, %v21188_v27  ;;  %v21231_v45 = vsub.f32 %v654_v31, %v21211_v39  ;;  %v728_v47 = vsub.f32 %v21201_v32, %v727_v42  ;;  %v20686_v61 = vld [vmem:[%s26966_s2 + $0x50] sm:$0xff]  ;;  %v1222_v7 = vsel %vm103_vm0, %v20688_v59, 0 }
  0xa2   :  { %507 = vmatprep.subr.mxu0 %v231_v48  ;;  %240 = vmatpush1.msra.mxu1 %v239_v62  ;;  %v21208_v38 = vsub.f32 %v73_v21, %v21191_v28  ;;  %v21217_v41 = vsub.f32 %v72_v23, %v21196_v30  ;;  %v1199_v48 = vpop.permute.xlu0 %1198  ;;  %v21306_v19 = vand.u32 4294901760, %v1222_v7 }
  0xa3   :  { %246 = vmatprep.subr.mxu1 %v245_v15  ;;  %372 = vmatprep.mubr.f32.mxu0 %v26972_v4  ;;  %v778_v43 = vsub.f32 %v21188_v27, %v777_v33 }
  0xa4   :  { %252 = vmatpush1.msra.mxu1 %v251_v20  ;;  %v789_v44 = vand.u32 4294901760, %v21208_v38  ;;  %v795_v46 = vand.u32 4294901760, %v21217_v41  ;;  %v20689_v20 = vld [vmem:[%s26965_s1 + $0x28] sm:$0xff] }
  0xa5   :  { %287 = vmatmul.mubr.f32.vlgmr.msra.gmra.mxu1 %v21087_v8  ;;  %375 = vmatmul.mubr.f32.vlgmr.msra.gmra.mxu0 %v21091_v11  ;;  %v779_v11 = vand.u32 4294901760, %v778_v43  ;;  %v1225_v26 = vsel %vm103_vm0, %v20689_v20, 0 }
  0xa6   :  { %418 = vmatprep.subr.mxu1 %v21128_v34  ;;  %511 = vmatpush1.msra.mxu0 %v237_v49  ;;  %v1203_v49 = vpop.permute.xlu1 %1202  ;;  %v1197_v55 = vpop.permute.xlu0 %1196 }
  0xa7   :  { %420 = vmatpush1.msra.mxu1 %v21130_v35  ;;  %515 = vmatprep.subr.mxu0 %v243_v50  ;;  %v729_v50 = vand.u32 4294901760, %v728_v47  ;;  %v1208_v62 = vsel %vm1204_vm3, %v1203_v49, %v1199_v48 }
  0xa8   :  { %422 = vmatprep.subr.mxu1 %v21132_v36  ;;  %519 = vmatpush1.msra.mxu0 %v249_v51  ;;  %v1216_v14 = vmul.f32 %v20686_v61, %v1208_v62 }
  0xa9   :  { %292 = vmatprep.mubr.f32.mxu1 %v26972_v4  ;;  %380 = vmatprep.mubr.f32.mxu0 %v26972_v4 }
  0xaa   :  { %424 = vmatpush1.msra.mxu1 %v21134_v37  ;;  %383 = vmatmul.mubr.f32.gmra.mxu0 %v21100_v17  ;;  %v20687_v17 = vld [vmem:[%s26966_s2 + $0x58] sm:$0xff]  ;;  %v1201_v56 = vpop.permute.xlu1 %1200  ;;  %v21321_v22 = vand.u32 4294901760, %v1216_v14 }
  0xab   :  { %294 = vmatmul.mubr.f32.gmra.mxu1 %v21093_v12  ;;  %596 = vmatprep.subr.mxu1 %v21128_v34  ;;  %v783_v34 = vand.u32 4294901760, %v21214_v40  ;;  %v1205_v60 = vsel %vm1204_vm3, %v1197_v55, %v1201_v56  ;;  %v1207_v5 = vsel %vm1204_vm3, %v1201_v56, %v1197_v55  ;;  %v20692_v56 = vld [vmem:[%s26966_s2 + $0x70] sm:$0xff] }
  0xac   :  { %457 = vmatprep.mubr.f32.mxu1 %v26972_v4  ;;  %552 = vmatprep.mubr.f32.mxu0 %v26972_v4  ;;  %v1214_v15 = vmul.f32 %v20684_v63, %v1207_v5 }
  0xad   :  { %685 = vmatprep.subr.mxu0 %v21176_v18 }
  0xae   :  { %554 = vmatmul.mubr.f32.vlgmr.msra.gmra.mxu0 %v21087_v8  ;;  %v21326_v23 = vand.u32 4294901760, %v1214_v15 }
  0xaf   :  { %461 = vmatmul.mubr.f32.vlgmr.msra.gmra.mxu1 %v181_v16  ;;  %687 = vmatpush1.msra.mxu0 %v21193_v29  ;;  %v790_v16 = vsub.f32 %v21208_v38, %v789_v44 }
  0xb0   :  { %598 = vmatpush1.msra.mxu1 %v21130_v35  ;;  %689 = vmatprep.subr.mxu0 %v21191_v28  ;;  %v738_v35 = vand.u32 4294901760, %v21231_v45 }
  0xb1   :  { %600 = vmatprep.subr.mxu1 %v21132_v36  ;;  %691 = vmatpush1.msra.mxu0 %v21196_v30  ;;  %v784_v36 = vsub.f32 %v21214_v40, %v783_v34  ;;  %v791_v51 = vand.u32 4294901760, %v790_v16  ;;  %v1774_v16 = vpop.permute.xlu0 %1773 }
  0xb2   :  { %602 = vmatpush1.msra.mxu1 %v21134_v37  ;;  %466 = vmatprep.mubr.f32.mxu1 %v26972_v4  ;;  %v796_v37 = vsub.f32 %v21217_v41, %v795_v46  ;;  %v739_v52 = vsub.f32 %v21231_v45, %v738_v35 }
  0xb3   :  { %559 = vmatprep.mubr.f32.mxu0 %v26972_v4  ;;  %876 = vmatprep.subr.mxu0 %v21188_v27  ;;  %v785_v53 = vand.u32 4294901760, %v784_v36  ;;  %v21333_v27 = vsub.f32 %v1222_v7, %v21306_v19  ;;  %v1778_v36 = vpop.permute.xlu1 %1777  ;;  %v20695_v7 = vld [vmem:[%s26965_s1 + $0x38] sm:$0xff] }
  0xb4   :  { %470 = vmatmul.mubr.f32.gmra.mxu1 %v192_v25  ;;  %561 = vmatmul.mubr.f32.gmra.mxu0 %v21093_v12  ;;  %v797_v54 = vand.u32 4294901760, %v796_v37  ;;  %v1206_v25 = vsel %vm1204_vm3, %v1199_v48, %v1203_v49  ;;  %v740_v57 = vand.u32 4294901760, %v739_v52  ;;  %v1800_v20 = vsel %vm103_vm0, %v20695_v7, 0 }
  0xb5   :  { %780 = vmatprep.subr.mxu1 %v779_v11  ;;  %635 = vmatprep.mubr.f32.mxu1 %v26972_v4  ;;  %v1217_v58 = vmul.f32 %v20687_v17, %v1206_v25  ;;  %v1772_v52 = vpop.permute.xlu0 %1771  ;;  %v20694_v25 = vld [vmem:[%s26965_s1 + $0x30] sm:$0xff] }
  0xb6   :  { %724 = vmatprep.mubr.f32.mxu0 %v26972_v4 }
  0xb7   :  { %v21301_v6 = vand.u32 4294901760, %v1217_v58 }
  0xb8   :  { %637 = vmatmul.mubr.f32.vlgmr.msra.gmra.mxu1 %v21087_v8  ;;  %730 = vmatmul.mubr.f32.vlgmr.msra.gmra.mxu0 %v729_v50  ;;  %v20685_v8 = vld [vmem:[%s26966_s2 + $0x48] sm:$0xff] }
  0xb9   :  { %786 = vmatpush1.msra.mxu1 %v785_v53  ;;  %879 = vmatpush1.msra.mxu0 %v21214_v40  ;;  %v1215_v9 = vmul.f32 %v20685_v8, %v1205_v60  ;;  %v21346_v40 = vsub.f32 %v1216_v14, %v21321_v22  ;;  %v1776_v53 = vpop.permute.xlu1 %1775  ;;  %v1797_v60 = vsel %vm103_vm0, %v20694_v25, 0 }
  0xba   :  { %792 = vmatprep.subr.mxu1 %v791_v51  ;;  %882 = vmatprep.subr.mxu0 %v21208_v38  ;;  %v21343_v38 = vand.u32 4294901760, %v1225_v26  ;;  %v1780_v55 = vsel %vm1779_vm4, %v1772_v52, %v1776_v53  ;;  %v1782_v59 = vsel %vm1779_vm4, %v1776_v53, %v1772_v52  ;;  %v21437_v5 = vand.u32 4294901760, %v1797_v60 }
  0xbb   :  { %798 = vmatpush1.msra.mxu1 %v797_v54  ;;  %885 = vmatpush1.msra.mxu0 %v21217_v41  ;;  %v21319_v21 = vand.u32 4294901760, %v1215_v9  ;;  %v21349_v41 = vsub.f32 %v1214_v15, %v21326_v23  ;;  %v21565_v53 = vand.u32 4294901760, %v21002_v1 }
  0xbc   :  { %642 = vmatprep.mubr.f32.mxu1 %v26972_v4  ;;  %735 = vmatprep.mubr.f32.mxu0 %v26972_v4 }
  0xbd   :  { %964 = vmatprep.subr.mxu1 %v21176_v18  ;;  %1053 = vmatprep.subr.mxu0 %v777_v33  ;;  %v21340_v33 = vsub.f32 %v1215_v9, %v21319_v21  ;;  %v1366_v47 = vand.u32 4294901760, %v21349_v41 }
  0xbe   :  { %644 = vmatmul.mubr.f32.gmra.mxu1 %v21093_v12  ;;  %741 = vmatmul.mubr.f32.gmra.mxu0 %v740_v57  ;;  %v21314_v12 = vsub.f32 %v1217_v58, %v21301_v6  ;;  %v1783_v57 = vsel %vm1779_vm4, %v1778_v36, %v1774_v16  ;;  %v20690_v58 = vld [vmem:[%s26966_s2 + $0x60] sm:$0xff] }
  0xbf   :  { %831 = vmatprep.mubr.f32.mxu1 %v26972_v4  ;;  %918 = vmatprep.mubr.f32.mxu0 %v26972_v4  ;;  %v1791_v62 = vmul.f32 %v20692_v56, %v1783_v57  ;;  %v1789_v63 = vmul.f32 %v20690_v58, %v1782_v59  ;;  %v21591_v56 = vsub.f32 %v21002_v1, %v21565_v53 }
  0xc0   :  { %v1348_v31 = vand.u32 4294901760, %v21314_v12 }
  0xc1   :  { %v21452_v14 = vand.u32 4294901760, %v1791_v62  ;;  %v21457_v15 = vand.u32 4294901760, %v1789_v63 }
  0xc2   :  { %833 = vmatmul.mubr.f32.vlgmr.msra.gmra.mxu1 %v21180_v24  ;;  %921 = vmatmul.mubr.f32.vlgmr.msra.gmra.mxu0 %v21201_v32  ;;  %v1349_v43 = vsub.f32 %v21314_v12, %v1348_v31 }
  0xc3   :  { %966 = vmatpush1.msra.mxu1 %v21193_v29  ;;  %1057 = vmatpush1.msra.mxu0 %v783_v34  ;;  %v21363_v34 = vsub.f32 %v1225_v26, %v21343_v38 }
  0xc4   :  { %968 = vmatprep.subr.mxu1 %v21191_v28  ;;  %1061 = vmatprep.subr.mxu0 %v789_v44  ;;  %v1360_v44 = vand.u32 4294901760, %v21340_v33 }
  0xc5   :  { %970 = vmatpush1.msra.mxu1 %v21196_v30  ;;  %1065 = vmatpush1.msra.mxu0 %v795_v46  ;;  %v1354_v46 = vand.u32 4294901760, %v21346_v40  ;;  %v1309_v11 = vand.u32 4294901760, %v21363_v34 }
  0xc6   :  { %838 = vmatprep.mubr.f32.mxu1 %v26972_v4  ;;  %926 = vmatprep.mubr.f32.mxu0 %v26972_v4 }
  0xc7   :  { %1142 = vmatprep.subr.mxu1 %v21176_v18  ;;  %840 = vmatmul.mubr.f32.gmra.mxu1 %v21211_v39  ;;  %v1298_v18 = vand.u32 4294901760, %v21333_v27  ;;  %v1310_v49 = vsub.f32 %v21363_v34, %v1309_v11 }
  0xc8   :  { %929 = vmatmul.mubr.f32.gmra.mxu0 %v21231_v45  ;;  %1003 = vmatprep.mubr.f32.mxu1 %v26972_v4  ;;  %v20693_v45 = vld [vmem:[%s26966_s2 + $0x78] sm:$0xff] }
  0xc9   :  { %1098 = vmatprep.mubr.f32.mxu0 %v26972_v4  ;;  %1256 = vmatprep.subr.mxu0 %v21301_v6  ;;  %v1299_v32 = vsub.f32 %v21333_v27, %v1298_v18  ;;  %v1311_v54 = vand.u32 4294901760, %v1310_v49 }
  0xcb   :  { %1007 = vmatmul.mubr.f32.vlgmr.msra.gmra.mxu1 %v727_v42  ;;  %v1350_v42 = vand.u32 4294901760, %v1349_v43  ;;  %v1300_v37 = vand.u32 4294901760, %v1299_v32 }
  0xcc   :  { %1100 = vmatmul.mubr.f32.vlgmr.msra.gmra.mxu0 %v21180_v24  ;;  %1144 = vmatpush1.msra.mxu1 %v21193_v29  ;;  %v1361_v29 = vsub.f32 %v21340_v33, %v1360_v44 }
  0xcd   :  { %1258 = vmatpush1.msra.mxu0 %v21321_v22  ;;  %1146 = vmatprep.subr.mxu1 %v21191_v28  ;;  %v1355_v28 = vsub.f32 %v21346_v40, %v1354_v46 }
  0xce   :  { %1260 = vmatprep.subr.mxu0 %v21319_v21  ;;  %1148 = vmatpush1.msra.mxu1 %v21196_v30  ;;  %v1367_v30 = vsub.f32 %v21349_v41, %v1366_v47  ;;  %v1362_v48 = vand.u32 4294901760, %v1361_v29 }
  0xcf   :  { %1262 = vmatpush1.msra.mxu0 %v21326_v23  ;;  %1012 = vmatprep.mubr.f32.mxu1 %v26972_v4  ;;  %v1356_v50 = vand.u32 4294901760, %v1355_v28 }
  0xd0   :  { %1105 = vmatprep.mubr.f32.mxu0 %v26972_v4  ;;  %1447 = vmatprep.subr.mxu0 %v21314_v12  ;;  %v1368_v51 = vand.u32 4294901760, %v1367_v30  ;;  %v21464_v12 = vsub.f32 %v1797_v60, %v21437_v5  ;;  %v2494_v60 = vand.u32 4294901760, %v21591_v56 }
  0xd1   :  { %1016 = vmatmul.mubr.f32.gmra.mxu1 %v738_v35  ;;  %1107 = vmatmul.mubr.f32.gmra.mxu0 %v21211_v39  ;;  %v1781_v35 = vsel %vm1779_vm4, %v1774_v16, %v1778_v36 }
  0xd2   :  { %1351 = vmatprep.subr.mxu1 %v1350_v42  ;;  %1181 = vmatprep.mubr.f32.mxu1 %v26972_v4  ;;  %v1792_v17 = vmul.f32 %v20693_v45, %v1781_v35 }
  0xd3   :  { %1295 = vmatprep.mubr.f32.mxu0 %v26972_v4 }
  0xd4   :  { %v21432_v8 = vand.u32 4294901760, %v1792_v17 }
  0xd5   :  { %1183 = vmatmul.mubr.f32.vlgmr.msra.gmra.mxu1 %v21180_v24  ;;  %1301 = vmatmul.mubr.f32.vlgmr.msra.gmra.mxu0 %v1300_v37  ;;  %v20691_v24 = vld [vmem:[%s26966_s2 + $0x68] sm:$0xff]  ;;  %v21534_v37 = vand.u32 4294901760, %v21011_v2 }
  0xd6   :  { %1357 = vmatpush1.msra.mxu1 %v1356_v50  ;;  %1450 = vmatpush1.msra.mxu0 %v21346_v40  ;;  %v1790_v61 = vmul.f32 %v20691_v24, %v1780_v55  ;;  %v21477_v40 = vsub.f32 %v1791_v62, %v21452_v14  ;;  %v21544_v50 = vand.u32 4294901760, %v20997_v0  ;;  %v2902_v24 = vpop.permute.xlu0 %2901  ;;  %v2906_v55 = vpop.permute.xlu1 %2905 }
  0xd7   :  { %1363 = vmatprep.subr.mxu1 %v1362_v48  ;;  %1453 = vmatprep.subr.mxu0 %v21340_v33  ;;  %v21474_v33 = vand.u32 4294901760, %v1800_v20  ;;  %v20697_v48 = vld [vmem:[%s26965_s1 + $0x48] sm:$0xff]  ;;  %v21554_v45 = vsub.f32 %v21011_v2, %v21534_v37 }
  0xd8   :  { %1369 = vmatpush1.msra.mxu1 %v1368_v51  ;;  %1456 = vmatpush1.msra.mxu0 %v21349_v41  ;;  %v21450_v9 = vand.u32 4294901760, %v1790_v61  ;;  %v21480_v41 = vsub.f32 %v1789_v63, %v21457_v15  ;;  %v2353_v51 = vsel %vm103_vm0, %v20697_v48, 0  ;;  %v21569_v2 = vsub.f32 %v20997_v0, %v21544_v50 }
  0xd9   :  { %1188 = vmatprep.mubr.f32.mxu1 %v26972_v4  ;;  %1306 = vmatprep.mubr.f32.mxu0 %v26972_v4  ;;  %v21561_v52 = vand.u32 4294901760, %v2353_v51 }
  0xda   :  { %1535 = vmatprep.subr.mxu1 %v21301_v6  ;;  %1624 = vmatprep.subr.mxu0 %v1348_v31  ;;  %v21471_v31 = vsub.f32 %v1790_v61, %v21450_v9  ;;  %v1941_v32 = vand.u32 4294901760, %v21480_v41  ;;  %v2900_v63 = vpop.permute.xlu0 %2899  ;;  %v2904_v7 = vpop.permute.xlu1 %2903 }
  0xdb   :  { %1190 = vmatmul.mubr.f32.gmra.mxu1 %v21211_v39  ;;  %1312 = vmatmul.mubr.f32.gmra.mxu0 %v1311_v54  ;;  %v21445_v39 = vsub.f32 %v1792_v17, %v21432_v8  ;;  %v2476_v54 = vand.u32 4294901760, %v21554_v45  ;;  %v21584_v25 = vsub.f32 %v2353_v51, %v21561_v52 }
  0xdc   :  { %1402 = vmatprep.mubr.f32.mxu1 %v26972_v4  ;;  %1489 = vmatprep.mubr.f32.mxu0 %v26972_v4  ;;  %v1942_v29 = vsub.f32 %v21480_v41, %v1941_v32 }
  0xdd   :  { %v1923_v26 = vand.u32 4294901760, %v21445_v39  ;;  %v2477_v57 = vsub.f32 %v21554_v45, %v2476_v54  ;;  %v2437_v1 = vand.u32 4294901760, %v21584_v25 }
  0xde   :  { %v1943_v36 = vand.u32 4294901760, %v1942_v29 }
  0xdf   :  { %1404 = vmatmul.mubr.f32.vlgmr.msra.gmra.mxu1 %v21306_v19  ;;  %1492 = vmatmul.mubr.f32.vlgmr.msra.gmra.mxu0 %v21333_v27  ;;  %v1924_v43 = vsub.f32 %v21445_v39, %v1923_v26  ;;  %v2478_v61 = vand.u32 4294901760, %v2477_v57 }
  0xe0   :  { %1537 = vmatpush1.msra.mxu1 %v21321_v22  ;;  %1628 = vmatpush1.msra.mxu0 %v1354_v46  ;;  %v21492_v46 = vsub.f32 %v1800_v20, %v21474_v33 }
  0xe1   :  { %1539 = vmatprep.subr.mxu1 %v21319_v21  ;;  %1632 = vmatprep.subr.mxu0 %v1360_v44  ;;  %v1935_v44 = vand.u32 4294901760, %v21471_v31 }
  0xe2   :  { %1541 = vmatpush1.msra.mxu1 %v21326_v23  ;;  %1636 = vmatpush1.msra.mxu0 %v1366_v47  ;;  %v1929_v47 = vand.u32 4294901760, %v21477_v40  ;;  %v1884_v42 = vand.u32 4294901760, %v21492_v46 }
  0xe3   :  { %1409 = vmatprep.mubr.f32.mxu1 %v26972_v4  ;;  %1497 = vmatprep.mubr.f32.mxu0 %v26972_v4 }
  0xe4   :  { %1713 = vmatprep.subr.mxu1 %v21301_v6  ;;  %1411 = vmatmul.mubr.f32.gmra.mxu1 %v21343_v38  ;;  %v1873_v6 = vand.u32 4294901760, %v21464_v12  ;;  %v1885_v30 = vsub.f32 %v21492_v46, %v1884_v42 }
  0xe5   :  { %1500 = vmatmul.mubr.f32.gmra.mxu0 %v21363_v34  ;;  %1574 = vmatprep.mubr.f32.mxu1 %v26972_v4 }
  0xe6   :  { %1669 = vmatprep.mubr.f32.mxu0 %v26972_v4  ;;  %1831 = vmatprep.subr.mxu0 %v21432_v8  ;;  %v1874_v27 = vsub.f32 %v21464_v12, %v1873_v6  ;;  %v1886_v34 = vand.u32 4294901760, %v1885_v30 }
  0xe8   :  { %1578 = vmatmul.mubr.f32.vlgmr.msra.gmra.mxu1 %v1298_v18  ;;  %v1925_v18 = vand.u32 4294901760, %v1924_v43  ;;  %v2909_v43 = vsel %vm2907_vm5, %v2902_v24, %v2906_v55 }
  0xe9   :  { %1671 = vmatmul.mubr.f32.vlgmr.msra.gmra.mxu0 %v21306_v19  ;;  %1715 = vmatpush1.msra.mxu1 %v21321_v22  ;;  %v1936_v22 = vsub.f32 %v21471_v31, %v1935_v44 }
  0xea   :  { %1833 = vmatpush1.msra.mxu0 %v21452_v14  ;;  %1717 = vmatprep.subr.mxu1 %v21319_v21  ;;  %v1930_v21 = vsub.f32 %v21477_v40, %v1929_v47 }
  0xeb   :  { %1835 = vmatprep.subr.mxu0 %v21450_v9  ;;  %1719 = vmatpush1.msra.mxu1 %v21326_v23  ;;  %v1875_v23 = vand.u32 4294901760, %v1874_v27  ;;  %v1937_v28 = vand.u32 4294901760, %v1936_v22 }
  0xec   :  { %1837 = vmatpush1.msra.mxu0 %v21457_v15  ;;  %1583 = vmatprep.mubr.f32.mxu1 %v26972_v4  ;;  %v1931_v16 = vand.u32 4294901760, %v1930_v21 }
  0xed   :  { %1676 = vmatprep.mubr.f32.mxu0 %v26972_v4  ;;  %2022 = vmatprep.subr.mxu0 %v21445_v39 }
  0xee   :  { %1587 = vmatmul.mubr.f32.gmra.mxu1 %v1309_v11  ;;  %1678 = vmatmul.mubr.f32.gmra.mxu0 %v21343_v38  ;;  %v20696_v11 = vld [vmem:[%s26965_s1 + $0x40] sm:$0xff] }
  0xef   :  { %1926 = vmatprep.subr.mxu1 %v1925_v18  ;;  %1752 = vmatprep.mubr.f32.mxu1 %v26972_v4 }
  0xf0   :  { %1870 = vmatprep.mubr.f32.mxu0 %v26972_v4 }
  0xf2   :  { %1754 = vmatmul.mubr.f32.vlgmr.msra.gmra.mxu1 %v21306_v19  ;;  %1876 = vmatmul.mubr.f32.vlgmr.msra.gmra.mxu0 %v1875_v23  ;;  %v2350_v19 = vsel %vm103_vm0, %v20696_v11, 0  ;;  %v20703_v23 = vld [vmem:[%s26965_s1 + $0x58] sm:$0xff] }
  0xf3   :  { %1932 = vmatpush1.msra.mxu1 %v1931_v16  ;;  %2025 = vmatpush1.msra.mxu0 %v21477_v40  ;;  %v21541_v49 = vand.u32 4294901760, %v2350_v19  ;;  %v2910_v40 = vsel %vm2907_vm5, %v2904_v7, %v2900_v63 }
  0xf4   :  { %1938 = vmatprep.subr.mxu1 %v1937_v28  ;;  %2028 = vmatprep.subr.mxu0 %v21471_v31  ;;  %v20699_v31 = vld [vmem:[%s26966_s2 + $0xa8] sm:$0xff] }
  0xf5   :  { %1944 = vmatpush1.msra.mxu1 %v1943_v36  ;;  %2031 = vmatpush1.msra.mxu0 %v21480_v41  ;;  %v21559_v35 = vsub.f32 %v2350_v19, %v21541_v49  ;;  %v20702_v41 = vld [vmem:[%s26965_s1 + $0x50] sm:$0xff]  ;;  %v2918_v27 = vmul.f32 %v20699_v31, %v2910_v40  ;;  %v2928_v36 = vsel %vm103_vm0, %v20703_v23, 0 }
  0xf6   :  { %1759 = vmatprep.mubr.f32.mxu1 %v26972_v4  ;;  %1881 = vmatprep.mubr.f32.mxu0 %v26972_v4  ;;  %v2925_v18 = vsel %vm103_vm0, %v20702_v41, 0  ;;  %v21705_v51 = vand.u32 4294901760, %v2928_v36 }
  0xf7   :  { %2110 = vmatprep.subr.mxu1 %v21432_v8  ;;  %2199 = vmatprep.subr.mxu0 %v1923_v26  ;;  %v2426_v0 = vand.u32 4294901760, %v21559_v35  ;;  %v21665_v29 = vand.u32 4294901760, %v2925_v18  ;;  %v21671_v28 = vand.u32 4294901760, %v2918_v27 }
  0xf8   :  { %1761 = vmatmul.mubr.f32.gmra.mxu1 %v21343_v38  ;;  %1887 = vmatmul.mubr.f32.gmra.mxu0 %v1886_v34  ;;  %v21550_v38 = vand.u32 4294901760, %v21016_v3 }
  0xf9   :  { %1977 = vmatprep.mubr.f32.mxu1 %v26972_v4  ;;  %2064 = vmatprep.mubr.f32.mxu0 %v26972_v4  ;;  %v2427_v59 = vsub.f32 %v21559_v35, %v2426_v0  ;;  %v21689_v34 = vsub.f32 %v2925_v18, %v21665_v29  ;;  %v21692_v11 = vsub.f32 %v2918_v27, %v21671_v28 }
  0xfa   :  { %v21576_v17 = vsub.f32 %v21016_v3, %v21550_v38  ;;  %v2482_v3 = vand.u32 4294901760, %v21569_v2 }
  0xfb   :  { %v2428_v39 = vand.u32 4294901760, %v2427_v59  ;;  %v3481_v59 = vpop.permute.xlu1 %3480 }
  0xfc   :  { %1979 = vmatmul.mubr.f32.vlgmr.msra.gmra.mxu1 %v21437_v5  ;;  %2067 = vmatmul.mubr.f32.vlgmr.msra.gmra.mxu0 %v21464_v12  ;;  %v2488_v58 = vand.u32 4294901760, %v21576_v17  ;;  %v2495_v12 = vsub.f32 %v21591_v56, %v2494_v60 }
  0xfd   :  { %2112 = vmatpush1.msra.mxu1 %v21452_v14  ;;  %2203 = vmatpush1.msra.mxu0 %v1929_v47  ;;  %v2908_v47 = vsel %vm2907_vm5, %v2900_v63, %v2904_v7 }
  0xfe   :  { %2114 = vmatprep.subr.mxu1 %v21450_v9  ;;  %2207 = vmatprep.subr.mxu0 %v1935_v44  ;;  %v2489_v62 = vsub.f32 %v21576_v17, %v2488_v58 }
  0xff   :  { %2116 = vmatpush1.msra.mxu1 %v21457_v15  ;;  %2211 = vmatpush1.msra.mxu0 %v1941_v32  ;;  %v2496_v32 = vand.u32 4294901760, %v2495_v12  ;;  %v3479_v63 = vpop.permute.xlu1 %3478  ;;  %v20704_v12 = vld [vmem:[%s26966_s2 + $0xc0] sm:$0xff] }
 0x100   :  { %1984 = vmatprep.mubr.f32.mxu1 %v26972_v4  ;;  %2072 = vmatprep.mubr.f32.mxu0 %v26972_v4  ;;  %v2490_v26 = vand.u32 4294901760, %v2489_v62  ;;  %v20707_v62 = vld [vmem:[%s26966_s2 + $0xd8] sm:$0xff] }
 0x101   :  { %2288 = vmatprep.subr.mxu1 %v21432_v8  ;;  %1986 = vmatmul.mubr.f32.gmra.mxu1 %v21474_v33  ;;  %v2483_v8 = vsub.f32 %v21569_v2, %v2482_v3 }
 0x102   :  { %2075 = vmatmul.mubr.f32.gmra.mxu0 %v21492_v46  ;;  %2149 = vmatprep.mubr.f32.mxu1 %v26972_v4  ;;  %v20698_v46 = vld [vmem:[%s26966_s2 + $0xa0] sm:$0xff] }
 0x103   :  { %2244 = vmatprep.mubr.f32.mxu0 %v26972_v4  ;;  %2384 = vmatprep.subr.mxu0 %v21534_v37  ;;  %v2484_v20 = vand.u32 4294901760, %v2483_v8 }
 0x105   :  { %2153 = vmatmul.mubr.f32.vlgmr.msra.gmra.mxu1 %v1873_v6  ;;  %v20700_v6 = vld [vmem:[%s26966_s2 + $0xb0] sm:$0xff] }
 0x106   :  { %2246 = vmatmul.mubr.f32.vlgmr.msra.gmra.mxu0 %v21437_v5  ;;  %2290 = vmatpush1.msra.mxu1 %v21452_v14  ;;  %v20701_v14 = vld [vmem:[%s26966_s2 + $0xb8] sm:$0xff]  ;;  %v2919_v22 = vmul.f32 %v20700_v6, %v2909_v43 }
 0x107   :  { %2292 = vmatprep.subr.mxu1 %v21450_v9  ;;  %2158 = vmatprep.mubr.f32.mxu1 %v26972_v4  ;;  %v2438_v9 = vsub.f32 %v21584_v25, %v2437_v1 }
 0x108   :  { %2294 = vmatpush1.msra.mxu1 %v21457_v15  ;;  %2251 = vmatprep.mubr.f32.mxu0 %v26972_v4  ;;  %v2911_v15 = vsel %vm2907_vm5, %v2906_v55, %v2902_v24  ;;  %v21673_v30 = vand.u32 4294901760, %v2919_v22  ;;  %v21723_v24 = vsub.f32 %v2928_v36, %v21705_v51 }
 0x109   :  { %2162 = vmatmul.mubr.f32.gmra.mxu1 %v1884_v42  ;;  %2386 = vmatpush1.msra.mxu0 %v21544_v50  ;;  %v2920_v44 = vmul.f32 %v20701_v14, %v2911_v15  ;;  %v2917_v42 = vmul.f32 %v20698_v46, %v2908_v47  ;;  %v20708_v14 = vld [vmem:[%s26965_s1 + $0x60] sm:$0xff]  ;;  %v20706_v15 = vld [vmem:[%s26966_s2 + $0xd0] sm:$0xff] }
 0x10a   :  { %2253 = vmatmul.mubr.f32.gmra.mxu0 %v21474_v33  ;;  %2388 = vmatprep.subr.mxu0 %v21550_v38  ;;  %v21697_v19 = vsub.f32 %v2919_v22, %v21673_v30  ;;  %v3012_v57 = vand.u32 4294901760, %v21723_v24  ;;  %v3500_v41 = vsel %vm103_vm0, %v20708_v14, 0 }
 0x10b   :  { %2327 = vmatprep.mubr.f32.mxu1 %v26972_v4  ;;  %2390 = vmatpush1.msra.mxu0 %v21565_v53  ;;  %v21662_v21 = vand.u32 4294901760, %v2920_v44  ;;  %v21805_v46 = vand.u32 4294901760, %v3500_v41 }
 0x10c   :  { %2423 = vmatprep.mubr.f32.mxu0 %v26972_v4  ;;  %2479 = vmatprep.subr.mxu1 %v2478_v61 }
 0x10d   :  { %2329 = vmatmul.mubr.f32.vlgmr.msra.gmra.mxu1 %v21437_v5  ;;  %2575 = vmatprep.subr.mxu0 %v21554_v45  ;;  %v2439_v5 = vand.u32 4294901760, %v2438_v9  ;;  %v21683_v16 = vsub.f32 %v2920_v44, %v21662_v21  ;;  %v21830_v22 = vsub.f32 %v3500_v41, %v21805_v46 }
 0x10e   :  { %2429 = vmatmul.mubr.f32.vlgmr.msra.gmra.mxu0 %v2428_v39  ;;  %2334 = vmatprep.mubr.f32.mxu1 %v26972_v4 }
 0x10f   :  { %2434 = vmatprep.mubr.f32.mxu0 %v26972_v4  ;;  %2485 = vmatpush1.msra.mxu1 %v2484_v20  ;;  %v3051_v45 = vand.u32 4294901760, %v21683_v16 }
 0x110   :  { %2578 = vmatpush1.msra.mxu0 %v21569_v2  ;;  %2491 = vmatprep.subr.mxu1 %v2490_v26  ;;  %v3063_v2 = vand.u32 4294901760, %v21692_v11 }
 0x111   :  { %2336 = vmatmul.mubr.f32.gmra.mxu1 %v21474_v33  ;;  %2581 = vmatprep.subr.mxu0 %v21576_v17  ;;  %v21677_v33 = vand.u32 4294901760, %v2917_v42  ;;  %v3057_v17 = vand.u32 4294901760, %v21697_v19  ;;  %v3052_v55 = vsub.f32 %v21683_v16, %v3051_v45 }
 0x112   :  { %2440 = vmatmul.mubr.f32.gmra.mxu0 %v2439_v5  ;;  %2530 = vmatprep.mubr.f32.mxu1 %v26972_v4 }
 0x113   :  { %2497 = vmatpush1.msra.mxu1 %v2496_v32  ;;  %2584 = vmatpush1.msra.mxu0 %v21591_v56  ;;  %v21700_v48 = vsub.f32 %v2917_v42, %v21677_v33  ;;  %v3053_v8 = vand.u32 4294901760, %v3052_v55  ;;  %v4056_v55 = vpop.permute.xlu1 %4055 }
 0x114   :  { %2617 = vmatprep.mubr.f32.mxu0 %v26972_v4  ;;  %2663 = vmatprep.subr.mxu1 %v21534_v37 }
 0x115   :  { %2532 = vmatmul.mubr.f32.vlgmr.msra.gmra.mxu1 %v21541_v49  ;;  %2752 = vmatprep.subr.mxu0 %v2476_v54  ;;  %v3001_v54 = vand.u32 4294901760, %v21689_v34 }
 0x116   :  { %2620 = vmatmul.mubr.f32.vlgmr.msra.gmra.mxu0 %v21559_v35  ;;  %2537 = vmatprep.mubr.f32.mxu1 %v26972_v4  ;;  %v3058_v35 = vsub.f32 %v21697_v19, %v3057_v17 }
 0x117   :  { %2625 = vmatprep.mubr.f32.mxu0 %v26972_v4  ;;  %2665 = vmatpush1.msra.mxu1 %v21544_v50  ;;  %v3002_v56 = vsub.f32 %v21689_v34, %v3001_v54 }
 0x118   :  { %2756 = vmatpush1.msra.mxu0 %v2482_v3  ;;  %2667 = vmatprep.subr.mxu1 %v21550_v38  ;;  %v3069_v3 = vand.u32 4294901760, %v21700_v48  ;;  %v3059_v61 = vand.u32 4294901760, %v3058_v35 }
 0x119   :  { %2539 = vmatmul.mubr.f32.gmra.mxu1 %v21561_v52  ;;  %2760 = vmatprep.subr.mxu0 %v2488_v58  ;;  %v3477_v58 = vpop.permute.xlu0 %3476 }
 0x11a   :  { %2628 = vmatmul.mubr.f32.gmra.mxu0 %v21584_v25  ;;  %2669 = vmatpush1.msra.mxu1 %v21565_v53  ;;  %v3484_v20 = vsel %vm3482_vm6, %v3477_v58, %v3481_v59 }
 0x11b   :  { %2764 = vmatpush1.msra.mxu0 %v2494_v60  ;;  %2702 = vmatprep.mubr.f32.mxu1 %v26972_v4  ;;  %v3494_v6 = vmul.f32 %v20706_v15, %v3484_v20 }
 0x11c   :  { %2797 = vmatprep.mubr.f32.mxu0 %v26972_v4  ;;  %2959 = vmatprep.subr.mxu0 %v21662_v21 }
 0x11d   :  { %2706 = vmatmul.mubr.f32.vlgmr.msra.gmra.mxu1 %v2426_v0  ;;  %2841 = vmatprep.subr.mxu1 %v21534_v37  ;;  %v3064_v37 = vsub.f32 %v21692_v11, %v3063_v2  ;;  %v3070_v0 = vsub.f32 %v21700_v48, %v3069_v3  ;;  %v21814_v5 = vand.u32 4294901760, %v3494_v6 }
 0x11e   :  { %2799 = vmatmul.mubr.f32.vlgmr.msra.gmra.mxu0 %v21541_v49  ;;  %2711 = vmatprep.mubr.f32.mxu1 %v26972_v4 }
 0x11f   :  { %2961 = vmatpush1.msra.mxu0 %v21673_v30  ;;  %2804 = vmatprep.mubr.f32.mxu0 %v26972_v4  ;;  %v3065_v60 = vand.u32 4294901760, %v3064_v37  ;;  %v3071_v25 = vand.u32 4294901760, %v3070_v0  ;;  %v21838_v23 = vsub.f32 %v3494_v6, %v21814_v5 }
 0x120   :  { %2963 = vmatprep.subr.mxu0 %v21671_v28  ;;  %2843 = vmatpush1.msra.mxu1 %v21544_v50  ;;  %v3003_v50 = vand.u32 4294901760, %v3002_v56 }
 0x121   :  { %2965 = vmatpush1.msra.mxu0 %v21677_v33  ;;  %2715 = vmatmul.mubr.f32.gmra.mxu1 %v2437_v1  ;;  %v3013_v1 = vsub.f32 %v21723_v24, %v3012_v57 }
 0x122   :  { %3150 = vmatprep.subr.mxu0 %v21683_v16  ;;  %2806 = vmatmul.mubr.f32.gmra.mxu0 %v21561_v52 }
 0x123   :  { %2845 = vmatprep.subr.mxu1 %v21550_v38  ;;  %2880 = vmatprep.mubr.f32.mxu1 %v26972_v4  ;;  %v3486_v38 = vsel %vm3482_vm6, %v3481_v59, %v3477_v58  ;;  %v3014_v39 = vand.u32 4294901760, %v3013_v1  ;;  %v20712_v1 = vld [vmem:[%s26966_s2 + $0xf0] sm:$0xff] }
 0x124   :  { %2847 = vmatpush1.msra.mxu1 %v21565_v53  ;;  %2998 = vmatprep.mubr.f32.mxu0 %v26972_v4  ;;  %v3475_v53 = vpop.permute.xlu0 %3474  ;;  %v3495_v7 = vmul.f32 %v20707_v62, %v3486_v38  ;;  %v20710_v38 = vld [vmem:[%s26966_s2 + $0xe0] sm:$0xff] }
 0x125   :  { %3054 = vmatprep.subr.mxu1 %v3053_v8  ;;  %2882 = vmatmul.mubr.f32.vlgmr.msra.gmra.mxu1 %v21541_v49  ;;  %v20705_v49 = vld [vmem:[%s26966_s2 + $0xc8] sm:$0xff]  ;;  %v3485_v9 = vsel %vm3482_vm6, %v3479_v63, %v3475_v53  ;;  %v3483_v26 = vsel %vm3482_vm6, %v3475_v53, %v3479_v63  ;;  %v4054_v8 = vpop.permute.xlu1 %4053 }
 0x126   :  { %3004 = vmatmul.mubr.f32.vlgmr.msra.gmra.mxu0 %v3003_v50  ;;  %3060 = vmatpush1.msra.mxu1 %v3059_v61  ;;  %v21796_v31 = vand.u32 4294901760, %v3495_v7  ;;  %v3493_v40 = vmul.f32 %v20705_v49, %v3485_v9  ;;  %v3492_v43 = vmul.f32 %v20704_v12, %v3483_v26 }
 0x127   :  { %3153 = vmatpush1.msra.mxu0 %v21697_v19  ;;  %3066 = vmatprep.subr.mxu1 %v3065_v60 }
 0x128   :  { %3156 = vmatprep.subr.mxu0 %v21692_v11  ;;  %3072 = vmatpush1.msra.mxu1 %v3071_v25  ;;  %v21803_v44 = vsub.f32 %v3495_v7, %v21796_v31  ;;  %v21812_v47 = vand.u32 4294901760, %v3493_v40  ;;  %v21819_v32 = vand.u32 4294901760, %v3492_v43  ;;  %v3576_v11 = vand.u32 4294901760, %v21830_v22  ;;  %v20714_v25 = vld [vmem:[%s26965_s1 + $0x70] sm:$0xff] }
 0x129   :  { %3159 = vmatpush1.msra.mxu0 %v21700_v48  ;;  %2887 = vmatprep.mubr.f32.mxu1 %v26972_v4  ;;  %v3632_v48 = vand.u32 4294901760, %v21838_v23 }
 0x12a   :  { %3009 = vmatprep.mubr.f32.mxu0 %v26972_v4  ;;  %3238 = vmatprep.subr.mxu1 %v21662_v21  ;;  %v3626_v18 = vand.u32 4294901760, %v21803_v44  ;;  %v21833_v42 = vsub.f32 %v3493_v40, %v21812_v47  ;;  %v21841_v16 = vsub.f32 %v3492_v43, %v21819_v32 }
 0x12b   :  { %3327 = vmatprep.subr.mxu0 %v3051_v45  ;;  %2889 = vmatmul.mubr.f32.gmra.mxu1 %v21561_v52  ;;  %v20709_v52 = vld [vmem:[%s26965_s1 + $0x68] sm:$0xff] }
 0x12c   :  { %3015 = vmatmul.mubr.f32.gmra.mxu0 %v3014_v39  ;;  %3105 = vmatprep.mubr.f32.mxu1 %v26972_v4  ;;  %v3503_v27 = vsel %vm103_vm0, %v20709_v52, 0  ;;  %v3638_v19 = vand.u32 4294901760, %v21833_v42  ;;  %v3644_v45 = vand.u32 4294901760, %v21841_v16  ;;  %v4075_v39 = vsel %vm103_vm0, %v20714_v25, 0 }
 0x12d   :  { %3192 = vmatprep.mubr.f32.mxu0 %v26972_v4  ;;  %v21845_v36 = vand.u32 4294901760, %v3503_v27  ;;  %v21936_v15 = vand.u32 4294901760, %v4075_v39 }
 0x12f   :  { %3107 = vmatmul.mubr.f32.vlgmr.msra.gmra.mxu1 %v21665_v29  ;;  %v21961_v6 = vsub.f32 %v4075_v39, %v21936_v15 }
 0x130   :  { %3195 = vmatmul.mubr.f32.vlgmr.msra.gmra.mxu0 %v21689_v34  ;;  %3240 = vmatpush1.msra.mxu1 %v21673_v30  ;;  %v3577_v34 = vsub.f32 %v21830_v22, %v3576_v11 }
 0x131   :  { %3331 = vmatpush1.msra.mxu0 %v3057_v17  ;;  %3242 = vmatprep.subr.mxu1 %v21671_v28 }
 0x132   :  { %3335 = vmatprep.subr.mxu0 %v3063_v2  ;;  %3244 = vmatpush1.msra.mxu1 %v21677_v33  ;;  %v21861_v2 = vsub.f32 %v3503_v27, %v21845_v36  ;;  %v3578_v56 = vand.u32 4294901760, %v3577_v34 }
 0x133   :  { %3339 = vmatpush1.msra.mxu0 %v3069_v3  ;;  %3112 = vmatprep.mubr.f32.mxu1 %v26972_v4  ;;  %v4052_v3 = vpop.permute.xlu0 %4051 }
 0x134   :  { %3200 = vmatprep.mubr.f32.mxu0 %v26972_v4  ;;  %3416 = vmatprep.subr.mxu1 %v21662_v21  ;;  %v3627_v21 = vsub.f32 %v21803_v44, %v3626_v18  ;;  %v4059_v62 = vsel %vm4057_vm7, %v4052_v3, %v4056_v55 }
 0x135   :  { %3114 = vmatmul.mubr.f32.gmra.mxu1 %v21705_v51  ;;  %3203 = vmatmul.mubr.f32.gmra.mxu0 %v21723_v24  ;;  %v20713_v24 = vld [vmem:[%s26966_s2 + $0xf8] sm:$0xff]  ;;  %v4069_v49 = vmul.f32 %v20712_v1, %v4059_v62 }
 0x136   :  { %3277 = vmatprep.mubr.f32.mxu1 %v26972_v4  ;;  %3372 = vmatprep.mubr.f32.mxu0 %v26972_v4  ;;  %v3628_v17 = vand.u32 4294901760, %v3627_v21 }
 0x137   :  { %3534 = vmatprep.subr.mxu0 %v21796_v31  ;;  %v4050_v59 = vpop.permute.xlu0 %4049  ;;  %v21945_v12 = vand.u32 4294901760, %v4069_v49 }
 0x138   :  { %v4060_v61 = vsel %vm4057_vm7, %v4054_v8, %v4050_v59  ;;  %v4058_v53 = vsel %vm4057_vm7, %v4050_v59, %v4054_v8  ;;  %v20718_v8 = vld [vmem:[%s26966_s2 + $0x110] sm:$0xff] }
 0x139   :  { %3281 = vmatmul.mubr.f32.vlgmr.msra.gmra.mxu1 %v3001_v54  ;;  %3374 = vmatmul.mubr.f32.vlgmr.msra.gmra.mxu0 %v21665_v29  ;;  %v3639_v54 = vsub.f32 %v21833_v42, %v3638_v19  ;;  %v4067_v9 = vmul.f32 %v20710_v38, %v4058_v53 }
 0x13a   :  { %3418 = vmatpush1.msra.mxu1 %v21673_v30  ;;  %3536 = vmatpush1.msra.mxu0 %v21814_v5  ;;  %v3645_v30 = vsub.f32 %v21841_v16, %v3644_v45 }
 0x13b   :  { %3420 = vmatprep.subr.mxu1 %v21671_v28  ;;  %3538 = vmatprep.subr.mxu0 %v21812_v47  ;;  %v3633_v28 = vsub.f32 %v21838_v23, %v3632_v48  ;;  %v3640_v37 = vand.u32 4294901760, %v3639_v54  ;;  %v21950_v26 = vand.u32 4294901760, %v4067_v9 }
 0x13c   :  { %3422 = vmatpush1.msra.mxu1 %v21677_v33  ;;  %3540 = vmatpush1.msra.mxu0 %v21819_v32  ;;  %v3587_v33 = vand.u32 4294901760, %v21861_v2  ;;  %v3646_v0 = vand.u32 4294901760, %v3645_v30 }
 0x13d   :  { %3286 = vmatprep.mubr.f32.mxu1 %v26972_v4  ;;  %3379 = vmatprep.mubr.f32.mxu0 %v26972_v4  ;;  %v3634_v35 = vand.u32 4294901760, %v3633_v28  ;;  %v21972_v52 = vsub.f32 %v4067_v9, %v21950_v26 }
 0x13e   :  { %3725 = vmatprep.subr.mxu0 %v21803_v44  ;;  %3290 = vmatmul.mubr.f32.gmra.mxu1 %v3012_v57  ;;  %v3588_v58 = vsub.f32 %v21861_v2, %v3587_v33  ;;  %v4061_v57 = vsel %vm4057_vm7, %v4056_v55, %v4052_v3  ;;  %v21969_v44 = vsub.f32 %v4069_v49, %v21945_v12 }
 0x13f   :  { %3381 = vmatmul.mubr.f32.gmra.mxu0 %v21705_v51  ;;  %3629 = vmatprep.subr.mxu1 %v3628_v17  ;;  %v4070_v50 = vmul.f32 %v20713_v24, %v4061_v57  ;;  %v20720_v57 = vld [vmem:[%s26965_s1 + $0x80] sm:$0xff] }
 0x140   :  { %3455 = vmatprep.mubr.f32.mxu1 %v26972_v4  ;;  %3573 = vmatprep.mubr.f32.mxu0 %v26972_v4  ;;  %v3589_v60 = vand.u32 4294901760, %v3588_v58  ;;  %v4650_v38 = vsel %vm103_vm0, %v20720_v57, 0 }
 0x141   :  { %v21927_v63 = vand.u32 4294901760, %v4070_v50 }
 0x142   :  { %3457 = vmatmul.mubr.f32.vlgmr.msra.gmra.mxu1 %v21665_v29  ;;  %v20711_v29 = vld [vmem:[%s26966_s2 + $0xe8] sm:$0xff] }
 0x143   :  { %3579 = vmatmul.mubr.f32.vlgmr.msra.gmra.mxu0 %v3578_v56  ;;  %3635 = vmatpush1.msra.mxu1 %v3634_v35  ;;  %v4068_v7 = vmul.f32 %v20711_v29, %v4060_v61  ;;  %v21934_v14 = vsub.f32 %v4070_v50, %v21927_v63 }
 0x144   :  { %3728 = vmatpush1.msra.mxu0 %v21838_v23  ;;  %3641 = vmatprep.subr.mxu1 %v3640_v37  ;;  %v4207_v23 = vand.u32 4294901760, %v21969_v44 }
 0x145   :  { %3731 = vmatprep.subr.mxu0 %v21833_v42  ;;  %3647 = vmatpush1.msra.mxu1 %v3646_v0  ;;  %v21943_v20 = vand.u32 4294901760, %v4068_v7  ;;  %v4201_v41 = vand.u32 4294901760, %v21934_v14 }
 0x146   :  { %3734 = vmatpush1.msra.mxu0 %v21841_v16  ;;  %3462 = vmatprep.mubr.f32.mxu1 %v26972_v4  ;;  %v4219_v16 = vand.u32 4294901760, %v21972_v52 }
 0x147   :  { %3584 = vmatprep.mubr.f32.mxu0 %v26972_v4  ;;  %3813 = vmatprep.subr.mxu1 %v21796_v31  ;;  %v21964_v43 = vsub.f32 %v4068_v7, %v21943_v20 }
 0x148   :  { %3902 = vmatprep.subr.mxu0 %v3626_v18  ;;  %3464 = vmatmul.mubr.f32.gmra.mxu1 %v21705_v51  ;;  %v20715_v51 = vld [vmem:[%s26965_s1 + $0x78] sm:$0xff]  ;;  %v4151_v18 = vand.u32 4294901760, %v21961_v6 }
 0x149   :  { %3590 = vmatmul.mubr.f32.gmra.mxu0 %v3589_v60  ;;  %3680 = vmatprep.mubr.f32.mxu1 %v26972_v4  ;;  %v4078_v40 = vsel %vm103_vm0, %v20715_v51, 0  ;;  %v4213_v42 = vand.u32 4294901760, %v21964_v43  ;;  %v20716_v60 = vld [vmem:[%s26966_s2 + $0x100] sm:$0xff]  ;;  %v22075_v51 = vand.u32 4294901760, %v4650_v38 }
 0x14a   :  { %3767 = vmatprep.mubr.f32.mxu0 %v26972_v4  ;;  %v21976_v27 = vand.u32 4294901760, %v4078_v40 }
 0x14c   :  { %3682 = vmatmul.mubr.f32.vlgmr.msra.gmra.mxu1 %v21805_v46  ;;  %v21992_v21 = vsub.f32 %v4078_v40, %v21976_v27  ;;  %v20721_v40 = vld [vmem:[%s26965_s1 + $0x88] sm:$0xff] }
 0x14d   :  { %3770 = vmatmul.mubr.f32.vlgmr.msra.gmra.mxu0 %v21830_v22  ;;  %3815 = vmatpush1.msra.mxu1 %v21814_v5  ;;  %v4152_v22 = vsub.f32 %v21961_v6, %v4151_v18 }
 0x14e   :  { %3906 = vmatpush1.msra.mxu0 %v3632_v48  ;;  %3817 = vmatprep.subr.mxu1 %v21812_v47  ;;  %v4627_v48 = vpop.permute.xlu0 %4626 }
 0x14f   :  { %3910 = vmatprep.subr.mxu0 %v3638_v19  ;;  %3819 = vmatpush1.msra.mxu1 %v21819_v32  ;;  %v4153_v17 = vand.u32 4294901760, %v4152_v22 }
 0x150   :  { %3914 = vmatpush1.msra.mxu0 %v3644_v45  ;;  %3687 = vmatprep.mubr.f32.mxu1 %v26972_v4  ;;  %v4631_v45 = vpop.permute.xlu1 %4630 }
 0x151   :  { %3775 = vmatprep.mubr.f32.mxu0 %v26972_v4  ;;  %3991 = vmatprep.subr.mxu1 %v21796_v31  ;;  %v4202_v31 = vsub.f32 %v21934_v14, %v4201_v41  ;;  %v4634_v50 = vsel %vm4632_vm8, %v4627_v48, %v4631_v45 }
 0x152   :  { %3689 = vmatmul.mubr.f32.gmra.mxu1 %v21845_v36  ;;  %3778 = vmatmul.mubr.f32.gmra.mxu0 %v21861_v2  ;;  %v20719_v2 = vld [vmem:[%s26966_s2 + $0x118] sm:$0xff]  ;;  %v4625_v56 = vpop.permute.xlu0 %4624  ;;  %v4644_v7 = vmul.f32 %v20718_v8, %v4634_v50 }
 0x153   :  { %3852 = vmatprep.mubr.f32.mxu1 %v26972_v4  ;;  %3947 = vmatprep.mubr.f32.mxu0 %v26972_v4  ;;  %v4203_v19 = vand.u32 4294901760, %v4202_v31 }
 0x154   :  { %4109 = vmatprep.subr.mxu0 %v21927_v63  ;;  %v4629_v37 = vpop.permute.xlu1 %4628 }
 0x155   :  { %v4635_v24 = vsel %vm4632_vm8, %v4629_v37, %v4625_v56  ;;  %v4633_v29 = vsel %vm4632_vm8, %v4625_v56, %v4629_v37 }
 0x156   :  { %3856 = vmatmul.mubr.f32.vlgmr.msra.gmra.mxu1 %v3576_v11  ;;  %3949 = vmatmul.mubr.f32.vlgmr.msra.gmra.mxu0 %v21805_v46  ;;  %v4214_v11 = vsub.f32 %v21964_v43, %v4213_v42  ;;  %v4642_v39 = vmul.f32 %v20716_v60, %v4633_v29 }
 0x157   :  { %3993 = vmatpush1.msra.mxu1 %v21814_v5  ;;  %4111 = vmatpush1.msra.mxu0 %v21945_v12  ;;  %v4220_v5 = vsub.f32 %v21972_v52, %v4219_v16 }
 0x158   :  { %3995 = vmatprep.subr.mxu1 %v21812_v47  ;;  %4113 = vmatprep.subr.mxu0 %v21943_v20  ;;  %v4208_v47 = vsub.f32 %v21969_v44, %v4207_v23  ;;  %v4215_v34 = vand.u32 4294901760, %v4214_v11  ;;  %v22089_v22 = vand.u32 4294901760, %v4642_v39 }
 0x159   :  { %3997 = vmatpush1.msra.mxu1 %v21819_v32  ;;  %4115 = vmatpush1.msra.mxu0 %v21950_v26  ;;  %v4162_v32 = vand.u32 4294901760, %v21992_v21  ;;  %v4221_v30 = vand.u32 4294901760, %v4220_v5 }
 0x15a   :  { %3861 = vmatprep.mubr.f32.mxu1 %v26972_v4  ;;  %3954 = vmatprep.mubr.f32.mxu0 %v26972_v4  ;;  %v4209_v28 = vand.u32 4294901760, %v4208_v47  ;;  %v4653_v47 = vsel %vm103_vm0, %v20721_v40, 0 }
 0x15b   :  { %4300 = vmatprep.subr.mxu0 %v21934_v14  ;;  %3865 = vmatmul.mubr.f32.gmra.mxu1 %v3587_v33  ;;  %v4163_v3 = vsub.f32 %v21992_v21, %v4162_v32  ;;  %v4636_v33 = vsel %vm4632_vm8, %v4631_v45, %v4627_v48 }
 0x15c   :  { %3956 = vmatmul.mubr.f32.gmra.mxu0 %v21845_v36  ;;  %4204 = vmatprep.subr.mxu1 %v4203_v19  ;;  %v4645_v35 = vmul.f32 %v20719_v2, %v4636_v33  ;;  %v22084_v19 = vand.u32 4294901760, %v4644_v7 }
 0x15d   :  { %4030 = vmatprep.mubr.f32.mxu1 %v26972_v4  ;;  %4148 = vmatprep.mubr.f32.mxu0 %v26972_v4  ;;  %v185_v54 = vpop.f32.mrf.mxu0  ;;  %v4164_v58 = vand.u32 4294901760, %v4163_v3 }
 0x15e   :  { %v22062_v61 = vand.u32 4294901760, %v4645_v35 }
 0x15f   :  { %4032 = vmatmul.mubr.f32.vlgmr.msra.gmra.mxu1 %v21805_v46  ;;  %v22031_v55 = vpop.f32.mrf.mxu0  ;;  %v20717_v46 = vld [vmem:[%s26966_s2 + $0x108] sm:$0xff] }
 0x160   :  { %4154 = vmatmul.mubr.f32.vlgmr.msra.gmra.mxu0 %v4153_v17  ;;  %4210 = vmatpush1.msra.mxu1 %v4209_v28  ;;  %v4643_v62 = vmul.f32 %v20717_v46, %v4635_v24  ;;  %v22073_v14 = vsub.f32 %v4645_v35, %v22062_v61 }
 0x161   :  { %4303 = vmatpush1.msra.mxu0 %v21969_v44  ;;  %4216 = vmatprep.subr.mxu1 %v4215_v34  ;;  %v196_v0 = vpop.f32.mrf.mxu0  ;;  %v22119_v34 = vand.u32 4294901760, %v4653_v47 }
 0x162   :  { %4306 = vmatprep.subr.mxu0 %v21964_v43  ;;  %4222 = vmatpush1.msra.mxu1 %v4221_v30  ;;  %v4776_v44 = vand.u32 4294901760, %v22073_v14 }
 0x163   :  { %4309 = vmatpush1.msra.mxu0 %v21972_v52  ;;  %4037 = vmatprep.mubr.f32.mxu1 %v26972_v4  ;;  %v22045_v59 = vpop.f32.mrf.mxu0  ;;  %v22112_v52 = vsub.f32 %v4644_v7, %v22084_v19 }
 0x164   :  { %4159 = vmatprep.mubr.f32.mxu0 %v26972_v4  ;;  %4388 = vmatprep.subr.mxu1 %v21927_v63  ;;  %v4777_v30 = vsub.f32 %v22073_v14, %v4776_v44 }
 0x165   :  { %4477 = vmatprep.subr.mxu0 %v4201_v41  ;;  %4039 = vmatmul.mubr.f32.gmra.mxu1 %v21845_v36  ;;  %v288_v25 = vpop.f32.mrf.mxu1  ;;  %v376_v1 = vpop.f32.mrf.mxu0  ;;  %v22082_v41 = vand.u32 4294901760, %v4643_v62  ;;  %v4782_v37 = vand.u32 4294901760, %v22112_v52 }
 0x166   :  { %4165 = vmatmul.mubr.f32.gmra.mxu0 %v4164_v58  ;;  %4255 = vmatprep.mubr.f32.mxu1 %v26972_v4  ;;  %v289_v53 = vadd.f32 %v288_v25, %v185_v54 }
 0x167   :  { %4342 = vmatprep.mubr.f32.mxu0 %v26972_v4  ;;  %v22067_v49 = vpop.f32.mrf.mxu1  ;;  %v22069_v9 = vpop.f32.mrf.mxu0  ;;  %v22107_v43 = vsub.f32 %v4643_v62, %v22082_v41 }
 0x168   :  { %v377_v36 = vadd.f32 %v376_v1, %v289_v53 }
 0x169   :  { %4257 = vmatmul.mubr.f32.vlgmr.msra.gmra.mxu1 %v21936_v15  ;;  %v4788_v33 = vand.u32 4294901760, %v22107_v43 }
 0x16a   :  { %4345 = vmatmul.mubr.f32.vlgmr.msra.gmra.mxu0 %v21961_v6  ;;  %4390 = vmatpush1.msra.mxu1 %v21945_v12  ;;  %v384_v31 = vpop.f32.mrf.mxu0  ;;  %v4778_v6 = vand.u32 4294901760, %v4777_v30 }
 0x16b   :  { %4481 = vmatpush1.msra.mxu0 %v4207_v23  ;;  %4392 = vmatprep.subr.mxu1 %v21943_v20  ;;  %v295_v11 = vpop.f32.mrf.mxu1  ;;  %v22102_v23 = vsub.f32 %v4650_v38, %v22075_v51 }
 0x16c   :  { %4485 = vmatprep.subr.mxu0 %v4213_v42  ;;  %4394 = vmatpush1.msra.mxu1 %v21950_v26  ;;  %v296_v5 = vadd.f32 %v295_v11, %v196_v0  ;;  %v22095_v48 = vpop.f32.mrf.mxu0  ;;  %v22139_v0 = vsub.f32 %v4653_v47, %v22119_v34 }
 0x16d   :  { %4489 = vmatpush1.msra.mxu0 %v4219_v16  ;;  %4262 = vmatprep.mubr.f32.mxu1 %v26972_v4  ;;  %v22104_v45 = vpop.f32.mrf.mxu1  ;;  %v22115_v16 = vsub.f32 %v4642_v39, %v22089_v22  ;;  %v4726_v3 = vand.u32 4294901760, %v22102_v23 }
 0x16e   :  { %4350 = vmatprep.mubr.f32.mxu0 %v26972_v4  ;;  %4566 = vmatprep.subr.mxu1 %v21927_v63  ;;  %v385_v42 = vadd.f32 %v384_v31, %v296_v5  ;;  %v555_v17 = vpop.f32.mrf.mxu0  ;;  %v4737_v50 = vand.u32 4294901760, %v22139_v0 }
 0x16f   :  { %4264 = vmatmul.mubr.f32.gmra.mxu1 %v21976_v27  ;;  %4353 = vmatmul.mubr.f32.gmra.mxu0 %v21992_v21  ;;  %v462_v54 = vpop.f32.mrf.mxu1  ;;  %v4794_v35 = vand.u32 4294901760, %v22115_v16 }
 0x170   :  { %4427 = vmatprep.mubr.f32.mxu1 %v26972_v4  ;;  %4522 = vmatprep.mubr.f32.mxu0 %v26972_v4  ;;  %v463_v63 = vadd.f32 %v462_v54, %v377_v36  ;;  %v22123_v28 = vpop.f32.mrf.mxu0  ;;  %v4738_v21 = vsub.f32 %v22139_v0, %v4737_v50 }
 0x171   :  { %4684 = vmatprep.subr.mxu0 %v22062_v61  ;;  %v22130_v2 = vpop.f32.mrf.mxu1 }
 0x172   :  { %v556_v56 = vadd.f32 %v555_v17, %v463_v63  ;;  %v4739_v11 = vand.u32 4294901760, %v4738_v21 }
 0x173   :  { %4431 = vmatmul.mubr.f32.vlgmr.msra.gmra.mxu1 %v4151_v18  ;;  %4524 = vmatmul.mubr.f32.vlgmr.msra.gmra.mxu0 %v21936_v15  ;;  %v4727_v18 = vsub.f32 %v22102_v23, %v4726_v3 }
 0x174   :  { %4568 = vmatpush1.msra.mxu1 %v21945_v12  ;;  %4686 = vmatpush1.msra.mxu0 %v22084_v19  ;;  %v471_v58 = vpop.f32.mrf.mxu1  ;;  %v562_v46 = vpop.f32.mrf.mxu0  ;;  %v4789_v12 = vsub.f32 %v22107_v43, %v4788_v33 }
 0x175   :  { %4570 = vmatprep.subr.mxu1 %v21943_v20  ;;  %4688 = vmatprep.subr.mxu0 %v22082_v41  ;;  %v472_v24 = vadd.f32 %v471_v58, %v385_v42  ;;  %v4783_v20 = vsub.f32 %v22112_v52, %v4782_v37  ;;  %v4728_v1 = vand.u32 4294901760, %v4727_v18 }
 0x176   :  { %4572 = vmatpush1.msra.mxu1 %v21950_v26  ;;  %4690 = vmatpush1.msra.mxu0 %v22089_v22  ;;  %v22153_v57 = vpop.f32.mrf.mxu1  ;;  %v22155_v8 = vpop.f32.mrf.mxu0  ;;  %v4795_v26 = vsub.f32 %v22115_v16, %v4794_v35  ;;  %v4790_v38 = vand.u32 4294901760, %v4789_v12 }
 0x177   :  { %4436 = vmatprep.mubr.f32.mxu1 %v26972_v4  ;;  %4529 = vmatprep.mubr.f32.mxu0 %v26972_v4  ;;  %v563_v60 = vadd.f32 %v562_v46, %v472_v24  ;;  %v4784_v39 = vand.u32 4294901760, %v4783_v20 }
 0x178   :  { %4875 = vmatprep.subr.mxu0 %v22073_v14  ;;  %4440 = vmatmul.mubr.f32.gmra.mxu1 %v4162_v32  ;;  %v638_v29 = vpop.f32.mrf.mxu1  ;;  %v731_v25 = vpop.f32.mrf.mxu0  ;;  %v4796_v36 = vand.u32 4294901760, %v4795_v26 }
 0x179   :  { %4531 = vmatmul.mubr.f32.gmra.mxu0 %v21976_v27  ;;  %4779 = vmatprep.subr.mxu1 %v4778_v6  ;;  %v639_v62 = vadd.f32 %v638_v29, %v556_v56 }
 0x17a   :  { %4605 = vmatprep.mubr.f32.mxu1 %v26972_v4  ;;  %4723 = vmatprep.mubr.f32.mxu0 %v26972_v4  ;;  %v22172_v53 = vpop.f32.mrf.mxu1  ;;  %v22174_v7 = vpop.f32.mrf.mxu0 }
 0x17b   :  { %v732_v32 = vadd.f32 %v731_v25, %v639_v62 }
 0x17c   :  { %4607 = vmatmul.mubr.f32.vlgmr.msra.gmra.mxu1 %v21936_v15 }
 0x17d   :  { %4729 = vmatmul.mubr.f32.vlgmr.msra.gmra.mxu0 %v4728_v1  ;;  %4785 = vmatpush1.msra.mxu1 %v4784_v39 }
 0x17e   :  { %4878 = vmatpush1.msra.mxu0 %v22112_v52  ;;  %4791 = vmatprep.subr.mxu1 %v4790_v38  ;;  %v645_v40 = vpop.f32.mrf.mxu1  ;;  %v742_v31 = vpop.f32.mrf.mxu0 }
 0x17f   :  { %4881 = vmatprep.subr.mxu0 %v22107_v43  ;;  %4797 = vmatpush1.msra.mxu1 %v4796_v36  ;;  %v646_v47 = vadd.f32 %v645_v40, %v563_v60 }
 0x180   :  { %4884 = vmatpush1.msra.mxu0 %v22115_v16  ;;  %4612 = vmatprep.mubr.f32.mxu1 %v26972_v4  ;;  %v22184_v5 = vpop.f32.mrf.mxu1  ;;  %v22186_v42 = vpop.f32.mrf.mxu0 }
 0x181   :  { %4734 = vmatprep.mubr.f32.mxu0 %v26972_v4  ;;  %4963 = vmatprep.subr.mxu1 %v22062_v61  ;;  %v743_v15 = vadd.f32 %v742_v31, %v646_v47 }
 0x182   :  { %5052 = vmatprep.subr.mxu0 %v4776_v44  ;;  %4614 = vmatmul.mubr.f32.gmra.mxu1 %v21976_v27  ;;  %v834_v17 = vpop.f32.mrf.mxu1  ;;  %v922_v54 = vpop.f32.mrf.mxu0 }
 0x183   :  { %4740 = vmatmul.mubr.f32.gmra.mxu0 %v4739_v11  ;;  %4830 = vmatprep.mubr.f32.mxu1 %v26972_v4  ;;  %v835_v63 = vadd.f32 %v834_v17, %v732_v32 }
 0x184   :  { %4917 = vmatprep.mubr.f32.mxu0 %v26972_v4  ;;  %v22195_v30 = vpop.f32.mrf.mxu1  ;;  %v22197_v56 = vpop.f32.mrf.mxu0 }
 0x185   :  { %v923_v58 = vadd.f32 %v922_v54, %v835_v63 }
 0x186   :  { %4832 = vmatmul.mubr.f32.vlgmr.msra.gmra.mxu1 %v22075_v51 }
 0x187   :  { %4920 = vmatmul.mubr.f32.vlgmr.msra.gmra.mxu0 %v22102_v23  ;;  %4965 = vmatpush1.msra.mxu1 %v22084_v19  ;;  %v841_v27 = vpop.f32.mrf.mxu1 }
 0x188   :  { %5056 = vmatpush1.msra.mxu0 %v4782_v37  ;;  %4967 = vmatprep.subr.mxu1 %v22082_v41  ;;  %v842_v14 = vadd.f32 %v841_v27, %v743_v15  ;;  %v930_v44 = vpop.f32.mrf.mxu0 }
 0x189   :  { %5060 = vmatprep.subr.mxu0 %v4788_v33  ;;  %4969 = vmatpush1.msra.mxu1 %v22089_v22  ;;  %v22208_v46 = vpop.f32.mrf.mxu1 }
 0x18a   :  { %5064 = vmatpush1.msra.mxu0 %v4794_v35  ;;  %4837 = vmatprep.mubr.f32.mxu1 %v26972_v4  ;;  %v931_v6 = vadd.f32 %v930_v44, %v842_v14  ;;  %v22213_v18 = vpop.f32.mrf.mxu0 }
 0x18b   :  { %5141 = vmatprep.subr.mxu1 %v22062_v61  ;;  %4839 = vmatmul.mubr.f32.gmra.mxu1 %v22119_v34  ;;  %v1008_v52 = vpop.f32.mrf.mxu1 }
 0x18c   :  { %4925 = vmatprep.mubr.f32.mxu0 %v26972_v4  ;;  %5002 = vmatprep.mubr.f32.mxu1 %v26972_v4  ;;  %v1009_v43 = vadd.f32 %v1008_v52, %v923_v58  ;;  %v1101_v33 = vpop.f32.mrf.mxu0 }
 0x18d   :  { %4928 = vmatmul.mubr.f32.gmra.mxu0 %v22139_v0  ;;  %v22220_v16 = vpop.f32.mrf.mxu1 }
 0x18e   :  { %5097 = vmatprep.mubr.f32.mxu0 %v26972_v4  ;;  %v1102_v37 = vadd.f32 %v1101_v33, %v1009_v43  ;;  %v22223_v35 = vpop.f32.mrf.mxu0 }
 0x18f   :  { %26990 = vst [vmem:[#allocation12_spill] sm:$0xff] %v22223_v35  ;;  %5006 = vmatmul.mubr.f32.vlgmr.msra.gmra.mxu1 %v4726_v3 }
 0x190   :  { %5143 = vmatpush1.msra.mxu1 %v22084_v19  ;;  %5011 = vmatprep.mubr.f32.mxu1 %v26972_v4 }
 0x191   :  { %5145 = vmatprep.subr.mxu1 %v22082_v41  ;;  %5099 = vmatmul.mubr.f32.vlgmr.msra.gmra.mxu0 %v22075_v51  ;;  %v1017_v61 = vpop.f32.mrf.mxu1  ;;  %v1108_v24 = vpop.f32.mrf.mxu0 }
 0x192   :  { %5147 = vmatpush1.msra.mxu1 %v22089_v22  ;;  %5104 = vmatprep.mubr.f32.mxu0 %v26972_v4  ;;  %v1018_v12 = vadd.f32 %v1017_v61, %v931_v6 }
 0x193   :  { %5015 = vmatmul.mubr.f32.gmra.mxu1 %v4737_v50  ;;  %v22235_v23 = vpop.f32.mrf.mxu1  ;;  %v22237_v3 = vpop.f32.mrf.mxu0 }
 0x194   :  { %26991 = vst [vmem:[#allocation13_spill] sm:$0xff] %v22237_v3  ;;  %5180 = vmatprep.mubr.f32.mxu1 %v26972_v4  ;;  %v1109_v19 = vadd.f32 %v1108_v24, %v1018_v12 }
 0x195   :  { %5106 = vmatmul.mubr.f32.gmra.mxu0 %v22119_v34  ;;  %v1184_v41 = vpop.f32.mrf.mxu1  ;;  %v1302_v20 = vpop.f32.mrf.mxu0 }
 0x196   :  { %v1185_v26 = vadd.f32 %v1184_v41, %v1102_v37  ;;  %5321 = vmatprep.mubr.f32.mxu0 %v26972_v4 }
 0x197   :  { %5182 = vmatmul.mubr.f32.vlgmr.msra.gmra.mxu1 %v22075_v51  ;;  %v22243_v22 = vpop.f32.mrf.mxu1  ;;  %v22245_v0 = vpop.f32.mrf.mxu0 }
 0x198   :  { %26992 = vst [vmem:[#allocation14_spill] sm:$0xff] %v22243_v22  ;;  %5187 = vmatprep.mubr.f32.mxu1 %v26972_v4 }
 0x19b   :  { %5189 = vmatmul.mubr.f32.gmra.mxu1 %v22119_v34  ;;  %v1191_v50 = vpop.f32.mrf.mxu1  ;;  %v1313_v60 = vpop.f32.mrf.mxu0 }
 0x19c   :  { %v1192_v29 = vadd.f32 %v1191_v50, %v1109_v19  ;;  %5428 = vmatprep.mubr.f32.mxu1 %v26972_v4 }
 0x19d   :  { %v22250_v25 = vpop.f32.mrf.mxu1  ;;  %v22252_v1 = vpop.f32.mrf.mxu0 }
 0x19e   :  { %26993 = vst [vmem:[#allocation15_spill] sm:$0xff] %v22250_v25 }
 0x19f   :  { %v1405_v62 = vpop.f32.mrf.mxu1  ;;  %v1493_v38 = vpop.f32.mrf.mxu0 }
 0x1a0   :  { %v1406_v51 = vadd.f32 %v1405_v62, %v1302_v20 }
 0x1a1   :  { %v22254_v39 = vpop.f32.mrf.mxu1  ;;  %v22256_v36 = vpop.f32.mrf.mxu0 }
 0x1a2   :  { %v1494_v21 = vadd.f32 %v1493_v38, %v1406_v51 }
 0x1a4   :  { %v1412_v32 = vpop.f32.mrf.mxu1 }
 0x1a5   :  { %v1413_v40 = vadd.f32 %v1412_v32, %v1313_v60  ;;  %v1501_v34 = vpop.f32.mrf.mxu0 }
 0x1a6   :  { %v22258_v31 = vpop.f32.mrf.mxu1 }
 0x1a7   :  { %v1502_v11 = vadd.f32 %v1501_v34, %v1413_v40  ;;  %v22260_v47 = vpop.f32.mrf.mxu0 }
 0x1a8   :  { %v1579_v15 = vpop.f32.mrf.mxu1 }
 0x1a9   :  { %v1580_v17 = vadd.f32 %v1579_v15, %v1494_v21  ;;  %v1672_v54 = vpop.f32.mrf.mxu0 }
 0x1aa   :  { %v22262_v63 = vpop.f32.mrf.mxu1 }
 0x1ab   :  { %v1673_v58 = vadd.f32 %v1672_v54, %v1580_v17  ;;  %v22264_v27 = vpop.f32.mrf.mxu0 }
 0x1ac   :  { %26994 = vst [vmem:[#allocation16_spill] sm:$0xff] %v22264_v27 }
 0x1ae   :  { %v1588_v14 = vpop.f32.mrf.mxu1  ;;  %v1679_v44 = vpop.f32.mrf.mxu0 }
 0x1af   :  { %v1589_v6 = vadd.f32 %v1588_v14, %v1502_v11 }
 0x1b0   :  { %v22266_v52 = vpop.f32.mrf.mxu1  ;;  %v22268_v43 = vpop.f32.mrf.mxu0 }
 0x1b1   :  { %26995 = vst [vmem:[#allocation17_spill] sm:$0xff] %v22268_v43  ;;  %v1680_v33 = vadd.f32 %v1679_v44, %v1589_v6 }
 0x1b2   :  { %v1755_v37 = vpop.f32.mrf.mxu1  ;;  %v1877_v61 = vpop.f32.mrf.mxu0 }
 0x1b3   :  { %v1756_v24 = vadd.f32 %v1755_v37, %v1673_v58 }
 0x1b4   :  { %v22270_v12 = vpop.f32.mrf.mxu1  ;;  %v22272_v19 = vpop.f32.mrf.mxu0 }
 0x1b5   :  { %26996 = vst [vmem:[#allocation18_spill] sm:$0xff] %v22270_v12  ;;  %v1767_v41 = vadd.f32 %v1756_v24, %v1185_v26 }
 0x1b8   :  { %v1762_v20 = vpop.f32.mrf.mxu1  ;;  %v1888_v50 = vpop.f32.mrf.mxu0 }
 0x1b9   :  { %v1763_v60 = vadd.f32 %v1762_v20, %v1680_v33 }
 0x1ba   :  { %v22274_v62 = vpop.f32.mrf.mxu1  ;;  %v22276_v38 = vpop.f32.mrf.mxu0 }
 0x1bb   :  { %26997 = vst [vmem:[#allocation19_spill] sm:$0xff] %v22274_v62  ;;  %v1769_v51 = vadd.f32 %v1763_v60, %v1192_v29 }
 0x1bc   :  { %v1980_v21 = vpop.f32.mrf.mxu1  ;;  %v2068_v32 = vpop.f32.mrf.mxu0 }
 0x1bd   :  { %v1981_v40 = vadd.f32 %v1980_v21, %v1877_v61 }
 0x1be   :  { %v22278_v34 = vpop.f32.mrf.mxu1  ;;  %v22280_v11 = vpop.f32.mrf.mxu0 }
 0x1bf   :  { %v2069_v15 = vadd.f32 %v2068_v32, %v1981_v40 }
 0x1c1   :  { %v1987_v17 = vpop.f32.mrf.mxu1 }
 0x1c2   :  { %v1988_v54 = vadd.f32 %v1987_v17, %v1888_v50  ;;  %v2076_v58 = vpop.f32.mrf.mxu0 }
 0x1c3   :  { %v22282_v26 = vpop.f32.mrf.mxu1 }
 0x1c4   :  { %v2077_v14 = vadd.f32 %v2076_v58, %v1988_v54  ;;  %v22284_v44 = vpop.f32.mrf.mxu0 }
 0x1c5   :  { %v2154_v6 = vpop.f32.mrf.mxu1 }
 0x1c6   :  { %v2155_v33 = vadd.f32 %v2154_v6, %v2069_v15  ;;  %v2247_v37 = vpop.f32.mrf.mxu0 }
 0x1c7   :  { %v22286_v29 = vpop.f32.mrf.mxu1 }
 0x1c8   :  { %v2248_v24 = vadd.f32 %v2247_v37, %v2155_v33  ;;  %v22288_v61 = vpop.f32.mrf.mxu0 }
 0x1c9   :  { %26998 = vst [vmem:[#allocation20_spill] sm:$0xff] %v22288_v61  ;;  %v2163_v20 = vpop.f32.mrf.mxu1 }
 0x1ca   :  { %v2164_v60 = vadd.f32 %v2163_v20, %v2077_v14  ;;  %v2254_v21 = vpop.f32.mrf.mxu0 }
 0x1cb   :  { %v22290_v32 = vpop.f32.mrf.mxu1 }
 0x1cc   :  { %v2255_v50 = vadd.f32 %v2254_v21, %v2164_v60  ;;  %v22292_v40 = vpop.f32.mrf.mxu0 }
 0x1cd   :  { %26999 = vst [vmem:[#allocation21_spill] sm:$0xff] %v22292_v40  ;;  %v2330_v17 = vpop.f32.mrf.mxu1 }
 0x1ce   :  { %v2331_v54 = vadd.f32 %v2330_v17, %v2248_v24  ;;  %v2430_v58 = vpop.f32.mrf.mxu0 }
 0x1cf   :  { %v22294_v10 = vpop.f32.mrf.mxu1 }
 0x1d0   :  { %27000 = vst [vmem:[#allocation22_spill] sm:$0xff] %v22294_v10  ;;  %v2342_v15 = vadd.f32 %v2331_v54, %v1767_v41  ;;  %v22296_v6 = vpop.f32.mrf.mxu0 }
 0x1d1   :  { %v2337_v4 = vpop.f32.mrf.mxu1 }
 0x1d2   :  { %v2338_v33 = vadd.f32 %v2337_v4, %v2255_v50  ;;  %v2441_v37 = vpop.f32.mrf.mxu0 }
 0x1d3   :  { %v22298_v13 = vpop.f32.mrf.mxu1 }
 0x1d4   :  { %27001 = vst [vmem:[#allocation23_spill] sm:$0xff] %v22298_v13  ;;  %v2344_v14 = vadd.f32 %v2338_v33, %v1769_v51  ;;  %v22300_v20 = vpop.f32.mrf.mxu0 }
 0x1d5   :  { %v2533_v25 = vpop.f32.mrf.mxu1 }
 0x1d6   :  { %v2534_v60 = vadd.f32 %v2533_v25, %v2430_v58  ;;  %v2621_v21 = vpop.f32.mrf.mxu0 }
 0x1d7   :  { %v22302_v22 = vpop.f32.mrf.mxu1 }
 0x1d8   :  { %v2622_v24 = vadd.f32 %v2621_v21, %v2534_v60  ;;  %v22304_v17 = vpop.f32.mrf.mxu0 }
 0x1d9   :  { %v2540_v10 = vpop.f32.mrf.mxu1 }
 0x1da   :  { %v2541_v41 = vadd.f32 %v2540_v10, %v2441_v37  ;;  %v2629_v54 = vpop.f32.mrf.mxu0 }
 0x1db   :  { %v22306_v40 = vpop.f32.mrf.mxu1 }
 0x1dc   :  { %v2630_v4 = vadd.f32 %v2629_v54, %v2541_v41  ;;  %v22308_v50 = vpop.f32.mrf.mxu0 }
 0x1dd   :  { %v2707_v13 = vpop.f32.mrf.mxu1 }
 0x1de   :  { %v2708_v51 = vadd.f32 %v2707_v13, %v2622_v24  ;;  %v2800_v33 = vpop.f32.mrf.mxu0 }
 0x1df   :  { %v22310_v62 = vpop.f32.mrf.mxu1 }
 0x1e0   :  { %27002 = vst [vmem:[#allocation24_spill] sm:$0xff] %v22310_v62  ;;  %v2801_v25 = vadd.f32 %v2800_v33, %v2708_v51  ;;  %v22312_v58 = vpop.f32.mrf.mxu0 }
 0x1e1   :  { %27003 = vst [vmem:[#allocation25_spill] sm:$0xff] %v22312_v58  ;;  %v2716_v61 = vpop.f32.mrf.mxu1 }
 0x1e2   :  { %v2717_v60 = vadd.f32 %v2716_v61, %v2630_v4  ;;  %v2807_v21 = vpop.f32.mrf.mxu0 }
 0x1e3   :  { %v22314_v12 = vpop.f32.mrf.mxu1 }
 0x1e4   :  { %27004 = vst [vmem:[#allocation26_spill] sm:$0xff] %v22314_v12  ;;  %v2808_v10 = vadd.f32 %v2807_v21, %v2717_v60  ;;  %v22316_v37 = vpop.f32.mrf.mxu0 }
 0x1e5   :  { %27005 = vst [vmem:[#allocation27_spill] sm:$0xff] %v22316_v37  ;;  %v2883_v3 = vpop.f32.mrf.mxu1 }
 0x1e6   :  { %v2884_v41 = vadd.f32 %v2883_v3, %v2801_v25  ;;  %v3005_v54 = vpop.f32.mrf.mxu0 }
 0x1e7   :  { %v22318_v35 = vpop.f32.mrf.mxu1 }
 0x1e8   :  { %27006 = vst [vmem:[#allocation28_spill] sm:$0xff] %v22318_v35  ;;  %v2895_v13 = vadd.f32 %v2884_v41, %v2342_v15  ;;  %v22320_v24 = vpop.f32.mrf.mxu0 }
 0x1eb   :  { %v2890_v62 = vpop.f32.mrf.mxu1 }
 0x1ec   :  { %v2891_v51 = vadd.f32 %v2890_v62, %v2808_v10  ;;  %v3016_v33 = vpop.f32.mrf.mxu0 }
 0x1ed   :  { %v22322_v58 = vpop.f32.mrf.mxu1 }
 0x1ee   :  { %27007 = vst [vmem:[#allocation29_spill] sm:$0xff] %v22322_v58  ;;  %v2897_v61 = vadd.f32 %v2891_v51, %v2344_v14  ;;  %v22324_v4 = vpop.f32.mrf.mxu0 }
 0x1ef   :  { %27008 = vst [vmem:[#allocation30_spill] sm:$0xff] %v22324_v4  ;;  %v3108_v12 = vpop.f32.mrf.mxu1 }
 0x1f0   :  { %v3109_v60 = vadd.f32 %v3108_v12, %v3005_v54  ;;  %v3196_v21 = vpop.f32.mrf.mxu0 }
 0x1f1   :  { %v22326_v37 = vpop.f32.mrf.mxu1 }
 0x1f2   :  { %27009 = vst [vmem:[#allocation31_spill] sm:$0xff] %v22326_v37  ;;  %v3197_v3 = vadd.f32 %v3196_v21, %v3109_v60  ;;  %v22328_v25 = vpop.f32.mrf.mxu0 }
 0x1f3   :  { %27010 = vst [vmem:[#allocation32_spill] sm:$0xff] %v22328_v25 }
 0x1f5   :  { %v3115_v35 = vpop.f32.mrf.mxu1  ;;  %v3204_v15 = vpop.f32.mrf.mxu0 }
 0x1f6   :  { %v3116_v41 = vadd.f32 %v3115_v35, %v3016_v33 }
 0x1f7   :  { %v22330_v43 = vpop.f32.mrf.mxu1  ;;  %v22332_v62 = vpop.f32.mrf.mxu0 }
 0x1f8   :  { %27011 = vst [vmem:[#allocation33_spill] sm:$0xff] %v22330_v43  ;;  %27012 = vst [vmem:[#allocation34_spill] sm:$0xff] %v22332_v62  ;;  %v3205_v10 = vadd.f32 %v3204_v15, %v3116_v41 }
 0x1f9   :  { %v3282_v58 = vpop.f32.mrf.mxu1  ;;  %v3375_v14 = vpop.f32.mrf.mxu0 }
 0x1fa   :  { %v3283_v51 = vadd.f32 %v3282_v58, %v3197_v3 }
 0x1fb   :  { %v22334_v4 = vpop.f32.mrf.mxu1  ;;  %v22336_v12 = vpop.f32.mrf.mxu0 }
 0x1fc   :  { %v3376_v54 = vadd.f32 %v3375_v14, %v3283_v51 }
 0x1fe   :  { %v3291_v27 = vpop.f32.mrf.mxu1 }
 0x1ff   :  { %v3292_v60 = vadd.f32 %v3291_v27, %v3205_v10  ;;  %v3382_v21 = vpop.f32.mrf.mxu0 }
 0x200   :  { %v22338_v25 = vpop.f32.mrf.mxu1 }
 0x201   :  { %v3383_v37 = vadd.f32 %v3382_v21, %v3292_v60  ;;  %v22340_v35 = vpop.f32.mrf.mxu0 }
 0x202   :  { %27013 = vst [vmem:[#allocation35_spill] sm:$0xff] %v22340_v35  ;;  %v3458_v33 = vpop.f32.mrf.mxu1 }
 0x203   :  { %v3459_v43 = vadd.f32 %v3458_v33, %v3376_v54  ;;  %v22342_v62 = vpop.f32.mrf.mxu0 }
 0x204   :  { %v22344_v15 = vpop.f32.mrf.mxu1 }
 0x205   :  { %27014 = vst [vmem:[#allocation36_spill] sm:$0xff] %v22344_v15  ;;  %v22346_v58 = vadd.f32 %v3459_v43, %v2895_v13  ;;  %v22348_v3 = vpop.f32.mrf.mxu0 }
 0x207   :  { %27015 = vst [vmem:[#allocation37_spill] sm:$0xff] %v22346_v58 }
 0x208   :  { %v3465_v41 = vpop.f32.mrf.mxu1 }
 0x209   :  { %v3466_v14 = vadd.f32 %v3465_v41, %v3383_v37  ;;  %v22350_v51 = vpop.f32.mrf.mxu0 }
 0x20a   :  { %v22352_v27 = vpop.f32.mrf.mxu1 }
 0x20b   :  { %27016 = vst [vmem:[#allocation38_spill] sm:$0xff] %v22352_v27  ;;  %v22354_v10 = vadd.f32 %v3466_v14, %v2897_v61  ;;  %v22356_v60 = vpop.f32.mrf.mxu0 }
 0x20c   :  { %v22358_v21 = vpop.f32.mrf.mxu1 }
 0x20d   :  { %27017 = vst [vmem:[#allocation39_spill] sm:$0xff] %v22354_v10  ;;  %v22360_v54 = vpop.f32.mrf.mxu0 }
 0x20e   :  { %27018 = vst [vmem:[#allocation40_spill] sm:$0xff] %v22360_v54  ;;  %v22362_v33 = vpop.f32.mrf.mxu1 }
 0x20f   :  { %v22364_v43 = vpop.f32.mrf.mxu0 }
 0x210   :  { %27019 = vst [vmem:[#allocation41_spill] sm:$0xff] %v22364_v43 }
 0x212   :  { %v22366_v13 = vpop.f32.mrf.mxu1  ;;  %v22368_v58 = vpop.f32.mrf.mxu0 }
 0x213   :  { %27020 = vst [vmem:[#allocation42_spill] sm:$0xff] %v22368_v58 }
 0x214   :  { %v22370_v37 = vpop.f32.mrf.mxu1  ;;  %v22372_v41 = vpop.f32.mrf.mxu0 }
 0x215   :  { %27021 = vst [vmem:[#allocation43_spill] sm:$0xff] %v22370_v37  ;;  %27022 = vst [vmem:[#allocation44_spill] sm:$0xff] %v22372_v41 }
 0x216   :  { %v22374_v61 = vpop.f32.mrf.mxu1  ;;  %v22376_v14 = vpop.f32.mrf.mxu0 }
 0x217   :  { %27023 = vst [vmem:[#allocation45_spill] sm:$0xff] %v22374_v61  ;;  %27024 = vst [vmem:[#allocation46_spill] sm:$0xff] %v22376_v14 }
 0x218   :  { %v22378_v10 = vpop.f32.mrf.mxu1  ;;  %v22380_v27 = vpop.f32.mrf.mxu0 }
 0x219   :  { %27025 = vst [vmem:[#allocation47_spill] sm:$0xff] %v22378_v10  ;;  %27026 = vst [vmem:[#allocation48_spill] sm:$0xff] %v22380_v27  ;;  %v291_v27 = vadd.f32 %v22067_v49, %v22031_v55 }
 0x21b   :  { %v22382_v35 = vpop.f32.mrf.mxu1 }
 0x21c   :  { %27027 = vst [vmem:[#allocation49_spill] sm:$0xff] %v22382_v35  ;;  %v22384_v54 = vpop.f32.mrf.mxu0 }
 0x21d   :  { %27028 = vst [vmem:[#allocation50_spill] sm:$0xff] %v22384_v54  ;;  %v22386_v43 = vpop.f32.mrf.mxu1  ;;  %v298_v54 = vadd.f32 %v22104_v45, %v22045_v59 }
 0x21e   :  { %27029 = vst [vmem:[#allocation51_spill] sm:$0xff] %v22386_v43  ;;  %v22388_v15 = vpop.f32.mrf.mxu0 }
 0x21f   :  { %27030 = vst [vmem:[#allocation52_spill] sm:$0xff] %v22388_v15  ;;  %v22390_v58 = vpop.f32.mrf.mxu1 }
 0x220   :  { %27031 = vst [vmem:[#allocation53_spill] sm:$0xff] %v22390_v58  ;;  %v22392_v37 = vpop.f32.mrf.mxu0 }
 0x221   :  { %v22394_v41 = vpop.f32.mrf.mxu1 }
 0x222   :  { %27032 = vst [vmem:[#allocation54_spill] sm:$0xff] %v22394_v41  ;;  %v22396_v61 = vpop.f32.mrf.mxu0  ;;  %v379_v41 = vadd.f32 %v22069_v9, %v291_v27 }
 0x223   :  { %27033 = vst [vmem:[#allocation55_spill] sm:$0xff] %v22396_v61 }
 0x224   :  { %v465_v55 = vadd.f32 %v22130_v2, %v379_v41 }
 0x225   :  { %v22398_v14 = vpop.f32.mrf.mxu1 }
 0x226   :  { %27034 = vst [vmem:[#allocation56_spill] sm:$0xff] %v22398_v14  ;;  %v22400_v10 = vpop.f32.mrf.mxu0  ;;  %v387_v14 = vadd.f32 %v22095_v48, %v298_v54 }
 0x227   :  { %27035 = vst [vmem:[#allocation57_spill] sm:$0xff] %v22400_v10  ;;  %v22406_v43 = vpop.f32.mrf.mxu1 }
 0x228   :  { %27036 = vst [vmem:[#allocation58_spill] sm:$0xff] %v22406_v43  ;;  %v22408_v15 = vpop.f32.mrf.mxu0  ;;  %v474_v59 = vadd.f32 %v22153_v57, %v387_v14  ;;  %v558_v43 = vadd.f32 %v22123_v28, %v465_v55  ;;  %v1408_v14 = vadd.f32 %v22254_v39, %v22245_v0  ;;  %v1983_v55 = vadd.f32 %v22278_v34, %v22272_v19 }
 0x229   :  { %27037 = vst [vmem:[#allocation59_spill] sm:$0xff] %v22408_v15  ;;  %v22410_v58 = vpop.f32.mrf.mxu1 }
 0x22a   :  { %v22412_v35 = vpop.f32.mrf.mxu0  ;;  %v641_v48 = vadd.f32 %v22172_v53, %v558_v43  ;;  %v1415_v53 = vadd.f32 %v22258_v31, %v22252_v1  ;;  %v1496_v0 = vadd.f32 %v22256_v36, %v1408_v14  ;;  %v2071_v36 = vadd.f32 %v22280_v11, %v1983_v55 }
 0x22b   :  { %27038 = vst [vmem:[#allocation60_spill] sm:$0xff] %v22412_v35  ;;  %v22416_v61 = vpop.f32.mrf.mxu1  ;;  %v565_v35 = vadd.f32 %v22155_v8, %v474_v59 }
 0x22c   :  { %v22418_v10 = vpop.f32.mrf.mxu0  ;;  %v734_v28 = vadd.f32 %v22174_v7, %v641_v48  ;;  %v1990_v7 = vadd.f32 %v22282_v26, %v22276_v38  ;;  %v1504_v1 = vadd.f32 %v22260_v47, %v1415_v53  ;;  %v1582_v34 = vadd.f32 %v22262_v63, %v1496_v0 }
 0x22d   :  { %v648_v27 = vadd.f32 %v22184_v5, %v565_v35 }
 0x22e   :  { %v837_v5 = vadd.f32 %v22195_v30, %v734_v28  ;;  %v2536_v30 = vadd.f32 %v22302_v22, %v22296_v6  ;;  %v1591_v47 = vadd.f32 %v22266_v52, %v1504_v1  ;;  %v2079_v48 = vadd.f32 %v22284_v44, %v1990_v7  ;;  %v27039_v52 = vld [vmem:[#allocation31_spill] sm:$0xff]  ;;  %v27040_v44 = vld [vmem:[#allocation16_spill] sm:$0xff] }
 0x22f   :  { %v22422_v49 = vpop.f32.mrf.mxu1  ;;  %v22424_v45 = vpop.f32.mrf.mxu0  ;;  %v745_v8 = vadd.f32 %v22186_v42, %v648_v27  ;;  %v3111_v27 = vadd.f32 %v27039_v52, %v22320_v24  ;;  %v1675_v28 = vadd.f32 %v27040_v44, %v1582_v34  ;;  %v27048_v24 = vld [vmem:[#allocation19_spill] sm:$0xff]  ;;  %v27050_v34 = vld [vmem:[#allocation32_spill] sm:$0xff]  ;;  %v27053_v52 = vld [vmem:[#allocation14_spill] sm:$0xff] }
 0x230   :  { %v925_v19 = vadd.f32 %v22197_v56, %v837_v5  ;;  %v2157_v56 = vadd.f32 %v22286_v29, %v2071_v36  ;;  %v2624_v63 = vadd.f32 %v22304_v17, %v2536_v30  ;;  %v27046_v17 = vld [vmem:[#allocation18_spill] sm:$0xff]  ;;  %v27054_v44 = vld [vmem:[#allocation15_spill] sm:$0xff] }
 0x231   :  { %v22428_v15 = vpop.f32.mrf.mxu1  ;;  %v22430_v9 = vpop.f32.mrf.mxu0  ;;  %v844_v35 = vadd.f32 %v22208_v46, %v745_v8  ;;  %v2543_v46 = vadd.f32 %v22306_v40, %v22300_v20  ;;  %v27041_v8 = vld [vmem:[#allocation17_spill] sm:$0xff]  ;;  %v1758_v0 = vadd.f32 %v27046_v17, %v1675_v28  ;;  %v3199_v36 = vadd.f32 %v27050_v34, %v3111_v27  ;;  %v27059_v34 = vld [vmem:[#allocation28_spill] sm:$0xff] }
 0x232   :  { %v1011_v40 = vadd.f32 %v22220_v16, %v925_v19  ;;  %v1682_v14 = vadd.f32 %v27041_v8, %v1591_v47  ;;  %v27042_v16 = vld [vmem:[#allocation24_spill] sm:$0xff]  ;;  %v27049_v19 = vld [vmem:[#allocation21_spill] sm:$0xff]  ;;  %v27051_v47 = vld [vmem:[#allocation30_spill] sm:$0xff] }
 0x233   :  { %v22434_v54 = vpop.f32.mrf.mxu1  ;;  %v22436_v2 = vpop.f32.mrf.mxu0  ;;  %v933_v38 = vadd.f32 %v22213_v18, %v844_v35  ;;  %v2166_v18 = vadd.f32 %v22290_v32, %v2079_v48  ;;  %v2632_v11 = vadd.f32 %v22308_v50, %v2543_v46  ;;  %v2710_v53 = vadd.f32 %v27042_v16, %v2624_v63  ;;  %v27044_v35 = vld [vmem:[#allocation12_spill] sm:$0xff]  ;;  %v27045_v32 = vld [vmem:[#allocation13_spill] sm:$0xff]  ;;  %v27055_v8 = vld [vmem:[#allocation22_spill] sm:$0xff] }
 0x234   :  { %v1104_v55 = vadd.f32 %v27044_v35, %v1011_v40  ;;  %v27047_v50 = vld [vmem:[#allocation20_spill] sm:$0xff]  ;;  %v1765_v46 = vadd.f32 %v27048_v24, %v1682_v14  ;;  %v27052_v48 = vld [vmem:[#allocation33_spill] sm:$0xff]  ;;  %v3285_v27 = vadd.f32 %v22334_v4, %v3199_v36  ;;  %v3691_v4 = vadd.f32 %v22366_v13, %v22350_v51 }
 0x235   :  { %v22438_v57 = vpop.f32.mrf.mxu1  ;;  %v22440_v41 = vpop.f32.mrf.mxu0  ;;  %v1020_v6 = vadd.f32 %v22235_v23, %v933_v38  ;;  %v27043_v23 = vld [vmem:[#allocation26_spill] sm:$0xff]  ;;  %v2250_v1 = vadd.f32 %v27047_v50, %v2157_v56  ;;  %v2257_v38 = vadd.f32 %v27049_v19, %v2166_v18  ;;  %v3118_v63 = vadd.f32 %v27052_v48, %v27051_v47  ;;  %v27056_v56 = vld [vmem:[#allocation23_spill] sm:$0xff]  ;;  %v27057_v35 = vld [vmem:[#allocation25_spill] sm:$0xff] }
 0x236   :  { %v2719_v5 = vadd.f32 %v27043_v23, %v2632_v11  ;;  %v1187_v40 = vadd.f32 %v27053_v52, %v1104_v55  ;;  %v2803_v14 = vadd.f32 %v27057_v35, %v2710_v53  ;;  %v27060_v55 = vld [vmem:[#allocation29_spill] sm:$0xff]  ;;  %v3686_v53 = vadd.f32 %v22362_v33, %v22348_v3  ;;  %v27063_v3 = vld [vmem:[#allocation36_spill] sm:$0xff] }
 0x237   :  { %v1111_v7 = vadd.f32 %v27045_v32, %v1020_v6  ;;  %v2333_v28 = vadd.f32 %v27055_v8, %v2250_v1  ;;  %v2340_v23 = vadd.f32 %v27056_v56, %v2257_v38  ;;  %v27058_v32 = vld [vmem:[#allocation27_spill] sm:$0xff]  ;;  %v3684_v38 = vadd.f32 %v22358_v21, %v22342_v62  ;;  %v27065_v13 = vld [vmem:[#allocation40_spill] sm:$0xff] }
 0x238   :  { %v22448_v43 = vpop.f32.mrf.mxu1  ;;  %v2810_v18 = vadd.f32 %v27058_v32, %v2719_v5  ;;  %v1768_v50 = vadd.f32 %v1758_v0, %v1187_v40  ;;  %v2886_v47 = vadd.f32 %v27059_v34, %v2803_v14  ;;  %v27062_v40 = vld [vmem:[#allocation43_spill] sm:$0xff] }
 0x239   :  { %v22454_v59 = vpop.f32.mrf.mxu0  ;;  %v1194_v6 = vadd.f32 %v27054_v44, %v1111_v7  ;;  %v27061_v7 = vld [vmem:[#allocation34_spill] sm:$0xff]  ;;  %v3772_v56 = vadd.f32 %v27065_v13, %v3684_v38  ;;  %v27068_v14 = vld [vmem:[#allocation55_spill] sm:$0xff]  ;;  %v27075_v38 = vld [vmem:[#allocation60_spill] sm:$0xff] }
 0x23a   :  { %v22458_v42 = vpop.f32.mrf.mxu1  ;;  %v2893_v48 = vadd.f32 %v27060_v55, %v2810_v18  ;;  %v3207_v52 = vadd.f32 %v27061_v7, %v3118_v63  ;;  %v2343_v44 = vadd.f32 %v2333_v28, %v1768_v50  ;;  %v3693_v63 = vadd.f32 %v27062_v40, %v22356_v60  ;;  %v27064_v28 = vld [vmem:[#allocation57_spill] sm:$0xff] }
 0x23b   :  { %v22461_v39 = vpop.f32.mrf.mxu0  ;;  %v1770_v19 = vadd.f32 %v1765_v46, %v1194_v6  ;;  %v3378_v46 = vadd.f32 %v22336_v12, %v3285_v27  ;;  %v4259_v6 = vadd.f32 %v22410_v58, %v22392_v37  ;;  %v4266_v51 = vadd.f32 %v22422_v49, %v27064_v28  ;;  %v27066_v12 = vld [vmem:[#allocation41_spill] sm:$0xff]  ;;  %v27069_v37 = vld [vmem:[#allocation35_spill] sm:$0xff]  ;;  %v27070_v27 = vld [vmem:[#allocation44_spill] sm:$0xff] }
 0x23c   :  { %v22468_v31 = vpop.f32.mrf.mxu1  ;;  %v3294_v36 = vadd.f32 %v22338_v25, %v3207_v52  ;;  %v2896_v62 = vadd.f32 %v2886_v47, %v2343_v44  ;;  %v27067_v25 = vld [vmem:[#allocation42_spill] sm:$0xff]  ;;  %v4261_v60 = vadd.f32 %v22416_v61, %v27068_v14  ;;  %v3782_v50 = vadd.f32 %v27070_v27, %v3693_v63  ;;  %v27072_v47 = vld [vmem:[#allocation45_spill] sm:$0xff] }
 0x23d   :  { %v22474_v26 = vpop.f32.mrf.mxu0  ;;  %v2345_v0 = vadd.f32 %v2340_v23, %v1770_v19  ;;  %v3461_v33 = vadd.f32 %v27063_v3, %v3378_v46  ;;  %v3774_v23 = vadd.f32 %v27066_v12, %v3686_v53  ;;  %v3780_v35 = vadd.f32 %v27067_v25, %v3691_v4  ;;  %v27071_v19 = vld [vmem:[#allocation59_spill] sm:$0xff]  ;;  %v27074_v52 = vld [vmem:[#allocation49_spill] sm:$0xff]  ;;  %v27076_v63 = vld [vmem:[#allocation38_spill] sm:$0xff] }
 0x23e   :  { %v22478_v22 = vpop.f32.mrf.mxu1  ;;  %v3385_v18 = vadd.f32 %v27069_v37, %v3294_v36  ;;  %v4268_v34 = vadd.f32 %v22428_v15, %v27071_v19  ;;  %v3858_v55 = vadd.f32 %v27072_v47, %v3772_v56  ;;  %v4347_v53 = vadd.f32 %v27075_v38, %v4259_v6  ;;  %v27077_v3 = vld [vmem:[#allocation51_spill] sm:$0xff]  ;;  %v27084_v47 = vld [vmem:[#allocation54_spill] sm:$0xff] }
 0x23f   :  { %v22483_v20 = vpop.f32.mrf.mxu0  ;;  %v22529_v21 = vadd.f32 %v2893_v48, %v2345_v0  ;;  %v27073_v48 = vld [vmem:[#allocation47_spill] sm:$0xff]  ;;  %v3867_v44 = vadd.f32 %v27074_v52, %v3780_v35  ;;  %v3471_v0 = vadd.f32 %v3461_v33, %v2896_v62  ;;  %v4355_v46 = vadd.f32 %v22424_v45, %v4266_v51  ;;  %v27078_v45 = vld [vmem:[#allocation46_spill] sm:$0xff] }
 0x240   :  { %v3860_v7 = vadd.f32 %v27073_v48, %v3774_v23  ;;  %v3468_v15 = vadd.f32 %v27076_v63, %v3385_v18  ;;  %v4433_v28 = vadd.f32 %v22434_v54, %v4347_v53  ;;  %v4357_v6 = vadd.f32 %v22430_v9, %v4268_v34  ;;  %v27081_v9 = vld [vmem:[#allocation52_spill] sm:$0xff]  ;;  %v27086_v53 = vld [vmem:[#allocation37_spill] sm:$0xff] }
 0x241   :  { %v4442_v12 = vadd.f32 %v22448_v43, %v4355_v46  ;;  %v3951_v51 = vadd.f32 %v27078_v45, %v3858_v55  ;;  %v27082_v43 = vld [vmem:[#allocation53_spill] sm:$0xff] }
 0x242   :  { %v22494_v29 = vpop.f32.mrf.mxu1  ;;  %v4444_v54 = vadd.f32 %v22458_v42, %v4357_v6  ;;  %v4526_v18 = vadd.f32 %v22436_v2, %v4433_v28 }
 0x243   :  { %v4741_v30 = vpop.f32.mrf.mxu0  ;;  %v4533_v19 = vadd.f32 %v22454_v59, %v4442_v12  ;;  %v3473_v59 = vadd.f32 %v3468_v15, %v22529_v21 }
 0x244   :  { %v22505_v11 = vpop.f32.mrf.mxu1  ;;  %v4609_v48 = vadd.f32 %v22468_v31, %v4526_v18  ;;  %v4535_v52 = vadd.f32 %v22461_v39, %v4444_v54 }
 0x245   :  { %v4743_v16 = vpop.f32.mrf.mxu0  ;;  %v4616_v2 = vadd.f32 %v22494_v29, %v4533_v19 }
 0x246   :  { %v4833_v17 = vpop.f32.mrf.mxu1  ;;  %v4618_v31 = vadd.f32 %v22505_v11, %v4535_v52 }
 0x247   :  { %v4921_v24 = vpop.f32.mrf.mxu0  ;;  %v4834_v49 = vadd.f32 %v4833_v17, %v22474_v26  ;;  %v3869_v26 = vadd.f32 %v27077_v3, %v3782_v50  ;;  %v4349_v17 = vadd.f32 %v22418_v10, %v4261_v60 }
 0x248   :  { %v4835_v1 = vpop.f32.mrf.mxu1 }
 0x249   :  { %v4923_v5 = vpop.f32.mrf.mxu0  ;;  %v4836_v36 = vadd.f32 %v4835_v1, %v22483_v20  ;;  %v4922_v62 = vadd.f32 %v4921_v24, %v4834_v49  ;;  %v27079_v20 = vld [vmem:[#allocation48_spill] sm:$0xff]  ;;  %v27080_v1 = vld [vmem:[#allocation50_spill] sm:$0xff]  ;;  %v4435_v23 = vadd.f32 %v22438_v57, %v4349_v17  ;;  %v3960_v37 = vadd.f32 %v27081_v9, %v3869_v26 }
 0x24a   :  { %v4034_v24 = vadd.f32 %v27082_v43, %v3951_v51  ;;  %v5200_v51 = vstv %s5199_s25  ;;  %v20725_v9 = vld [vmem:[%s26965_s1 + $0xa8] sm:$0xff] }
 0x24b   :  { %v4840_v8 = vpop.f32.mrf.mxu1  ;;  %v4924_v35 = vadd.f32 %v4923_v5, %v4836_v36  ;;  %v27085_v5 = vld [vmem:[#allocation58_spill] sm:$0xff]  ;;  %v4528_v55 = vadd.f32 %v22440_v41, %v4435_v23 }
 0x24c   :  { %v4841_v40 = vadd.f32 %v4840_v8, %v4741_v30  ;;  %v3953_v30 = vadd.f32 %v27079_v20, %v3860_v7  ;;  %v3958_v8 = vadd.f32 %v27080_v1, %v3867_v44 }
 0x24d   :  { %v4842_v32 = vpop.f32.mrf.mxu1  ;;  %v4929_v58 = vpop.f32.mrf.mxu0  ;;  %v4611_v36 = vadd.f32 %v22478_v22, %v4528_v55 }
 0x24e   :  { %v4843_v33 = vadd.f32 %v4842_v32, %v4743_v16  ;;  %v4930_v14 = vadd.f32 %v4929_v58, %v4841_v40  ;;  %v27083_v16 = vld [vmem:[#allocation56_spill] sm:$0xff]  ;;  %v4036_v42 = vadd.f32 %v27084_v47, %v3953_v30  ;;  %v4043_v58 = vadd.f32 %v27085_v5, %v3960_v37  ;;  %v20808_v47 = vld [vmem:[%s26966_s2 + $0x38] sm:$0xff] }
 0x24f   :  { %v4931_v61 = vpop.f32.mrf.mxu0  ;;  %v5007_v4 = vpop.f32.mrf.mxu1  ;;  %v4041_v32 = vadd.f32 %v27083_v16, %v3958_v8  ;;  %v5251_v37 = vsel %vm103_vm0, %v20725_v9, 0 }
 0x250   :  { %v5008_v60 = vadd.f32 %v5007_v4, %v4922_v62  ;;  %v4932_v57 = vadd.f32 %v4931_v61, %v4843_v33  ;;  %v4045_v61 = vadd.f32 %v4034_v24, %v27086_v53  ;;  %v27087_v4 = vld [vmem:[#allocation39_spill] sm:$0xff]  ;;  %v4046_v39 = vadd.f32 %v4036_v42, %v3471_v0 }
 0x251   :  { %v5009_v13 = vpop.f32.mrf.mxu1  ;;  %v5100_v56 = vpop.f32.mrf.mxu0  ;;  %v4047_v46 = vadd.f32 %v4041_v32, %v27087_v4  ;;  %v4048_v17 = vadd.f32 %v4043_v58, %v3473_v59  ;;  %v22662_v24 = vand.u32 4294901760, %v5251_v37  ;;  %v20809_v59 = vld [vmem:[%s26966_s2 + $0x20] sm:$0xff] }
 0x252   :  { %v5010_v34 = vadd.f32 %v5009_v13, %v4924_v35  ;;  %v5101_v44 = vadd.f32 %v5100_v56, %v5008_v60  ;;  %v4620_v29 = vadd.f32 %v4609_v48, %v4045_v61  ;;  %v4621_v6 = vadd.f32 %v4611_v36, %v4046_v39  ;;  %v20724_v35 = vld [vmem:[%s26965_s1 + $0xa0] sm:$0xff]  ;;  %v20810_v61 = vld [vmem:[%s26966_s2 + $0x28] sm:$0xff] }
 0x253   :  { %v5016_v25 = vpop.f32.mrf.mxu1  ;;  %v5102_v10 = vpop.f32.mrf.mxu0  ;;  %v4622_v13 = vadd.f32 %v4616_v2, %v4047_v46  ;;  %v4623_v62 = vadd.f32 %v4618_v31, %v4048_v17 }
 0x254   :  { %v5017_v49 = vadd.f32 %v5016_v25, %v4930_v14  ;;  %v5103_v63 = vadd.f32 %v5102_v10, %v5010_v34  ;;  %v5248_v14 = vsel %vm103_vm0, %v20724_v35, 0  ;;  %v20807_v34 = vld [vmem:[%s26966_s2 + $0x30] sm:$0xff] }
 0x255   :  { %v5018_v27 = vpop.f32.mrf.mxu1  ;;  %v5107_v50 = vpop.f32.mrf.mxu0  ;;  %v22653_v60 = vand.u32 4294901760, %v5248_v14 }
 0x256   :  { %v5019_v38 = vadd.f32 %v5018_v27, %v4932_v57  ;;  %v5108_v3 = vadd.f32 %v5107_v50, %v5017_v49  ;;  %v22670_v57 = vsub.f32 %v5251_v37, %v22662_v24 }
 0x257   :  { %v5183_v7 = vpop.f32.mrf.mxu1  ;;  %v5109_v40 = vpop.f32.mrf.mxu0  ;;  %v22660_v43 = vsub.f32 %v5248_v14, %v22653_v60 }
 0x258   :  { %v5184_v26 = vadd.f32 %v5183_v7, %v5101_v44  ;;  %v5110_v56 = vadd.f32 %v5109_v40, %v5019_v38  ;;  %v5335_v44 = vand.u32 4294901760, %v22670_v57 }
 0x259   :  { %v5185_v41 = vpop.f32.mrf.mxu1  ;;  %v5324_v32 = vand.u32 4294901760, %v22660_v43 }
 0x25a   :  { %v5186_v21 = vadd.f32 %v5185_v41, %v5103_v63  ;;  %v5195_v33 = vadd.f32 %v5184_v26, %v4620_v29  ;;  %v5336_v26 = vsub.f32 %v22670_v57, %v5335_v44 }
 0x25b   :  { %v5190_v28 = vpop.f32.mrf.mxu1  ;;  %v5325_v5 = vsub.f32 %v22660_v43, %v5324_v32 }
 0x25c   :  { %v5191_v15 = vadd.f32 %v5190_v28, %v5108_v3  ;;  %v5196_v20 = vadd.f32 %v5186_v21, %v4621_v6  ;;  %v5201_v1 = vadd.f32 %v5200_v51, %v5195_v33  ;;  %v27089_v6 = vmov 0.0  }
 0x25d   :  { %v5192_v12 = vpop.f32.mrf.mxu1  ;;  %v5326_v36 = vand.u32 4294901760, %v5325_v5  ;;  %v20814_v5 = vld [vmem:[%s26966_s2] sm:$0xff] }
 0x25e   :  { %v5197_v22 = vadd.f32 %v5191_v15, %v4622_v13  ;;  %v5193_v45 = vadd.f32 %v5192_v12, %v5110_v56  ;;  %v5202_v23 = vadd.f32 %v5200_v51, %v5196_v20  ;;  %v22583_v10 = vmax.f32 %v5201_v1, 0.0 }
 0x260   :  { %v5203_v11 = vadd.f32 %v5200_v51, %v5197_v22  ;;  %v5198_v30 = vadd.f32 %v5193_v45, %v4623_v62  ;;  %v22587_v54 = vmax.f32 %v5202_v23, 0.0  ;;  %v5337_v62 = vand.u32 4294901760, %v5336_v26  ;;  %v20811_v22 = vld [vmem:[%s26966_s2 + $0x18] sm:$0xff] }
 0x262   :  { %v22577_v8 = vmax.f32 %v5203_v11, 0.0  ;;  %v5204_v0 = vadd.f32 %v5200_v51, %v5198_v30  ;;  %v20722_v30 = vld [vmem:[%s26965_s1 + $0x90] sm:$0xff] }
 0x263   :  { %v5794_v37 = vsel %vm103_vm0, %v20722_v30, 0 }
 0x264   :  { %v22579_v25 = vmax.f32 %v5204_v0, 0.0  ;;  %5230 = vrot.lane.b32.xlu0 %v22577_v8, %s20943_s9 }
 0x266   :  { %5234 = vrot.lane.b32.xlu1 %v22579_v25, %s20943_s9 }
 0x268   :  { %5228 = vrot.lane.b32.xlu0 %v22583_v10, %s20943_s9 }
 0x26a   :  { %5232 = vrot.lane.b32.xlu1 %v22587_v54, %s20943_s9 }
 0x26c   :  { %5211 = vrot.lane.b32.xlu0 %v22577_v8, %s20945_s14 }
 0x26e   :  { %5215 = vrot.lane.b32.xlu1 %v22579_v25, %s20945_s14 }
 0x270   :  { %5209 = vrot.lane.b32.xlu0 %v22583_v10, %s20945_s14 }
 0x272   :  { %5213 = vrot.lane.b32.xlu1 %v22587_v54, %s20945_s14 }
 0x274   :  { %6341 = vrot.lane.b32.xlu0 %v22577_v8, %s20946_s0 }
 0x276   :  { %6345 = vrot.lane.b32.xlu1 %v22579_v25, %s20946_s0 }
 0x278   :  { %6339 = vrot.lane.b32.xlu0 %v22583_v10, %s20946_s0 }
 0x27a   :  { %6343 = vrot.lane.b32.xlu1 %v22587_v54, %s20946_s0 }
 0x27c   :  { %6910 = vrot.lane.b32.xlu0 %v22577_v8, %s20947_s15 }
 0x27e   :  { %6914 = vrot.lane.b32.xlu1 %v22579_v25, %s20947_s15 }
 0x280   :  { %6908 = vrot.lane.b32.xlu0 %v22583_v10, %s20947_s15 }
 0x282   :  { %6912 = vrot.lane.b32.xlu1 %v22587_v54, %s20947_s15 }
 0x284   :  { %8032 = vrot.lane.b32.xlu0 %v22577_v8, %s20948_s16 }
 0x286   :  { %8036 = vrot.lane.b32.xlu1 %v22579_v25, %s20948_s16 }
 0x288   :  { %8030 = vrot.lane.b32.xlu0 %v22583_v10, %s20948_s16 }
 0x28a   :  { %8034 = vrot.lane.b32.xlu1 %v22587_v54, %s20948_s16 }
 0x28c   :  { %8601 = vrot.lane.b32.xlu0 %v22577_v8, %s20949_s17 }
 0x28e   :  { %8605 = vrot.lane.b32.xlu1 %v22579_v25, %s20949_s17 }
 0x290   :  { %8599 = vrot.lane.b32.xlu0 %v22583_v10, %s20949_s17 }
 0x292   :  { %8603 = vrot.lane.b32.xlu1 %v22587_v54, %s20949_s17 }
 0x294   :  { %9170 = vrot.lane.b32.xlu0 %v22577_v8, %s20950_s18 }
 0x296   :  { %9174 = vrot.lane.b32.xlu1 %v22579_v25, %s20950_s18 }
 0x298   :  { %9168 = vrot.lane.b32.xlu0 %v22583_v10, %s20950_s18 }
 0x29a   :  { %9172 = vrot.lane.b32.xlu1 %v22587_v54, %s20950_s18 }
 0x29c   :  { %9739 = vrot.lane.b32.xlu0 %v22577_v8, %s20951_s19 }
 0x29e   :  { %9743 = vrot.lane.b32.xlu1 %v22579_v25, %s20951_s19 }
 0x2a0   :  { %9737 = vrot.lane.b32.xlu0 %v22583_v10, %s20951_s19 }
 0x2a2   :  { %9741 = vrot.lane.b32.xlu1 %v22587_v54, %s20951_s19 }
 0x2d6   :  { %v5231_v16 = vpop.permute.xlu0 %5230 }
 0x2d8   :  { %v5235_v18 = vpop.permute.xlu1 %5234 }
 0x2d9   :  { %v5237_v50 = vsel %vm86_vm1, %v5231_v16, %v5235_v18  ;;  %v5239_v19 = vsel %vm86_vm1, %v5235_v18, %v5231_v16  ;;  %v20812_v18 = vld [vmem:[%s26966_s2 + $0x10] sm:$0xff] }
 0x2da   :  { %v5242_v49 = vmul.f32 %v20807_v34, %v5239_v19  ;;  %v5243_v42 = vmul.f32 %v20808_v47, %v5237_v50  ;;  %v5229_v48 = vpop.permute.xlu0 %5228  ;;  %v20813_v19 = vld [vmem:[%s26966_s2 + $0x8] sm:$0xff]  ;;  %v20723_v47 = vld [vmem:[%s26965_s1 + $0x98] sm:$0xff] }
 0x2dc   :  { %v22681_v58 = vand.u32 4294901760, %v5243_v42  ;;  %v22683_v55 = vand.u32 4294901760, %v5242_v49  ;;  %v5233_v7 = vpop.permute.xlu1 %5232 }
 0x2dd   :  { %v5236_v52 = vsel %vm86_vm1, %v5229_v48, %v5233_v7  ;;  %v5238_v2 = vsel %vm86_vm1, %v5233_v7, %v5229_v48 }
 0x2de   :  { %v22691_v38 = vsub.f32 %v5242_v49, %v22683_v55  ;;  %v5240_v53 = vmul.f32 %v20809_v59, %v5238_v2  ;;  %v5241_v4 = vmul.f32 %v20810_v61, %v5236_v52  ;;  %5282 = vmatprep.subr.mxu0 %v22681_v58  ;;  %v5373_v46 = vsub.f32 %v5243_v42, %v22681_v58  ;;  %v5212_v17 = vpop.permute.xlu0 %5211 }
 0x2df   :  { %5284 = vmatpush1.msra.mxu0 %v22683_v55  ;;  %v22743_v49 = vand.u32 4294901760, %v5794_v37  ;;  %v5797_v52 = vsel %vm103_vm0, %v20723_v47, 0 }
 0x2e0   :  { %v22702_v40 = vand.u32 4294901760, %v5241_v4  ;;  %v22704_v41 = vand.u32 4294901760, %v5240_v53  ;;  %v5216_v31 = vpop.permute.xlu1 %5215  ;;  %v5374_v63 = vand.u32 4294901760, %v5373_v46  ;;  %v5380_v3 = vand.u32 4294901760, %v22691_v38 }
 0x2e1   :  { %v5218_v28 = vsel %vm63_vm2, %v5212_v17, %v5216_v31  ;;  %v5220_v1 = vsel %vm63_vm2, %v5216_v31, %v5212_v17  ;;  %v22774_v61 = vand.u32 4294901760, %v5797_v52 }
 0x2e2   :  { %v5391_v39 = vsub.f32 %v5240_v53, %v22704_v41  ;;  %5286 = vmatprep.subr.mxu0 %v22702_v40  ;;  %v5375_v29 = vsub.f32 %v5373_v46, %v5374_v63  ;;  %v5385_v13 = vsub.f32 %v5241_v4, %v22702_v40  ;;  %v5381_v56 = vsub.f32 %v22691_v38, %v5380_v3  ;;  %v5210_v0 = vpop.permute.xlu0 %5209 }
 0x2e3   :  { %5288 = vmatpush1.msra.mxu0 %v22704_v41  ;;  %v5224_v45 = vmul.f32 %v20811_v22, %v5218_v28  ;;  %v5223_v50 = vmul.f32 %v20812_v18, %v5220_v1  ;;  %v20818_v18 = vld [vmem:[%s26966_s2 + $0x40] sm:$0xff] }
 0x2e4   :  { %5327 = vmatmul.mubr.f32.vlgmr.msra.gmra.mxu0 %v5326_v36  ;;  %5473 = vmatprep.subr.mxu0 %v5373_v46  ;;  %v5376_v21 = vand.u32 4294901760, %v5375_v29  ;;  %v5392_v15 = vand.u32 4294901760, %v5391_v39  ;;  %v5382_v12 = vand.u32 4294901760, %v5381_v56  ;;  %v5386_v33 = vand.u32 4294901760, %v5385_v13  ;;  %v5214_v51 = vpop.permute.xlu1 %5213 }
 0x2e5   :  { %5476 = vmatpush1.msra.mxu0 %v22691_v38  ;;  %5332 = vmatprep.mubr.f32.mxu0 %v27089_v6  ;;  %v22727_v14 = vand.u32 4294901760, %v5224_v45  ;;  %v5217_v9 = vsel %vm63_vm2, %v5210_v0, %v5214_v51  ;;  %v5219_v16 = vsel %vm63_vm2, %v5214_v51, %v5210_v0  ;;  %v22756_v7 = vand.u32 4294901760, %v5223_v50  ;;  %v20816_v0 = vld [vmem:[%s26966_s2 + $0x50] sm:$0xff] }
 0x2e6   :  { %5377 = vmatprep.subr.mxu1 %v5376_v21  ;;  %5479 = vmatprep.subr.mxu0 %v5385_v13  ;;  %v5387_v20 = vsub.f32 %v5385_v13, %v5386_v33  ;;  %v5393_v11 = vsub.f32 %v5391_v39, %v5392_v15  ;;  %v5222_v34 = vmul.f32 %v20813_v19, %v5217_v9 }
 0x2e7   :  { %5383 = vmatpush1.msra.mxu1 %v5382_v12  ;;  %5482 = vmatpush1.msra.mxu0 %v5391_v39  ;;  %v22749_v42 = vsub.f32 %v5224_v45, %v22727_v14  ;;  %v5221_v48 = vmul.f32 %v20814_v5, %v5219_v16  ;;  %v22765_v38 = vsub.f32 %v5794_v37, %v22743_v49  ;;  %v20727_v37 = vld [vmem:[%s26965_s1 + $0xb8] sm:$0xff] }
 0x2e8   :  { %5338 = vmatmul.mubr.f32.gmra.mxu0 %v5337_v62  ;;  %5650 = vmatprep.subr.mxu0 %v5374_v63  ;;  %v5388_v23 = vand.u32 4294901760, %v5387_v20  ;;  %v5394_v35 = vand.u32 4294901760, %v5393_v11  ;;  %v22760_v2 = vand.u32 4294901760, %v5222_v34  ;;  %v22777_v4 = vsub.f32 %v5223_v50, %v22756_v7  ;;  %v6346_v29 = vpop.permute.xlu1 %6345  ;;  %v20815_v62 = vld [vmem:[%s26966_s2 + $0x58] sm:$0xff] }
 0x2e9   :  { %5515 = vmatprep.mubr.f32.mxu0 %v27089_v6  ;;  %v22767_v59 = vand.u32 4294901760, %v5221_v48  ;;  %v5920_v53 = vand.u32 4294901760, %v22749_v42  ;;  %v5870_v36 = vand.u32 4294901760, %v22765_v38 }
 0x2ea   :  { %5389 = vmatprep.subr.mxu1 %v5388_v23  ;;  %v22782_v46 = vsub.f32 %v5222_v34, %v22760_v2  ;;  %v20817_v23 = vld [vmem:[%s26966_s2 + $0x48] sm:$0xff]  ;;  %v6362_v34 = vsel %vm103_vm0, %v20727_v37, 0 }
 0x2eb   :  { %5395 = vmatpush1.msra.mxu1 %v5394_v35  ;;  %v22787_v31 = vsub.f32 %v5221_v48, %v22767_v59  ;;  %v5921_v63 = vsub.f32 %v22749_v42, %v5920_v53 }
 0x2ec   :  { %5430 = vmatmul.mubr.f32.vlgmr.msra.gmra.mxu1 %v22653_v60  ;;  %5518 = vmatmul.mubr.f32.vlgmr.msra.gmra.mxu0 %v22660_v43  ;;  %v5871_v43 = vsub.f32 %v22765_v38, %v5870_v36  ;;  %v6344_v22 = vpop.permute.xlu1 %6343 }
 0x2ed   :  { %5561 = vmatprep.subr.mxu1 %v22681_v58  ;;  %5654 = vmatpush1.msra.mxu0 %v5380_v3  ;;  %v5926_v3 = vand.u32 4294901760, %v22777_v4  ;;  %v5922_v26 = vand.u32 4294901760, %v5921_v63 }
 0x2ee   :  { %5563 = vmatpush1.msra.mxu1 %v22683_v55  ;;  %5658 = vmatprep.subr.mxu0 %v5386_v33 }
 0x2ef   :  { %5565 = vmatprep.subr.mxu1 %v22702_v40  ;;  %5662 = vmatpush1.msra.mxu0 %v5392_v15  ;;  %v5927_v39 = vsub.f32 %v22777_v4, %v5926_v3 }
 0x2f0   :  { %5435 = vmatprep.mubr.f32.mxu1 %v27089_v6  ;;  %5523 = vmatprep.mubr.f32.mxu0 %v27089_v6 }
 0x2f1   :  { %5567 = vmatpush1.msra.mxu1 %v22704_v41  ;;  %5828 = vmatprep.subr.mxu0 %v22727_v14  ;;  %v5928_v13 = vand.u32 4294901760, %v5927_v39 }
 0x2f2   :  { %5437 = vmatmul.mubr.f32.gmra.mxu1 %v22662_v24  ;;  %5526 = vmatmul.mubr.f32.gmra.mxu0 %v22670_v57 }
 0x2f3   :  { %5739 = vmatprep.subr.mxu1 %v22681_v58  ;;  %5600 = vmatprep.mubr.f32.mxu1 %v27089_v6  ;;  %v22794_v58 = vsub.f32 %v5797_v52, %v22774_v61  ;;  %v22901_v52 = vand.u32 4294901760, %v6362_v34 }
 0x2f4   :  { %5695 = vmatprep.mubr.f32.mxu0 %v27089_v6 }
 0x2f5   :  { %v22920_v63 = vsub.f32 %v6362_v34, %v22901_v52 }
 0x2f6   :  { %5604 = vmatmul.mubr.f32.vlgmr.msra.gmra.mxu1 %v5324_v32  ;;  %5697 = vmatmul.mubr.f32.vlgmr.msra.gmra.mxu0 %v22653_v60  ;;  %v5932_v32 = vand.u32 4294901760, %v22782_v46 }
 0x2f7   :  { %5741 = vmatpush1.msra.mxu1 %v22683_v55  ;;  %5830 = vmatpush1.msra.mxu0 %v22756_v7  ;;  %v5938_v55 = vand.u32 4294901760, %v22787_v31 }
 0x2f8   :  { %5743 = vmatprep.subr.mxu1 %v22702_v40  ;;  %5832 = vmatprep.subr.mxu0 %v22760_v2  ;;  %v5881_v40 = vand.u32 4294901760, %v22794_v58  ;;  %v5933_v17 = vsub.f32 %v22782_v46, %v5932_v32 }
 0x2f9   :  { %5745 = vmatpush1.msra.mxu1 %v22704_v41  ;;  %5834 = vmatpush1.msra.mxu0 %v22767_v59  ;;  %v5872_v41 = vand.u32 4294901760, %v5871_v43  ;;  %v5939_v28 = vsub.f32 %v22787_v31, %v5938_v55 }
 0x2fa   :  { %5609 = vmatprep.mubr.f32.mxu1 %v27089_v6  ;;  %5702 = vmatprep.mubr.f32.mxu0 %v27089_v6  ;;  %v5882_v57 = vsub.f32 %v22794_v58, %v5881_v40  ;;  %v5934_v21 = vand.u32 4294901760, %v5933_v17 }
 0x2fb   :  { %5923 = vmatprep.subr.mxu1 %v5922_v26  ;;  %6019 = vmatprep.subr.mxu0 %v22749_v42  ;;  %v5940_v15 = vand.u32 4294901760, %v5939_v28 }
 0x2fc   :  { %5613 = vmatmul.mubr.f32.gmra.mxu1 %v5335_v44  ;;  %5704 = vmatmul.mubr.f32.gmra.mxu0 %v22662_v24  ;;  %v6342_v44 = vpop.permute.xlu0 %6341  ;;  %v5883_v12 = vand.u32 4294901760, %v5882_v57 }
 0x2fd   :  { %5778 = vmatprep.mubr.f32.mxu1 %v27089_v6  ;;  %5867 = vmatprep.mubr.f32.mxu0 %v27089_v6  ;;  %v6348_v56 = vsel %vm1204_vm3, %v6342_v44, %v6346_v29  ;;  %v6350_v45 = vsel %vm1204_vm3, %v6346_v29, %v6342_v44  ;;  %v20819_v44 = vld [vmem:[%s26966_s2 + $0x78] sm:$0xff] }
 0x2fe   :  { %v6354_v33 = vmul.f32 %v20815_v62, %v6348_v56 }
 0x300   :  { %5780 = vmatmul.mubr.f32.vlgmr.msra.gmra.mxu1 %v22653_v60  ;;  %5873 = vmatmul.mubr.f32.vlgmr.msra.gmra.mxu0 %v5872_v41  ;;  %v20726_v60 = vld [vmem:[%s26965_s1 + $0xb0] sm:$0xff]  ;;  %v6340_v51 = vpop.permute.xlu0 %6339  ;;  %v22847_v20 = vand.u32 4294901760, %v6354_v33 }
 0x301   :  { %5929 = vmatpush1.msra.mxu1 %v5928_v13  ;;  %6022 = vmatpush1.msra.mxu0 %v22777_v4  ;;  %v6347_v11 = vsel %vm1204_vm3, %v6340_v51, %v6344_v22  ;;  %v6359_v30 = vsel %vm103_vm0, %v20726_v60, 0  ;;  %v6349_v1 = vsel %vm1204_vm3, %v6344_v22, %v6340_v51  ;;  %v20820_v60 = vld [vmem:[%s26966_s2 + $0x70] sm:$0xff] }
 0x302   :  { %5935 = vmatprep.subr.mxu1 %v5934_v21  ;;  %6025 = vmatprep.subr.mxu0 %v22782_v46  ;;  %v6352_v35 = vmul.f32 %v20817_v23, %v6347_v11  ;;  %v22864_v9 = vand.u32 4294901760, %v6359_v30  ;;  %v22870_v16 = vsub.f32 %v6354_v33, %v22847_v20  ;;  %v6351_v50 = vmul.f32 %v20818_v18, %v6349_v1 }
 0x303   :  { %5941 = vmatpush1.msra.mxu1 %v5940_v15  ;;  %6028 = vmatpush1.msra.mxu0 %v22787_v31 }
 0x304   :  { %5785 = vmatprep.mubr.f32.mxu1 %v27089_v6  ;;  %5878 = vmatprep.mubr.f32.mxu0 %v27089_v6  ;;  %v22887_v47 = vand.u32 4294901760, %v6352_v35  ;;  %v22892_v42 = vsub.f32 %v6359_v30, %v22864_v9  ;;  %v22894_v5 = vand.u32 4294901760, %v6351_v50  ;;  %v6485_v48 = vand.u32 4294901760, %v22870_v16  ;;  %v20729_v30 = vld [vmem:[%s26965_s1 + $0xc8] sm:$0xff] }
 0x305   :  { %6107 = vmatprep.subr.mxu1 %v22727_v14  ;;  %6196 = vmatprep.subr.mxu0 %v5920_v53 }
 0x306   :  { %5787 = vmatmul.mubr.f32.gmra.mxu1 %v22662_v24  ;;  %5884 = vmatmul.mubr.f32.gmra.mxu0 %v5883_v12  ;;  %v6353_v24 = vmul.f32 %v20816_v0, %v6350_v45  ;;  %v22909_v4 = vsub.f32 %v6352_v35, %v22887_v47  ;;  %v22913_v46 = vsub.f32 %v6351_v50, %v22894_v5  ;;  %v20821_v45 = vld [vmem:[%s26966_s2 + $0x68] sm:$0xff]  ;;  %v20822_v0 = vld [vmem:[%s26966_s2 + $0x60] sm:$0xff]  ;;  %v6931_v35 = vsel %vm103_vm0, %v20729_v30, 0 }
 0x307   :  { %5974 = vmatprep.mubr.f32.mxu1 %v27089_v6  ;;  %6061 = vmatprep.mubr.f32.mxu0 %v27089_v6  ;;  %v6486_v31 = vsub.f32 %v22870_v16, %v6485_v48  ;;  %v23027_v34 = vand.u32 4294901760, %v6931_v35 }
 0x308   :  { %v22881_v19 = vand.u32 4294901760, %v6353_v24  ;;  %v6503_v43 = vand.u32 4294901760, %v22913_v46 }
 0x30a   :  { %5976 = vmatmul.mubr.f32.vlgmr.msra.gmra.mxu1 %v22743_v49  ;;  %6064 = vmatmul.mubr.f32.vlgmr.msra.gmra.mxu0 %v22765_v38  ;;  %v22904_v53 = vsub.f32 %v6353_v24, %v22881_v19  ;;  %v6504_v39 = vsub.f32 %v22913_v46, %v6503_v43 }
 0x30b   :  { %6109 = vmatpush1.msra.mxu1 %v22756_v7  ;;  %6200 = vmatpush1.msra.mxu0 %v5926_v3 }
 0x30c   :  { %6111 = vmatprep.subr.mxu1 %v22760_v2  ;;  %6204 = vmatprep.subr.mxu0 %v5932_v32  ;;  %v6491_v3 = vand.u32 4294901760, %v22904_v53  ;;  %v6487_v32 = vand.u32 4294901760, %v6486_v31  ;;  %v6505_v28 = vand.u32 4294901760, %v6504_v39  ;;  %v23046_v31 = vsub.f32 %v6931_v35, %v23027_v34 }
 0x30d   :  { %6113 = vmatpush1.msra.mxu1 %v22767_v59  ;;  %6208 = vmatpush1.msra.mxu0 %v5938_v55  ;;  %v6915_v55 = vpop.permute.xlu1 %6914 }
 0x30e   :  { %5981 = vmatprep.mubr.f32.mxu1 %v27089_v6  ;;  %6069 = vmatprep.mubr.f32.mxu0 %v27089_v6 }
 0x30f   :  { %6285 = vmatprep.subr.mxu1 %v22727_v14  ;;  %6393 = vmatprep.subr.mxu0 %v22847_v20  ;;  %v6435_v14 = vand.u32 4294901760, %v22892_v42 }
 0x310   :  { %5983 = vmatmul.mubr.f32.gmra.mxu1 %v22774_v61  ;;  %6072 = vmatmul.mubr.f32.gmra.mxu0 %v22794_v58 }
 0x311   :  { %6146 = vmatprep.mubr.f32.mxu1 %v27089_v6  ;;  %6241 = vmatprep.mubr.f32.mxu0 %v27089_v6  ;;  %v6436_v38 = vsub.f32 %v22892_v42, %v6435_v14  ;;  %v6913_v56 = vpop.permute.xlu1 %6912 }
 0x314   :  { %6150 = vmatmul.mubr.f32.vlgmr.msra.gmra.mxu1 %v5870_v36  ;;  %6243 = vmatmul.mubr.f32.vlgmr.msra.gmra.mxu0 %v22743_v49  ;;  %v6497_v36 = vand.u32 4294901760, %v22909_v4 }
 0x315   :  { %6287 = vmatpush1.msra.mxu1 %v22756_v7  ;;  %6395 = vmatpush1.msra.mxu0 %v22881_v19  ;;  %v6446_v7 = vand.u32 4294901760, %v22920_v63 }
 0x316   :  { %6289 = vmatprep.subr.mxu1 %v22760_v2  ;;  %6397 = vmatprep.subr.mxu0 %v22887_v47  ;;  %v6492_v2 = vsub.f32 %v22904_v53, %v6491_v3  ;;  %v6498_v26 = vsub.f32 %v22909_v4, %v6497_v36 }
 0x317   :  { %6291 = vmatpush1.msra.mxu1 %v22767_v59  ;;  %6399 = vmatpush1.msra.mxu0 %v22894_v5  ;;  %v6437_v59 = vand.u32 4294901760, %v6436_v38  ;;  %v6447_v58 = vsub.f32 %v22920_v63, %v6446_v7 }
 0x318   :  { %6155 = vmatprep.mubr.f32.mxu1 %v27089_v6  ;;  %6248 = vmatprep.mubr.f32.mxu0 %v27089_v6  ;;  %v6493_v41 = vand.u32 4294901760, %v6492_v2  ;;  %v6499_v29 = vand.u32 4294901760, %v6498_v26 }
 0x319   :  { %6488 = vmatprep.subr.mxu1 %v6487_v32  ;;  %6584 = vmatprep.subr.mxu0 %v22870_v16  ;;  %v6448_v57 = vand.u32 4294901760, %v6447_v58 }
 0x31a   :  { %6159 = vmatmul.mubr.f32.gmra.mxu1 %v5881_v40  ;;  %6250 = vmatmul.mubr.f32.gmra.mxu0 %v22774_v61  ;;  %v6911_v40 = vpop.permute.xlu0 %6910 }
 0x31b   :  { %6324 = vmatprep.mubr.f32.mxu1 %v27089_v6  ;;  %6432 = vmatprep.mubr.f32.mxu0 %v27089_v6  ;;  %v6917_v17 = vsel %vm1779_vm4, %v6911_v40, %v6915_v55  ;;  %v6919_v21 = vsel %vm1779_vm4, %v6915_v55, %v6911_v40  ;;  %v23089_v55 = vand.u32 4294901760, %v22579_v25 }
 0x31c   :  { %v6923_v13 = vmul.f32 %v20819_v44, %v6917_v17 }
 0x31d   :  { %v23102_v40 = vsub.f32 %v22579_v25, %v23089_v55 }
 0x31e   :  { %6326 = vmatmul.mubr.f32.vlgmr.msra.gmra.mxu1 %v22743_v49  ;;  %6438 = vmatmul.mubr.f32.vlgmr.msra.gmra.mxu0 %v6437_v59  ;;  %v20728_v49 = vld [vmem:[%s26965_s1 + $0xc0] sm:$0xff]  ;;  %v6909_v15 = vpop.permute.xlu0 %6908  ;;  %v22973_v12 = vand.u32 4294901760, %v6923_v13 }
 0x31f   :  { %6494 = vmatpush1.msra.mxu1 %v6493_v41  ;;  %6587 = vmatpush1.msra.mxu0 %v22904_v53  ;;  %v6916_v62 = vsel %vm1779_vm4, %v6909_v15, %v6913_v56  ;;  %v6928_v33 = vsel %vm103_vm0, %v20728_v49, 0  ;;  %v6918_v22 = vsel %vm1779_vm4, %v6913_v56, %v6909_v15  ;;  %v23107_v41 = vand.u32 4294901760, %v22577_v8 }
 0x320   :  { %6500 = vmatprep.subr.mxu1 %v6499_v29  ;;  %6590 = vmatprep.subr.mxu0 %v22909_v4  ;;  %v6921_v51 = vmul.f32 %v20821_v45, %v6916_v62  ;;  %v22990_v11 = vand.u32 4294901760, %v6928_v33  ;;  %v22996_v1 = vsub.f32 %v6923_v13, %v22973_v12  ;;  %v6920_v24 = vmul.f32 %v20822_v0, %v6918_v22 }
 0x321   :  { %6506 = vmatpush1.msra.mxu1 %v6505_v28  ;;  %6593 = vmatpush1.msra.mxu0 %v22913_v46  ;;  %v23113_v29 = vand.u32 4294901760, %v22587_v54  ;;  %v23121_v28 = vand.u32 4294901760, %v22583_v10  ;;  %v23132_v13 = vsub.f32 %v22577_v8, %v23107_v41 }
 0x322   :  { %6331 = vmatprep.mubr.f32.mxu1 %v27089_v6  ;;  %6443 = vmatprep.mubr.f32.mxu0 %v27089_v6  ;;  %v23013_v37 = vand.u32 4294901760, %v6921_v51  ;;  %v23018_v16 = vsub.f32 %v6928_v33, %v22990_v11  ;;  %v23020_v18 = vand.u32 4294901760, %v6920_v24  ;;  %v7054_v50 = vand.u32 4294901760, %v22996_v1  ;;  %v8033_v0 = vpop.permute.xlu0 %8032 }
 0x323   :  { %6672 = vmatprep.subr.mxu1 %v22847_v20  ;;  %6761 = vmatprep.subr.mxu0 %v6485_v48  ;;  %v23137_v49 = vsub.f32 %v22587_v54, %v23113_v29  ;;  %v23142_v15 = vsub.f32 %v22583_v10, %v23121_v28  ;;  %v7613_v54 = vand.u32 4294901760, %v23132_v13 }
 0x324   :  { %6333 = vmatmul.mubr.f32.gmra.mxu1 %v22774_v61  ;;  %6449 = vmatmul.mubr.f32.gmra.mxu0 %v6448_v57  ;;  %v6922_v61 = vmul.f32 %v20820_v60, %v6919_v21  ;;  %v23035_v53 = vsub.f32 %v6921_v51, %v23013_v37  ;;  %v23039_v4 = vsub.f32 %v6920_v24, %v23020_v18  ;;  %v7607_v57 = vand.u32 4294901760, %v23102_v40  ;;  %v8037_v51 = vpop.permute.xlu1 %8036 }
 0x325   :  { %6539 = vmatprep.mubr.f32.mxu1 %v27089_v6  ;;  %6626 = vmatprep.mubr.f32.mxu0 %v27089_v6  ;;  %v7055_v46 = vsub.f32 %v22996_v1, %v7054_v50  ;;  %v7625_v33 = vand.u32 4294901760, %v23142_v15  ;;  %v7614_v60 = vsub.f32 %v23132_v13, %v7613_v54 }
 0x326   :  { %v23007_v23 = vand.u32 4294901760, %v6922_v61  ;;  %v7072_v38 = vand.u32 4294901760, %v23039_v4  ;;  %v7608_v21 = vsub.f32 %v23102_v40, %v7607_v57 }
 0x327   :  { %v7626_v30 = vsub.f32 %v23142_v15, %v7625_v33  ;;  %v7615_v24 = vand.u32 4294901760, %v7614_v60 }
 0x328   :  { %6541 = vmatmul.mubr.f32.vlgmr.msra.gmra.mxu1 %v22864_v9  ;;  %6629 = vmatmul.mubr.f32.vlgmr.msra.gmra.mxu0 %v22892_v42  ;;  %v23030_v48 = vsub.f32 %v6922_v61, %v23007_v23  ;;  %v7073_v32 = vsub.f32 %v23039_v4, %v7072_v38  ;;  %v7609_v62 = vand.u32 4294901760, %v7608_v21 }
 0x329   :  { %6674 = vmatpush1.msra.mxu1 %v22881_v19  ;;  %6765 = vmatpush1.msra.mxu0 %v6491_v3 }
 0x32a   :  { %6676 = vmatprep.subr.mxu1 %v22887_v47  ;;  %6769 = vmatprep.subr.mxu0 %v6497_v36  ;;  %v7060_v3 = vand.u32 4294901760, %v23030_v48  ;;  %v7056_v36 = vand.u32 4294901760, %v7055_v46 }
 0x32b   :  { %6678 = vmatpush1.msra.mxu1 %v22894_v5  ;;  %6773 = vmatpush1.msra.mxu0 %v6503_v43 }
 0x32c   :  { %6546 = vmatprep.mubr.f32.mxu1 %v27089_v6  ;;  %6634 = vmatprep.mubr.f32.mxu0 %v27089_v6 }
 0x32d   :  { %6850 = vmatprep.subr.mxu1 %v22847_v20  ;;  %6962 = vmatprep.subr.mxu0 %v22973_v12  ;;  %v7004_v20 = vand.u32 4294901760, %v23018_v16 }
 0x32e   :  { %6548 = vmatmul.mubr.f32.gmra.mxu1 %v22901_v52  ;;  %6637 = vmatmul.mubr.f32.gmra.mxu0 %v22920_v63 }
 0x32f   :  { %6711 = vmatprep.mubr.f32.mxu1 %v27089_v6  ;;  %6806 = vmatprep.mubr.f32.mxu0 %v27089_v6  ;;  %v7005_v42 = vsub.f32 %v23018_v16, %v7004_v20 }
 0x332   :  { %6715 = vmatmul.mubr.f32.vlgmr.msra.gmra.mxu1 %v6435_v14  ;;  %6808 = vmatmul.mubr.f32.vlgmr.msra.gmra.mxu0 %v22864_v9  ;;  %v7066_v14 = vand.u32 4294901760, %v23035_v53 }
 0x333   :  { %6852 = vmatpush1.msra.mxu1 %v22881_v19  ;;  %6964 = vmatpush1.msra.mxu0 %v23007_v23  ;;  %v7015_v19 = vand.u32 4294901760, %v23046_v31 }
 0x334   :  { %6854 = vmatprep.subr.mxu1 %v22887_v47  ;;  %6966 = vmatprep.subr.mxu0 %v23013_v37  ;;  %v7061_v47 = vsub.f32 %v23030_v48, %v7060_v3  ;;  %v7067_v43 = vsub.f32 %v23035_v53, %v7066_v14 }
 0x335   :  { %6856 = vmatpush1.msra.mxu1 %v22894_v5  ;;  %6968 = vmatpush1.msra.mxu0 %v23020_v18  ;;  %v7006_v5 = vand.u32 4294901760, %v7005_v42  ;;  %v7016_v2 = vsub.f32 %v23046_v31, %v7015_v19  ;;  %v20824_v42 = vld [vmem:[%s26966_s2 + $0xb0] sm:$0xff] }
 0x336   :  { %6720 = vmatprep.mubr.f32.mxu1 %v27089_v6  ;;  %6813 = vmatprep.mubr.f32.mxu0 %v27089_v6  ;;  %v7062_v59 = vand.u32 4294901760, %v7061_v47  ;;  %v7068_v63 = vand.u32 4294901760, %v7067_v43 }
 0x337   :  { %7057 = vmatprep.subr.mxu1 %v7056_v36  ;;  %7153 = vmatprep.subr.mxu0 %v22996_v1  ;;  %v7017_v26 = vand.u32 4294901760, %v7016_v2 }
 0x338   :  { %6724 = vmatmul.mubr.f32.gmra.mxu1 %v6446_v7  ;;  %6815 = vmatmul.mubr.f32.gmra.mxu0 %v22901_v52  ;;  %v7074_v7 = vand.u32 4294901760, %v7073_v32 }
 0x339   :  { %6889 = vmatprep.mubr.f32.mxu1 %v27089_v6  ;;  %7001 = vmatprep.mubr.f32.mxu0 %v27089_v6 }
 0x33c   :  { %6891 = vmatmul.mubr.f32.vlgmr.msra.gmra.mxu1 %v22864_v9  ;;  %7007 = vmatmul.mubr.f32.vlgmr.msra.gmra.mxu0 %v7006_v5  ;;  %v20730_v9 = vld [vmem:[%s26965_s1 + $0xd0] sm:$0xff]  ;;  %v20826_v5 = vld [vmem:[%s26966_s2 + $0xa0] sm:$0xff] }
 0x33d   :  { %7063 = vmatpush1.msra.mxu1 %v7062_v59  ;;  %7156 = vmatpush1.msra.mxu0 %v23030_v48  ;;  %v7481_v39 = vsel %vm103_vm0, %v20730_v9, 0  ;;  %v8035_v48 = vpop.permute.xlu1 %8034 }
 0x33e   :  { %7069 = vmatprep.subr.mxu1 %v7068_v63  ;;  %7159 = vmatprep.subr.mxu0 %v23035_v53  ;;  %v23094_v58 = vand.u32 4294901760, %v7481_v39  ;;  %v8039_v53 = vsel %vm2907_vm5, %v8033_v0, %v8037_v51 }
 0x33f   :  { %7075 = vmatpush1.msra.mxu1 %v7074_v7  ;;  %7162 = vmatpush1.msra.mxu0 %v23039_v4 }
 0x340   :  { %6896 = vmatprep.mubr.f32.mxu1 %v27089_v6  ;;  %7012 = vmatprep.mubr.f32.mxu0 %v27089_v6  ;;  %v23116_v25 = vsub.f32 %v7481_v39, %v23094_v58 }
 0x341   :  { %7241 = vmatprep.subr.mxu1 %v22973_v12  ;;  %7330 = vmatprep.subr.mxu0 %v7054_v50 }
 0x342   :  { %6898 = vmatmul.mubr.f32.gmra.mxu1 %v22901_v52  ;;  %7018 = vmatmul.mubr.f32.gmra.mxu0 %v7017_v26  ;;  %v20731_v52 = vld [vmem:[%s26965_s1 + $0xd8] sm:$0xff]  ;;  %v7557_v56 = vand.u32 4294901760, %v23116_v25 }
 0x343   :  { %7108 = vmatprep.mubr.f32.mxu1 %v27089_v6  ;;  %7195 = vmatprep.mubr.f32.mxu0 %v27089_v6  ;;  %v7484_v17 = vsel %vm103_vm0, %v20731_v52, 0 }
 0x344   :  { %v23126_v44 = vand.u32 4294901760, %v7484_v17  ;;  %v7558_v10 = vsub.f32 %v23116_v25, %v7557_v56 }
 0x346   :  { %7110 = vmatmul.mubr.f32.vlgmr.msra.gmra.mxu1 %v22990_v11  ;;  %7198 = vmatmul.mubr.f32.vlgmr.msra.gmra.mxu0 %v23018_v16  ;;  %v23148_v8 = vsub.f32 %v7484_v17, %v23126_v44  ;;  %v7559_v61 = vand.u32 4294901760, %v7558_v10 }
 0x347   :  { %7243 = vmatpush1.msra.mxu1 %v23007_v23  ;;  %7334 = vmatpush1.msra.mxu0 %v7060_v3 }
 0x348   :  { %7245 = vmatprep.subr.mxu1 %v23013_v37  ;;  %7338 = vmatprep.subr.mxu0 %v7066_v14  ;;  %v7568_v22 = vand.u32 4294901760, %v23148_v8  ;;  %v20825_v14 = vld [vmem:[%s26966_s2 + $0xa8] sm:$0xff] }
 0x349   :  { %7247 = vmatpush1.msra.mxu1 %v23020_v18  ;;  %7342 = vmatpush1.msra.mxu0 %v7072_v38 }
 0x34a   :  { %7115 = vmatprep.mubr.f32.mxu1 %v27089_v6  ;;  %7203 = vmatprep.mubr.f32.mxu0 %v27089_v6  ;;  %v7569_v1 = vsub.f32 %v23148_v8, %v7568_v22 }
 0x34b   :  { %7419 = vmatprep.subr.mxu1 %v22973_v12  ;;  %7515 = vmatprep.subr.mxu0 %v23089_v55  ;;  %v7619_v12 = vand.u32 4294901760, %v23137_v49 }
 0x34c   :  { %7117 = vmatmul.mubr.f32.gmra.mxu1 %v23027_v34  ;;  %7206 = vmatmul.mubr.f32.gmra.mxu0 %v23046_v31  ;;  %v7570_v16 = vand.u32 4294901760, %v7569_v1 }
 0x34d   :  { %7280 = vmatprep.mubr.f32.mxu1 %v27089_v6  ;;  %7375 = vmatprep.mubr.f32.mxu0 %v27089_v6  ;;  %v7620_v45 = vsub.f32 %v23137_v49, %v7619_v12 }
 0x34f   :  { %v7621_v35 = vand.u32 4294901760, %v7620_v45  ;;  %v20827_v45 = vld [vmem:[%s26966_s2 + $0xd8] sm:$0xff] }
 0x350   :  { %7284 = vmatmul.mubr.f32.vlgmr.msra.gmra.mxu1 %v7004_v20  ;;  %7377 = vmatmul.mubr.f32.vlgmr.msra.gmra.mxu0 %v22990_v11  ;;  %v8031_v20 = vpop.permute.xlu0 %8030 }
 0x351   :  { %7421 = vmatpush1.msra.mxu1 %v23007_v23  ;;  %7517 = vmatpush1.msra.mxu0 %v23107_v41  ;;  %v8041_v23 = vsel %vm2907_vm5, %v8037_v51, %v8033_v0  ;;  %v8040_v46 = vsel %vm2907_vm5, %v8035_v48, %v8031_v20  ;;  %v8038_v3 = vsel %vm2907_vm5, %v8031_v20, %v8035_v48  ;;  %v20830_v20 = vld [vmem:[%s26966_s2 + $0xc0] sm:$0xff] }
 0x352   :  { %7423 = vmatprep.subr.mxu1 %v23013_v37  ;;  %7519 = vmatprep.subr.mxu0 %v23113_v29  ;;  %v7627_v37 = vand.u32 4294901760, %v7626_v30  ;;  %v8043_v38 = vmul.f32 %v20825_v14, %v8040_v46  ;;  %v8042_v43 = vmul.f32 %v20826_v5, %v8038_v3 }
 0x353   :  { %7425 = vmatpush1.msra.mxu1 %v23020_v18  ;;  %7521 = vmatpush1.msra.mxu0 %v23121_v28  ;;  %v20823_v18 = vld [vmem:[%s26966_s2 + $0xb8] sm:$0xff] }
 0x354   :  { %7289 = vmatprep.mubr.f32.mxu1 %v27089_v6  ;;  %7382 = vmatprep.mubr.f32.mxu0 %v27089_v6  ;;  %v8045_v50 = vmul.f32 %v20823_v18, %v8041_v23  ;;  %v23241_v59 = vand.u32 4294901760, %v8043_v38  ;;  %v23248_v7 = vand.u32 4294901760, %v8042_v43  ;;  %v20829_v18 = vld [vmem:[%s26966_s2 + $0xc8] sm:$0xff] }
 0x355   :  { %7610 = vmatprep.subr.mxu1 %v7609_v62  ;;  %7706 = vmatprep.subr.mxu0 %v23102_v40 }
 0x356   :  { %7293 = vmatmul.mubr.f32.gmra.mxu1 %v7015_v19  ;;  %7384 = vmatmul.mubr.f32.gmra.mxu0 %v23027_v34  ;;  %v23201_v4 = vand.u32 4294901760, %v8045_v50  ;;  %v20733_v19 = vld [vmem:[%s26965_s1 + $0xe8] sm:$0xff]  ;;  %v23263_v52 = vsub.f32 %v8043_v38, %v23241_v59  ;;  %v23267_v40 = vsub.f32 %v8042_v43, %v23248_v7 }
 0x357   :  { %7458 = vmatprep.mubr.f32.mxu1 %v27089_v6  ;;  %7554 = vmatprep.mubr.f32.mxu0 %v27089_v6  ;;  %v8053_v2 = vsel %vm103_vm0, %v20733_v19, 0 }
 0x358   :  { %v23224_v47 = vsub.f32 %v8045_v50, %v23201_v4  ;;  %v23255_v9 = vand.u32 4294901760, %v8053_v2 }
 0x35a   :  { %7460 = vmatmul.mubr.f32.vlgmr.msra.gmra.mxu1 %v22990_v11  ;;  %7560 = vmatmul.mubr.f32.vlgmr.msra.gmra.mxu0 %v7559_v61  ;;  %v20732_v11 = vld [vmem:[%s26965_s1 + $0xe0] sm:$0xff]  ;;  %v8176_v26 = vand.u32 4294901760, %v23224_v47 }
 0x35b   :  { %7616 = vmatpush1.msra.mxu1 %v7615_v24  ;;  %7709 = vmatpush1.msra.mxu0 %v23132_v13  ;;  %v8050_v31 = vsel %vm103_vm0, %v20732_v11, 0  ;;  %v20735_v11 = vld [vmem:[%s26965_s1 + $0xf8] sm:$0xff] }
 0x35c   :  { %7622 = vmatprep.subr.mxu1 %v7621_v35  ;;  %7712 = vmatprep.subr.mxu0 %v23137_v49  ;;  %v23218_v36 = vand.u32 4294901760, %v8050_v31  ;;  %v8177_v17 = vsub.f32 %v23224_v47, %v8176_v26  ;;  %v8194_v49 = vand.u32 4294901760, %v23267_v40  ;;  %v8622_v3 = vsel %vm103_vm0, %v20735_v11, 0 }
 0x35d   :  { %7628 = vmatpush1.msra.mxu1 %v7627_v37  ;;  %7715 = vmatpush1.msra.mxu0 %v23142_v15  ;;  %v23381_v19 = vand.u32 4294901760, %v8622_v3 }
 0x35e   :  { %7465 = vmatprep.mubr.f32.mxu1 %v27089_v6  ;;  %7565 = vmatprep.mubr.f32.mxu0 %v27089_v6  ;;  %v23246_v63 = vsub.f32 %v8050_v31, %v23218_v36  ;;  %v8178_v21 = vand.u32 4294901760, %v8177_v17  ;;  %v8195_v10 = vsub.f32 %v23267_v40, %v8194_v49 }
 0x35f   :  { %7794 = vmatprep.subr.mxu1 %v23089_v55  ;;  %7883 = vmatprep.subr.mxu0 %v7607_v57  ;;  %v23274_v57 = vsub.f32 %v8053_v2, %v23255_v9 }
 0x360   :  { %7467 = vmatmul.mubr.f32.gmra.mxu1 %v23027_v34  ;;  %7571 = vmatmul.mubr.f32.gmra.mxu0 %v7570_v16  ;;  %v8044_v34 = vmul.f32 %v20824_v42, %v8039_v53  ;;  %v8196_v60 = vand.u32 4294901760, %v8195_v10  ;;  %v20828_v16 = vld [vmem:[%s26966_s2 + $0xd0] sm:$0xff] }
 0x361   :  { %7661 = vmatprep.mubr.f32.mxu1 %v27089_v6  ;;  %7748 = vmatprep.mubr.f32.mxu0 %v27089_v6 }
 0x362   :  { %v23235_v32 = vand.u32 4294901760, %v8044_v34 }
 0x364   :  { %7663 = vmatmul.mubr.f32.vlgmr.msra.gmra.mxu1 %v23094_v58  ;;  %7751 = vmatmul.mubr.f32.vlgmr.msra.gmra.mxu0 %v23116_v25  ;;  %v23258_v39 = vsub.f32 %v8044_v34, %v23235_v32 }
 0x365   :  { %7796 = vmatpush1.msra.mxu1 %v23107_v41  ;;  %7887 = vmatpush1.msra.mxu0 %v7613_v54  ;;  %v8606_v54 = vpop.permute.xlu1 %8605 }
 0x366   :  { %7798 = vmatprep.subr.mxu1 %v23113_v29  ;;  %7891 = vmatprep.subr.mxu0 %v7619_v12  ;;  %v8182_v13 = vand.u32 4294901760, %v23258_v39  ;;  %v8602_v12 = vpop.permute.xlu0 %8601 }
 0x367   :  { %7800 = vmatpush1.msra.mxu1 %v23121_v28  ;;  %7895 = vmatpush1.msra.mxu0 %v7625_v33  ;;  %v8610_v33 = vsel %vm3482_vm6, %v8606_v54, %v8602_v12  ;;  %v8608_v1 = vsel %vm3482_vm6, %v8602_v12, %v8606_v54 }
 0x368   :  { %7668 = vmatprep.mubr.f32.mxu1 %v27089_v6  ;;  %7756 = vmatprep.mubr.f32.mxu0 %v27089_v6  ;;  %v8614_v51 = vmul.f32 %v20827_v45, %v8610_v33  ;;  %v20833_v45 = vld [vmem:[%s26966_s2 + $0xe8] sm:$0xff] }
 0x369   :  { %7972 = vmatprep.subr.mxu1 %v23089_v55  ;;  %8084 = vmatprep.subr.mxu0 %v23201_v4  ;;  %v8126_v55 = vand.u32 4294901760, %v23246_v63  ;;  %v8604_v30 = vpop.permute.xlu1 %8603 }
 0x36a   :  { %7670 = vmatmul.mubr.f32.gmra.mxu1 %v23126_v44  ;;  %7759 = vmatmul.mubr.f32.gmra.mxu0 %v23148_v8  ;;  %v8600_v0 = vpop.permute.xlu0 %8599  ;;  %v23327_v24 = vand.u32 4294901760, %v8614_v51 }
 0x36b   :  { %7833 = vmatprep.mubr.f32.mxu1 %v27089_v6  ;;  %7928 = vmatprep.mubr.f32.mxu0 %v27089_v6  ;;  %v8127_v25 = vsub.f32 %v23246_v63, %v8126_v55  ;;  %v8609_v23 = vsel %vm3482_vm6, %v8604_v30, %v8600_v0  ;;  %v8607_v37 = vsel %vm3482_vm6, %v8600_v0, %v8604_v30  ;;  %v20834_v0 = vld [vmem:[%s26966_s2 + $0xe0] sm:$0xff] }
 0x36c   :  { %v8612_v50 = vmul.f32 %v20829_v18, %v8609_v23  ;;  %v23350_v53 = vsub.f32 %v8614_v51, %v23327_v24  ;;  %v8611_v46 = vmul.f32 %v20830_v20, %v8607_v37 }
 0x36e   :  { %7837 = vmatmul.mubr.f32.vlgmr.msra.gmra.mxu1 %v7557_v56  ;;  %7930 = vmatmul.mubr.f32.vlgmr.msra.gmra.mxu0 %v23094_v58  ;;  %v8188_v56 = vand.u32 4294901760, %v23263_v52  ;;  %v23367_v42 = vand.u32 4294901760, %v8612_v50  ;;  %v23374_v14 = vand.u32 4294901760, %v8611_v46  ;;  %v8745_v38 = vand.u32 4294901760, %v23350_v53 }
 0x36f   :  { %7974 = vmatpush1.msra.mxu1 %v23107_v41  ;;  %8086 = vmatpush1.msra.mxu0 %v23235_v32  ;;  %v8137_v41 = vand.u32 4294901760, %v23274_v57 }
 0x370   :  { %7976 = vmatprep.subr.mxu1 %v23113_v29  ;;  %8088 = vmatprep.subr.mxu0 %v23241_v59  ;;  %v8183_v29 = vsub.f32 %v23258_v39, %v8182_v13  ;;  %v8189_v15 = vsub.f32 %v23263_v52, %v8188_v56  ;;  %v23389_v5 = vsub.f32 %v8612_v50, %v23367_v42 }
 0x371   :  { %7978 = vmatpush1.msra.mxu1 %v23121_v28  ;;  %8090 = vmatpush1.msra.mxu0 %v23248_v7  ;;  %v8128_v28 = vand.u32 4294901760, %v8127_v25  ;;  %v8138_v8 = vsub.f32 %v23274_v57, %v8137_v41  ;;  %v23393_v43 = vsub.f32 %v8611_v46, %v23374_v14  ;;  %v8746_v2 = vsub.f32 %v23350_v53, %v8745_v38 }
 0x372   :  { %7842 = vmatprep.mubr.f32.mxu1 %v27089_v6  ;;  %7935 = vmatprep.mubr.f32.mxu0 %v27089_v6  ;;  %v8184_v62 = vand.u32 4294901760, %v8183_v29 }
 0x373   :  { %8179 = vmatprep.subr.mxu1 %v8178_v21  ;;  %8275 = vmatprep.subr.mxu0 %v23224_v47  ;;  %v8139_v61 = vand.u32 4294901760, %v8138_v8 }
 0x374   :  { %7846 = vmatmul.mubr.f32.gmra.mxu1 %v7568_v22  ;;  %7937 = vmatmul.mubr.f32.gmra.mxu0 %v23126_v44  ;;  %v8190_v22 = vand.u32 4294901760, %v8189_v15  ;;  %v20831_v15 = vld [vmem:[%s26966_s2 + $0xf8] sm:$0xff] }
 0x375   :  { %8011 = vmatprep.mubr.f32.mxu1 %v27089_v6  ;;  %8123 = vmatprep.mubr.f32.mxu0 %v27089_v6 }
 0x378   :  { %8013 = vmatmul.mubr.f32.vlgmr.msra.gmra.mxu1 %v23094_v58  ;;  %8129 = vmatmul.mubr.f32.vlgmr.msra.gmra.mxu0 %v8128_v28  ;;  %v20734_v58 = vld [vmem:[%s26965_s1 + $0xf0] sm:$0xff] }
 0x379   :  { %8185 = vmatpush1.msra.mxu1 %v8184_v62  ;;  %8278 = vmatpush1.msra.mxu0 %v23258_v39  ;;  %v8619_v35 = vsel %vm103_vm0, %v20734_v58, 0  ;;  %v20737_v58 = vld [vmem:[%s26965_s1 + $0x108] sm:$0xff] }
 0x37a   :  { %8191 = vmatprep.subr.mxu1 %v8190_v22  ;;  %8281 = vmatprep.subr.mxu0 %v23263_v52  ;;  %v23344_v48 = vand.u32 4294901760, %v8619_v35  ;;  %v8757_v52 = vand.u32 4294901760, %v23389_v5  ;;  %v9191_v37 = vsel %vm103_vm0, %v20737_v58, 0 }
 0x37b   :  { %8197 = vmatpush1.msra.mxu1 %v8196_v60  ;;  %8284 = vmatpush1.msra.mxu0 %v23267_v40  ;;  %v8747_v40 = vand.u32 4294901760, %v8746_v2  ;;  %v23509_v20 = vand.u32 4294901760, %v9191_v37 }
 0x37c   :  { %8018 = vmatprep.mubr.f32.mxu1 %v27089_v6  ;;  %8134 = vmatprep.mubr.f32.mxu0 %v27089_v6  ;;  %v23372_v34 = vsub.f32 %v8619_v35, %v23344_v48  ;;  %v8758_v17 = vsub.f32 %v23389_v5, %v8757_v52 }
 0x37d   :  { %8363 = vmatprep.subr.mxu1 %v23201_v4  ;;  %8452 = vmatprep.subr.mxu0 %v8176_v26  ;;  %v23400_v26 = vsub.f32 %v8622_v3, %v23381_v19 }
 0x37e   :  { %8020 = vmatmul.mubr.f32.gmra.mxu1 %v23126_v44  ;;  %8140 = vmatmul.mubr.f32.gmra.mxu0 %v8139_v61  ;;  %v8613_v44 = vmul.f32 %v20828_v16, %v8608_v1  ;;  %v20832_v61 = vld [vmem:[%s26966_s2 + $0xf0] sm:$0xff] }
 0x37f   :  { %8230 = vmatprep.mubr.f32.mxu1 %v27089_v6  ;;  %8317 = vmatprep.mubr.f32.mxu0 %v27089_v6 }
 0x380   :  { %v23361_v31 = vand.u32 4294901760, %v8613_v44 }
 0x382   :  { %8232 = vmatmul.mubr.f32.vlgmr.msra.gmra.mxu1 %v23218_v36  ;;  %8320 = vmatmul.mubr.f32.vlgmr.msra.gmra.mxu0 %v23246_v63  ;;  %v23384_v47 = vsub.f32 %v8613_v44, %v23361_v31 }
 0x383   :  { %8365 = vmatpush1.msra.mxu1 %v23235_v32  ;;  %8456 = vmatpush1.msra.mxu0 %v8182_v13  ;;  %v9175_v13 = vpop.permute.xlu1 %9174 }
 0x384   :  { %8367 = vmatprep.subr.mxu1 %v23241_v59  ;;  %8460 = vmatprep.subr.mxu0 %v8188_v56  ;;  %v8751_v39 = vand.u32 4294901760, %v23384_v47  ;;  %v9171_v56 = vpop.permute.xlu0 %9170 }
 0x385   :  { %8369 = vmatpush1.msra.mxu1 %v23248_v7  ;;  %8464 = vmatpush1.msra.mxu0 %v8194_v49  ;;  %v9179_v21 = vsel %vm4057_vm7, %v9175_v13, %v9171_v56  ;;  %v9177_v8 = vsel %vm4057_vm7, %v9171_v56, %v9175_v13 }
 0x386   :  { %8237 = vmatprep.mubr.f32.mxu1 %v27089_v6  ;;  %8325 = vmatprep.mubr.f32.mxu0 %v27089_v6  ;;  %v9183_v54 = vmul.f32 %v20831_v15, %v9179_v21 }
 0x387   :  { %8541 = vmatprep.subr.mxu1 %v23201_v4  ;;  %8653 = vmatprep.subr.mxu0 %v23327_v24  ;;  %v8695_v4 = vand.u32 4294901760, %v23372_v34  ;;  %v9173_v10 = vpop.permute.xlu1 %9172 }
 0x388   :  { %8239 = vmatmul.mubr.f32.gmra.mxu1 %v23255_v9  ;;  %8328 = vmatmul.mubr.f32.gmra.mxu0 %v23274_v57  ;;  %v9169_v12 = vpop.permute.xlu0 %9168  ;;  %v23453_v62 = vand.u32 4294901760, %v9183_v54 }
 0x389   :  { %8402 = vmatprep.mubr.f32.mxu1 %v27089_v6  ;;  %8497 = vmatprep.mubr.f32.mxu0 %v27089_v6  ;;  %v8696_v63 = vsub.f32 %v23372_v34, %v8695_v4  ;;  %v9178_v33 = vsel %vm4057_vm7, %v9173_v10, %v9169_v12  ;;  %v9176_v60 = vsel %vm4057_vm7, %v9169_v12, %v9173_v10 }
 0x38a   :  { %v9181_v51 = vmul.f32 %v20833_v45, %v9178_v33  ;;  %v23476_v1 = vsub.f32 %v9183_v54, %v23453_v62  ;;  %v9180_v23 = vmul.f32 %v20834_v0, %v9176_v60  ;;  %v20738_v45 = vld [vmem:[%s26965_s1 + $0x110] sm:$0xff] }
 0x38c   :  { %8406 = vmatmul.mubr.f32.vlgmr.msra.gmra.mxu1 %v8126_v55  ;;  %8499 = vmatmul.mubr.f32.vlgmr.msra.gmra.mxu0 %v23218_v36  ;;  %v8763_v55 = vand.u32 4294901760, %v23393_v43  ;;  %v23493_v44 = vand.u32 4294901760, %v9181_v51  ;;  %v23500_v50 = vand.u32 4294901760, %v9180_v23  ;;  %v9314_v11 = vand.u32 4294901760, %v23476_v1  ;;  %v9740_v21 = vpop.permute.xlu0 %9739 }
 0x38d   :  { %8543 = vmatpush1.msra.mxu1 %v23235_v32  ;;  %8655 = vmatpush1.msra.mxu0 %v23361_v31  ;;  %v8706_v32 = vand.u32 4294901760, %v23400_v26 }
 0x38e   :  { %8545 = vmatprep.subr.mxu1 %v23241_v59  ;;  %8657 = vmatprep.subr.mxu0 %v23367_v42  ;;  %v8752_v59 = vsub.f32 %v23384_v47, %v8751_v39  ;;  %v8764_v25 = vsub.f32 %v23393_v43, %v8763_v55 }
 0x38f   :  { %8547 = vmatpush1.msra.mxu1 %v23248_v7  ;;  %8659 = vmatpush1.msra.mxu0 %v23374_v14  ;;  %v8697_v7 = vand.u32 4294901760, %v8696_v63  ;;  %v8707_v57 = vsub.f32 %v23400_v26, %v8706_v32 }
 0x390   :  { %8411 = vmatprep.mubr.f32.mxu1 %v27089_v6  ;;  %8504 = vmatprep.mubr.f32.mxu0 %v27089_v6  ;;  %v8753_v49 = vand.u32 4294901760, %v8752_v59  ;;  %v8765_v29 = vand.u32 4294901760, %v8764_v25 }
 0x391   :  { %8748 = vmatprep.subr.mxu1 %v8747_v40  ;;  %8844 = vmatprep.subr.mxu0 %v23350_v53  ;;  %v8708_v28 = vand.u32 4294901760, %v8707_v57  ;;  %v9744_v57 = vpop.permute.xlu1 %9743 }
 0x392   :  { %8415 = vmatmul.mubr.f32.gmra.mxu1 %v8137_v41  ;;  %8506 = vmatmul.mubr.f32.gmra.mxu0 %v23255_v9  ;;  %v8759_v41 = vand.u32 4294901760, %v8758_v17 }
 0x393   :  { %8580 = vmatprep.mubr.f32.mxu1 %v27089_v6  ;;  %8692 = vmatprep.mubr.f32.mxu0 %v27089_v6 }
 0x396   :  { %8582 = vmatmul.mubr.f32.vlgmr.msra.gmra.mxu1 %v23218_v36  ;;  %8698 = vmatmul.mubr.f32.vlgmr.msra.gmra.mxu0 %v8697_v7  ;;  %v20736_v36 = vld [vmem:[%s26965_s1 + $0x100] sm:$0xff] }
 0x397   :  { %8754 = vmatpush1.msra.mxu1 %v8753_v49  ;;  %8847 = vmatpush1.msra.mxu0 %v23384_v47  ;;  %v9188_v22 = vsel %vm103_vm0, %v20736_v36, 0  ;;  %v23521_v47 = vsub.f32 %v9180_v23, %v23500_v50  ;;  %v9746_v23 = vsel %vm4632_vm8, %v9740_v21, %v9744_v57 }
 0x398   :  { %8760 = vmatprep.subr.mxu1 %v8759_v41  ;;  %8850 = vmatprep.subr.mxu0 %v23389_v5  ;;  %v23470_v30 = vand.u32 4294901760, %v9188_v22  ;;  %v9315_v5 = vsub.f32 %v23476_v1, %v9314_v11 }
 0x399   :  { %8766 = vmatpush1.msra.mxu1 %v8765_v29  ;;  %8853 = vmatpush1.msra.mxu0 %v23393_v43  ;;  %v23530_v43 = vsub.f32 %v9191_v37, %v23509_v20  ;;  %v9738_v37 = vpop.permute.xlu0 %9737 }
 0x39a   :  { %8587 = vmatprep.mubr.f32.mxu1 %v27089_v6  ;;  %8703 = vmatprep.mubr.f32.mxu0 %v27089_v6  ;;  %v23498_v18 = vsub.f32 %v9188_v22, %v23470_v30 }
 0x39b   :  { %8932 = vmatprep.subr.mxu1 %v23327_v24  ;;  %9021 = vmatprep.subr.mxu0 %v8745_v38 }
 0x39c   :  { %8589 = vmatmul.mubr.f32.gmra.mxu1 %v23255_v9  ;;  %8709 = vmatmul.mubr.f32.gmra.mxu0 %v8708_v28  ;;  %v9182_v9 = vmul.f32 %v20832_v61, %v9177_v8  ;;  %v9264_v3 = vand.u32 4294901760, %v23498_v18  ;;  %v9748_v28 = vsel %vm4632_vm8, %v9744_v57, %v9740_v21  ;;  %v9742_v61 = vpop.permute.xlu1 %9741 }
 0x39d   :  { %8799 = vmatprep.mubr.f32.mxu1 %v27089_v6  ;;  %8886 = vmatprep.mubr.f32.mxu0 %v27089_v6 }
 0x39e   :  { %v23487_v35 = vand.u32 4294901760, %v9182_v9 }
 0x3a0   :  { %8801 = vmatmul.mubr.f32.vlgmr.msra.gmra.mxu1 %v23344_v48  ;;  %8889 = vmatmul.mubr.f32.vlgmr.msra.gmra.mxu0 %v23372_v34  ;;  %v23512_v46 = vsub.f32 %v9182_v9, %v23487_v35  ;;  %v9265_v34 = vsub.f32 %v23498_v18, %v9264_v3 }
 0x3a1   :  { %8934 = vmatpush1.msra.mxu1 %v23361_v31  ;;  %9025 = vmatpush1.msra.mxu0 %v8751_v39 }
 0x3a2   :  { %8936 = vmatprep.subr.mxu1 %v23367_v42  ;;  %9029 = vmatprep.subr.mxu0 %v8757_v52  ;;  %v9320_v39 = vand.u32 4294901760, %v23512_v46  ;;  %v9266_v13 = vand.u32 4294901760, %v9265_v34 }
 0x3a3   :  { %8938 = vmatpush1.msra.mxu1 %v23374_v14  ;;  %9033 = vmatpush1.msra.mxu0 %v8763_v55  ;;  %v9332_v55 = vand.u32 4294901760, %v23521_v47 }
 0x3a4   :  { %v5328_v16 = vpop.f32.mrf.mxu0  ;;  %8806 = vmatprep.mubr.f32.mxu1 %v27089_v6  ;;  %8894 = vmatprep.mubr.f32.mxu0 %v27089_v6 }
 0x3a5   :  { %9110 = vmatprep.subr.mxu1 %v23327_v24  ;;  %9222 = vmatprep.subr.mxu0 %v23453_v62  ;;  %v23517_v24 = vsub.f32 %v9181_v51, %v23493_v44  ;;  %v9333_v56 = vsub.f32 %v23521_v47, %v9332_v55 }
 0x3a6   :  { %v23505_v53 = vpop.f32.mrf.mxu0  ;;  %8808 = vmatmul.mubr.f32.gmra.mxu1 %v23381_v19  ;;  %8897 = vmatmul.mubr.f32.gmra.mxu0 %v23400_v26 }
 0x3a7   :  { %8971 = vmatprep.mubr.f32.mxu1 %v27089_v6  ;;  %9066 = vmatprep.mubr.f32.mxu0 %v27089_v6  ;;  %v9334_v36 = vand.u32 4294901760, %v9333_v56  ;;  %v20838_v56 = vld [vmem:[%s26966_s2 + $0x100] sm:$0xff] }
 0x3a8   :  { %v5339_v38 = vpop.f32.mrf.mxu0 }
 0x3aa   :  { %8975 = vmatmul.mubr.f32.vlgmr.msra.gmra.mxu1 %v8695_v4  ;;  %9068 = vmatmul.mubr.f32.vlgmr.msra.gmra.mxu0 %v23344_v48  ;;  %v23532_v2 = vpop.f32.mrf.mxu0  ;;  %v9326_v4 = vand.u32 4294901760, %v23517_v24 }
 0x3ab   :  { %9112 = vmatpush1.msra.mxu1 %v23361_v31  ;;  %9224 = vmatpush1.msra.mxu0 %v23487_v35  ;;  %v9316_v31 = vand.u32 4294901760, %v9315_v5 }
 0x3ac   :  { %9114 = vmatprep.subr.mxu1 %v23367_v42  ;;  %9226 = vmatprep.subr.mxu0 %v23493_v44  ;;  %v5431_v63 = vpop.f32.mrf.mxu1  ;;  %v5519_v52 = vpop.f32.mrf.mxu0  ;;  %v9275_v42 = vand.u32 4294901760, %v23530_v43  ;;  %v9327_v25 = vsub.f32 %v23517_v24, %v9326_v4 }
 0x3ad   :  { %9116 = vmatpush1.msra.mxu1 %v23374_v14  ;;  %9228 = vmatpush1.msra.mxu0 %v23500_v50  ;;  %v5432_v40 = vadd.f32 %v5431_v63, %v5328_v16  ;;  %v9321_v14 = vsub.f32 %v23512_v46, %v9320_v39 }
 0x3ae   :  { %8980 = vmatprep.mubr.f32.mxu1 %v27089_v6  ;;  %9073 = vmatprep.mubr.f32.mxu0 %v27089_v6  ;;  %v23549_v59 = vpop.f32.mrf.mxu1  ;;  %v23551_v7 = vpop.f32.mrf.mxu0  ;;  %v9276_v26 = vsub.f32 %v23530_v43, %v9275_v42  ;;  %v9328_v15 = vand.u32 4294901760, %v9327_v25 }
 0x3af   :  { %9317 = vmatprep.subr.mxu1 %v9316_v31  ;;  %9413 = vmatprep.subr.mxu0 %v23476_v1  ;;  %v5520_v17 = vadd.f32 %v5519_v52, %v5432_v40  ;;  %v9322_v41 = vand.u32 4294901760, %v9321_v14  ;;  %v9757_v1 = vsel %vm103_vm0, %v20738_v45, 0  ;;  %v20837_v31 = vld [vmem:[%s26966_s2 + $0x108] sm:$0xff] }
 0x3b0   :  { %8984 = vmatmul.mubr.f32.gmra.mxu1 %v8706_v32  ;;  %9075 = vmatmul.mubr.f32.gmra.mxu0 %v23381_v19  ;;  %v9277_v12 = vand.u32 4294901760, %v9276_v26  ;;  %v23616_v14 = vand.u32 4294901760, %v9757_v1 }
 0x3b1   :  { %9149 = vmatprep.mubr.f32.mxu1 %v27089_v6  ;;  %9261 = vmatprep.mubr.f32.mxu0 %v27089_v6 }
 0x3b2   :  { %v5438_v32 = vpop.f32.mrf.mxu1  ;;  %v5527_v49 = vpop.f32.mrf.mxu0 }
 0x3b3   :  { %v5439_v29 = vadd.f32 %v5438_v32, %v5339_v38  ;;  %v9747_v38 = vsel %vm4632_vm8, %v9742_v61, %v9738_v37 }
 0x3b4   :  { %9151 = vmatmul.mubr.f32.vlgmr.msra.gmra.mxu1 %v23344_v48  ;;  %9267 = vmatmul.mubr.f32.vlgmr.msra.gmra.mxu0 %v9266_v13  ;;  %v23574_v54 = vpop.f32.mrf.mxu1  ;;  %v23576_v10 = vpop.f32.mrf.mxu0  ;;  %v20835_v48 = vld [vmem:[%s26966_s2 + $0x118] sm:$0xff]  ;;  %v9750_v40 = vmul.f32 %v20837_v31, %v9747_v38 }
 0x3b5   :  { %9323 = vmatpush1.msra.mxu1 %v9322_v41  ;;  %9416 = vmatpush1.msra.mxu0 %v23512_v46  ;;  %v5528_v8 = vadd.f32 %v5527_v49, %v5439_v29  ;;  %v9752_v60 = vmul.f32 %v20835_v48, %v9748_v28 }
 0x3b6   :  { %9329 = vmatprep.subr.mxu1 %v9328_v15  ;;  %9419 = vmatprep.subr.mxu0 %v23517_v24  ;;  %v5605_v33 = vpop.f32.mrf.mxu1  ;;  %v5698_v22 = vpop.f32.mrf.mxu0  ;;  %v23643_v46 = vand.u32 4294901760, %v9750_v40  ;;  %v23648_v24 = vsub.f32 %v9757_v1, %v23616_v14 }
 0x3b7   :  { %9335 = vmatpush1.msra.mxu1 %v9334_v36  ;;  %9422 = vmatpush1.msra.mxu0 %v23521_v47  ;;  %v5606_v9 = vadd.f32 %v5605_v33, %v5520_v17  ;;  %v23599_v16 = vand.u32 4294901760, %v9752_v60  ;;  %v20739_v17 = vld [vmem:[%s26965_s1 + $0x118] sm:$0xff] }
 0x3b8   :  { %9156 = vmatprep.mubr.f32.mxu1 %v27089_v6  ;;  %9272 = vmatprep.mubr.f32.mxu0 %v27089_v6  ;;  %v23589_v51 = vpop.f32.mrf.mxu1  ;;  %v23591_v58 = vpop.f32.mrf.mxu0  ;;  %v9760_v29 = vsel %vm103_vm0, %v20739_v17, 0 }
 0x3b9   :  { %9501 = vmatprep.subr.mxu1 %v23453_v62  ;;  %9590 = vmatprep.subr.mxu0 %v9314_v11  ;;  %v5699_v0 = vadd.f32 %v5698_v22, %v5606_v9  ;;  %v9745_v11 = vsel %vm4632_vm8, %v9738_v37, %v9742_v61  ;;  %v23626_v57 = vsub.f32 %v9752_v60, %v23599_v16  ;;  %v23661_v36 = vand.u32 4294901760, %v9760_v29 }
 0x3ba   :  { %9158 = vmatmul.mubr.f32.gmra.mxu1 %v23381_v19  ;;  %9278 = vmatmul.mubr.f32.gmra.mxu0 %v9277_v12  ;;  %v20836_v19 = vld [vmem:[%s26966_s2 + $0x110] sm:$0xff]  ;;  %v9749_v26 = vmul.f32 %v20838_v56, %v9745_v11  ;;  %v9833_v12 = vand.u32 4294901760, %v23648_v24 }
 0x3bb   :  { %9368 = vmatprep.mubr.f32.mxu1 %v27089_v6  ;;  %9455 = vmatprep.mubr.f32.mxu0 %v27089_v6  ;;  %v9751_v63 = vmul.f32 %v20836_v19, %v9746_v23  ;;  %v9883_v47 = vand.u32 4294901760, %v23626_v57  ;;  %v23682_v9 = vsub.f32 %v9760_v29, %v23661_v36 }
 0x3bc   :  { %v5614_v5 = vpop.f32.mrf.mxu1  ;;  %v5705_v34 = vpop.f32.mrf.mxu0  ;;  %v23654_v15 = vand.u32 4294901760, %v9749_v26 }
 0x3bd   :  { %v5615_v52 = vadd.f32 %v5614_v5, %v5528_v8  ;;  %v23637_v41 = vand.u32 4294901760, %v9751_v63  ;;  %v9884_v60 = vsub.f32 %v23626_v57, %v9883_v47 }
 0x3be   :  { %9370 = vmatmul.mubr.f32.vlgmr.msra.gmra.mxu1 %v23470_v30  ;;  %9458 = vmatmul.mubr.f32.vlgmr.msra.gmra.mxu0 %v23498_v18  ;;  %v23621_v13 = vpop.f32.mrf.mxu1  ;;  %v23623_v25 = vpop.f32.mrf.mxu0  ;;  %v23673_v48 = vsub.f32 %v9749_v26, %v23654_v15  ;;  %v9834_v18 = vsub.f32 %v23648_v24, %v9833_v12 }
 0x3bf   :  { %9503 = vmatpush1.msra.mxu1 %v23487_v35  ;;  %9594 = vmatpush1.msra.mxu0 %v9320_v39  ;;  %v5706_v32 = vadd.f32 %v5705_v34, %v5615_v52  ;;  %v23664_v8 = vsub.f32 %v9751_v63, %v23637_v41 }
 0x3c0   :  { %9505 = vmatprep.subr.mxu1 %v23493_v44  ;;  %9598 = vmatprep.subr.mxu0 %v9326_v4  ;;  %v5781_v49 = vpop.f32.mrf.mxu1  ;;  %v5874_v21 = vpop.f32.mrf.mxu0  ;;  %v9901_v11 = vand.u32 4294901760, %v23673_v48  ;;  %v9835_v52 = vand.u32 4294901760, %v9834_v18 }
 0x3c1   :  { %9507 = vmatpush1.msra.mxu1 %v23500_v50  ;;  %9602 = vmatpush1.msra.mxu0 %v9332_v55  ;;  %v5782_v28 = vadd.f32 %v5781_v49, %v5699_v0  ;;  %v9889_v23 = vand.u32 4294901760, %v23664_v8 }
 0x3c2   :  { %9375 = vmatprep.mubr.f32.mxu1 %v27089_v6  ;;  %9463 = vmatprep.mubr.f32.mxu0 %v27089_v6  ;;  %v23650_v39 = vpop.f32.mrf.mxu1  ;;  %v23652_v4 = vpop.f32.mrf.mxu0 }
 0x3c3   :  { %9679 = vmatprep.subr.mxu1 %v23453_v62  ;;  %9791 = vmatprep.subr.mxu0 %v23599_v16  ;;  %v5875_v55 = vadd.f32 %v5874_v21, %v5782_v28  ;;  %v23669_v62 = vsub.f32 %v9750_v40, %v23643_v46  ;;  %v9902_v40 = vsub.f32 %v23673_v48, %v9901_v11 }
 0x3c4   :  { %9377 = vmatmul.mubr.f32.gmra.mxu1 %v23509_v20  ;;  %9466 = vmatmul.mubr.f32.gmra.mxu0 %v23530_v43 }
 0x3c5   :  { %9540 = vmatprep.mubr.f32.mxu1 %v27089_v6  ;;  %9635 = vmatprep.mubr.f32.mxu0 %v27089_v6  ;;  %v9903_v29 = vand.u32 4294901760, %v9902_v40 }
 0x3c6   :  { %v5788_v33 = vpop.f32.mrf.mxu1  ;;  %v5885_v22 = vpop.f32.mrf.mxu0 }
 0x3c7   :  { %v5789_v61 = vadd.f32 %v5788_v33, %v5706_v32 }
 0x3c8   :  { %9544 = vmatmul.mubr.f32.vlgmr.msra.gmra.mxu1 %v9264_v3  ;;  %9637 = vmatmul.mubr.f32.vlgmr.msra.gmra.mxu0 %v23470_v30  ;;  %v23684_v45 = vpop.f32.mrf.mxu1  ;;  %v23686_v0 = vpop.f32.mrf.mxu0  ;;  %v9895_v3 = vand.u32 4294901760, %v23669_v62 }
 0x3c9   :  { %9681 = vmatpush1.msra.mxu1 %v23487_v35  ;;  %9793 = vmatpush1.msra.mxu0 %v23637_v41  ;;  %v5886_v37 = vadd.f32 %v5885_v22, %v5789_v61  ;;  %v9885_v35 = vand.u32 4294901760, %v9884_v60 }
 0x3ca   :  { %9683 = vmatprep.subr.mxu1 %v23493_v44  ;;  %9795 = vmatprep.subr.mxu0 %v23643_v46  ;;  %v5977_v38 = vpop.f32.mrf.mxu1  ;;  %v6065_v1 = vpop.f32.mrf.mxu0  ;;  %v9844_v44 = vand.u32 4294901760, %v23682_v9  ;;  %v9896_v31 = vsub.f32 %v23669_v62, %v9895_v3 }
 0x3cb   :  { %9685 = vmatpush1.msra.mxu1 %v23500_v50  ;;  %9797 = vmatpush1.msra.mxu0 %v23654_v15  ;;  %v5978_v5 = vadd.f32 %v5977_v38, %v5875_v55  ;;  %v9890_v50 = vsub.f32 %v23664_v8, %v9889_v23 }
 0x3cc   :  { %9549 = vmatprep.mubr.f32.mxu1 %v27089_v6  ;;  %9642 = vmatprep.mubr.f32.mxu0 %v27089_v6  ;;  %v23703_v34 = vpop.f32.mrf.mxu1  ;;  %v23705_v19 = vpop.f32.mrf.mxu0  ;;  %v9845_v43 = vsub.f32 %v23682_v9, %v9844_v44  ;;  %v9897_v32 = vand.u32 4294901760, %v9896_v31 }
 0x3cd   :  { %9886 = vmatprep.subr.mxu1 %v9885_v35  ;;  %9982 = vmatprep.subr.mxu0 %v23626_v57  ;;  %v6066_v63 = vadd.f32 %v6065_v1, %v5978_v5  ;;  %v9891_v56 = vand.u32 4294901760, %v9890_v50 }
 0x3ce   :  { %9553 = vmatmul.mubr.f32.gmra.mxu1 %v9275_v42  ;;  %9644 = vmatmul.mubr.f32.gmra.mxu0 %v23509_v20  ;;  %v9846_v55 = vand.u32 4294901760, %v9845_v43 }
 0x3cf   :  { %9718 = vmatprep.mubr.f32.mxu1 %v27089_v6  ;;  %9830 = vmatprep.mubr.f32.mxu0 %v27089_v6 }
 0x3d0   :  { %v5984_v42 = vpop.f32.mrf.mxu1  ;;  %v6073_v17 = vpop.f32.mrf.mxu0 }
 0x3d1   :  { %v5985_v26 = vadd.f32 %v5984_v42, %v5886_v37 }
 0x3d2   :  { %9720 = vmatmul.mubr.f32.vlgmr.msra.gmra.mxu1 %v23470_v30  ;;  %9836 = vmatmul.mubr.f32.vlgmr.msra.gmra.mxu0 %v9835_v52  ;;  %v23726_v49 = vpop.f32.mrf.mxu1  ;;  %v23728_v21 = vpop.f32.mrf.mxu0 }
 0x3d3   :  { %9892 = vmatpush1.msra.mxu1 %v9891_v56  ;;  %9985 = vmatpush1.msra.mxu0 %v23664_v8  ;;  %v6074_v28 = vadd.f32 %v6073_v17, %v5985_v26 }
 0x3d4   :  { %9898 = vmatprep.subr.mxu1 %v9897_v32  ;;  %9988 = vmatprep.subr.mxu0 %v23669_v62  ;;  %v6151_v33 = vpop.f32.mrf.mxu1  ;;  %v6244_v22 = vpop.f32.mrf.mxu0 }
 0x3d5   :  { %9904 = vmatpush1.msra.mxu1 %v9903_v29  ;;  %9991 = vmatpush1.msra.mxu0 %v23673_v48  ;;  %v6152_v30 = vadd.f32 %v6151_v33, %v6066_v63 }
 0x3d6   :  { %9725 = vmatprep.mubr.f32.mxu1 %v27089_v6  ;;  %9841 = vmatprep.mubr.f32.mxu0 %v27089_v6  ;;  %v23735_v60 = vpop.f32.mrf.mxu1  ;;  %v23737_v61 = vpop.f32.mrf.mxu0 }
 0x3d7   :  { %27090 = vst [vmem:[#allocation31_spill] sm:$0xff] %v23737_v61  ;;  %10070 = vmatprep.subr.mxu1 %v23599_v16  ;;  %10159 = vmatprep.subr.mxu0 %v9883_v47  ;;  %v6245_v37 = vadd.f32 %v6244_v22, %v6152_v30 }
 0x3d8   :  { %9727 = vmatmul.mubr.f32.gmra.mxu1 %v23509_v20  ;;  %9847 = vmatmul.mubr.f32.gmra.mxu0 %v9846_v55 }
 0x3d9   :  { %9937 = vmatprep.mubr.f32.mxu1 %v27089_v6  ;;  %10024 = vmatprep.mubr.f32.mxu0 %v27089_v6 }
 0x3da   :  { %v6160_v18 = vpop.f32.mrf.mxu1  ;;  %v6251_v38 = vpop.f32.mrf.mxu0 }
 0x3db   :  { %v6161_v1 = vadd.f32 %v6160_v18, %v6074_v28 }
 0x3dc   :  { %9939 = vmatmul.mubr.f32.vlgmr.msra.gmra.mxu1 %v23616_v14  ;;  %10027 = vmatmul.mubr.f32.vlgmr.msra.gmra.mxu0 %v23648_v24  ;;  %v23747_v35 = vpop.f32.mrf.mxu1  ;;  %v23749_v5 = vpop.f32.mrf.mxu0 }
 0x3dd   :  { %27091 = vst [vmem:[#allocation16_spill] sm:$0xff] %v23749_v5  ;;  %10072 = vmatpush1.msra.mxu1 %v23637_v41  ;;  %10163 = vmatpush1.msra.mxu0 %v9889_v23  ;;  %v6252_v20 = vadd.f32 %v6251_v38, %v6161_v1 }
 0x3de   :  { %10074 = vmatprep.subr.mxu1 %v23643_v46  ;;  %10167 = vmatprep.subr.mxu0 %v9895_v3  ;;  %v6327_v57 = vpop.f32.mrf.mxu1  ;;  %v6439_v47 = vpop.f32.mrf.mxu0 }
 0x3df   :  { %10076 = vmatpush1.msra.mxu1 %v23654_v15  ;;  %10171 = vmatpush1.msra.mxu0 %v9901_v11  ;;  %v6328_v50 = vadd.f32 %v6327_v57, %v6245_v37 }
 0x3e0   :  { %9944 = vmatprep.mubr.f32.mxu1 %v27089_v6  ;;  %10248 = vmatprep.subr.mxu1 %v23599_v16  ;;  %v23762_v8 = vpop.f32.mrf.mxu1  ;;  %v23764_v23 = vpop.f32.mrf.mxu0 }
 0x3e1   :  { %27092 = vst [vmem:[#allocation17_spill] sm:$0xff] %v23762_v8  ;;  %9946 = vmatmul.mubr.f32.gmra.mxu1 %v23661_v36  ;;  %10032 = vmatprep.mubr.f32.mxu0 %v27089_v6 }
 0x3e2   :  { %10035 = vmatmul.mubr.f32.gmra.mxu0 %v23682_v9  ;;  %10109 = vmatprep.mubr.f32.mxu1 %v27089_v6 }
 0x3e3   :  { %10204 = vmatprep.mubr.f32.mxu0 %v27089_v6 }
 0x3e4   :  { %v6334_v62 = vpop.f32.mrf.mxu1  ;;  %v6450_v48 = vpop.f32.mrf.mxu0 }
 0x3e5   :  { %10113 = vmatmul.mubr.f32.vlgmr.msra.gmra.mxu1 %v9833_v12  ;;  %v6335_v16 = vadd.f32 %v6334_v62, %v6252_v20 }
 0x3e6   :  { %10250 = vmatpush1.msra.mxu1 %v23637_v41  ;;  %10206 = vmatmul.mubr.f32.vlgmr.msra.gmra.mxu0 %v23616_v14  ;;  %v23775_v3 = vpop.f32.mrf.mxu1  ;;  %v23777_v11 = vpop.f32.mrf.mxu0 }
 0x3e7   :  { %27093 = vst [vmem:[#allocation24_spill] sm:$0xff] %v23775_v3  ;;  %10252 = vmatprep.subr.mxu1 %v23643_v46  ;;  %10118 = vmatprep.mubr.f32.mxu1 %v27089_v6 }
 0x3e8   :  { %10254 = vmatpush1.msra.mxu1 %v23654_v15  ;;  %10211 = vmatprep.mubr.f32.mxu0 %v27089_v6  ;;  %v6542_v63 = vpop.f32.mrf.mxu1  ;;  %v6630_v24 = vpop.f32.mrf.mxu0 }
 0x3e9   :  { %10122 = vmatmul.mubr.f32.gmra.mxu1 %v9844_v44  ;;  %v6543_v41 = vadd.f32 %v6542_v63, %v6439_v47 }
 0x3ea   :  { %10213 = vmatmul.mubr.f32.gmra.mxu0 %v23661_v36  ;;  %10287 = vmatprep.mubr.f32.mxu1 %v27089_v6  ;;  %v23787_v12 = vpop.f32.mrf.mxu1  ;;  %v23789_v52 = vpop.f32.mrf.mxu0 }
 0x3eb   :  { %v6631_v46 = vadd.f32 %v6630_v24, %v6543_v41  ;;  %10428 = vmatprep.mubr.f32.mxu0 %v27089_v6 }
 0x3ed   :  { %10289 = vmatmul.mubr.f32.vlgmr.msra.gmra.mxu1 %v23616_v14 }
 0x3ee   :  { %10294 = vmatprep.mubr.f32.mxu1 %v27089_v6  ;;  %v6549_v15 = vpop.f32.mrf.mxu1  ;;  %v6638_v31 = vpop.f32.mrf.mxu0 }
 0x3ef   :  { %v6550_v9 = vadd.f32 %v6549_v15, %v6450_v48 }
 0x3f0   :  { %v23794_v44 = vpop.f32.mrf.mxu1  ;;  %v23796_v40 = vpop.f32.mrf.mxu0 }
 0x3f1   :  { %10296 = vmatmul.mubr.f32.gmra.mxu1 %v23661_v36  ;;  %v6639_v43 = vadd.f32 %v6638_v31, %v6550_v9 }
 0x3f2   :  { %v6716_v42 = vpop.f32.mrf.mxu1  ;;  %v6809_v17 = vpop.f32.mrf.mxu0  ;;  %10535 = vmatprep.mubr.f32.mxu1 %v27089_v6 }
 0x3f3   :  { %v6717_v56 = vadd.f32 %v6716_v42, %v6631_v46 }
 0x3f4   :  { %v23800_v26 = vpop.f32.mrf.mxu1  ;;  %v23802_v14 = vpop.f32.mrf.mxu0 }
 0x3f5   :  { %27094 = vst [vmem:[#allocation26_spill] sm:$0xff] %v23802_v14  ;;  %v6810_v32 = vadd.f32 %v6809_v17, %v6717_v56 }
 0x3f8   :  { %v6725_v29 = vpop.f32.mrf.mxu1  ;;  %v6816_v28 = vpop.f32.mrf.mxu0 }
 0x3f9   :  { %v6726_v55 = vadd.f32 %v6725_v29, %v6639_v43 }
 0x3fa   :  { %v23804_v33 = vpop.f32.mrf.mxu1  ;;  %v23806_v22 = vpop.f32.mrf.mxu0 }
 0x3fb   :  { %27095 = vst [vmem:[#allocation12_spill] sm:$0xff] %v23806_v22  ;;  %v6817_v30 = vadd.f32 %v6816_v28, %v6726_v55 }
 0x3fc   :  { %v6892_v36 = vpop.f32.mrf.mxu1  ;;  %v7008_v37 = vpop.f32.mrf.mxu0 }
 0x3fd   :  { %v6893_v18 = vadd.f32 %v6892_v36, %v6810_v32 }
 0x3fe   :  { %v23808_v38 = vpop.f32.mrf.mxu1  ;;  %v23810_v1 = vpop.f32.mrf.mxu0 }
 0x3ff   :  { %27096 = vst [vmem:[#allocation13_spill] sm:$0xff] %v23808_v38  ;;  %v6904_v20 = vadd.f32 %v6893_v18, %v6328_v50 }
 0x402   :  { %v6899_v57 = vpop.f32.mrf.mxu1  ;;  %v7019_v47 = vpop.f32.mrf.mxu0 }
 0x403   :  { %v6900_v62 = vadd.f32 %v6899_v57, %v6817_v30 }
 0x404   :  { %v23812_v48 = vpop.f32.mrf.mxu1  ;;  %v23814_v63 = vpop.f32.mrf.mxu0 }
 0x405   :  { %27097 = vst [vmem:[#allocation18_spill] sm:$0xff] %v23812_v48  ;;  %v6906_v24 = vadd.f32 %v6900_v62, %v6335_v16 }
 0x406   :  { %v7111_v41 = vpop.f32.mrf.mxu1  ;;  %v7199_v46 = vpop.f32.mrf.mxu0 }
 0x407   :  { %v7112_v15 = vadd.f32 %v7111_v41, %v7008_v37 }
 0x408   :  { %v23816_v31 = vpop.f32.mrf.mxu1  ;;  %v23818_v9 = vpop.f32.mrf.mxu0 }
 0x409   :  { %v7200_v43 = vadd.f32 %v7199_v46, %v7112_v15 }
 0x40c   :  { %v7118_v42 = vpop.f32.mrf.mxu1  ;;  %v7207_v17 = vpop.f32.mrf.mxu0 }
 0x40d   :  { %v7119_v56 = vadd.f32 %v7118_v42, %v7019_v47 }
 0x40e   :  { %v23820_v50 = vpop.f32.mrf.mxu1  ;;  %v23822_v32 = vpop.f32.mrf.mxu0 }
 0x40f   :  { %v7208_v29 = vadd.f32 %v7207_v17, %v7119_v56 }
 0x410   :  { %v7285_v28 = vpop.f32.mrf.mxu1  ;;  %v7378_v55 = vpop.f32.mrf.mxu0 }
 0x411   :  { %v7286_v30 = vadd.f32 %v7285_v28, %v7200_v43 }
 0x412   :  { %v23824_v16 = vpop.f32.mrf.mxu1  ;;  %v23826_v36 = vpop.f32.mrf.mxu0 }
 0x413   :  { %27098 = vst [vmem:[#allocation20_spill] sm:$0xff] %v23826_v36  ;;  %v7379_v37 = vadd.f32 %v7378_v55, %v7286_v30 }
 0x416   :  { %v7294_v18 = vpop.f32.mrf.mxu1  ;;  %v7385_v57 = vpop.f32.mrf.mxu0 }
 0x417   :  { %v7295_v62 = vadd.f32 %v7294_v18, %v7208_v29 }
 0x418   :  { %v23828_v41 = vpop.f32.mrf.mxu1  ;;  %v23830_v46 = vpop.f32.mrf.mxu0 }
 0x419   :  { %27099 = vst [vmem:[#allocation19_spill] sm:$0xff] %v23830_v46  ;;  %v7386_v47 = vadd.f32 %v7385_v57, %v7295_v62 }
 0x41a   :  { %v7461_v15 = vpop.f32.mrf.mxu1  ;;  %v7561_v42 = vpop.f32.mrf.mxu0 }
 0x41b   :  { %v7462_v6 = vadd.f32 %v7461_v15, %v7379_v37 }
 0x41c   :  { %v23832_v17 = vpop.f32.mrf.mxu1  ;;  %v23834_v56 = vpop.f32.mrf.mxu0 }
 0x41d   :  { %27100 = vst [vmem:[#allocation21_spill] sm:$0xff] %v23832_v17  ;;  %v7473_v43 = vadd.f32 %v7462_v6, %v6904_v20 }
 0x420   :  { %v7468_v28 = vpop.f32.mrf.mxu1  ;;  %v7572_v27 = vpop.f32.mrf.mxu0 }
 0x421   :  { %v7469_v3 = vadd.f32 %v7468_v28, %v7386_v47 }
 0x422   :  { %v23836_v55 = vpop.f32.mrf.mxu1  ;;  %v23838_v30 = vpop.f32.mrf.mxu0 }
 0x423   :  { %27101 = vst [vmem:[#allocation32_spill] sm:$0xff] %v23836_v55  ;;  %v7475_v29 = vadd.f32 %v7469_v3, %v6906_v24 }
 0x424   :  { %v7664_v18 = vpop.f32.mrf.mxu1  ;;  %v7752_v8 = vpop.f32.mrf.mxu0 }
 0x425   :  { %v7665_v46 = vadd.f32 %v7664_v18, %v7561_v42 }
 0x426   :  { %v23840_v57 = vpop.f32.mrf.mxu1  ;;  %v23842_v62 = vpop.f32.mrf.mxu0 }
 0x427   :  { %v7753_v37 = vadd.f32 %v7752_v8, %v7665_v46 }
 0x42a   :  { %v7671_v15 = vpop.f32.mrf.mxu1  ;;  %v7760_v17 = vpop.f32.mrf.mxu0 }
 0x42b   :  { %v7672_v48 = vadd.f32 %v7671_v15, %v7572_v27 }
 0x42c   :  { %v23844_v6 = vpop.f32.mrf.mxu1  ;;  %v23846_v20 = vpop.f32.mrf.mxu0 }
 0x42d   :  { %v7761_v47 = vadd.f32 %v7760_v17, %v7672_v48 }
 0x42e   :  { %v7838_v28 = vpop.f32.mrf.mxu1  ;;  %v7931_v55 = vpop.f32.mrf.mxu0 }
 0x42f   :  { %v7839_v36 = vadd.f32 %v7838_v28, %v7753_v37 }
 0x430   :  { %v23848_v3 = vpop.f32.mrf.mxu1  ;;  %v23850_v24 = vpop.f32.mrf.mxu0 }
 0x431   :  { %27102 = vst [vmem:[#allocation30_spill] sm:$0xff] %v23848_v3  ;;  %27103 = vst [vmem:[#allocation33_spill] sm:$0xff] %v23850_v24  ;;  %v7932_v42 = vadd.f32 %v7931_v55, %v7839_v36 }
 0x434   :  { %v7847_v18 = vpop.f32.mrf.mxu1  ;;  %v7938_v38 = vpop.f32.mrf.mxu0 }
 0x435   :  { %v7848_v5 = vadd.f32 %v7847_v18, %v7761_v47 }
 0x436   :  { %v23852_v8 = vpop.f32.mrf.mxu1  ;;  %v23854_v46 = vpop.f32.mrf.mxu0 }
 0x437   :  { %27104 = vst [vmem:[#allocation14_spill] sm:$0xff] %v23852_v8  ;;  %27105 = vst [vmem:[#allocation15_spill] sm:$0xff] %v23854_v46  ;;  %v7939_v27 = vadd.f32 %v7938_v38, %v7848_v5 }
 0x438   :  { %v8014_v15 = vpop.f32.mrf.mxu1  ;;  %v8130_v61 = vpop.f32.mrf.mxu0 }
 0x439   :  { %v8015_v22 = vadd.f32 %v8014_v15, %v7932_v42 }
 0x43a   :  { %v23856_v48 = vpop.f32.mrf.mxu1  ;;  %v23858_v17 = vpop.f32.mrf.mxu0 }
 0x43b   :  { %27106 = vst [vmem:[#allocation22_spill] sm:$0xff] %v23856_v48  ;;  %v8026_v37 = vadd.f32 %v8015_v22, %v7473_v43 }
 0x43e   :  { %v8021_v28 = vpop.f32.mrf.mxu1  ;;  %v8141_v3 = vpop.f32.mrf.mxu0 }
 0x43f   :  { %v8022_v24 = vadd.f32 %v8021_v28, %v7939_v27 }
 0x440   :  { %v23860_v36 = vpop.f32.mrf.mxu1  ;;  %v23862_v55 = vpop.f32.mrf.mxu0 }
 0x441   :  { %27107 = vst [vmem:[#allocation23_spill] sm:$0xff] %v23860_v36  ;;  %27108 = vst [vmem:[#allocation25_spill] sm:$0xff] %v23862_v55  ;;  %v8028_v47 = vadd.f32 %v8022_v24, %v7475_v29 }
 0x442   :  { %v8233_v18 = vpop.f32.mrf.mxu1  ;;  %v8321_v8 = vpop.f32.mrf.mxu0 }
 0x443   :  { %v8234_v46 = vadd.f32 %v8233_v18, %v8130_v61 }
 0x444   :  { %v23864_v5 = vpop.f32.mrf.mxu1  ;;  %v23866_v38 = vpop.f32.mrf.mxu0 }
 0x445   :  { %27109 = vst [vmem:[#allocation27_spill] sm:$0xff] %v23864_v5  ;;  %27110 = vst [vmem:[#allocation28_spill] sm:$0xff] %v23866_v38  ;;  %v8322_v42 = vadd.f32 %v8321_v8, %v8234_v46 }
 0x448   :  { %v8240_v15 = vpop.f32.mrf.mxu1  ;;  %v8329_v48 = vpop.f32.mrf.mxu0 }
 0x449   :  { %v8241_v14 = vadd.f32 %v8240_v15, %v8141_v3 }
 0x44a   :  { %v23868_v22 = vpop.f32.mrf.mxu1  ;;  %v23870_v43 = vpop.f32.mrf.mxu0 }
 0x44b   :  { %27111 = vst [vmem:[#allocation29_spill] sm:$0xff] %v23868_v22  ;;  %v8330_v27 = vadd.f32 %v8329_v48, %v8241_v14 }
 0x44c   :  { %v8407_v28 = vpop.f32.mrf.mxu1  ;;  %v8500_v36 = vpop.f32.mrf.mxu0 }
 0x44d   :  { %v8408_v55 = vadd.f32 %v8407_v28, %v8322_v42 }
 0x44e   :  { %v23872_v29 = vpop.f32.mrf.mxu1  ;;  %v23874_v24 = vpop.f32.mrf.mxu0 }
 0x44f   :  { %27112 = vst [vmem:[#allocation34_spill] sm:$0xff] %v23874_v24  ;;  %v8501_v61 = vadd.f32 %v8500_v36, %v8408_v55 }
 0x452   :  { %v8416_v18 = vpop.f32.mrf.mxu1  ;;  %v8507_v5 = vpop.f32.mrf.mxu0 }
 0x453   :  { %v8417_v38 = vadd.f32 %v8416_v18, %v8330_v27 }
 0x454   :  { %v23876_v8 = vpop.f32.mrf.mxu1  ;;  %v23878_v46 = vpop.f32.mrf.mxu0 }
 0x455   :  { %27113 = vst [vmem:[#allocation43_spill] sm:$0xff] %v23878_v46  ;;  %v8508_v3 = vadd.f32 %v8507_v5, %v8417_v38 }
 0x456   :  { %v8583_v15 = vpop.f32.mrf.mxu1  ;;  %v23880_v22 = vpop.f32.mrf.mxu0 }
 0x457   :  { %v8584_v14 = vadd.f32 %v8583_v15, %v8501_v61 }
 0x458   :  { %v23882_v48 = vpop.f32.mrf.mxu1  ;;  %v23884_v42 = vpop.f32.mrf.mxu0 }
 0x459   :  { %27114 = vst [vmem:[#allocation36_spill] sm:$0xff] %v23882_v48  ;;  %v23886_v28 = vadd.f32 %v8584_v14, %v8026_v37 }
 0x45b   :  { %27115 = vst [vmem:[#allocation57_spill] sm:$0xff] %v23886_v28 }
 0x45c   :  { %v8590_v24 = vpop.f32.mrf.mxu1  ;;  %v23888_v36 = vpop.f32.mrf.mxu0 }
 0x45d   :  { %v8591_v55 = vadd.f32 %v8590_v24, %v8508_v3 }
 0x45e   :  { %v23890_v27 = vpop.f32.mrf.mxu1  ;;  %v23892_v18 = vpop.f32.mrf.mxu0 }
 0x45f   :  { %27116 = vst [vmem:[#allocation40_spill] sm:$0xff] %v23890_v27  ;;  %v23894_v46 = vadd.f32 %v8591_v55, %v8028_v47 }
 0x460   :  { %v23896_v5 = vpop.f32.mrf.mxu1  ;;  %v23898_v38 = vpop.f32.mrf.mxu0 }
 0x461   :  { %27117 = vst [vmem:[#allocation41_spill] sm:$0xff] %v23894_v46  ;;  %27118 = vst [vmem:[#allocation42_spill] sm:$0xff] %v23898_v38 }
 0x462   :  { %v23900_v61 = vpop.f32.mrf.mxu1  ;;  %v23902_v15 = vpop.f32.mrf.mxu0 }
 0x463   :  { %27119 = vst [vmem:[#allocation55_spill] sm:$0xff] %v23902_v15 }
 0x466   :  { %v23904_v37 = vpop.f32.mrf.mxu1  ;;  %v23906_v14 = vpop.f32.mrf.mxu0 }
 0x467   :  { %27120 = vst [vmem:[#allocation35_spill] sm:$0xff] %v23906_v14 }
 0x468   :  { %v23908_v28 = vpop.f32.mrf.mxu1  ;;  %v23910_v24 = vpop.f32.mrf.mxu0 }
 0x469   :  { %27121 = vst [vmem:[#allocation44_spill] sm:$0xff] %v23908_v28  ;;  %27122 = vst [vmem:[#allocation59_spill] sm:$0xff] %v23910_v24 }
 0x46a   :  { %v23912_v3 = vpop.f32.mrf.mxu1  ;;  %v23914_v47 = vpop.f32.mrf.mxu0 }
 0x46b   :  { %27123 = vst [vmem:[#allocation45_spill] sm:$0xff] %v23912_v3  ;;  %27124 = vst [vmem:[#allocation47_spill] sm:$0xff] %v23914_v47 }
 0x46c   :  { %v23916_v55 = vpop.f32.mrf.mxu1  ;;  %v23918_v46 = vpop.f32.mrf.mxu0 }
 0x46d   :  { %27125 = vst [vmem:[#allocation49_spill] sm:$0xff] %v23916_v55  ;;  %27126 = vst [vmem:[#allocation60_spill] sm:$0xff] %v23918_v46 }
 0x470   :  { %v23920_v27 = vpop.f32.mrf.mxu1  ;;  %v23922_v38 = vpop.f32.mrf.mxu0 }
 0x471   :  { %27127 = vst [vmem:[#allocation38_spill] sm:$0xff] %v23920_v27  ;;  %27128 = vst [vmem:[#allocation51_spill] sm:$0xff] %v23922_v38  ;;  %v5434_v38 = vadd.f32 %v23549_v59, %v23505_v53 }
 0x472   :  { %v23924_v15 = vpop.f32.mrf.mxu1  ;;  %v23926_v48 = vpop.f32.mrf.mxu0 }
 0x473   :  { %27129 = vst [vmem:[#allocation46_spill] sm:$0xff] %v23924_v15  ;;  %27130 = vst [vmem:[#allocation48_spill] sm:$0xff] %v23926_v48 }
 0x474   :  { %v23928_v14 = vpop.f32.mrf.mxu1  ;;  %v23930_v28 = vpop.f32.mrf.mxu0 }
 0x475   :  { %27131 = vst [vmem:[#allocation50_spill] sm:$0xff] %v23928_v14  ;;  %v5441_v14 = vadd.f32 %v23574_v54, %v23532_v2 }
 0x476   :  { %v23932_v24 = vpop.f32.mrf.mxu1  ;;  %v23934_v3 = vpop.f32.mrf.mxu0 }
 0x477   :  { %27132 = vst [vmem:[#allocation52_spill] sm:$0xff] %v23932_v24  ;;  %27133 = vst [vmem:[#allocation53_spill] sm:$0xff] %v23934_v3 }
 0x47a   :  { %v23936_v47 = vpop.f32.mrf.mxu1  ;;  %v23938_v55 = vpop.f32.mrf.mxu0 }
 0x47b   :  { %27134 = vst [vmem:[#allocation56_spill] sm:$0xff] %v23936_v47  ;;  %27135 = vst [vmem:[#allocation54_spill] sm:$0xff] %v23938_v55  ;;  %v5522_v47 = vadd.f32 %v23551_v7, %v5434_v38 }
 0x47c   :  { %v23940_v46 = vpop.f32.mrf.mxu1  ;;  %v23942_v27 = vpop.f32.mrf.mxu0 }
 0x47d   :  { %27136 = vst [vmem:[#allocation58_spill] sm:$0xff] %v23940_v46  ;;  %27137 = vst [vmem:[#allocation37_spill] sm:$0xff] %v23942_v27  ;;  %v5530_v46 = vadd.f32 %v23576_v10, %v5441_v14  ;;  %v5608_v27 = vadd.f32 %v23589_v51, %v5522_v47 }
 0x47e   :  { %v23948_v48 = vpop.f32.mrf.mxu1  ;;  %v23950_v15 = vpop.f32.mrf.mxu0 }
 0x47f   :  { %27138 = vst [vmem:[#allocation39_spill] sm:$0xff] %v23950_v15  ;;  %v5617_v55 = vadd.f32 %v23621_v13, %v5530_v46  ;;  %v5701_v15 = vadd.f32 %v23591_v58, %v5608_v27  ;;  %v6545_v58 = vadd.f32 %v23787_v12, %v23764_v23 }
 0x480   :  { %v23952_v24 = vpop.f32.mrf.mxu1  ;;  %v23954_v3 = vpop.f32.mrf.mxu0 }
 0x481   :  { %27139 = vst [vmem:[#allocation61_spill] sm:$0xff] %v23952_v24  ;;  %27140 = vst [vmem:[#allocation62_spill] sm:$0xff] %v23954_v3  ;;  %v5708_v3 = vadd.f32 %v23623_v25, %v5617_v55  ;;  %v5784_v10 = vadd.f32 %v23650_v39, %v5701_v15  ;;  %v6552_v25 = vadd.f32 %v23794_v44, %v23777_v11 }
 0x482   :  { %v7114_v15 = vadd.f32 %v23816_v31, %v23810_v1  ;;  %v6633_v11 = vadd.f32 %v23789_v52, %v6545_v58  ;;  %v7667_v44 = vadd.f32 %v23840_v57, %v23834_v56 }
 0x483   :  { %v5791_v51 = vadd.f32 %v23684_v45, %v5708_v3  ;;  %v5877_v38 = vadd.f32 %v23652_v4, %v5784_v10  ;;  %v7121_v4 = vadd.f32 %v23820_v50, %v23814_v63  ;;  %v6641_v12 = vadd.f32 %v23796_v40, %v6552_v25 }
 0x484   :  { %v23960_v53 = vpop.f32.mrf.mxu1  ;;  %v23962_v59 = vpop.f32.mrf.mxu0  ;;  %v6719_v50 = vadd.f32 %v23800_v26, %v6633_v11  ;;  %v7202_v52 = vadd.f32 %v23818_v9, %v7114_v15  ;;  %v7755_v26 = vadd.f32 %v23842_v62, %v7667_v44  ;;  %v27148_v15 = vld [vmem:[#allocation13_spill] sm:$0xff]  ;;  %v27151_v44 = vld [vmem:[#allocation19_spill] sm:$0xff] }
 0x485   :  { %v5888_v14 = vadd.f32 %v23686_v0, %v5791_v51  ;;  %v5980_v39 = vadd.f32 %v23703_v34, %v5877_v38  ;;  %v7674_v34 = vadd.f32 %v23844_v6, %v23838_v30  ;;  %v6728_v40 = vadd.f32 %v23804_v33, %v6641_v12  ;;  %v27141_v33 = vld [vmem:[#allocation27_spill] sm:$0xff]  ;;  %v27143_v51 = vld [vmem:[#allocation12_spill] sm:$0xff] }
 0x486   :  { %v23964_v2 = vpop.f32.mrf.mxu1  ;;  %v23966_v54 = vpop.f32.mrf.mxu0  ;;  %v7210_v3 = vadd.f32 %v23822_v32, %v7121_v4  ;;  %v8236_v55 = vadd.f32 %v27141_v33, %v23858_v17  ;;  %v27142_v32 = vld [vmem:[#allocation26_spill] sm:$0xff]  ;;  %v27149_v4 = vld [vmem:[#allocation20_spill] sm:$0xff] }
 0x487   :  { %v5987_v45 = vadd.f32 %v23726_v49, %v5888_v14  ;;  %v6068_v63 = vadd.f32 %v23705_v19, %v5980_v39  ;;  %v7288_v19 = vadd.f32 %v23824_v16, %v7202_v52  ;;  %v7763_v9 = vadd.f32 %v23846_v20, %v7674_v34  ;;  %v27144_v14 = vld [vmem:[#allocation30_spill] sm:$0xff]  ;;  %v27146_v39 = vld [vmem:[#allocation31_spill] sm:$0xff]  ;;  %v27154_v52 = vld [vmem:[#allocation29_spill] sm:$0xff] }
 0x488   :  { %v23970_v24 = vpop.f32.mrf.mxu1  ;;  %v23972_v7 = vpop.f32.mrf.mxu0  ;;  %v6812_v10 = vadd.f32 %v27142_v32, %v6719_v50  ;;  %v6819_v38 = vadd.f32 %v27143_v51, %v6728_v40  ;;  %v7841_v58 = vadd.f32 %v27144_v14, %v7755_v26  ;;  %v27150_v17 = vld [vmem:[#allocation18_spill] sm:$0xff]  ;;  %v27153_v50 = vld [vmem:[#allocation25_spill] sm:$0xff]  ;;  %v27156_v33 = vld [vmem:[#allocation24_spill] sm:$0xff] }
 0x489   :  { %v6076_v31 = vadd.f32 %v23728_v21, %v5987_v45  ;;  %v6154_v30 = vadd.f32 %v23735_v60, %v6068_v63  ;;  %v7297_v21 = vadd.f32 %v23828_v41, %v7210_v3  ;;  %v27145_v60 = vld [vmem:[#allocation14_spill] sm:$0xff]  ;;  %v27147_v45 = vld [vmem:[#allocation16_spill] sm:$0xff]  ;;  %v7381_v11 = vadd.f32 %v27149_v4, %v7288_v19  ;;  %v27157_v32 = vld [vmem:[#allocation21_spill] sm:$0xff] }
 0x48a   :  { %v23976_v13 = vpop.f32.mrf.mxu1  ;;  %v23978_v46 = vpop.f32.mrf.mxu0  ;;  %v7850_v25 = vadd.f32 %v27145_v60, %v7763_v9  ;;  %v6895_v20 = vadd.f32 %v27148_v15, %v6812_v10  ;;  %v6902_v12 = vadd.f32 %v27150_v17, %v6819_v38  ;;  %v27152_v63 = vld [vmem:[#allocation28_spill] sm:$0xff]  ;;  %v8243_v40 = vadd.f32 %v27154_v52, %v27153_v50  ;;  %v27155_v9 = vld [vmem:[#allocation17_spill] sm:$0xff]  ;;  %v27160_v60 = vld [vmem:[#allocation15_spill] sm:$0xff] }
 0x48b   :  { %v6163_v6 = vadd.f32 %v23747_v35, %v6076_v31  ;;  %v6247_v41 = vadd.f32 %v27146_v39, %v6154_v30  ;;  %v7388_v34 = vadd.f32 %v27151_v44, %v7297_v21  ;;  %v8324_v31 = vadd.f32 %v27152_v63, %v8236_v55  ;;  %v27158_v51 = vld [vmem:[#allocation32_spill] sm:$0xff]  ;;  %v27159_v14 = vld [vmem:[#allocation33_spill] sm:$0xff]  ;;  %v27161_v17 = vld [vmem:[#allocation22_spill] sm:$0xff] }
 0x48c   :  { %v7464_v10 = vadd.f32 %v27157_v32, %v7381_v11  ;;  %v7934_v38 = vadd.f32 %v27159_v14, %v7841_v58  ;;  %v7941_v21 = vadd.f32 %v27160_v60, %v7850_v25  ;;  %v27162_v63 = vld [vmem:[#allocation23_spill] sm:$0xff]  ;;  %v8803_v58 = vadd.f32 %v23896_v5, %v23880_v22  ;;  %v27165_v5 = vld [vmem:[#allocation36_spill] sm:$0xff]  ;;  %v27171_v14 = vld [vmem:[#allocation61_spill] sm:$0xff] }
 0x48d   :  { %v6254_v62 = vadd.f32 %v27147_v45, %v6163_v6  ;;  %v6330_v30 = vadd.f32 %v27155_v9, %v6247_v41  ;;  %v7471_v19 = vadd.f32 %v27158_v51, %v7388_v34  ;;  %v8410_v55 = vadd.f32 %v23872_v29, %v8324_v31  ;;  %v27164_v9 = vld [vmem:[#allocation44_spill] sm:$0xff]  ;;  %v27169_v51 = vld [vmem:[#allocation35_spill] sm:$0xff] }
 0x48e   :  { %v23986_v27 = vpop.f32.mrf.mxu1  ;;  %v23988_v47 = vpop.f32.mrf.mxu0  ;;  %v8017_v44 = vadd.f32 %v27161_v17, %v7934_v38  ;;  %v8024_v41 = vadd.f32 %v27162_v63, %v7941_v21  ;;  %v8805_v25 = vadd.f32 %v23900_v61, %v23884_v42  ;;  %v8810_v29 = vadd.f32 %v23904_v37, %v23888_v36  ;;  %v27166_v61 = vld [vmem:[#allocation54_spill] sm:$0xff]  ;;  %v27173_v21 = vld [vmem:[#allocation59_spill] sm:$0xff] }
 0x48f   :  { %v6337_v6 = vadd.f32 %v27156_v33, %v6254_v62  ;;  %v6905_v15 = vadd.f32 %v6895_v20, %v6330_v30  ;;  %v8332_v62 = vadd.f32 %v23870_v43, %v8243_v40  ;;  %v8812_v43 = vadd.f32 %v27164_v9, %v23892_v18  ;;  %v27170_v18 = vld [vmem:[#allocation53_spill] sm:$0xff] }
 0x490   :  { %v23996_v0 = vpop.f32.mrf.mxu1  ;;  %v23998_v23 = vpop.f32.mrf.mxu0  ;;  %v9372_v40 = vadd.f32 %v23948_v48, %v23930_v28  ;;  %v9379_v36 = vadd.f32 %v23960_v53, %v27166_v61  ;;  %v9374_v38 = vadd.f32 %v27171_v14, %v27170_v18  ;;  %v27172_v28 = vld [vmem:[#allocation43_spill] sm:$0xff]  ;;  %v27181_v61 = vld [vmem:[#allocation62_spill] sm:$0xff] }
 0x491   :  { %v6907_v4 = vadd.f32 %v6902_v12, %v6337_v6  ;;  %v7474_v52 = vadd.f32 %v7464_v10, %v6905_v15  ;;  %v27163_v12 = vld [vmem:[#allocation34_spill] sm:$0xff]  ;;  %v8419_v31 = vadd.f32 %v23876_v8, %v8332_v62  ;;  %v27168_v10 = vld [vmem:[#allocation55_spill] sm:$0xff]  ;;  %v27174_v15 = vld [vmem:[#allocation37_spill] sm:$0xff] }
 0x492   :  { %v24006_v49 = vpop.f32.mrf.mxu1  ;;  %v24008_v1 = vpop.f32.mrf.mxu0  ;;  %v8503_v34 = vadd.f32 %v27163_v12, %v8410_v55  ;;  %v27167_v6 = vld [vmem:[#allocation42_spill] sm:$0xff]  ;;  %v8893_v8 = vadd.f32 %v27168_v10, %v8805_v25  ;;  %v8901_v55 = vadd.f32 %v27173_v21, %v8812_v43  ;;  %v27178_v25 = vld [vmem:[#allocation39_spill] sm:$0xff] }
 0x493   :  { %v7476_v20 = vadd.f32 %v7471_v19, %v6907_v4  ;;  %v8027_v33 = vadd.f32 %v8017_v44, %v7474_v52  ;;  %v8891_v32 = vadd.f32 %v27167_v6, %v8803_v58  ;;  %v8899_v19 = vadd.f32 %v27169_v51, %v8810_v29  ;;  %v27175_v44 = vld [vmem:[#allocation45_spill] sm:$0xff]  ;;  %v27177_v52 = vld [vmem:[#allocation38_spill] sm:$0xff] }
 0x494   :  { %v24016_v56 = vpop.f32.mrf.mxu1  ;;  %v24018_v57 = vpop.f32.mrf.mxu0  ;;  %v8586_v42 = vadd.f32 %v27165_v5, %v8503_v34  ;;  %v8510_v60 = vadd.f32 %v27172_v28, %v8419_v31  ;;  %v9381_v4 = vadd.f32 %v23964_v2, %v27174_v15  ;;  %v9460_v29 = vadd.f32 %v27178_v25, %v9372_v40  ;;  %v27179_v2 = vld [vmem:[#allocation40_spill] sm:$0xff] }
 0x495   :  { %v24067_v22 = vadd.f32 %v8024_v41, %v7476_v20  ;;  %v8977_v63 = vadd.f32 %v27175_v44, %v8891_v32  ;;  %v27176_v41 = vld [vmem:[#allocation49_spill] sm:$0xff]  ;;  %v8986_v58 = vadd.f32 %v27177_v52, %v8899_v19  ;;  %v9468_v34 = vadd.f32 %v23962_v59, %v9379_v36  ;;  %v27182_v36 = vld [vmem:[#allocation47_spill] sm:$0xff] }
 0x496   :  { %v8979_v62 = vadd.f32 %v27176_v41, %v8893_v8  ;;  %v8596_v12 = vadd.f32 %v8586_v42, %v8027_v33  ;;  %v8593_v5 = vadd.f32 %v27179_v2, %v8510_v60  ;;  %v9462_v6 = vadd.f32 %v27181_v61, %v9374_v38 }
 0x497   :  { %v9546_v32 = vadd.f32 %v23970_v24, %v9460_v29  ;;  %v9470_v8 = vadd.f32 %v23966_v54, %v9381_v4  ;;  %v9555_v40 = vadd.f32 %v23986_v27, %v9468_v34  ;;  %v27185_v54 = vld [vmem:[#allocation48_spill] sm:$0xff]  ;;  %v27186_v27 = vld [vmem:[#allocation50_spill] sm:$0xff]  ;;  %v27191_v34 = vld [vmem:[#allocation41_spill] sm:$0xff] }
 0x498   :  { %v24032_v35 = vpop.f32.mrf.mxu1  ;;  %v9848_v16 = vpop.f32.mrf.mxu0  ;;  %v9548_v19 = vadd.f32 %v23976_v13, %v9462_v6 }
 0x499   :  { %v9557_v14 = vadd.f32 %v23996_v0, %v9470_v8  ;;  %v9639_v21 = vadd.f32 %v23972_v7, %v9546_v32  ;;  %v9646_v4 = vadd.f32 %v23988_v47, %v9555_v40  ;;  %v8598_v47 = vadd.f32 %v8593_v5, %v24067_v22 }
 0x49a   :  { %v24043_v3 = vpop.f32.mrf.mxu1  ;;  %v9850_v26 = vpop.f32.mrf.mxu0  ;;  %v9641_v41 = vadd.f32 %v23978_v46, %v9548_v19 }
 0x49b   :  { %v9729_v7 = vadd.f32 %v24032_v35, %v9646_v4 }
 0x49c   :  { %v9940_v39 = vpop.f32.mrf.mxu1  ;;  %v10028_v45 = vpop.f32.mrf.mxu0 }
 0x49d   :  { %v9941_v53 = vadd.f32 %v9940_v39, %v24008_v1  ;;  %v27180_v1 = vld [vmem:[#allocation46_spill] sm:$0xff] }
 0x49e   :  { %v9942_v50 = vpop.f32.mrf.mxu1  ;;  %v10030_v11 = vpop.f32.mrf.mxu0  ;;  %v8988_v39 = vadd.f32 %v27180_v1, %v8901_v55 }
 0x49f   :  { %v9943_v31 = vadd.f32 %v9942_v50, %v24018_v57  ;;  %v10029_v33 = vadd.f32 %v10028_v45, %v9941_v53  ;;  %v9070_v57 = vadd.f32 %v27182_v36, %v8977_v63  ;;  %v27188_v63 = vld [vmem:[#allocation52_spill] sm:$0xff] }
 0x4a0   :  { %v9079_v60 = vadd.f32 %v27185_v54, %v8988_v39  ;;  %v20744_v54 = vld [vmem:[%s26965_s1 + $0x138] sm:$0xff] }
 0x4a1   :  { %v9947_v30 = vpop.f32.mrf.mxu1  ;;  %v10031_v24 = vadd.f32 %v10030_v11, %v9943_v31  ;;  %v9153_v45 = vadd.f32 %v27186_v27, %v9070_v57  ;;  %v27189_v11 = vld [vmem:[#allocation58_spill] sm:$0xff]  ;;  %v10307_v57 = vstv %s20740_s5 }
 0x4a2   :  { %v10036_v37 = vpop.f32.mrf.mxu0  ;;  %v9948_v9 = vadd.f32 %v9947_v30, %v9848_v16  ;;  %v27183_v16 = vld [vmem:[#allocation60_spill] sm:$0xff]  ;;  %v27184_v30 = vld [vmem:[#allocation51_spill] sm:$0xff] }
 0x4a3   :  { %v9949_v48 = vpop.f32.mrf.mxu1  ;;  %v9072_v50 = vadd.f32 %v27183_v16, %v8979_v62  ;;  %v9077_v51 = vadd.f32 %v27184_v30, %v8986_v58  ;;  %v9722_v62 = vadd.f32 %v24006_v49, %v9639_v21  ;;  %v9648_v58 = vadd.f32 %v23998_v23, %v9557_v14 }
 0x4a4   :  { %v10038_v17 = vpop.f32.mrf.mxu0  ;;  %v9950_v42 = vadd.f32 %v9949_v48, %v9850_v26  ;;  %v10037_v38 = vadd.f32 %v10036_v37, %v9948_v9  ;;  %v27187_v26 = vld [vmem:[#allocation56_spill] sm:$0xff]  ;;  %v9162_v37 = vadd.f32 %v27189_v11, %v9079_v60  ;;  %v9724_v9 = vadd.f32 %v24016_v56, %v9641_v41 }
 0x4a5   :  { %v10114_v20 = vpop.f32.mrf.mxu1  ;;  %v9160_v48 = vadd.f32 %v27187_v26, %v9077_v51  ;;  %v9155_v0 = vadd.f32 %v27188_v63, %v9072_v50  ;;  %v9731_v49 = vadd.f32 %v24043_v3, %v9648_v58  ;;  %v10358_v60 = vsel %vm103_vm0, %v20744_v54, 0  ;;  %v20840_v63 = vld [vmem:[%s26966_s2 + $0x38] sm:$0xff] }
 0x4a6   :  { %v10207_v43 = vpop.f32.mrf.mxu0  ;;  %v10115_v28 = vadd.f32 %v10114_v20, %v10029_v33  ;;  %v10039_v53 = vadd.f32 %v10038_v17, %v9950_v42  ;;  %v27190_v17 = vld [vmem:[#allocation57_spill] sm:$0xff]  ;;  %v9167_v6 = vadd.f32 %v9162_v37, %v8598_v47  ;;  %v20841_v47 = vld [vmem:[%s26966_s2 + $0x20] sm:$0xff] }
 0x4a7   :  { %v10116_v10 = vpop.f32.mrf.mxu1  ;;  %v9164_v20 = vadd.f32 %v9153_v45, %v27190_v17  ;;  %v9166_v31 = vadd.f32 %v9160_v48, %v27191_v34  ;;  %v9165_v23 = vadd.f32 %v9155_v0, %v8596_v12  ;;  %v24200_v45 = vand.u32 4294901760, %v10358_v60 }
 0x4a8   :  { %v10209_v59 = vpop.f32.mrf.mxu0  ;;  %v10117_v13 = vadd.f32 %v10116_v10, %v10031_v24  ;;  %v10208_v25 = vadd.f32 %v10207_v43, %v10115_v28  ;;  %v9736_v33 = vadd.f32 %v9731_v49, %v9167_v6  ;;  %v20743_v24 = vld [vmem:[%s26965_s1 + $0x130] sm:$0xff] }
 0x4a9   :  { %v10123_v18 = vpop.f32.mrf.mxu1  ;;  %v9733_v35 = vadd.f32 %v9722_v62, %v9164_v20  ;;  %v9735_v32 = vadd.f32 %v9729_v7, %v9166_v31  ;;  %v9734_v8 = vadd.f32 %v9724_v9, %v9165_v23  ;;  %v20842_v20 = vld [vmem:[%s26966_s2 + $0x28] sm:$0xff] }
 0x4aa   :  { %v10214_v15 = vpop.f32.mrf.mxu0  ;;  %v10124_v44 = vadd.f32 %v10123_v18, %v10037_v38  ;;  %v10210_v1 = vadd.f32 %v10209_v59, %v10117_v13  ;;  %v10355_v38 = vsel %vm103_vm0, %v20743_v24, 0  ;;  %v20839_v13 = vld [vmem:[%s26966_s2 + $0x30] sm:$0xff] }
 0x4ab   :  { %v10125_v55 = vpop.f32.mrf.mxu1  ;;  %v24191_v28 = vand.u32 4294901760, %v10355_v38 }
 0x4ac   :  { %v10126_v29 = vadd.f32 %v10125_v55, %v10039_v53  ;;  %v10216_v2 = vpop.f32.mrf.mxu0  ;;  %v10215_v39 = vadd.f32 %v10214_v15, %v10124_v44  ;;  %v24208_v53 = vsub.f32 %v10358_v60, %v24200_v45 }
 0x4ad   :  { %v10290_v52 = vpop.f32.mrf.mxu1  ;;  %v24198_v27 = vsub.f32 %v10355_v38, %v24191_v28 }
 0x4ae   :  { %v10291_v61 = vadd.f32 %v10290_v52, %v10208_v25  ;;  %v10217_v10 = vadd.f32 %v10216_v2, %v10126_v29  ;;  %v10442_v25 = vand.u32 4294901760, %v24208_v53 }
 0x4af   :  { %v10292_v46 = vpop.f32.mrf.mxu1  ;;  %v10431_v48 = vand.u32 4294901760, %v24198_v27 }
 0x4b0   :  { %v10293_v22 = vadd.f32 %v10292_v46, %v10210_v1  ;;  %v10302_v42 = vadd.f32 %v10291_v61, %v9733_v35  ;;  %v10443_v61 = vsub.f32 %v24208_v53, %v10442_v25 }
 0x4b1   :  { %v10297_v43 = vpop.f32.mrf.mxu1  ;;  %v10432_v11 = vsub.f32 %v24198_v27, %v10431_v48 }
 0x4b2   :  { %v10298_v5 = vadd.f32 %v10297_v43, %v10215_v39  ;;  %v10303_v16 = vadd.f32 %v10293_v22, %v9734_v8  ;;  %v10308_v50 = vadd.f32 %v10307_v57, %v10302_v42  ;;  %v27197_v8 = vmov 0.0  }
 0x4b3   :  { %v10299_v40 = vpop.f32.mrf.mxu1  ;;  %v10433_v9 = vand.u32 4294901760, %v10432_v11  ;;  %v20846_v11 = vld [vmem:[%s26966_s2] sm:$0xff] }
 0x4b4   :  { %v10304_v56 = vadd.f32 %v10298_v5, %v9735_v32  ;;  %v10300_v36 = vadd.f32 %v10299_v40, %v10217_v10  ;;  %v10309_v51 = vadd.f32 %v10307_v57, %v10303_v16  ;;  %v24121_v18 = vmax.f32 %v10308_v50, 0.0 }
 0x4b6   :  { %v10310_v3 = vadd.f32 %v10307_v57, %v10304_v56  ;;  %v10305_v59 = vadd.f32 %v10300_v36, %v9736_v33  ;;  %27194 = vst [vmem:[#allocation12_spill] sm:$0xff] %v24121_v18  ;;  %v24125_v14 = vmax.f32 %v10309_v51, 0.0  ;;  %v10444_v33 = vand.u32 4294901760, %v10443_v61  ;;  %v20843_v56 = vld [vmem:[%s26966_s2 + $0x18] sm:$0xff] }
 0x4b8   :  { %v24115_v30 = vmax.f32 %v10310_v3, 0.0  ;;  %v10311_v12 = vadd.f32 %v10307_v57, %v10305_v59  ;;  %27195 = vst [vmem:[#allocation30_spill] sm:$0xff] %v24125_v14  ;;  %v20741_v59 = vld [vmem:[%s26965_s1 + $0x120] sm:$0xff] }
 0x4b9   :  { %v10901_v60 = vsel %vm103_vm0, %v20741_v59, 0 }
 0x4ba   :  { %27192 = vst [vmem:[#allocation27_spill] sm:$0xff] %v24115_v30  ;;  %v24117_v19 = vmax.f32 %v10311_v12, 0.0  ;;  %10337 = vrot.lane.b32.xlu0 %v24115_v30, %s20943_s9 }
 0x4bc   :  { %27193 = vst [vmem:[#allocation26_spill] sm:$0xff] %v24117_v19  ;;  %10341 = vrot.lane.b32.xlu1 %v24117_v19, %s20943_s9 }
 0x4be   :  { %10335 = vrot.lane.b32.xlu0 %v24121_v18, %s20943_s9 }
 0x4c0   :  { %10339 = vrot.lane.b32.xlu1 %v24125_v14, %s20943_s9 }
 0x4c2   :  { %10318 = vrot.lane.b32.xlu0 %v24115_v30, %s20945_s14 }
 0x4c4   :  { %10322 = vrot.lane.b32.xlu1 %v24117_v19, %s20945_s14 }
 0x4c6   :  { %10316 = vrot.lane.b32.xlu0 %v24121_v18, %s20945_s14 }
 0x4c8   :  { %10320 = vrot.lane.b32.xlu1 %v24125_v14, %s20945_s14 }
 0x4ca   :  { %11448 = vrot.lane.b32.xlu0 %v24115_v30, %s20946_s0 }
 0x4cc   :  { %11452 = vrot.lane.b32.xlu1 %v24117_v19, %s20946_s0 }
 0x4ce   :  { %11446 = vrot.lane.b32.xlu0 %v24121_v18, %s20946_s0 }
 0x4d0   :  { %11450 = vrot.lane.b32.xlu1 %v24125_v14, %s20946_s0 }
 0x4d2   :  { %12017 = vrot.lane.b32.xlu0 %v24115_v30, %s20947_s15 }
 0x4d4   :  { %12021 = vrot.lane.b32.xlu1 %v24117_v19, %s20947_s15 }
 0x4d6   :  { %12015 = vrot.lane.b32.xlu0 %v24121_v18, %s20947_s15 }
 0x4d8   :  { %12019 = vrot.lane.b32.xlu1 %v24125_v14, %s20947_s15 }
 0x4da   :  { %13139 = vrot.lane.b32.xlu0 %v24115_v30, %s20948_s16 }
 0x4dc   :  { %13143 = vrot.lane.b32.xlu1 %v24117_v19, %s20948_s16 }
 0x4de   :  { %13137 = vrot.lane.b32.xlu0 %v24121_v18, %s20948_s16 }
 0x4e0   :  { %13141 = vrot.lane.b32.xlu1 %v24125_v14, %s20948_s16 }
 0x4e2   :  { %13708 = vrot.lane.b32.xlu0 %v24115_v30, %s20949_s17 }
 0x4e4   :  { %13712 = vrot.lane.b32.xlu1 %v24117_v19, %s20949_s17 }
 0x4e6   :  { %13706 = vrot.lane.b32.xlu0 %v24121_v18, %s20949_s17 }
 0x4e8   :  { %13710 = vrot.lane.b32.xlu1 %v24125_v14, %s20949_s17 }
 0x4ea   :  { %14277 = vrot.lane.b32.xlu0 %v24115_v30, %s20950_s18 }
 0x4ec   :  { %14281 = vrot.lane.b32.xlu1 %v24117_v19, %s20950_s18 }
 0x4ee   :  { %14275 = vrot.lane.b32.xlu0 %v24121_v18, %s20950_s18 }
 0x4f0   :  { %14279 = vrot.lane.b32.xlu1 %v24125_v14, %s20950_s18 }
 0x4f2   :  { %14846 = vrot.lane.b32.xlu0 %v24115_v30, %s20951_s19 }
 0x4f4   :  { %14850 = vrot.lane.b32.xlu1 %v24117_v19, %s20951_s19 }
 0x4f6   :  { %14844 = vrot.lane.b32.xlu0 %v24121_v18, %s20951_s19 }
 0x4f8   :  { %14848 = vrot.lane.b32.xlu1 %v24125_v14, %s20951_s19 }
 0x52c   :  { %v10338_v26 = vpop.permute.xlu0 %10337 }
 0x52e   :  { %v10342_v21 = vpop.permute.xlu1 %10341 }
 0x52f   :  { %v10344_v15 = vsel %vm86_vm1, %v10338_v26, %v10342_v21  ;;  %v10346_v4 = vsel %vm86_vm1, %v10342_v21, %v10338_v26  ;;  %v20844_v21 = vld [vmem:[%s26966_s2 + $0x10] sm:$0xff] }
 0x530   :  { %v10349_v44 = vmul.f32 %v20839_v13, %v10346_v4  ;;  %v10350_v0 = vmul.f32 %v20840_v63, %v10344_v15  ;;  %v10336_v62 = vpop.permute.xlu0 %10335  ;;  %v20845_v4 = vld [vmem:[%s26966_s2 + $0x8] sm:$0xff] }
 0x531   :  { %v20742_v63 = vld [vmem:[%s26965_s1 + $0x128] sm:$0xff] }
 0x532   :  { %v24219_v37 = vand.u32 4294901760, %v10350_v0  ;;  %v24221_v41 = vand.u32 4294901760, %v10349_v44  ;;  %v10340_v52 = vpop.permute.xlu1 %10339 }
 0x533   :  { %v10343_v58 = vsel %vm86_vm1, %v10336_v62, %v10340_v52  ;;  %v10345_v7 = vsel %vm86_vm1, %v10340_v52, %v10336_v62 }
 0x534   :  { %v24229_v29 = vsub.f32 %v10349_v44, %v24221_v41  ;;  %v10347_v17 = vmul.f32 %v20841_v47, %v10345_v7  ;;  %v10348_v34 = vmul.f32 %v20842_v20, %v10343_v58  ;;  %10389 = vmatprep.subr.mxu0 %v24219_v37  ;;  %v10480_v31 = vsub.f32 %v10350_v0, %v24219_v37  ;;  %v10319_v6 = vpop.permute.xlu0 %10318 }
 0x535   :  { %10391 = vmatpush1.msra.mxu0 %v24221_v41  ;;  %v24281_v44 = vand.u32 4294901760, %v10901_v60  ;;  %v10904_v58 = vsel %vm103_vm0, %v20742_v63, 0 }
 0x536   :  { %v10487_v2 = vand.u32 4294901760, %v24229_v29  ;;  %v24241_v46 = vand.u32 4294901760, %v10348_v34  ;;  %v24243_v49 = vand.u32 4294901760, %v10347_v17  ;;  %v10323_v1 = vpop.permute.xlu1 %10322  ;;  %v10481_v39 = vand.u32 4294901760, %v10480_v31 }
 0x537   :  { %v10325_v43 = vsel %vm63_vm2, %v10319_v6, %v10323_v1  ;;  %v10327_v50 = vsel %vm63_vm2, %v10323_v1, %v10319_v6  ;;  %v24312_v20 = vand.u32 4294901760, %v10904_v58 }
 0x538   :  { %v10498_v23 = vsub.f32 %v10347_v17, %v24243_v49  ;;  %10393 = vmatprep.subr.mxu0 %v24241_v46  ;;  %v10482_v35 = vsub.f32 %v10480_v31, %v10481_v39  ;;  %v10492_v32 = vsub.f32 %v10348_v34, %v24241_v46  ;;  %v10488_v10 = vsub.f32 %v24229_v29, %v10487_v2  ;;  %v10317_v12 = vpop.permute.xlu0 %10316 }
 0x539   :  { %10395 = vmatpush1.msra.mxu0 %v24243_v49  ;;  %v10331_v36 = vmul.f32 %v20843_v56, %v10325_v43  ;;  %v10330_v15 = vmul.f32 %v20844_v21, %v10327_v50  ;;  %v20850_v21 = vld [vmem:[%s26966_s2 + $0x40] sm:$0xff] }
 0x53a   :  { %v10499_v22 = vand.u32 4294901760, %v10498_v23  ;;  %10434 = vmatmul.mubr.f32.vlgmr.msra.gmra.mxu0 %v10433_v9  ;;  %10580 = vmatprep.subr.mxu0 %v10480_v31  ;;  %v10483_v5 = vand.u32 4294901760, %v10482_v35  ;;  %v10489_v40 = vand.u32 4294901760, %v10488_v10  ;;  %v10493_v42 = vand.u32 4294901760, %v10492_v32  ;;  %v10321_v57 = vpop.permute.xlu1 %10320 }
 0x53b   :  { %10583 = vmatpush1.msra.mxu0 %v24229_v29  ;;  %10439 = vmatprep.mubr.f32.mxu0 %v27197_v8  ;;  %v24265_v38 = vand.u32 4294901760, %v10331_v36  ;;  %v10324_v54 = vsel %vm63_vm2, %v10317_v12, %v10321_v57  ;;  %v10326_v26 = vsel %vm63_vm2, %v10321_v57, %v10317_v12  ;;  %v24294_v52 = vand.u32 4294901760, %v10330_v15  ;;  %v20848_v12 = vld [vmem:[%s26966_s2 + $0x50] sm:$0xff] }
 0x53c   :  { %10484 = vmatprep.subr.mxu1 %v10483_v5  ;;  %10586 = vmatprep.subr.mxu0 %v10492_v32  ;;  %v10494_v16 = vsub.f32 %v10492_v32, %v10493_v42  ;;  %v10500_v3 = vsub.f32 %v10498_v23, %v10499_v22  ;;  %v10329_v13 = vmul.f32 %v20845_v4, %v10324_v54 }
 0x53d   :  { %10490 = vmatpush1.msra.mxu1 %v10489_v40  ;;  %10589 = vmatpush1.msra.mxu0 %v10498_v23  ;;  %v24287_v0 = vsub.f32 %v10331_v36, %v24265_v38  ;;  %v10328_v62 = vmul.f32 %v20846_v11, %v10326_v26  ;;  %v24303_v29 = vsub.f32 %v10901_v60, %v24281_v44  ;;  %v20746_v60 = vld [vmem:[%s26965_s1 + $0x148] sm:$0xff] }
 0x53e   :  { %10445 = vmatmul.mubr.f32.gmra.mxu0 %v10444_v33  ;;  %10757 = vmatprep.subr.mxu0 %v10481_v39  ;;  %v10495_v51 = vand.u32 4294901760, %v10494_v16  ;;  %v10501_v24 = vand.u32 4294901760, %v10500_v3  ;;  %v24298_v7 = vand.u32 4294901760, %v10329_v13  ;;  %v24315_v34 = vsub.f32 %v10330_v15, %v24294_v52  ;;  %v11453_v35 = vpop.permute.xlu1 %11452  ;;  %v20847_v33 = vld [vmem:[%s26966_s2 + $0x58] sm:$0xff] }
 0x53f   :  { %10622 = vmatprep.mubr.f32.mxu0 %v27197_v8  ;;  %v24305_v47 = vand.u32 4294901760, %v10328_v62  ;;  %v11027_v17 = vand.u32 4294901760, %v24287_v0  ;;  %v10977_v9 = vand.u32 4294901760, %v24303_v29 }
 0x540   :  { %10496 = vmatprep.subr.mxu1 %v10495_v51  ;;  %v24320_v31 = vsub.f32 %v10329_v13, %v24298_v7  ;;  %v11033_v39 = vand.u32 4294901760, %v24315_v34  ;;  %v20849_v51 = vld [vmem:[%s26966_s2 + $0x48] sm:$0xff]  ;;  %v11469_v13 = vsel %vm103_vm0, %v20746_v60, 0 }
 0x541   :  { %10502 = vmatpush1.msra.mxu1 %v10501_v24  ;;  %v11028_v1 = vsub.f32 %v24287_v0, %v11027_v17 }
 0x542   :  { %10537 = vmatmul.mubr.f32.vlgmr.msra.gmra.mxu1 %v24191_v28  ;;  %10625 = vmatmul.mubr.f32.vlgmr.msra.gmra.mxu0 %v24198_v27  ;;  %v10978_v27 = vsub.f32 %v24303_v29, %v10977_v9  ;;  %v11451_v56 = vpop.permute.xlu1 %11450 }
 0x543   :  { %10668 = vmatprep.subr.mxu1 %v24219_v37  ;;  %10761 = vmatpush1.msra.mxu0 %v10487_v2  ;;  %v24325_v2 = vsub.f32 %v10328_v62, %v24305_v47  ;;  %v11029_v23 = vand.u32 4294901760, %v11028_v1 }
 0x544   :  { %10670 = vmatpush1.msra.mxu1 %v24221_v41  ;;  %10765 = vmatprep.subr.mxu0 %v10493_v42 }
 0x545   :  { %10672 = vmatprep.subr.mxu1 %v24241_v46  ;;  %10769 = vmatpush1.msra.mxu0 %v10499_v22  ;;  %v11045_v61 = vand.u32 4294901760, %v24325_v2 }
 0x546   :  { %10542 = vmatprep.mubr.f32.mxu1 %v27197_v8  ;;  %10630 = vmatprep.mubr.f32.mxu0 %v27197_v8 }
 0x547   :  { %10674 = vmatpush1.msra.mxu1 %v24243_v49  ;;  %10935 = vmatprep.subr.mxu0 %v24265_v38  ;;  %v11046_v43 = vsub.f32 %v24325_v2, %v11045_v61 }
 0x548   :  { %10544 = vmatmul.mubr.f32.gmra.mxu1 %v24200_v45  ;;  %10633 = vmatmul.mubr.f32.gmra.mxu0 %v24208_v53 }
 0x549   :  { %10846 = vmatprep.subr.mxu1 %v24219_v37  ;;  %10707 = vmatprep.mubr.f32.mxu1 %v27197_v8  ;;  %v24332_v37 = vsub.f32 %v10904_v58, %v24312_v20  ;;  %v11047_v5 = vand.u32 4294901760, %v11046_v43  ;;  %v24439_v58 = vand.u32 4294901760, %v11469_v13 }
 0x54a   :  { %10802 = vmatprep.mubr.f32.mxu0 %v27197_v8 }
 0x54b   :  { %v24458_v1 = vsub.f32 %v11469_v13, %v24439_v58 }
 0x54c   :  { %10711 = vmatmul.mubr.f32.vlgmr.msra.gmra.mxu1 %v10431_v48  ;;  %10804 = vmatmul.mubr.f32.vlgmr.msra.gmra.mxu0 %v24191_v28  ;;  %v11039_v48 = vand.u32 4294901760, %v24320_v31 }
 0x54d   :  { %10848 = vmatpush1.msra.mxu1 %v24221_v41  ;;  %10937 = vmatpush1.msra.mxu0 %v24294_v52  ;;  %v10988_v41 = vand.u32 4294901760, %v24332_v37 }
 0x54e   :  { %10850 = vmatprep.subr.mxu1 %v24241_v46  ;;  %10939 = vmatprep.subr.mxu0 %v24298_v7  ;;  %v11034_v46 = vsub.f32 %v24315_v34, %v11033_v39  ;;  %v11040_v6 = vsub.f32 %v24320_v31, %v11039_v48 }
 0x54f   :  { %10852 = vmatpush1.msra.mxu1 %v24243_v49  ;;  %10941 = vmatpush1.msra.mxu0 %v24305_v47  ;;  %v10979_v49 = vand.u32 4294901760, %v10978_v27  ;;  %v10989_v53 = vsub.f32 %v24332_v37, %v10988_v41 }
 0x550   :  { %10716 = vmatprep.mubr.f32.mxu1 %v27197_v8  ;;  %10809 = vmatprep.mubr.f32.mxu0 %v27197_v8  ;;  %v11035_v32 = vand.u32 4294901760, %v11034_v46  ;;  %v11041_v22 = vand.u32 4294901760, %v11040_v6 }
 0x551   :  { %11030 = vmatprep.subr.mxu1 %v11029_v23  ;;  %11126 = vmatprep.subr.mxu0 %v24287_v0  ;;  %v10990_v40 = vand.u32 4294901760, %v10989_v53  ;;  %v12022_v23 = vpop.permute.xlu1 %12021 }
 0x552   :  { %10720 = vmatmul.mubr.f32.gmra.mxu1 %v10442_v25  ;;  %10811 = vmatmul.mubr.f32.gmra.mxu0 %v24200_v45  ;;  %v11449_v25 = vpop.permute.xlu0 %11448 }
 0x553   :  { %10885 = vmatprep.mubr.f32.mxu1 %v27197_v8  ;;  %10974 = vmatprep.mubr.f32.mxu0 %v27197_v8  ;;  %v11455_v10 = vsel %vm1204_vm3, %v11449_v25, %v11453_v35  ;;  %v11457_v36 = vsel %vm1204_vm3, %v11453_v35, %v11449_v25  ;;  %v20851_v25 = vld [vmem:[%s26966_s2 + $0x78] sm:$0xff] }
 0x554   :  { %v11461_v42 = vmul.f32 %v20847_v33, %v11455_v10 }
 0x555   :  { %v12020_v10 = vpop.permute.xlu1 %12019 }
 0x556   :  { %10887 = vmatmul.mubr.f32.vlgmr.msra.gmra.mxu1 %v24191_v28  ;;  %10980 = vmatmul.mubr.f32.vlgmr.msra.gmra.mxu0 %v10979_v49  ;;  %v20745_v28 = vld [vmem:[%s26965_s1 + $0x140] sm:$0xff]  ;;  %v11447_v57 = vpop.permute.xlu0 %11446  ;;  %v24385_v16 = vand.u32 4294901760, %v11461_v42 }
 0x557   :  { %11036 = vmatpush1.msra.mxu1 %v11035_v32  ;;  %11129 = vmatpush1.msra.mxu0 %v24315_v34  ;;  %v11454_v3 = vsel %vm1204_vm3, %v11447_v57, %v11451_v56  ;;  %v11466_v59 = vsel %vm103_vm0, %v20745_v28, 0  ;;  %v11456_v50 = vsel %vm1204_vm3, %v11451_v56, %v11447_v57  ;;  %v20852_v28 = vld [vmem:[%s26966_s2 + $0x70] sm:$0xff] }
 0x558   :  { %11042 = vmatprep.subr.mxu1 %v11041_v22  ;;  %11132 = vmatprep.subr.mxu0 %v24320_v31  ;;  %v11459_v24 = vmul.f32 %v20849_v51, %v11454_v3  ;;  %v24402_v54 = vand.u32 4294901760, %v11466_v59  ;;  %v24408_v26 = vsub.f32 %v11461_v42, %v24385_v16  ;;  %v11458_v15 = vmul.f32 %v20850_v21, %v11456_v50 }
 0x559   :  { %11048 = vmatpush1.msra.mxu1 %v11047_v5  ;;  %11135 = vmatpush1.msra.mxu0 %v24325_v2 }
 0x55a   :  { %10892 = vmatprep.mubr.f32.mxu1 %v27197_v8  ;;  %10985 = vmatprep.mubr.f32.mxu0 %v27197_v8  ;;  %v24425_v63 = vand.u32 4294901760, %v11459_v24  ;;  %v24430_v0 = vsub.f32 %v11466_v59, %v24402_v54  ;;  %v24432_v11 = vand.u32 4294901760, %v11458_v15  ;;  %v11592_v62 = vand.u32 4294901760, %v24408_v26  ;;  %v20748_v59 = vld [vmem:[%s26965_s1 + $0x158] sm:$0xff] }
 0x55b   :  { %11214 = vmatprep.subr.mxu1 %v24265_v38  ;;  %11303 = vmatprep.subr.mxu0 %v11027_v17 }
 0x55c   :  { %10894 = vmatmul.mubr.f32.gmra.mxu1 %v24200_v45  ;;  %10991 = vmatmul.mubr.f32.gmra.mxu0 %v10990_v40  ;;  %v11460_v45 = vmul.f32 %v20848_v12, %v11457_v36  ;;  %v24447_v34 = vsub.f32 %v11459_v24, %v24425_v63  ;;  %v24451_v31 = vsub.f32 %v11458_v15, %v24432_v11  ;;  %v20853_v36 = vld [vmem:[%s26966_s2 + $0x68] sm:$0xff]  ;;  %v20854_v12 = vld [vmem:[%s26966_s2 + $0x60] sm:$0xff]  ;;  %v12038_v24 = vsel %vm103_vm0, %v20748_v59, 0 }
 0x55d   :  { %11081 = vmatprep.mubr.f32.mxu1 %v27197_v8  ;;  %11168 = vmatprep.mubr.f32.mxu0 %v27197_v8  ;;  %v11593_v2 = vsub.f32 %v24408_v26, %v11592_v62  ;;  %v24565_v13 = vand.u32 4294901760, %v12038_v24 }
 0x55e   :  { %v24419_v4 = vand.u32 4294901760, %v11460_v45  ;;  %v11610_v27 = vand.u32 4294901760, %v24451_v31 }
 0x560   :  { %11083 = vmatmul.mubr.f32.vlgmr.msra.gmra.mxu1 %v24281_v44  ;;  %11171 = vmatmul.mubr.f32.vlgmr.msra.gmra.mxu0 %v24303_v29  ;;  %v24442_v17 = vsub.f32 %v11460_v45, %v24419_v4  ;;  %v11611_v46 = vsub.f32 %v24451_v31, %v11610_v27 }
 0x561   :  { %11216 = vmatpush1.msra.mxu1 %v24294_v52  ;;  %11307 = vmatpush1.msra.mxu0 %v11033_v39 }
 0x562   :  { %11218 = vmatprep.subr.mxu1 %v24298_v7  ;;  %11311 = vmatprep.subr.mxu0 %v11039_v48  ;;  %v11598_v39 = vand.u32 4294901760, %v24442_v17  ;;  %v11594_v48 = vand.u32 4294901760, %v11593_v2  ;;  %v11612_v43 = vand.u32 4294901760, %v11611_v46  ;;  %v24584_v2 = vsub.f32 %v12038_v24, %v24565_v13 }
 0x563   :  { %11220 = vmatpush1.msra.mxu1 %v24305_v47  ;;  %11315 = vmatpush1.msra.mxu0 %v11045_v61 }
 0x564   :  { %11088 = vmatprep.mubr.f32.mxu1 %v27197_v8  ;;  %11176 = vmatprep.mubr.f32.mxu0 %v27197_v8 }
 0x565   :  { %11392 = vmatprep.subr.mxu1 %v24265_v38  ;;  %11500 = vmatprep.subr.mxu0 %v24385_v16  ;;  %v11542_v38 = vand.u32 4294901760, %v24430_v0 }
 0x566   :  { %11090 = vmatmul.mubr.f32.gmra.mxu1 %v24312_v20  ;;  %11179 = vmatmul.mubr.f32.gmra.mxu0 %v24332_v37 }
 0x567   :  { %11253 = vmatprep.mubr.f32.mxu1 %v27197_v8  ;;  %11348 = vmatprep.mubr.f32.mxu0 %v27197_v8  ;;  %v11543_v29 = vsub.f32 %v24430_v0, %v11542_v38 }
 0x56a   :  { %11257 = vmatmul.mubr.f32.vlgmr.msra.gmra.mxu1 %v10977_v9  ;;  %11350 = vmatmul.mubr.f32.vlgmr.msra.gmra.mxu0 %v24281_v44  ;;  %v11604_v9 = vand.u32 4294901760, %v24447_v34 }
 0x56b   :  { %11394 = vmatpush1.msra.mxu1 %v24294_v52  ;;  %11502 = vmatpush1.msra.mxu0 %v24419_v4  ;;  %v11553_v52 = vand.u32 4294901760, %v24458_v1 }
 0x56c   :  { %11396 = vmatprep.subr.mxu1 %v24298_v7  ;;  %11504 = vmatprep.subr.mxu0 %v24425_v63  ;;  %v11599_v7 = vsub.f32 %v24442_v17, %v11598_v39  ;;  %v11605_v61 = vsub.f32 %v24447_v34, %v11604_v9 }
 0x56d   :  { %11398 = vmatpush1.msra.mxu1 %v24305_v47  ;;  %11506 = vmatpush1.msra.mxu0 %v24432_v11  ;;  %v11544_v47 = vand.u32 4294901760, %v11543_v29  ;;  %v11554_v37 = vsub.f32 %v24458_v1, %v11553_v52 }
 0x56e   :  { %11262 = vmatprep.mubr.f32.mxu1 %v27197_v8  ;;  %11355 = vmatprep.mubr.f32.mxu0 %v27197_v8  ;;  %v11600_v49 = vand.u32 4294901760, %v11599_v7  ;;  %v11606_v35 = vand.u32 4294901760, %v11605_v61 }
 0x56f   :  { %11595 = vmatprep.subr.mxu1 %v11594_v48  ;;  %11691 = vmatprep.subr.mxu0 %v24408_v26  ;;  %v11555_v53 = vand.u32 4294901760, %v11554_v37 }
 0x570   :  { %11266 = vmatmul.mubr.f32.gmra.mxu1 %v10988_v41  ;;  %11357 = vmatmul.mubr.f32.gmra.mxu0 %v24312_v20  ;;  %v12018_v41 = vpop.permute.xlu0 %12017 }
 0x571   :  { %11431 = vmatprep.mubr.f32.mxu1 %v27197_v8  ;;  %11539 = vmatprep.mubr.f32.mxu0 %v27197_v8  ;;  %v12024_v6 = vsel %vm1779_vm4, %v12018_v41, %v12022_v23  ;;  %v12026_v22 = vsel %vm1779_vm4, %v12022_v23, %v12018_v41  ;;  %v24627_v23 = vand.u32 4294901760, %v24117_v19 }
 0x572   :  { %v12030_v32 = vmul.f32 %v20851_v25, %v12024_v6 }
 0x573   :  { %v24640_v41 = vsub.f32 %v24117_v19, %v24627_v23 }
 0x574   :  { %11433 = vmatmul.mubr.f32.vlgmr.msra.gmra.mxu1 %v24281_v44  ;;  %11545 = vmatmul.mubr.f32.vlgmr.msra.gmra.mxu0 %v11544_v47  ;;  %v20747_v44 = vld [vmem:[%s26965_s1 + $0x150] sm:$0xff]  ;;  %v12016_v5 = vpop.permute.xlu0 %12015  ;;  %v24511_v40 = vand.u32 4294901760, %v12030_v32 }
 0x575   :  { %11601 = vmatpush1.msra.mxu1 %v11600_v49  ;;  %11694 = vmatpush1.msra.mxu0 %v24442_v17  ;;  %v12023_v33 = vsel %vm1779_vm4, %v12016_v5, %v12020_v10  ;;  %v12035_v42 = vsel %vm103_vm0, %v20747_v44, 0  ;;  %v12025_v56 = vsel %vm1779_vm4, %v12020_v10, %v12016_v5  ;;  %v24645_v49 = vand.u32 4294901760, %v24115_v30 }
 0x576   :  { %11607 = vmatprep.subr.mxu1 %v11606_v35  ;;  %11697 = vmatprep.subr.mxu0 %v24447_v34  ;;  %v12028_v57 = vmul.f32 %v20853_v36, %v12023_v33  ;;  %v24528_v3 = vand.u32 4294901760, %v12035_v42  ;;  %v24534_v50 = vsub.f32 %v12030_v32, %v24511_v40  ;;  %v12027_v45 = vmul.f32 %v20854_v12, %v12025_v56 }
 0x577   :  { %11613 = vmatpush1.msra.mxu1 %v11612_v43  ;;  %11700 = vmatpush1.msra.mxu0 %v24451_v31  ;;  %v24651_v35 = vand.u32 4294901760, %v24125_v14  ;;  %v12714_v25 = vand.u32 4294901760, %v24640_v41  ;;  %v24670_v10 = vsub.f32 %v24115_v30, %v24645_v49 }
 0x578   :  { %11438 = vmatprep.mubr.f32.mxu1 %v27197_v8  ;;  %11550 = vmatprep.mubr.f32.mxu0 %v27197_v8  ;;  %v24551_v60 = vand.u32 4294901760, %v12028_v57  ;;  %v24556_v26 = vsub.f32 %v12035_v42, %v24528_v3  ;;  %v24558_v21 = vand.u32 4294901760, %v12027_v45  ;;  %v12161_v15 = vand.u32 4294901760, %v24534_v50 }
 0x579   :  { %11779 = vmatprep.subr.mxu1 %v24385_v16  ;;  %11868 = vmatprep.subr.mxu0 %v11592_v62  ;;  %v12715_v5 = vsub.f32 %v24640_v41, %v12714_v25  ;;  %v12720_v42 = vand.u32 4294901760, %v24670_v10 }
 0x57a   :  { %11440 = vmatmul.mubr.f32.gmra.mxu1 %v24312_v20  ;;  %11556 = vmatmul.mubr.f32.gmra.mxu0 %v11555_v53  ;;  %v12029_v20 = vmul.f32 %v20852_v28, %v12026_v22  ;;  %v24573_v17 = vsub.f32 %v12028_v57, %v24551_v60  ;;  %v24577_v34 = vsub.f32 %v12027_v45, %v24558_v21  ;;  %v24659_v53 = vand.u32 4294901760, %v24121_v18  ;;  %v13144_v45 = vpop.permute.xlu1 %13143 }
 0x57b   :  { %11646 = vmatprep.mubr.f32.mxu1 %v27197_v8  ;;  %11733 = vmatprep.mubr.f32.mxu0 %v27197_v8  ;;  %v12162_v31 = vsub.f32 %v24534_v50, %v12161_v15  ;;  %v24675_v22 = vsub.f32 %v24125_v14, %v24651_v35  ;;  %v12721_v59 = vsub.f32 %v24670_v10, %v12720_v42 }
 0x57c   :  { %v24545_v51 = vand.u32 4294901760, %v12029_v20  ;;  %v12179_v29 = vand.u32 4294901760, %v24577_v34 }
 0x57d   :  { %v12726_v28 = vand.u32 4294901760, %v24675_v22 }
 0x57e   :  { %11648 = vmatmul.mubr.f32.vlgmr.msra.gmra.mxu1 %v24402_v54  ;;  %11736 = vmatmul.mubr.f32.vlgmr.msra.gmra.mxu0 %v24430_v0  ;;  %v24568_v62 = vsub.f32 %v12029_v20, %v24545_v51  ;;  %v12180_v48 = vsub.f32 %v24577_v34, %v12179_v29  ;;  %v12716_v20 = vand.u32 4294901760, %v12715_v5 }
 0x57f   :  { %11781 = vmatpush1.msra.mxu1 %v24419_v4  ;;  %11872 = vmatpush1.msra.mxu0 %v11598_v39  ;;  %v12727_v12 = vsub.f32 %v24675_v22, %v12726_v28 }
 0x580   :  { %11783 = vmatprep.subr.mxu1 %v24425_v63  ;;  %11876 = vmatprep.subr.mxu0 %v11604_v9  ;;  %v12167_v39 = vand.u32 4294901760, %v24568_v62  ;;  %v12163_v9 = vand.u32 4294901760, %v12162_v31  ;;  %v13142_v31 = vpop.permute.xlu1 %13141 }
 0x581   :  { %11785 = vmatpush1.msra.mxu1 %v24432_v11  ;;  %11880 = vmatpush1.msra.mxu0 %v11610_v27 }
 0x582   :  { %11653 = vmatprep.mubr.f32.mxu1 %v27197_v8  ;;  %11741 = vmatprep.mubr.f32.mxu0 %v27197_v8 }
 0x583   :  { %11957 = vmatprep.subr.mxu1 %v24385_v16  ;;  %12069 = vmatprep.subr.mxu0 %v24511_v40  ;;  %v12111_v16 = vand.u32 4294901760, %v24556_v26 }
 0x584   :  { %11655 = vmatmul.mubr.f32.gmra.mxu1 %v24439_v58  ;;  %11744 = vmatmul.mubr.f32.gmra.mxu0 %v24458_v1 }
 0x585   :  { %11818 = vmatprep.mubr.f32.mxu1 %v27197_v8  ;;  %11913 = vmatprep.mubr.f32.mxu0 %v27197_v8  ;;  %v12112_v0 = vsub.f32 %v24556_v26, %v12111_v16 }
 0x588   :  { %11822 = vmatmul.mubr.f32.vlgmr.msra.gmra.mxu1 %v11542_v38  ;;  %11915 = vmatmul.mubr.f32.vlgmr.msra.gmra.mxu0 %v24402_v54  ;;  %v12173_v38 = vand.u32 4294901760, %v24573_v17 }
 0x589   :  { %11959 = vmatpush1.msra.mxu1 %v24419_v4  ;;  %12071 = vmatpush1.msra.mxu0 %v24545_v51  ;;  %v12122_v4 = vand.u32 4294901760, %v24584_v2 }
 0x58a   :  { %11961 = vmatprep.subr.mxu1 %v24425_v63  ;;  %12073 = vmatprep.subr.mxu0 %v24551_v60  ;;  %v12168_v63 = vsub.f32 %v24568_v62, %v12167_v39  ;;  %v12174_v27 = vsub.f32 %v24573_v17, %v12173_v38 }
 0x58b   :  { %11963 = vmatpush1.msra.mxu1 %v24432_v11  ;;  %12075 = vmatpush1.msra.mxu0 %v24558_v21  ;;  %v12113_v11 = vand.u32 4294901760, %v12112_v0  ;;  %v12123_v7 = vsub.f32 %v24584_v2, %v12122_v4 }
 0x58c   :  { %11827 = vmatprep.mubr.f32.mxu1 %v27197_v8  ;;  %11920 = vmatprep.mubr.f32.mxu0 %v27197_v8  ;;  %v12169_v47 = vand.u32 4294901760, %v12168_v63  ;;  %v12175_v1 = vand.u32 4294901760, %v12174_v27  ;;  %v20857_v63 = vld [vmem:[%s26966_s2 + $0xa8] sm:$0xff] }
 0x58d   :  { %12164 = vmatprep.subr.mxu1 %v12163_v9  ;;  %12260 = vmatprep.subr.mxu0 %v24534_v50  ;;  %v12124_v61 = vand.u32 4294901760, %v12123_v7 }
 0x58e   :  { %11831 = vmatmul.mubr.f32.gmra.mxu1 %v11553_v52  ;;  %11922 = vmatmul.mubr.f32.gmra.mxu0 %v24439_v58  ;;  %v12181_v52 = vand.u32 4294901760, %v12180_v48  ;;  %v20752_v48 = vld [vmem:[%s26965_s1 + $0x178] sm:$0xff] }
 0x58f   :  { %11996 = vmatprep.mubr.f32.mxu1 %v27197_v8  ;;  %12108 = vmatprep.mubr.f32.mxu0 %v27197_v8 }
 0x592   :  { %11998 = vmatmul.mubr.f32.vlgmr.msra.gmra.mxu1 %v24402_v54  ;;  %12114 = vmatmul.mubr.f32.vlgmr.msra.gmra.mxu0 %v12113_v11  ;;  %v20749_v54 = vld [vmem:[%s26965_s1 + $0x160] sm:$0xff] }
 0x593   :  { %12170 = vmatpush1.msra.mxu1 %v12169_v47  ;;  %12263 = vmatpush1.msra.mxu0 %v24568_v62  ;;  %v12588_v46 = vsel %vm103_vm0, %v20749_v54, 0  ;;  %v20858_v47 = vld [vmem:[%s26966_s2 + $0xa0] sm:$0xff] }
 0x594   :  { %12176 = vmatprep.subr.mxu1 %v12175_v1  ;;  %12266 = vmatprep.subr.mxu0 %v24573_v17  ;;  %v24632_v37 = vand.u32 4294901760, %v12588_v46 }
 0x595   :  { %12182 = vmatpush1.msra.mxu1 %v12181_v52  ;;  %12269 = vmatpush1.msra.mxu0 %v24577_v34 }
 0x596   :  { %12003 = vmatprep.mubr.f32.mxu1 %v27197_v8  ;;  %12119 = vmatprep.mubr.f32.mxu0 %v27197_v8  ;;  %v24654_v43 = vsub.f32 %v12588_v46, %v24632_v37 }
 0x597   :  { %12348 = vmatprep.subr.mxu1 %v24511_v40  ;;  %12437 = vmatprep.subr.mxu0 %v12161_v15  ;;  %v12728_v15 = vand.u32 4294901760, %v12727_v12 }
 0x598   :  { %12005 = vmatmul.mubr.f32.gmra.mxu1 %v24439_v58  ;;  %12125 = vmatmul.mubr.f32.gmra.mxu0 %v12124_v61  ;;  %v20750_v58 = vld [vmem:[%s26965_s1 + $0x168] sm:$0xff]  ;;  %v12664_v44 = vand.u32 4294901760, %v24654_v43  ;;  %v13160_v61 = vsel %vm103_vm0, %v20752_v48, 0 }
 0x599   :  { %12215 = vmatprep.mubr.f32.mxu1 %v27197_v8  ;;  %12302 = vmatprep.mubr.f32.mxu0 %v27197_v8  ;;  %v12591_v6 = vsel %vm103_vm0, %v20750_v58, 0 }
 0x59a   :  { %v24664_v32 = vand.u32 4294901760, %v12591_v6  ;;  %v12665_v56 = vsub.f32 %v24654_v43, %v12664_v44 }
 0x59c   :  { %12217 = vmatmul.mubr.f32.vlgmr.msra.gmra.mxu1 %v24528_v3  ;;  %12305 = vmatmul.mubr.f32.vlgmr.msra.gmra.mxu0 %v24556_v26  ;;  %v24686_v33 = vsub.f32 %v12591_v6, %v24664_v32  ;;  %v12666_v50 = vand.u32 4294901760, %v12665_v56  ;;  %v12722_v26 = vand.u32 4294901760, %v12721_v59  ;;  %v24793_v6 = vand.u32 4294901760, %v13160_v61 }
 0x59d   :  { %12350 = vmatpush1.msra.mxu1 %v24545_v51  ;;  %12441 = vmatpush1.msra.mxu0 %v12167_v39 }
 0x59e   :  { %12352 = vmatprep.subr.mxu1 %v24551_v60  ;;  %12445 = vmatprep.subr.mxu0 %v12173_v38  ;;  %v12675_v57 = vand.u32 4294901760, %v24686_v33 }
 0x59f   :  { %12354 = vmatpush1.msra.mxu1 %v24558_v21  ;;  %12449 = vmatpush1.msra.mxu0 %v12179_v29 }
 0x5a0   :  { %12222 = vmatprep.mubr.f32.mxu1 %v27197_v8  ;;  %12310 = vmatprep.mubr.f32.mxu0 %v27197_v8  ;;  %v12676_v24 = vsub.f32 %v24686_v33, %v12675_v57 }
 0x5a1   :  { %12526 = vmatprep.subr.mxu1 %v24511_v40  ;;  %12622 = vmatprep.subr.mxu0 %v24627_v23  ;;  %v24680_v40 = vsub.f32 %v24121_v18, %v24659_v53 }
 0x5a2   :  { %12224 = vmatmul.mubr.f32.gmra.mxu1 %v24565_v13  ;;  %12313 = vmatmul.mubr.f32.gmra.mxu0 %v24584_v2  ;;  %v12677_v17 = vand.u32 4294901760, %v12676_v24 }
 0x5a3   :  { %12387 = vmatprep.mubr.f32.mxu1 %v27197_v8  ;;  %12482 = vmatprep.mubr.f32.mxu0 %v27197_v8  ;;  %v12732_v36 = vand.u32 4294901760, %v24680_v40 }
 0x5a6   :  { %12391 = vmatmul.mubr.f32.vlgmr.msra.gmra.mxu1 %v12111_v16  ;;  %12484 = vmatmul.mubr.f32.vlgmr.msra.gmra.mxu0 %v24528_v3  ;;  %v20855_v16 = vld [vmem:[%s26966_s2 + $0xb8] sm:$0xff] }
 0x5a7   :  { %12528 = vmatpush1.msra.mxu1 %v24545_v51  ;;  %12624 = vmatpush1.msra.mxu0 %v24645_v49  ;;  %v12733_v51 = vsub.f32 %v24680_v40, %v12732_v36 }
 0x5a8   :  { %12530 = vmatprep.subr.mxu1 %v24551_v60  ;;  %12626 = vmatprep.subr.mxu0 %v24651_v35  ;;  %v13140_v60 = vpop.permute.xlu0 %13139 }
 0x5a9   :  { %12532 = vmatpush1.msra.mxu1 %v24558_v21  ;;  %12628 = vmatpush1.msra.mxu0 %v24659_v53  ;;  %v13148_v21 = vsel %vm2907_vm5, %v13144_v45, %v13140_v60  ;;  %v12734_v62 = vand.u32 4294901760, %v12733_v51  ;;  %v13146_v2 = vsel %vm2907_vm5, %v13140_v60, %v13144_v45  ;;  %v20859_v60 = vld [vmem:[%s26966_s2 + $0xd8] sm:$0xff] }
 0x5aa   :  { %12396 = vmatprep.mubr.f32.mxu1 %v27197_v8  ;;  %12489 = vmatprep.mubr.f32.mxu0 %v27197_v8  ;;  %v13152_v34 = vmul.f32 %v20855_v16, %v13148_v21 }
 0x5ab   :  { %12717 = vmatprep.subr.mxu1 %v12716_v20  ;;  %12813 = vmatprep.subr.mxu0 %v24640_v41 }
 0x5ac   :  { %12400 = vmatmul.mubr.f32.gmra.mxu1 %v12122_v4  ;;  %12491 = vmatmul.mubr.f32.gmra.mxu0 %v24565_v13  ;;  %v13138_v39 = vpop.permute.xlu0 %13137  ;;  %v24739_v0 = vand.u32 4294901760, %v13152_v34  ;;  %v20856_v4 = vld [vmem:[%s26966_s2 + $0xb0] sm:$0xff] }
 0x5ad   :  { %12565 = vmatprep.mubr.f32.mxu1 %v27197_v8  ;;  %12661 = vmatprep.mubr.f32.mxu0 %v27197_v8  ;;  %v13147_v38 = vsel %vm2907_vm5, %v13142_v31, %v13138_v39  ;;  %v13145_v9 = vsel %vm2907_vm5, %v13138_v39, %v13142_v31 }
 0x5ae   :  { %v13150_v11 = vmul.f32 %v20857_v63, %v13147_v38  ;;  %v24762_v7 = vsub.f32 %v13152_v34, %v24739_v0  ;;  %v13149_v1 = vmul.f32 %v20858_v47, %v13145_v9 }
 0x5b0   :  { %12567 = vmatmul.mubr.f32.vlgmr.msra.gmra.mxu1 %v24528_v3  ;;  %12667 = vmatmul.mubr.f32.vlgmr.msra.gmra.mxu0 %v12666_v50  ;;  %v20751_v3 = vld [vmem:[%s26965_s1 + $0x170] sm:$0xff]  ;;  %v24779_v54 = vand.u32 4294901760, %v13150_v11  ;;  %v24786_v58 = vand.u32 4294901760, %v13149_v1  ;;  %v13283_v41 = vand.u32 4294901760, %v24762_v7 }
 0x5b1   :  { %12723 = vmatpush1.msra.mxu1 %v12722_v26  ;;  %12816 = vmatpush1.msra.mxu0 %v24670_v10  ;;  %v13157_v29 = vsel %vm103_vm0, %v20751_v3, 0  ;;  %v20860_v3 = vld [vmem:[%s26966_s2 + $0xd0] sm:$0xff] }
 0x5b2   :  { %12729 = vmatprep.subr.mxu1 %v12728_v15  ;;  %12819 = vmatprep.subr.mxu0 %v24675_v22  ;;  %v24756_v27 = vand.u32 4294901760, %v13157_v29  ;;  %v24801_v10 = vsub.f32 %v13150_v11, %v24779_v54  ;;  %v24805_v22 = vsub.f32 %v13149_v1, %v24786_v58  ;;  %v13284_v5 = vsub.f32 %v24762_v7, %v13283_v41 }
 0x5b3   :  { %12735 = vmatpush1.msra.mxu1 %v12734_v62  ;;  %12822 = vmatpush1.msra.mxu0 %v24680_v40  ;;  %v24812_v40 = vsub.f32 %v13160_v61, %v24793_v6 }
 0x5b4   :  { %12572 = vmatprep.mubr.f32.mxu1 %v27197_v8  ;;  %12672 = vmatprep.mubr.f32.mxu0 %v27197_v8  ;;  %v24784_v46 = vsub.f32 %v13157_v29, %v24756_v27  ;;  %v13301_v56 = vand.u32 4294901760, %v24805_v22  ;;  %v20754_v29 = vld [vmem:[%s26965_s1 + $0x188] sm:$0xff] }
 0x5b5   :  { %12901 = vmatprep.subr.mxu1 %v24627_v23  ;;  %12990 = vmatprep.subr.mxu0 %v12714_v25  ;;  %v13729_v11 = vsel %vm103_vm0, %v20754_v29, 0 }
 0x5b6   :  { %12574 = vmatmul.mubr.f32.gmra.mxu1 %v24565_v13  ;;  %12678 = vmatmul.mubr.f32.gmra.mxu0 %v12677_v17  ;;  %v13151_v13 = vmul.f32 %v20856_v4, %v13146_v2  ;;  %v13302_v59 = vsub.f32 %v24805_v22, %v13301_v56  ;;  %v20861_v2 = vld [vmem:[%s26966_s2 + $0xc8] sm:$0xff]  ;;  %v20862_v4 = vld [vmem:[%s26966_s2 + $0xc0] sm:$0xff]  ;;  %v24919_v61 = vand.u32 4294901760, %v13729_v11 }
 0x5b7   :  { %12768 = vmatprep.mubr.f32.mxu1 %v27197_v8  ;;  %12855 = vmatprep.mubr.f32.mxu0 %v27197_v8 }
 0x5b8   :  { %v24773_v52 = vand.u32 4294901760, %v13151_v13  ;;  %v13303_v51 = vand.u32 4294901760, %v13302_v59 }
 0x5ba   :  { %12770 = vmatmul.mubr.f32.vlgmr.msra.gmra.mxu1 %v24632_v37  ;;  %12858 = vmatmul.mubr.f32.vlgmr.msra.gmra.mxu0 %v24654_v43  ;;  %v24796_v25 = vsub.f32 %v13151_v13, %v24773_v52 }
 0x5bb   :  { %12903 = vmatpush1.msra.mxu1 %v24645_v49  ;;  %12994 = vmatpush1.msra.mxu0 %v12720_v42 }
 0x5bc   :  { %12905 = vmatprep.subr.mxu1 %v24651_v35  ;;  %12998 = vmatprep.subr.mxu0 %v12726_v28  ;;  %v13289_v42 = vand.u32 4294901760, %v24796_v25  ;;  %v13285_v28 = vand.u32 4294901760, %v13284_v5  ;;  %v24938_v5 = vsub.f32 %v13729_v11, %v24919_v61 }
 0x5bd   :  { %12907 = vmatpush1.msra.mxu1 %v24659_v53  ;;  %13002 = vmatpush1.msra.mxu0 %v12732_v36  ;;  %v13713_v36 = vpop.permute.xlu1 %13712 }
 0x5be   :  { %12775 = vmatprep.mubr.f32.mxu1 %v27197_v8  ;;  %12863 = vmatprep.mubr.f32.mxu0 %v27197_v8 }
 0x5bf   :  { %13079 = vmatprep.subr.mxu1 %v24627_v23  ;;  %13191 = vmatprep.subr.mxu0 %v24739_v0  ;;  %v13233_v23 = vand.u32 4294901760, %v24784_v46 }
 0x5c0   :  { %12777 = vmatmul.mubr.f32.gmra.mxu1 %v24664_v32  ;;  %12866 = vmatmul.mubr.f32.gmra.mxu0 %v24686_v33 }
 0x5c1   :  { %12940 = vmatprep.mubr.f32.mxu1 %v27197_v8  ;;  %13035 = vmatprep.mubr.f32.mxu0 %v27197_v8  ;;  %v13234_v43 = vsub.f32 %v24784_v46, %v13233_v23  ;;  %v13711_v21 = vpop.permute.xlu1 %13710 }
 0x5c4   :  { %12944 = vmatmul.mubr.f32.vlgmr.msra.gmra.mxu1 %v12664_v44  ;;  %13037 = vmatmul.mubr.f32.vlgmr.msra.gmra.mxu0 %v24632_v37  ;;  %v13295_v44 = vand.u32 4294901760, %v24801_v10 }
 0x5c5   :  { %13081 = vmatpush1.msra.mxu1 %v24645_v49  ;;  %13193 = vmatpush1.msra.mxu0 %v24773_v52  ;;  %v13244_v49 = vand.u32 4294901760, %v24812_v40 }
 0x5c6   :  { %13083 = vmatprep.subr.mxu1 %v24651_v35  ;;  %13195 = vmatprep.subr.mxu0 %v24779_v54  ;;  %v13290_v35 = vsub.f32 %v24796_v25, %v13289_v42  ;;  %v13296_v20 = vsub.f32 %v24801_v10, %v13295_v44 }
 0x5c7   :  { %13085 = vmatpush1.msra.mxu1 %v24659_v53  ;;  %13197 = vmatpush1.msra.mxu0 %v24786_v58  ;;  %v13235_v53 = vand.u32 4294901760, %v13234_v43  ;;  %v13245_v33 = vsub.f32 %v24812_v40, %v13244_v49 }
 0x5c8   :  { %12949 = vmatprep.mubr.f32.mxu1 %v27197_v8  ;;  %13042 = vmatprep.mubr.f32.mxu0 %v27197_v8  ;;  %v13291_v50 = vand.u32 4294901760, %v13290_v35  ;;  %v13297_v45 = vand.u32 4294901760, %v13296_v20 }
 0x5c9   :  { %13286 = vmatprep.subr.mxu1 %v13285_v28  ;;  %13382 = vmatprep.subr.mxu0 %v24762_v7  ;;  %v13246_v24 = vand.u32 4294901760, %v13245_v33  ;;  %v14282_v28 = vpop.permute.xlu1 %14281 }
 0x5ca   :  { %12953 = vmatmul.mubr.f32.gmra.mxu1 %v12675_v57  ;;  %13044 = vmatmul.mubr.f32.gmra.mxu0 %v24664_v32  ;;  %v13709_v57 = vpop.permute.xlu0 %13708 }
 0x5cb   :  { %13118 = vmatprep.mubr.f32.mxu1 %v27197_v8  ;;  %13230 = vmatprep.mubr.f32.mxu0 %v27197_v8  ;;  %v13717_v12 = vsel %vm3482_vm6, %v13713_v36, %v13709_v57  ;;  %v13715_v15 = vsel %vm3482_vm6, %v13709_v57, %v13713_v36  ;;  %v20863_v57 = vld [vmem:[%s26966_s2 + $0xf8] sm:$0xff] }
 0x5cc   :  { %v13721_v26 = vmul.f32 %v20859_v60, %v13717_v12 }
 0x5cd   :  { %v14280_v12 = vpop.permute.xlu1 %14279 }
 0x5ce   :  { %13120 = vmatmul.mubr.f32.vlgmr.msra.gmra.mxu1 %v24632_v37  ;;  %13236 = vmatmul.mubr.f32.vlgmr.msra.gmra.mxu0 %v13235_v53  ;;  %v20753_v37 = vld [vmem:[%s26965_s1 + $0x180] sm:$0xff]  ;;  %v13707_v62 = vpop.permute.xlu0 %13706  ;;  %v24865_v17 = vand.u32 4294901760, %v13721_v26 }
 0x5cf   :  { %13292 = vmatpush1.msra.mxu1 %v13291_v50  ;;  %13385 = vmatpush1.msra.mxu0 %v24796_v25  ;;  %v13716_v16 = vsel %vm3482_vm6, %v13711_v21, %v13707_v62  ;;  %v13726_v34 = vsel %vm103_vm0, %v20753_v37, 0  ;;  %v13714_v31 = vsel %vm3482_vm6, %v13707_v62, %v13711_v21  ;;  %v20864_v37 = vld [vmem:[%s26966_s2 + $0xf0] sm:$0xff] }
 0x5d0   :  { %13298 = vmatprep.subr.mxu1 %v13297_v45  ;;  %13388 = vmatprep.subr.mxu0 %v24801_v10  ;;  %v13719_v39 = vmul.f32 %v20861_v2, %v13716_v16  ;;  %v24882_v38 = vand.u32 4294901760, %v13726_v34  ;;  %v24888_v9 = vsub.f32 %v13721_v26, %v24865_v17  ;;  %v13718_v13 = vmul.f32 %v20862_v4, %v13714_v31 }
 0x5d1   :  { %13304 = vmatpush1.msra.mxu1 %v13303_v51  ;;  %13391 = vmatpush1.msra.mxu0 %v24805_v22 }
 0x5d2   :  { %13125 = vmatprep.mubr.f32.mxu1 %v27197_v8  ;;  %13241 = vmatprep.mubr.f32.mxu0 %v27197_v8  ;;  %v24905_v48 = vand.u32 4294901760, %v13719_v39  ;;  %v24910_v7 = vsub.f32 %v13726_v34, %v24882_v38  ;;  %v24912_v47 = vand.u32 4294901760, %v13718_v13  ;;  %v13852_v1 = vand.u32 4294901760, %v24888_v9  ;;  %v20756_v34 = vld [vmem:[%s26965_s1 + $0x198] sm:$0xff] }
 0x5d3   :  { %13470 = vmatprep.subr.mxu1 %v24739_v0  ;;  %13559 = vmatprep.subr.mxu0 %v13283_v41 }
 0x5d4   :  { %13127 = vmatmul.mubr.f32.gmra.mxu1 %v24664_v32  ;;  %13247 = vmatmul.mubr.f32.gmra.mxu0 %v13246_v24  ;;  %v13720_v32 = vmul.f32 %v20860_v3, %v13715_v15  ;;  %v24927_v25 = vsub.f32 %v13719_v39, %v24905_v48  ;;  %v24931_v10 = vsub.f32 %v13718_v13, %v24912_v47  ;;  %v20865_v15 = vld [vmem:[%s26966_s2 + $0xe8] sm:$0xff]  ;;  %v20866_v3 = vld [vmem:[%s26966_s2 + $0xe0] sm:$0xff]  ;;  %v14298_v39 = vsel %vm103_vm0, %v20756_v34, 0 }
 0x5d5   :  { %13337 = vmatprep.mubr.f32.mxu1 %v27197_v8  ;;  %13424 = vmatprep.mubr.f32.mxu0 %v27197_v8  ;;  %v13853_v22 = vsub.f32 %v24888_v9, %v13852_v1 }
 0x5d6   :  { %v24899_v63 = vand.u32 4294901760, %v13720_v32  ;;  %v13870_v43 = vand.u32 4294901760, %v24931_v10 }
 0x5d8   :  { %13339 = vmatmul.mubr.f32.vlgmr.msra.gmra.mxu1 %v24756_v27  ;;  %13427 = vmatmul.mubr.f32.vlgmr.msra.gmra.mxu0 %v24784_v46  ;;  %v24922_v41 = vsub.f32 %v13720_v32, %v24899_v63  ;;  %v13871_v35 = vsub.f32 %v24931_v10, %v13870_v43 }
 0x5d9   :  { %13472 = vmatpush1.msra.mxu1 %v24773_v52  ;;  %13563 = vmatpush1.msra.mxu0 %v13289_v42 }
 0x5da   :  { %13474 = vmatprep.subr.mxu1 %v24779_v54  ;;  %13567 = vmatprep.subr.mxu0 %v13295_v44  ;;  %v13858_v42 = vand.u32 4294901760, %v24922_v41  ;;  %v13854_v44 = vand.u32 4294901760, %v13853_v22  ;;  %v13872_v59 = vand.u32 4294901760, %v13871_v35 }
 0x5db   :  { %13476 = vmatpush1.msra.mxu1 %v24786_v58  ;;  %13571 = vmatpush1.msra.mxu0 %v13301_v56 }
 0x5dc   :  { %13344 = vmatprep.mubr.f32.mxu1 %v27197_v8  ;;  %13432 = vmatprep.mubr.f32.mxu0 %v27197_v8 }
 0x5dd   :  { %13648 = vmatprep.subr.mxu1 %v24739_v0  ;;  %13760 = vmatprep.subr.mxu0 %v24865_v17  ;;  %v13802_v0 = vand.u32 4294901760, %v24910_v7 }
 0x5de   :  { %13346 = vmatmul.mubr.f32.gmra.mxu1 %v24793_v6  ;;  %13435 = vmatmul.mubr.f32.gmra.mxu0 %v24812_v40 }
 0x5df   :  { %13509 = vmatprep.mubr.f32.mxu1 %v27197_v8  ;;  %13604 = vmatprep.mubr.f32.mxu0 %v27197_v8  ;;  %v13803_v46 = vsub.f32 %v24910_v7, %v13802_v0 }
 0x5e2   :  { %13513 = vmatmul.mubr.f32.vlgmr.msra.gmra.mxu1 %v13233_v23  ;;  %13606 = vmatmul.mubr.f32.vlgmr.msra.gmra.mxu0 %v24756_v27  ;;  %v13864_v23 = vand.u32 4294901760, %v24927_v25 }
 0x5e3   :  { %13650 = vmatpush1.msra.mxu1 %v24773_v52  ;;  %13762 = vmatpush1.msra.mxu0 %v24899_v63  ;;  %v13813_v52 = vand.u32 4294901760, %v24938_v5 }
 0x5e4   :  { %13652 = vmatprep.subr.mxu1 %v24779_v54  ;;  %13764 = vmatprep.subr.mxu0 %v24905_v48  ;;  %v13859_v54 = vsub.f32 %v24922_v41, %v13858_v42  ;;  %v13865_v56 = vsub.f32 %v24927_v25, %v13864_v23 }
 0x5e5   :  { %13654 = vmatpush1.msra.mxu1 %v24786_v58  ;;  %13766 = vmatpush1.msra.mxu0 %v24912_v47  ;;  %v13804_v58 = vand.u32 4294901760, %v13803_v46  ;;  %v13814_v40 = vsub.f32 %v24938_v5, %v13813_v52 }
 0x5e6   :  { %13518 = vmatprep.mubr.f32.mxu1 %v27197_v8  ;;  %13611 = vmatprep.mubr.f32.mxu0 %v27197_v8  ;;  %v13860_v53 = vand.u32 4294901760, %v13859_v54  ;;  %v13866_v36 = vand.u32 4294901760, %v13865_v56 }
 0x5e7   :  { %13855 = vmatprep.subr.mxu1 %v13854_v44  ;;  %13951 = vmatprep.subr.mxu0 %v24888_v9  ;;  %v13815_v33 = vand.u32 4294901760, %v13814_v40 }
 0x5e8   :  { %13522 = vmatmul.mubr.f32.gmra.mxu1 %v13244_v49  ;;  %13613 = vmatmul.mubr.f32.gmra.mxu0 %v24793_v6  ;;  %v14278_v49 = vpop.permute.xlu0 %14277 }
 0x5e9   :  { %13687 = vmatprep.mubr.f32.mxu1 %v27197_v8  ;;  %13799 = vmatprep.mubr.f32.mxu0 %v27197_v8  ;;  %v14286_v20 = vsel %vm4057_vm7, %v14282_v28, %v14278_v49  ;;  %v14284_v45 = vsel %vm4057_vm7, %v14278_v49, %v14282_v28 }
 0x5ea   :  { %v14290_v50 = vmul.f32 %v20863_v57, %v14286_v20 }
 0x5ec   :  { %13689 = vmatmul.mubr.f32.vlgmr.msra.gmra.mxu1 %v24756_v27  ;;  %13805 = vmatmul.mubr.f32.vlgmr.msra.gmra.mxu0 %v13804_v58  ;;  %v20755_v27 = vld [vmem:[%s26965_s1 + $0x190] sm:$0xff]  ;;  %v14276_v51 = vpop.permute.xlu0 %14275  ;;  %v24991_v24 = vand.u32 4294901760, %v14290_v50 }
 0x5ed   :  { %13861 = vmatpush1.msra.mxu1 %v13860_v53  ;;  %13954 = vmatpush1.msra.mxu0 %v24922_v41  ;;  %v14285_v60 = vsel %vm4057_vm7, %v14280_v12, %v14276_v51  ;;  %v14295_v26 = vsel %vm103_vm0, %v20755_v27, 0  ;;  %v14283_v21 = vsel %vm4057_vm7, %v14276_v51, %v14280_v12  ;;  %v25047_v41 = vand.u32 4294901760, %v14298_v39 }
 0x5ee   :  { %13867 = vmatprep.subr.mxu1 %v13866_v36  ;;  %13957 = vmatprep.subr.mxu0 %v24927_v25  ;;  %v14288_v62 = vmul.f32 %v20865_v15, %v14285_v60  ;;  %v25008_v16 = vand.u32 4294901760, %v14295_v26  ;;  %v25014_v31 = vsub.f32 %v14290_v50, %v24991_v24  ;;  %v14287_v32 = vmul.f32 %v20866_v3, %v14283_v21  ;;  %v14851_v36 = vpop.permute.xlu1 %14850 }
 0x5ef   :  { %13873 = vmatpush1.msra.mxu1 %v13872_v59  ;;  %13960 = vmatpush1.msra.mxu0 %v24931_v10 }
 0x5f0   :  { %13694 = vmatprep.mubr.f32.mxu1 %v27197_v8  ;;  %13810 = vmatprep.mubr.f32.mxu0 %v27197_v8  ;;  %v25031_v9 = vand.u32 4294901760, %v14288_v62  ;;  %v25036_v4 = vsub.f32 %v14295_v26, %v25008_v16  ;;  %v25038_v13 = vand.u32 4294901760, %v14287_v32  ;;  %v14421_v11 = vand.u32 4294901760, %v25014_v31  ;;  %v14847_v57 = vpop.permute.xlu0 %14846 }
 0x5f1   :  { %14039 = vmatprep.subr.mxu1 %v24865_v17  ;;  %14128 = vmatprep.subr.mxu0 %v13852_v1  ;;  %v14855_v27 = vsel %vm4632_vm8, %v14851_v36, %v14847_v57 }
 0x5f2   :  { %13696 = vmatmul.mubr.f32.gmra.mxu1 %v24793_v6  ;;  %13816 = vmatmul.mubr.f32.gmra.mxu0 %v13815_v33  ;;  %v14289_v6 = vmul.f32 %v20864_v37, %v14284_v45  ;;  %v14371_v10 = vand.u32 4294901760, %v25036_v4  ;;  %v14422_v46 = vsub.f32 %v25014_v31, %v14421_v11  ;;  %v14849_v34 = vpop.permute.xlu1 %14848 }
 0x5f3   :  { %13906 = vmatprep.mubr.f32.mxu1 %v27197_v8  ;;  %13993 = vmatprep.mubr.f32.mxu0 %v27197_v8 }
 0x5f4   :  { %v25025_v2 = vand.u32 4294901760, %v14289_v6 }
 0x5f6   :  { %13908 = vmatmul.mubr.f32.vlgmr.msra.gmra.mxu1 %v24882_v38  ;;  %13996 = vmatmul.mubr.f32.vlgmr.msra.gmra.mxu0 %v24910_v7  ;;  %v25050_v25 = vsub.f32 %v14289_v6, %v25025_v2  ;;  %v14372_v7 = vsub.f32 %v25036_v4, %v14371_v10 }
 0x5f7   :  { %14041 = vmatpush1.msra.mxu1 %v24899_v63  ;;  %14132 = vmatpush1.msra.mxu0 %v13858_v42  ;;  %v25059_v42 = vsub.f32 %v14287_v32, %v25038_v13  ;;  %v20757_v32 = vld [vmem:[%s26965_s1 + $0x1a0] sm:$0xff] }
 0x5f8   :  { %14043 = vmatprep.subr.mxu1 %v24905_v48  ;;  %14136 = vmatprep.subr.mxu0 %v13864_v23  ;;  %v25068_v23 = vsub.f32 %v14298_v39, %v25047_v41  ;;  %v14427_v44 = vand.u32 4294901760, %v25050_v25  ;;  %v14373_v53 = vand.u32 4294901760, %v14372_v7  ;;  %v14845_v7 = vpop.permute.xlu0 %14844 }
 0x5f9   :  { %14045 = vmatpush1.msra.mxu1 %v24912_v47  ;;  %14140 = vmatpush1.msra.mxu0 %v13870_v43  ;;  %v14439_v56 = vand.u32 4294901760, %v25059_v42 }
 0x5fa   :  { %v10435_v29 = vpop.f32.mrf.mxu0  ;;  %13913 = vmatprep.mubr.f32.mxu1 %v27197_v8  ;;  %14001 = vmatprep.mubr.f32.mxu0 %v27197_v8 }
 0x5fb   :  { %14217 = vmatprep.subr.mxu1 %v24865_v17  ;;  %14329 = vmatprep.subr.mxu0 %v24991_v24  ;;  %v25055_v17 = vsub.f32 %v14288_v62, %v25031_v9  ;;  %v14440_v59 = vsub.f32 %v25059_v42, %v14439_v56 }
 0x5fc   :  { %v25043_v1 = vpop.f32.mrf.mxu0  ;;  %13915 = vmatmul.mubr.f32.gmra.mxu1 %v24919_v61  ;;  %14004 = vmatmul.mubr.f32.gmra.mxu0 %v24938_v5 }
 0x5fd   :  { %14078 = vmatprep.mubr.f32.mxu1 %v27197_v8  ;;  %14173 = vmatprep.mubr.f32.mxu0 %v27197_v8  ;;  %v14441_v26 = vand.u32 4294901760, %v14440_v59  ;;  %v20758_v59 = vld [vmem:[%s26965_s1 + $0x1a8] sm:$0xff] }
 0x5fe   :  { %v10446_v22 = vpop.f32.mrf.mxu0 }
 0x600   :  { %14082 = vmatmul.mubr.f32.vlgmr.msra.gmra.mxu1 %v13802_v0  ;;  %14175 = vmatmul.mubr.f32.vlgmr.msra.gmra.mxu0 %v24882_v38  ;;  %v25070_v43 = vpop.f32.mrf.mxu0  ;;  %v14433_v0 = vand.u32 4294901760, %v25055_v17 }
 0x601   :  { %14219 = vmatpush1.msra.mxu1 %v24899_v63  ;;  %14331 = vmatpush1.msra.mxu0 %v25025_v2  ;;  %v14423_v63 = vand.u32 4294901760, %v14422_v46  ;;  %v14853_v46 = vsel %vm4632_vm8, %v14847_v57, %v14851_v36  ;;  %v20870_v57 = vld [vmem:[%s26966_s2 + $0x100] sm:$0xff] }
 0x602   :  { %14221 = vmatprep.subr.mxu1 %v24905_v48  ;;  %14333 = vmatprep.subr.mxu0 %v25031_v9  ;;  %v10538_v54 = vpop.f32.mrf.mxu1  ;;  %v10626_v58 = vpop.f32.mrf.mxu0  ;;  %v14382_v48 = vand.u32 4294901760, %v25068_v23  ;;  %v14434_v20 = vsub.f32 %v25055_v17, %v14433_v0 }
 0x603   :  { %14223 = vmatpush1.msra.mxu1 %v24912_v47  ;;  %14335 = vmatpush1.msra.mxu0 %v25038_v13  ;;  %v10539_v28 = vadd.f32 %v10538_v54, %v10435_v29  ;;  %v14428_v47 = vsub.f32 %v25050_v25, %v14427_v44 }
 0x604   :  { %14087 = vmatprep.mubr.f32.mxu1 %v27197_v8  ;;  %14180 = vmatprep.mubr.f32.mxu0 %v27197_v8  ;;  %v25087_v35 = vpop.f32.mrf.mxu1  ;;  %v25089_v40 = vpop.f32.mrf.mxu0  ;;  %v14383_v5 = vsub.f32 %v25068_v23, %v14382_v48  ;;  %v14435_v45 = vand.u32 4294901760, %v14434_v20 }
 0x605   :  { %14424 = vmatprep.subr.mxu1 %v14423_v63  ;;  %14520 = vmatprep.subr.mxu0 %v25014_v31  ;;  %v10627_v49 = vadd.f32 %v10626_v58, %v10539_v28  ;;  %v14429_v50 = vand.u32 4294901760, %v14428_v47  ;;  %v14854_v58 = vsel %vm4632_vm8, %v14849_v34, %v14845_v7  ;;  %v14864_v31 = vsel %vm103_vm0, %v20757_v32, 0 }
 0x606   :  { %14091 = vmatmul.mubr.f32.gmra.mxu1 %v13813_v52  ;;  %14182 = vmatmul.mubr.f32.gmra.mxu0 %v24919_v61  ;;  %v14384_v37 = vand.u32 4294901760, %v14383_v5  ;;  %v25154_v36 = vand.u32 4294901760, %v14864_v31 }
 0x607   :  { %14256 = vmatprep.mubr.f32.mxu1 %v27197_v8  ;;  %14368 = vmatprep.mubr.f32.mxu0 %v27197_v8 }
 0x608   :  { %v10545_v52 = vpop.f32.mrf.mxu1  ;;  %v10634_v33 = vpop.f32.mrf.mxu0 }
 0x609   :  { %v10546_v12 = vadd.f32 %v10545_v52, %v10446_v22 }
 0x60a   :  { %14258 = vmatmul.mubr.f32.vlgmr.msra.gmra.mxu1 %v24882_v38  ;;  %14374 = vmatmul.mubr.f32.vlgmr.msra.gmra.mxu0 %v14373_v53  ;;  %v25112_v51 = vpop.f32.mrf.mxu1  ;;  %v25114_v60 = vpop.f32.mrf.mxu0  ;;  %v20867_v38 = vld [vmem:[%s26966_s2 + $0x118] sm:$0xff]  ;;  %v20869_v53 = vld [vmem:[%s26966_s2 + $0x108] sm:$0xff] }
 0x60b   :  { %14430 = vmatpush1.msra.mxu1 %v14429_v50  ;;  %14523 = vmatpush1.msra.mxu0 %v25050_v25  ;;  %v10635_v21 = vadd.f32 %v10634_v33, %v10546_v12  ;;  %v14859_v62 = vmul.f32 %v20867_v38, %v14855_v27  ;;  %v14857_v20 = vmul.f32 %v20869_v53, %v14854_v58 }
 0x60c   :  { %14436 = vmatprep.subr.mxu1 %v14435_v45  ;;  %14526 = vmatprep.subr.mxu0 %v25055_v17  ;;  %v10712_v6 = vpop.f32.mrf.mxu1  ;;  %v10805_v15 = vpop.f32.mrf.mxu0  ;;  %v25186_v17 = vsub.f32 %v14864_v31, %v25154_v36 }
 0x60d   :  { %14442 = vmatpush1.msra.mxu1 %v14441_v26  ;;  %14529 = vmatpush1.msra.mxu0 %v25059_v42  ;;  %v10713_v3 = vadd.f32 %v10712_v6, %v10627_v49  ;;  %v25137_v54 = vand.u32 4294901760, %v14859_v62  ;;  %v25181_v25 = vand.u32 4294901760, %v14857_v20 }
 0x60e   :  { %14263 = vmatprep.mubr.f32.mxu1 %v27197_v8  ;;  %14379 = vmatprep.mubr.f32.mxu0 %v27197_v8  ;;  %v25127_v39 = vpop.f32.mrf.mxu1  ;;  %v25129_v29 = vpop.f32.mrf.mxu0 }
 0x60f   :  { %14608 = vmatprep.subr.mxu1 %v24991_v24  ;;  %14697 = vmatprep.subr.mxu0 %v14421_v11  ;;  %v10806_v22 = vadd.f32 %v10805_v15, %v10713_v3  ;;  %v14852_v11 = vsel %vm4632_vm8, %v14845_v7, %v14849_v34  ;;  %v25164_v33 = vsub.f32 %v14859_v62, %v25137_v54  ;;  %v14940_v62 = vand.u32 4294901760, %v25186_v17 }
 0x610   :  { %14265 = vmatmul.mubr.f32.gmra.mxu1 %v24919_v61  ;;  %14385 = vmatmul.mubr.f32.gmra.mxu0 %v14384_v37  ;;  %v20868_v61 = vld [vmem:[%s26966_s2 + $0x110] sm:$0xff]  ;;  %v14856_v50 = vmul.f32 %v20870_v57, %v14852_v11 }
 0x611   :  { %14475 = vmatprep.mubr.f32.mxu1 %v27197_v8  ;;  %14562 = vmatprep.mubr.f32.mxu0 %v27197_v8  ;;  %v14858_v47 = vmul.f32 %v20868_v61, %v14853_v46  ;;  %v14990_v42 = vand.u32 4294901760, %v25164_v33 }
 0x612   :  { %v10721_v63 = vpop.f32.mrf.mxu1  ;;  %v10812_v28 = vpop.f32.mrf.mxu0  ;;  %v25192_v6 = vand.u32 4294901760, %v14856_v50 }
 0x613   :  { %v10722_v49 = vadd.f32 %v10721_v63, %v10635_v21  ;;  %v25175_v26 = vand.u32 4294901760, %v14858_v47  ;;  %v14867_v21 = vsel %vm103_vm0, %v20758_v59, 0 }
 0x614   :  { %14477 = vmatmul.mubr.f32.vlgmr.msra.gmra.mxu1 %v25008_v16  ;;  %14565 = vmatmul.mubr.f32.vlgmr.msra.gmra.mxu0 %v25036_v4  ;;  %v25159_v5 = vpop.f32.mrf.mxu1  ;;  %v25161_v52 = vpop.f32.mrf.mxu0  ;;  %v25199_v15 = vand.u32 4294901760, %v14867_v21  ;;  %v25211_v32 = vsub.f32 %v14856_v50, %v25192_v6  ;;  %v14941_v4 = vsub.f32 %v25186_v17, %v14940_v62 }
 0x615   :  { %14610 = vmatpush1.msra.mxu1 %v25025_v2  ;;  %14701 = vmatpush1.msra.mxu0 %v14427_v44  ;;  %v10813_v12 = vadd.f32 %v10812_v28, %v10722_v49  ;;  %v25202_v38 = vsub.f32 %v14858_v47, %v25175_v26 }
 0x616   :  { %14612 = vmatprep.subr.mxu1 %v25031_v9  ;;  %14705 = vmatprep.subr.mxu0 %v14433_v0  ;;  %v10888_v27 = vpop.f32.mrf.mxu1  ;;  %v10981_v45 = vpop.f32.mrf.mxu0  ;;  %v25220_v7 = vsub.f32 %v14867_v21, %v25199_v15  ;;  %v15008_v47 = vand.u32 4294901760, %v25211_v32  ;;  %v14942_v57 = vand.u32 4294901760, %v14941_v4 }
 0x617   :  { %14614 = vmatpush1.msra.mxu1 %v25038_v13  ;;  %14709 = vmatpush1.msra.mxu0 %v14439_v56  ;;  %v10889_v37 = vadd.f32 %v10888_v27, %v10806_v22  ;;  %v14991_v22 = vsub.f32 %v25164_v33, %v14990_v42  ;;  %v14996_v11 = vand.u32 4294901760, %v25202_v38 }
 0x618   :  { %14482 = vmatprep.mubr.f32.mxu1 %v27197_v8  ;;  %14570 = vmatprep.mubr.f32.mxu0 %v27197_v8  ;;  %v25188_v44 = vpop.f32.mrf.mxu1  ;;  %v25190_v0 = vpop.f32.mrf.mxu0 }
 0x619   :  { %14786 = vmatprep.subr.mxu1 %v24991_v24  ;;  %14898 = vmatprep.subr.mxu0 %v25137_v54  ;;  %v10982_v56 = vadd.f32 %v10981_v45, %v10889_v37  ;;  %v25207_v24 = vsub.f32 %v14857_v20, %v25181_v25 }
 0x61a   :  { %14484 = vmatmul.mubr.f32.gmra.mxu1 %v25047_v41  ;;  %14573 = vmatmul.mubr.f32.gmra.mxu0 %v25068_v23 }
 0x61b   :  { %14647 = vmatprep.mubr.f32.mxu1 %v27197_v8  ;;  %14742 = vmatprep.mubr.f32.mxu0 %v27197_v8 }
 0x61c   :  { %v10895_v34 = vpop.f32.mrf.mxu1  ;;  %v10992_v3 = vpop.f32.mrf.mxu0 }
 0x61d   :  { %v10896_v46 = vadd.f32 %v10895_v34, %v10813_v12  ;;  %v15009_v12 = vsub.f32 %v25211_v32, %v15008_v47 }
 0x61e   :  { %14651 = vmatmul.mubr.f32.vlgmr.msra.gmra.mxu1 %v14371_v10  ;;  %14744 = vmatmul.mubr.f32.vlgmr.msra.gmra.mxu0 %v25008_v16  ;;  %v25222_v58 = vpop.f32.mrf.mxu1  ;;  %v25224_v31 = vpop.f32.mrf.mxu0  ;;  %v15002_v10 = vand.u32 4294901760, %v25207_v24 }
 0x61f   :  { %14788 = vmatpush1.msra.mxu1 %v25025_v2  ;;  %14900 = vmatpush1.msra.mxu0 %v25175_v26  ;;  %v10993_v63 = vadd.f32 %v10992_v3, %v10896_v46  ;;  %v14992_v2 = vand.u32 4294901760, %v14991_v22  ;;  %v15010_v3 = vand.u32 4294901760, %v15009_v12 }
 0x620   :  { %14790 = vmatprep.subr.mxu1 %v25031_v9  ;;  %14902 = vmatprep.subr.mxu0 %v25181_v25  ;;  %v11084_v28 = vpop.f32.mrf.mxu1  ;;  %v11172_v61 = vpop.f32.mrf.mxu0  ;;  %v14951_v9 = vand.u32 4294901760, %v25220_v7  ;;  %v15003_v50 = vsub.f32 %v25207_v24, %v15002_v10 }
 0x621   :  { %14792 = vmatpush1.msra.mxu1 %v25038_v13  ;;  %14904 = vmatpush1.msra.mxu0 %v25192_v6  ;;  %v11085_v49 = vadd.f32 %v11084_v28, %v10982_v56  ;;  %v14997_v13 = vsub.f32 %v25202_v38, %v14996_v11 }
 0x622   :  { %14656 = vmatprep.mubr.f32.mxu1 %v27197_v8  ;;  %14749 = vmatprep.mubr.f32.mxu0 %v27197_v8  ;;  %v25241_v53 = vpop.f32.mrf.mxu1  ;;  %v25243_v20 = vpop.f32.mrf.mxu0  ;;  %v14952_v23 = vsub.f32 %v25220_v7, %v14951_v9  ;;  %v15004_v37 = vand.u32 4294901760, %v15003_v50 }
 0x623   :  { %14993 = vmatprep.subr.mxu1 %v14992_v2  ;;  %15089 = vmatprep.subr.mxu0 %v25164_v33  ;;  %v11173_v59 = vadd.f32 %v11172_v61, %v11085_v49  ;;  %v14998_v45 = vand.u32 4294901760, %v14997_v13 }
 0x624   :  { %14660 = vmatmul.mubr.f32.gmra.mxu1 %v14382_v48  ;;  %14751 = vmatmul.mubr.f32.gmra.mxu0 %v25047_v41  ;;  %v14953_v46 = vand.u32 4294901760, %v14952_v23 }
 0x625   :  { %14825 = vmatprep.mubr.f32.mxu1 %v27197_v8  ;;  %14937 = vmatprep.mubr.f32.mxu0 %v27197_v8 }
 0x626   :  { %v11091_v48 = vpop.f32.mrf.mxu1  ;;  %v11180_v27 = vpop.f32.mrf.mxu0 }
 0x627   :  { %v11092_v21 = vadd.f32 %v11091_v48, %v10993_v63 }
 0x628   :  { %14827 = vmatmul.mubr.f32.vlgmr.msra.gmra.mxu1 %v25008_v16  ;;  %14943 = vmatmul.mubr.f32.vlgmr.msra.gmra.mxu0 %v14942_v57  ;;  %v25264_v56 = vpop.f32.mrf.mxu1  ;;  %v25266_v34 = vpop.f32.mrf.mxu0 }
 0x629   :  { %14999 = vmatpush1.msra.mxu1 %v14998_v45  ;;  %15092 = vmatpush1.msra.mxu0 %v25202_v38  ;;  %v11181_v22 = vadd.f32 %v11180_v27, %v11092_v21 }
 0x62a   :  { %15005 = vmatprep.subr.mxu1 %v15004_v37  ;;  %15095 = vmatprep.subr.mxu0 %v25207_v24  ;;  %v11258_v4 = vpop.f32.mrf.mxu1  ;;  %v11351_v28 = vpop.f32.mrf.mxu0 }
 0x62b   :  { %15011 = vmatpush1.msra.mxu1 %v15010_v3  ;;  %15098 = vmatpush1.msra.mxu0 %v25211_v32  ;;  %v11259_v16 = vadd.f32 %v11258_v4, %v11173_v59 }
 0x62c   :  { %14832 = vmatprep.mubr.f32.mxu1 %v27197_v8  ;;  %14948 = vmatprep.mubr.f32.mxu0 %v27197_v8  ;;  %v25273_v63 = vpop.f32.mrf.mxu1  ;;  %v25275_v61 = vpop.f32.mrf.mxu0 }
 0x62d   :  { %27198 = vst [vmem:[#allocation14_spill] sm:$0xff] %v25275_v61  ;;  %15177 = vmatprep.subr.mxu1 %v25137_v54  ;;  %15266 = vmatprep.subr.mxu0 %v14990_v42  ;;  %v11352_v2 = vadd.f32 %v11351_v28, %v11259_v16 }
 0x62e   :  { %14834 = vmatmul.mubr.f32.gmra.mxu1 %v25047_v41  ;;  %14954 = vmatmul.mubr.f32.gmra.mxu0 %v14953_v46 }
 0x62f   :  { %15044 = vmatprep.mubr.f32.mxu1 %v27197_v8  ;;  %15131 = vmatprep.mubr.f32.mxu0 %v27197_v8 }
 0x630   :  { %v11267_v49 = vpop.f32.mrf.mxu1  ;;  %v11358_v13 = vpop.f32.mrf.mxu0 }
 0x631   :  { %v11268_v59 = vadd.f32 %v11267_v49, %v11181_v22 }
 0x632   :  { %15046 = vmatmul.mubr.f32.vlgmr.msra.gmra.mxu1 %v25154_v36  ;;  %15134 = vmatmul.mubr.f32.vlgmr.msra.gmra.mxu0 %v25186_v17  ;;  %v25285_v57 = vpop.f32.mrf.mxu1  ;;  %v25287_v50 = vpop.f32.mrf.mxu0 }
 0x633   :  { %27199 = vst [vmem:[#allocation31_spill] sm:$0xff] %v25287_v50  ;;  %15179 = vmatpush1.msra.mxu1 %v25175_v26  ;;  %15270 = vmatpush1.msra.mxu0 %v14996_v11  ;;  %v11359_v41 = vadd.f32 %v11358_v13, %v11268_v59 }
 0x634   :  { %15181 = vmatprep.subr.mxu1 %v25181_v25  ;;  %15274 = vmatprep.subr.mxu0 %v15002_v10  ;;  %v11434_v33 = vpop.f32.mrf.mxu1  ;;  %v11546_v42 = vpop.f32.mrf.mxu0 }
 0x635   :  { %15183 = vmatpush1.msra.mxu1 %v25192_v6  ;;  %15278 = vmatpush1.msra.mxu0 %v15008_v47  ;;  %v11435_v12 = vadd.f32 %v11434_v33, %v11352_v2 }
 0x636   :  { %15051 = vmatprep.mubr.f32.mxu1 %v27197_v8  ;;  %15355 = vmatprep.subr.mxu1 %v25137_v54  ;;  %v25300_v38 = vpop.f32.mrf.mxu1  ;;  %v25302_v11 = vpop.f32.mrf.mxu0 }
 0x637   :  { %27200 = vst [vmem:[#allocation16_spill] sm:$0xff] %v25300_v38  ;;  %15053 = vmatmul.mubr.f32.gmra.mxu1 %v25199_v15  ;;  %15139 = vmatprep.mubr.f32.mxu0 %v27197_v8 }
 0x638   :  { %15142 = vmatmul.mubr.f32.gmra.mxu0 %v25220_v7  ;;  %15216 = vmatprep.mubr.f32.mxu1 %v27197_v8 }
 0x639   :  { %15311 = vmatprep.mubr.f32.mxu0 %v27197_v8 }
 0x63a   :  { %v11441_v24 = vpop.f32.mrf.mxu1  ;;  %v11557_v32 = vpop.f32.mrf.mxu0 }
 0x63b   :  { %15220 = vmatmul.mubr.f32.vlgmr.msra.gmra.mxu1 %v14940_v62  ;;  %v11442_v54 = vadd.f32 %v11441_v24, %v11359_v41 }
 0x63c   :  { %15357 = vmatpush1.msra.mxu1 %v25175_v26  ;;  %15313 = vmatmul.mubr.f32.vlgmr.msra.gmra.mxu0 %v25154_v36  ;;  %v25313_v10 = vpop.f32.mrf.mxu1  ;;  %v25315_v47 = vpop.f32.mrf.mxu0 }
 0x63d   :  { %27201 = vst [vmem:[#allocation13_spill] sm:$0xff] %v25313_v10  ;;  %15359 = vmatprep.subr.mxu1 %v25181_v25  ;;  %15225 = vmatprep.mubr.f32.mxu1 %v27197_v8 }
 0x63e   :  { %15361 = vmatpush1.msra.mxu1 %v25192_v6  ;;  %15318 = vmatprep.mubr.f32.mxu0 %v27197_v8  ;;  %v11649_v23 = vpop.f32.mrf.mxu1  ;;  %v11737_v17 = vpop.f32.mrf.mxu0 }
 0x63f   :  { %15229 = vmatmul.mubr.f32.gmra.mxu1 %v14951_v9  ;;  %v11650_v26 = vadd.f32 %v11649_v23, %v11546_v42 }
 0x640   :  { %15320 = vmatmul.mubr.f32.gmra.mxu0 %v25199_v15  ;;  %15394 = vmatprep.mubr.f32.mxu1 %v27197_v8  ;;  %v25325_v62 = vpop.f32.mrf.mxu1  ;;  %v25327_v48 = vpop.f32.mrf.mxu0 }
 0x641   :  { %v11738_v25 = vadd.f32 %v11737_v17, %v11650_v26  ;;  %15539 = vmatprep.mubr.f32.mxu0 %v27197_v8 }
 0x643   :  { %15396 = vmatmul.mubr.f32.vlgmr.msra.gmra.mxu1 %v25154_v36 }
 0x644   :  { %15401 = vmatprep.mubr.f32.mxu1 %v27197_v8  ;;  %v11656_v6 = vpop.f32.mrf.mxu1  ;;  %v11745_v27 = vpop.f32.mrf.mxu0 }
 0x645   :  { %v11657_v7 = vadd.f32 %v11656_v6, %v11557_v32 }
 0x646   :  { %v25332_v9 = vpop.f32.mrf.mxu1  ;;  %v25334_v45 = vpop.f32.mrf.mxu0 }
 0x647   :  { %15403 = vmatmul.mubr.f32.gmra.mxu1 %v25199_v15  ;;  %v11746_v21 = vadd.f32 %v11745_v27, %v11657_v7 }
 0x648   :  { %v11823_v37 = vpop.f32.mrf.mxu1  ;;  %v11916_v3 = vpop.f32.mrf.mxu0  ;;  %15646 = vmatprep.mubr.f32.mxu1 %v27197_v8 }
 0x649   :  { %v11824_v22 = vadd.f32 %v11823_v37, %v11738_v25 }
 0x64a   :  { %v25338_v46 = vpop.f32.mrf.mxu1  ;;  %v25340_v36 = vpop.f32.mrf.mxu0 }
 0x64b   :  { %27202 = vst [vmem:[#allocation20_spill] sm:$0xff] %v25340_v36  ;;  %v11917_v4 = vadd.f32 %v11916_v3, %v11824_v22 }
 0x64e   :  { %v11832_v28 = vpop.f32.mrf.mxu1  ;;  %v11923_v16 = vpop.f32.mrf.mxu0 }
 0x64f   :  { %v11833_v2 = vadd.f32 %v11832_v28, %v11746_v21 }
 0x650   :  { %v25342_v49 = vpop.f32.mrf.mxu1  ;;  %v25344_v13 = vpop.f32.mrf.mxu0 }
 0x651   :  { %27203 = vst [vmem:[#allocation18_spill] sm:$0xff] %v25344_v13  ;;  %v11924_v59 = vadd.f32 %v11923_v16, %v11833_v2 }
 0x652   :  { %v11999_v15 = vpop.f32.mrf.mxu1  ;;  %v12115_v41 = vpop.f32.mrf.mxu0 }
 0x653   :  { %v12000_v33 = vadd.f32 %v11999_v15, %v11917_v4 }
 0x654   :  { %v25346_v42 = vpop.f32.mrf.mxu1  ;;  %v25348_v24 = vpop.f32.mrf.mxu0 }
 0x655   :  { %27204 = vst [vmem:[#allocation19_spill] sm:$0xff] %v25346_v42  ;;  %v12011_v32 = vadd.f32 %v12000_v33, %v11435_v12 }
 0x658   :  { %v12006_v23 = vpop.f32.mrf.mxu1  ;;  %v12126_v17 = vpop.f32.mrf.mxu0 }
 0x659   :  { %v12007_v26 = vadd.f32 %v12006_v23, %v11924_v59 }
 0x65a   :  { %v25350_v25 = vpop.f32.mrf.mxu1  ;;  %v25352_v6 = vpop.f32.mrf.mxu0 }
 0x65b   :  { %27205 = vst [vmem:[#allocation28_spill] sm:$0xff] %v25350_v25  ;;  %v12013_v27 = vadd.f32 %v12007_v26, %v11442_v54 }
 0x65c   :  { %v12218_v7 = vpop.f32.mrf.mxu1  ;;  %v12306_v21 = vpop.f32.mrf.mxu0 }
 0x65d   :  { %v12219_v37 = vadd.f32 %v12218_v7, %v12115_v41 }
 0x65e   :  { %v25354_v3 = vpop.f32.mrf.mxu1  ;;  %v25356_v22 = vpop.f32.mrf.mxu0 }
 0x65f   :  { %v12307_v4 = vadd.f32 %v12306_v21, %v12219_v37 }
 0x662   :  { %v12225_v28 = vpop.f32.mrf.mxu1  ;;  %v12314_v16 = vpop.f32.mrf.mxu0 }
 0x663   :  { %v12226_v2 = vadd.f32 %v12225_v28, %v12126_v17 }
 0x664   :  { %v25358_v12 = vpop.f32.mrf.mxu1  ;;  %v25360_v15 = vpop.f32.mrf.mxu0 }
 0x665   :  { %v12315_v59 = vadd.f32 %v12314_v16, %v12226_v2 }
 0x666   :  { %v12392_v33 = vpop.f32.mrf.mxu1  ;;  %v12485_v23 = vpop.f32.mrf.mxu0 }
 0x667   :  { %v12393_v8 = vadd.f32 %v12392_v33, %v12307_v4 }
 0x668   :  { %v25362_v54 = vpop.f32.mrf.mxu1  ;;  %v25364_v26 = vpop.f32.mrf.mxu0 }
 0x669   :  { %27206 = vst [vmem:[#allocation25_spill] sm:$0xff] %v25364_v26  ;;  %v12486_v41 = vadd.f32 %v12485_v23, %v12393_v8 }
 0x66c   :  { %v12401_v7 = vpop.f32.mrf.mxu1  ;;  %v12492_v55 = vpop.f32.mrf.mxu0 }
 0x66d   :  { %v12402_v14 = vadd.f32 %v12401_v7, %v12315_v59 }
 0x66e   :  { %v25366_v21 = vpop.f32.mrf.mxu1  ;;  %v25368_v37 = vpop.f32.mrf.mxu0 }
 0x66f   :  { %27207 = vst [vmem:[#allocation29_spill] sm:$0xff] %v25368_v37  ;;  %v12493_v17 = vadd.f32 %v12492_v55, %v12402_v14 }
 0x670   :  { %v12568_v28 = vpop.f32.mrf.mxu1  ;;  %v12668_v18 = vpop.f32.mrf.mxu0 }
 0x671   :  { %v12569_v19 = vadd.f32 %v12568_v28, %v12486_v41 }
 0x672   :  { %v25370_v16 = vpop.f32.mrf.mxu1  ;;  %v25372_v2 = vpop.f32.mrf.mxu0 }
 0x673   :  { %27208 = vst [vmem:[#allocation17_spill] sm:$0xff] %v25370_v16  ;;  %v12580_v4 = vadd.f32 %v12569_v19, %v12011_v32 }
 0x676   :  { %v12575_v33 = vpop.f32.mrf.mxu1  ;;  %v12679_v30 = vpop.f32.mrf.mxu0 }
 0x677   :  { %v12576_v10 = vadd.f32 %v12575_v33, %v12493_v17 }
 0x678   :  { %v25374_v8 = vpop.f32.mrf.mxu1  ;;  %v25376_v23 = vpop.f32.mrf.mxu0 }
 0x679   :  { %27209 = vst [vmem:[#allocation24_spill] sm:$0xff] %v25374_v8  ;;  %v12582_v59 = vadd.f32 %v12576_v10, %v12013_v27 }
 0x67a   :  { %v12771_v7 = vpop.f32.mrf.mxu1  ;;  %v12859_v38 = vpop.f32.mrf.mxu0 }
 0x67b   :  { %v12772_v37 = vadd.f32 %v12771_v7, %v12668_v18 }
 0x67c   :  { %v25378_v14 = vpop.f32.mrf.mxu1  ;;  %v25380_v55 = vpop.f32.mrf.mxu0 }
 0x67d   :  { %v12860_v41 = vadd.f32 %v12859_v38, %v12772_v37 }
 0x680   :  { %v12778_v28 = vpop.f32.mrf.mxu1  ;;  %v12867_v16 = vpop.f32.mrf.mxu0 }
 0x681   :  { %v12779_v26 = vadd.f32 %v12778_v28, %v12679_v30 }
 0x682   :  { %v25382_v19 = vpop.f32.mrf.mxu1  ;;  %v25384_v32 = vpop.f32.mrf.mxu0 }
 0x683   :  { %27210 = vst [vmem:[#allocation21_spill] sm:$0xff] %v25384_v32  ;;  %v12868_v17 = vadd.f32 %v12867_v16, %v12779_v26 }
 0x684   :  { %v12945_v33 = vpop.f32.mrf.mxu1  ;;  %v13038_v8 = vpop.f32.mrf.mxu0 }
 0x685   :  { %v12946_v25 = vadd.f32 %v12945_v33, %v12860_v41 }
 0x686   :  { %v25386_v10 = vpop.f32.mrf.mxu1  ;;  %v25388_v27 = vpop.f32.mrf.mxu0 }
 0x687   :  { %27211 = vst [vmem:[#allocation32_spill] sm:$0xff] %v25386_v10  ;;  %27212 = vst [vmem:[#allocation33_spill] sm:$0xff] %v25388_v27  ;;  %v13039_v18 = vadd.f32 %v13038_v8, %v12946_v25 }
 0x68a   :  { %v12954_v7 = vpop.f32.mrf.mxu1  ;;  %v13045_v42 = vpop.f32.mrf.mxu0 }
 0x68b   :  { %v12955_v50 = vadd.f32 %v12954_v7, %v12868_v17 }
 0x68c   :  { %v25390_v38 = vpop.f32.mrf.mxu1  ;;  %v25392_v37 = vpop.f32.mrf.mxu0 }
 0x68d   :  { %27213 = vst [vmem:[#allocation15_spill] sm:$0xff] %v25390_v38  ;;  %27214 = vst [vmem:[#allocation22_spill] sm:$0xff] %v25392_v37  ;;  %v13046_v30 = vadd.f32 %v13045_v42, %v12955_v50 }
 0x68e   :  { %v13121_v28 = vpop.f32.mrf.mxu1  ;;  %v13237_v13 = vpop.f32.mrf.mxu0 }
 0x68f   :  { %v13122_v36 = vadd.f32 %v13121_v28, %v13039_v18 }
 0x690   :  { %v25394_v26 = vpop.f32.mrf.mxu1  ;;  %v25396_v16 = vpop.f32.mrf.mxu0 }
 0x691   :  { %27215 = vst [vmem:[#allocation23_spill] sm:$0xff] %v25394_v26  ;;  %v13133_v41 = vadd.f32 %v13122_v36, %v12580_v4 }
 0x694   :  { %v13128_v33 = vpop.f32.mrf.mxu1  ;;  %v13248_v10 = vpop.f32.mrf.mxu0 }
 0x695   :  { %v13129_v27 = vadd.f32 %v13128_v33, %v13046_v30 }
 0x696   :  { %v25398_v25 = vpop.f32.mrf.mxu1  ;;  %v25400_v8 = vpop.f32.mrf.mxu0 }
 0x697   :  { %27216 = vst [vmem:[#allocation34_spill] sm:$0xff] %v25398_v25  ;;  %27217 = vst [vmem:[#allocation44_spill] sm:$0xff] %v25400_v8  ;;  %v13135_v17 = vadd.f32 %v13129_v27, %v12582_v59 }
 0x698   :  { %v13340_v7 = vpop.f32.mrf.mxu1  ;;  %v13428_v38 = vpop.f32.mrf.mxu0 }
 0x699   :  { %v13341_v37 = vadd.f32 %v13340_v7, %v13237_v13 }
 0x69a   :  { %v25402_v50 = vpop.f32.mrf.mxu1  ;;  %v25404_v42 = vpop.f32.mrf.mxu0 }
 0x69b   :  { %27218 = vst [vmem:[#allocation36_spill] sm:$0xff] %v25404_v42  ;;  %v13429_v18 = vadd.f32 %v13428_v38, %v13341_v37 }
 0x69e   :  { %v13347_v28 = vpop.f32.mrf.mxu1  ;;  %v13436_v26 = vpop.f32.mrf.mxu0 }
 0x69f   :  { %v13348_v61 = vadd.f32 %v13347_v28, %v13248_v10 }
 0x6a0   :  { %v25406_v36 = vpop.f32.mrf.mxu1  ;;  %v25408_v4 = vpop.f32.mrf.mxu0 }
 0x6a1   :  { %27219 = vst [vmem:[#allocation54_spill] sm:$0xff] %v25406_v36  ;;  %v13437_v30 = vadd.f32 %v13436_v26, %v13348_v61 }
 0x6a2   :  { %v13514_v33 = vpop.f32.mrf.mxu1  ;;  %v13607_v25 = vpop.f32.mrf.mxu0 }
 0x6a3   :  { %v13515_v8 = vadd.f32 %v13514_v33, %v13429_v18 }
 0x6a4   :  { %v25410_v59 = vpop.f32.mrf.mxu1  ;;  %v25412_v27 = vpop.f32.mrf.mxu0 }
 0x6a5   :  { %27220 = vst [vmem:[#allocation42_spill] sm:$0xff] %v25412_v27  ;;  %v13608_v13 = vadd.f32 %v13607_v25, %v13515_v8 }
 0x6a8   :  { %v13523_v7 = vpop.f32.mrf.mxu1  ;;  %v13614_v32 = vpop.f32.mrf.mxu0 }
 0x6a9   :  { %v13524_v42 = vadd.f32 %v13523_v7, %v13437_v30 }
 0x6aa   :  { %v25414_v38 = vpop.f32.mrf.mxu1  ;;  %v25416_v37 = vpop.f32.mrf.mxu0 }
 0x6ab   :  { %27221 = vst [vmem:[#allocation55_spill] sm:$0xff] %v25416_v37  ;;  %v13615_v10 = vadd.f32 %v13614_v32, %v13524_v42 }
 0x6ac   :  { %v13690_v28 = vpop.f32.mrf.mxu1  ;;  %v25418_v36 = vpop.f32.mrf.mxu0 }
 0x6ad   :  { %v13691_v61 = vadd.f32 %v13690_v28, %v13608_v13 }
 0x6ae   :  { %v25420_v26 = vpop.f32.mrf.mxu1  ;;  %v25422_v18 = vpop.f32.mrf.mxu0 }
 0x6af   :  { %v25424_v33 = vadd.f32 %v13691_v61, %v13133_v41 }
 0x6b1   :  { %27222 = vst [vmem:[#allocation35_spill] sm:$0xff] %v25424_v33 }
 0x6b2   :  { %v13697_v27 = vpop.f32.mrf.mxu1  ;;  %v25426_v25 = vpop.f32.mrf.mxu0 }
 0x6b3   :  { %v13698_v8 = vadd.f32 %v13697_v27, %v13615_v10 }
 0x6b4   :  { %v25428_v30 = vpop.f32.mrf.mxu1  ;;  %v25430_v7 = vpop.f32.mrf.mxu0 }
 0x6b5   :  { %27223 = vst [vmem:[#allocation53_spill] sm:$0xff] %v25428_v30  ;;  %27224 = vst [vmem:[#allocation61_spill] sm:$0xff] %v25430_v7  ;;  %v25432_v37 = vadd.f32 %v13698_v8, %v13135_v17 }
 0x6b6   :  { %v25434_v32 = vpop.f32.mrf.mxu1  ;;  %v25436_v42 = vpop.f32.mrf.mxu0 }
 0x6b7   :  { %27225 = vst [vmem:[#allocation43_spill] sm:$0xff] %v25432_v37  ;;  %27226 = vst [vmem:[#allocation59_spill] sm:$0xff] %v25436_v42 }
 0x6b8   :  { %v25438_v13 = vpop.f32.mrf.mxu1  ;;  %v25440_v28 = vpop.f32.mrf.mxu0 }
 0x6b9   :  { %27227 = vst [vmem:[#allocation37_spill] sm:$0xff] %v25440_v28 }
 0x6bc   :  { %v25442_v41 = vpop.f32.mrf.mxu1  ;;  %v25444_v61 = vpop.f32.mrf.mxu0 }
 0x6bd   :  { %27228 = vst [vmem:[#allocation45_spill] sm:$0xff] %v25444_v61 }
 0x6be   :  { %v25446_v33 = vpop.f32.mrf.mxu1  ;;  %v25448_v27 = vpop.f32.mrf.mxu0 }
 0x6bf   :  { %27229 = vst [vmem:[#allocation49_spill] sm:$0xff] %v25446_v33  ;;  %27230 = vst [vmem:[#allocation38_spill] sm:$0xff] %v25448_v27 }
 0x6c0   :  { %v25450_v10 = vpop.f32.mrf.mxu1  ;;  %v25452_v17 = vpop.f32.mrf.mxu0 }
 0x6c1   :  { %27231 = vst [vmem:[#allocation39_spill] sm:$0xff] %v25450_v10  ;;  %27232 = vst [vmem:[#allocation40_spill] sm:$0xff] %v25452_v17 }
 0x6c2   :  { %v25454_v8 = vpop.f32.mrf.mxu1  ;;  %v25456_v37 = vpop.f32.mrf.mxu0 }
 0x6c3   :  { %27233 = vst [vmem:[#allocation46_spill] sm:$0xff] %v25454_v8  ;;  %27234 = vst [vmem:[#allocation62_spill] sm:$0xff] %v25456_v37  ;;  %v10541_v37 = vadd.f32 %v25087_v35, %v25043_v1 }
 0x6c6   :  { %v25458_v30 = vpop.f32.mrf.mxu1  ;;  %v25460_v42 = vpop.f32.mrf.mxu0 }
 0x6c7   :  { %27235 = vst [vmem:[#allocation47_spill] sm:$0xff] %v25458_v30  ;;  %27236 = vst [vmem:[#allocation60_spill] sm:$0xff] %v25460_v42  ;;  %v10548_v42 = vadd.f32 %v25112_v51, %v25070_v43 }
 0x6c8   :  { %v25462_v28 = vpop.f32.mrf.mxu1  ;;  %v25464_v7 = vpop.f32.mrf.mxu0 }
 0x6c9   :  { %27237 = vst [vmem:[#allocation51_spill] sm:$0xff] %v25462_v28  ;;  %27238 = vst [vmem:[#allocation48_spill] sm:$0xff] %v25464_v7 }
 0x6ca   :  { %v25466_v61 = vpop.f32.mrf.mxu1  ;;  %v25468_v33 = vpop.f32.mrf.mxu0 }
 0x6cb   :  { %27239 = vst [vmem:[#allocation50_spill] sm:$0xff] %v25466_v61 }
 0x6cc   :  { %v25470_v27 = vpop.f32.mrf.mxu1  ;;  %v25472_v10 = vpop.f32.mrf.mxu0 }
 0x6cd   :  { %27240 = vst [vmem:[#allocation56_spill] sm:$0xff] %v25470_v27  ;;  %27241 = vst [vmem:[#allocation52_spill] sm:$0xff] %v25472_v10  ;;  %v10629_v27 = vadd.f32 %v25089_v40, %v10541_v37 }
 0x6cf   :  { %v10715_v1 = vadd.f32 %v25127_v39, %v10629_v27 }
 0x6d0   :  { %v25474_v17 = vpop.f32.mrf.mxu1  ;;  %v25476_v8 = vpop.f32.mrf.mxu0 }
 0x6d1   :  { %27242 = vst [vmem:[#allocation58_spill] sm:$0xff] %v25474_v17  ;;  %27243 = vst [vmem:[#allocation57_spill] sm:$0xff] %v25476_v8  ;;  %v10637_v17 = vadd.f32 %v25114_v60, %v10548_v42 }
 0x6d2   :  { %v25482_v28 = vpop.f32.mrf.mxu1  ;;  %v25484_v7 = vpop.f32.mrf.mxu0 }
 0x6d3   :  { %27244 = vst [vmem:[#allocation41_spill] sm:$0xff] %v25482_v28  ;;  %27245 = vst [vmem:[#allocation63_spill] sm:$0xff] %v25484_v7  ;;  %v10724_v43 = vadd.f32 %v25159_v5, %v10637_v17  ;;  %v10808_v28 = vadd.f32 %v25129_v29, %v10715_v1  ;;  %v11652_v1 = vadd.f32 %v25325_v62, %v25302_v11 }
 0x6d4   :  { %v25486_v61 = vpop.f32.mrf.mxu1  ;;  %v25488_v30 = vpop.f32.mrf.mxu0 }
 0x6d5   :  { %27246 = vst [vmem:[#allocation64_spill] sm:$0xff] %v25488_v30  ;;  %v10815_v30 = vadd.f32 %v25161_v52, %v10724_v43  ;;  %v10891_v60 = vadd.f32 %v25188_v44, %v10808_v28  ;;  %v11659_v44 = vadd.f32 %v25332_v9, %v25315_v47  ;;  %v12221_v43 = vadd.f32 %v25354_v3, %v25348_v24 }
 0x6d6   :  { %v25492_v10 = vpop.f32.mrf.mxu1  ;;  %v25494_v8 = vpop.f32.mrf.mxu0  ;;  %v11740_v47 = vadd.f32 %v25327_v48, %v11652_v1  ;;  %v12774_v9 = vadd.f32 %v25378_v14, %v25372_v2  ;;  %v12781_v24 = vadd.f32 %v25382_v19, %v25376_v23  ;;  %v13343_v2 = vadd.f32 %v25402_v50, %v25396_v16  ;;  %v27251_v50 = vld [vmem:[#allocation32_spill] sm:$0xff] }
 0x6d7   :  { %v10898_v37 = vadd.f32 %v25222_v58, %v10815_v30  ;;  %v10984_v29 = vadd.f32 %v25190_v0, %v10891_v60  ;;  %v12228_v0 = vadd.f32 %v25358_v12, %v25352_v6 }
 0x6d9   :  { %v10995_v52 = vadd.f32 %v25224_v31, %v10898_v37  ;;  %v11087_v17 = vadd.f32 %v25241_v53, %v10984_v29 }
 0x6da   :  { %v25498_v35 = vpop.f32.mrf.mxu1  ;;  %v25500_v51 = vpop.f32.mrf.mxu0 }
 0x6db   :  { %v11094_v58 = vadd.f32 %v25264_v56, %v10995_v52  ;;  %v11175_v11 = vadd.f32 %v25243_v20, %v11087_v17  ;;  %v11748_v56 = vadd.f32 %v25334_v45, %v11659_v44  ;;  %v11826_v20 = vadd.f32 %v25338_v46, %v11740_v47  ;;  %v27250_v17 = vld [vmem:[#allocation18_spill] sm:$0xff]  ;;  %v27252_v44 = vld [vmem:[#allocation15_spill] sm:$0xff] }
 0x6dc   :  { %v25504_v7 = vpop.f32.mrf.mxu1  ;;  %v25506_v40 = vpop.f32.mrf.mxu0  ;;  %v12309_v45 = vadd.f32 %v25356_v22, %v12221_v43  ;;  %v12862_v46 = vadd.f32 %v25380_v55, %v12774_v9  ;;  %v27248_v22 = vld [vmem:[#allocation14_spill] sm:$0xff]  ;;  %v27253_v43 = vld [vmem:[#allocation36_spill] sm:$0xff]  ;;  %v27256_v47 = vld [vmem:[#allocation31_spill] sm:$0xff] }
 0x6dd   :  { %v11183_v62 = vadd.f32 %v25266_v34, %v11094_v58  ;;  %v11261_v12 = vadd.f32 %v25273_v63, %v11175_v11  ;;  %v11835_v48 = vadd.f32 %v25342_v49, %v11748_v56  ;;  %v12317_v34 = vadd.f32 %v25360_v15, %v12228_v0  ;;  %v27247_v49 = vld [vmem:[#allocation21_spill] sm:$0xff]  ;;  %v27249_v15 = vld [vmem:[#allocation20_spill] sm:$0xff] }
 0x6de   :  { %v25510_v42 = vpop.f32.mrf.mxu1  ;;  %v25512_v39 = vpop.f32.mrf.mxu0  ;;  %v12395_v60 = vadd.f32 %v25362_v54, %v12309_v45  ;;  %v12870_v37 = vadd.f32 %v27247_v49, %v12781_v24  ;;  %v11919_v52 = vadd.f32 %v27249_v15, %v11826_v20  ;;  %v12948_v1 = vadd.f32 %v27251_v50, %v12862_v46  ;;  %v27254_v0 = vld [vmem:[#allocation44_spill] sm:$0xff]  ;;  %v27255_v54 = vld [vmem:[#allocation54_spill] sm:$0xff]  ;;  %v27259_v20 = vld [vmem:[#allocation25_spill] sm:$0xff] }
 0x6df   :  { %v11270_v19 = vadd.f32 %v25285_v57, %v11183_v62  ;;  %v12404_v63 = vadd.f32 %v25366_v21, %v12317_v34  ;;  %v11354_v29 = vadd.f32 %v27248_v22, %v11261_v12  ;;  %v11926_v16 = vadd.f32 %v27250_v17, %v11835_v48  ;;  %v27257_v62 = vld [vmem:[#allocation19_spill] sm:$0xff]  ;;  %v27258_v24 = vld [vmem:[#allocation28_spill] sm:$0xff]  ;;  %v27260_v45 = vld [vmem:[#allocation29_spill] sm:$0xff] }
 0x6e0   :  { %v25514_v5 = vpop.f32.mrf.mxu1  ;;  %v25516_v27 = vpop.f32.mrf.mxu0  ;;  %v12957_v58 = vadd.f32 %v27252_v44, %v12870_v37  ;;  %v13431_v57 = vadd.f32 %v27253_v43, %v13343_v2  ;;  %v13350_v11 = vadd.f32 %v27255_v54, %v27254_v0  ;;  %v12002_v9 = vadd.f32 %v27257_v62, %v11919_v52  ;;  %v27261_v37 = vld [vmem:[#allocation16_spill] sm:$0xff]  ;;  %v27262_v15 = vld [vmem:[#allocation13_spill] sm:$0xff] }
 0x6e1   :  { %v11361_v56 = vadd.f32 %v27256_v47, %v11270_v19  ;;  %v12009_v12 = vadd.f32 %v27258_v24, %v11926_v16  ;;  %v12488_v48 = vadd.f32 %v27259_v20, %v12395_v60  ;;  %v12495_v34 = vadd.f32 %v27260_v45, %v12404_v63  ;;  %v27263_v50 = vld [vmem:[#allocation17_spill] sm:$0xff]  ;;  %v27264_v19 = vld [vmem:[#allocation24_spill] sm:$0xff]  ;;  %v27266_v16 = vld [vmem:[#allocation22_spill] sm:$0xff] }
 0x6e2   :  { %v13517_v46 = vadd.f32 %v25410_v59, %v13431_v57  ;;  %v11437_v22 = vadd.f32 %v27261_v37, %v11354_v29  ;;  %v27265_v52 = vld [vmem:[#allocation33_spill] sm:$0xff]  ;;  %v13048_v54 = vadd.f32 %v27266_v16, %v12957_v58  ;;  %v13439_v60 = vadd.f32 %v25408_v4, %v13350_v11  ;;  %v27267_v29 = vld [vmem:[#allocation23_spill] sm:$0xff] }
 0x6e3   :  { %v11444_v17 = vadd.f32 %v27262_v15, %v11361_v56  ;;  %v12571_v44 = vadd.f32 %v27263_v50, %v12488_v48  ;;  %v12578_v43 = vadd.f32 %v27264_v19, %v12495_v34  ;;  %v13041_v0 = vadd.f32 %v27265_v52, %v12948_v1  ;;  %v27268_v56 = vld [vmem:[#allocation34_spill] sm:$0xff]  ;;  %v27272_v15 = vld [vmem:[#allocation59_spill] sm:$0xff] }
 0x6e4   :  { %v25526_v30 = vpop.f32.mrf.mxu1  ;;  %v25528_v28 = vpop.f32.mrf.mxu0  ;;  %v12012_v59 = vadd.f32 %v12002_v9, %v11437_v22  ;;  %v13910_v62 = vadd.f32 %v25434_v32, %v25418_v36  ;;  %v13131_v20 = vadd.f32 %v27268_v56, %v13048_v54  ;;  %v27269_v48 = vld [vmem:[#allocation42_spill] sm:$0xff]  ;;  %v13526_v34 = vadd.f32 %v25414_v38, %v13439_v60  ;;  %v27270_v32 = vld [vmem:[#allocation61_spill] sm:$0xff]  ;;  %v27278_v54 = vld [vmem:[#allocation39_spill] sm:$0xff] }
 0x6e5   :  { %v12014_v57 = vadd.f32 %v12009_v12, %v11444_v17  ;;  %v13124_v24 = vadd.f32 %v27267_v29, %v13041_v0  ;;  %v13610_v45 = vadd.f32 %v27269_v48, %v13517_v46  ;;  %v13912_v4 = vadd.f32 %v25438_v13, %v25422_v18  ;;  %v27271_v12 = vld [vmem:[#allocation49_spill] sm:$0xff]  ;;  %v27273_v17 = vld [vmem:[#allocation52_spill] sm:$0xff] }
 0x6e6   :  { %v25534_v31 = vpop.f32.mrf.mxu1  ;;  %v25536_v53 = vpop.f32.mrf.mxu0  ;;  %v12581_v58 = vadd.f32 %v12571_v44, %v12012_v59  ;;  %v13917_v11 = vadd.f32 %v25442_v41, %v25426_v25  ;;  %v13919_v22 = vadd.f32 %v27271_v12, %v27270_v32  ;;  %v14479_v46 = vadd.f32 %v25486_v61, %v25468_v33  ;;  %v27274_v44 = vld [vmem:[#allocation57_spill] sm:$0xff]  ;;  %v27275_v41 = vld [vmem:[#allocation55_spill] sm:$0xff] }
 0x6e7   :  { %v12583_v9 = vadd.f32 %v12578_v43, %v12014_v57  ;;  %v13693_v36 = vadd.f32 %v25420_v26, %v13610_v45  ;;  %v13998_v38 = vadd.f32 %v27272_v15, %v13910_v62  ;;  %v14481_v50 = vadd.f32 %v25492_v10, %v27273_v17  ;;  %v27276_v0 = vld [vmem:[#allocation37_spill] sm:$0xff]  ;;  %v27279_v59 = vld [vmem:[#allocation63_spill] sm:$0xff]  ;;  %v27280_v62 = vld [vmem:[#allocation38_spill] sm:$0xff] }
 0x6e8   :  { %v25546_v3 = vpop.f32.mrf.mxu1  ;;  %v25548_v6 = vpop.f32.mrf.mxu0  ;;  %v14486_v18 = vadd.f32 %v25498_v35, %v27274_v44  ;;  %v13134_v19 = vadd.f32 %v13124_v24, %v12581_v58  ;;  %v13617_v26 = vadd.f32 %v27275_v41, %v13526_v34  ;;  %v14000_v16 = vadd.f32 %v27276_v0, %v13912_v4  ;;  %v27277_v33 = vld [vmem:[#allocation45_spill] sm:$0xff]  ;;  %v27281_v24 = vld [vmem:[#allocation64_spill] sm:$0xff]  ;;  %v27283_v45 = vld [vmem:[#allocation47_spill] sm:$0xff] }
 0x6e9   :  { %v25611_v25 = vadd.f32 %v13131_v20, %v12583_v9  ;;  %v14006_v61 = vadd.f32 %v27277_v33, %v13917_v11  ;;  %v14084_v60 = vadd.f32 %v27278_v54, %v13998_v38  ;;  %v14488_v10 = vadd.f32 %v25504_v7, %v27279_v59  ;;  %v27284_v9 = vld [vmem:[#allocation51_spill] sm:$0xff]  ;;  %v27287_v41 = vld [vmem:[#allocation62_spill] sm:$0xff] }
 0x6ea   :  { %v25557_v14 = vpop.f32.mrf.mxu1  ;;  %v25559_v23 = vpop.f32.mrf.mxu0  ;;  %v13703_v35 = vadd.f32 %v13693_v36, %v13134_v19  ;;  %v14008_v29 = vadd.f32 %v27280_v62, %v13919_v22  ;;  %v14567_v56 = vadd.f32 %v27281_v24, %v14479_v46  ;;  %v14569_v58 = vadd.f32 %v25494_v8, %v14481_v50  ;;  %v27285_v46 = vld [vmem:[#allocation40_spill] sm:$0xff]  ;;  %v27286_v8 = vld [vmem:[#allocation53_spill] sm:$0xff] }
 0x6eb   :  { %v14093_v34 = vadd.f32 %v27283_v45, %v14006_v61  ;;  %v14575_v4 = vadd.f32 %v25500_v51, %v14486_v18  ;;  %v14177_v15 = vadd.f32 %v27285_v46, %v14084_v60  ;;  %v13700_v50 = vadd.f32 %v27286_v8, %v13617_v26  ;;  %v27291_v26 = vld [vmem:[#allocation56_spill] sm:$0xff] }
 0x6ec   :  { %v14095_v7 = vadd.f32 %v27284_v9, %v14008_v29  ;;  %v14653_v36 = vadd.f32 %v25510_v42, %v14567_v56  ;;  %v27293_v56 = vld [vmem:[#allocation35_spill] sm:$0xff] }
 0x6ed   :  { %v14662_v38 = vadd.f32 %v25526_v30, %v14575_v4  ;;  %v13705_v4 = vadd.f32 %v13700_v50, %v25611_v25 }
 0x6ee   :  { %v25574_v21 = vpop.f32.mrf.mxu1  ;;  %v14955_v55 = vpop.f32.mrf.mxu0  ;;  %v14746_v30 = vadd.f32 %v25512_v39, %v14653_v36 }
 0x6ef   :  { %v14753_v59 = vadd.f32 %v25528_v28, %v14662_v38  ;;  %v15414_v38 = vstv %s20759_s12 }
 0x6f0   :  { %v25582_v49 = vpop.f32.mrf.mxu1  ;;  %v14957_v2 = vpop.f32.mrf.mxu0 }
 0x6f2   :  { %v15047_v63 = vpop.f32.mrf.mxu1  ;;  %v15135_v47 = vpop.f32.mrf.mxu0 }
 0x6f3   :  { %v15048_v43 = vadd.f32 %v15047_v63, %v25548_v6  ;;  %v27282_v6 = vld [vmem:[#allocation46_spill] sm:$0xff] }
 0x6f4   :  { %v15049_v1 = vpop.f32.mrf.mxu1  ;;  %v15137_v37 = vpop.f32.mrf.mxu0  ;;  %v14086_v63 = vadd.f32 %v27282_v6, %v14000_v16  ;;  %v27290_v16 = vld [vmem:[#allocation48_spill] sm:$0xff] }
 0x6f5   :  { %v15050_v20 = vadd.f32 %v15049_v1, %v25559_v23  ;;  %v15136_v32 = vadd.f32 %v15135_v47, %v15048_v43  ;;  %v14577_v23 = vadd.f32 %v25506_v40, %v14488_v10  ;;  %v14655_v1 = vadd.f32 %v25514_v5, %v14569_v58  ;;  %v27288_v47 = vld [vmem:[#allocation60_spill] sm:$0xff] }
 0x6f6   :  { %v14179_v42 = vadd.f32 %v27287_v41, %v14086_v63  ;;  %v14186_v5 = vadd.f32 %v27290_v16, %v14095_v7  ;;  %v27300_v16 = vld [vmem:[#allocation12_spill] sm:$0xff] }
 0x6f7   :  { %v15054_v13 = vpop.f32.mrf.mxu1  ;;  %v15138_v51 = vadd.f32 %v15137_v37, %v15050_v20  ;;  %v14664_v0 = vadd.f32 %v25534_v31, %v14577_v23  ;;  %v14748_v60 = vadd.f32 %v25516_v27, %v14655_v1  ;;  %v14829_v31 = vadd.f32 %v25546_v3, %v14746_v30  ;;  %v27302_v30 = vld [vmem:[#allocation30_spill] sm:$0xff] }
 0x6f8   :  { %v15143_v52 = vpop.f32.mrf.mxu0  ;;  %v15055_v12 = vadd.f32 %v15054_v13, %v14955_v55  ;;  %v14184_v55 = vadd.f32 %v27288_v47, %v14093_v34  ;;  %v27289_v13 = vld [vmem:[#allocation50_spill] sm:$0xff]  ;;  %v14262_v37 = vadd.f32 %v27291_v26, %v14179_v42  ;;  %v14836_v27 = vadd.f32 %v25574_v21, %v14753_v59  ;;  %v27296_v47 = vld [vmem:[#allocation27_spill] sm:$0xff] }
 0x6f9   :  { %v15056_v57 = vpop.f32.mrf.mxu1  ;;  %v14260_v43 = vadd.f32 %v27289_v13, %v14177_v15  ;;  %v14755_v6 = vadd.f32 %v25536_v53, %v14664_v0  ;;  %v14831_v63 = vadd.f32 %v25557_v14, %v14748_v60  ;;  %v27298_v0 = vld [vmem:[#allocation26_spill] sm:$0xff] }
 0x6fa   :  { %v15145_v48 = vpop.f32.mrf.mxu0  ;;  %v15057_v44 = vadd.f32 %v15056_v57, %v14957_v2  ;;  %v15144_v33 = vadd.f32 %v15143_v52, %v15055_v12  ;;  %v27292_v2 = vld [vmem:[#allocation58_spill] sm:$0xff]  ;;  %v27294_v52 = vld [vmem:[#allocation41_spill] sm:$0xff]  ;;  %v14272_v3 = vadd.f32 %v14262_v37, %v13703_v35 }
 0x6fb   :  { %v15221_v11 = vpop.f32.mrf.mxu1  ;;  %v14267_v54 = vadd.f32 %v27292_v2, %v14184_v55  ;;  %v14271_v39 = vadd.f32 %v14260_v43, %v27293_v56  ;;  %v14269_v20 = vadd.f32 %v27294_v52, %v14186_v5  ;;  %v20763_v2 = vld [vmem:[%s26965_s1 + $0x1c8] sm:$0xff] }
 0x6fc   :  { %v15314_v22 = vpop.f32.mrf.mxu0  ;;  %v15222_v18 = vadd.f32 %v15221_v11, %v15136_v32  ;;  %v15146_v62 = vadd.f32 %v15145_v48, %v15057_v44  ;;  %v27295_v48 = vld [vmem:[#allocation43_spill] sm:$0xff]  ;;  %v14838_v32 = vadd.f32 %v25582_v49, %v14755_v6  ;;  %v14841_v14 = vadd.f32 %v14831_v63, %v14272_v3 }
 0x6fd   :  { %v15223_v17 = vpop.f32.mrf.mxu1  ;;  %v14273_v11 = vadd.f32 %v14267_v54, %v27295_v48  ;;  %v14840_v36 = vadd.f32 %v14829_v31, %v14271_v39  ;;  %v15469_v54 = vsel %vm103_vm0, %v20763_v2, 0  ;;  %v20871_v39 = vld [vmem:[%s26966_s2 + $0x30] sm:$0xff] }
 0x6fe   :  { %v15316_v19 = vpop.f32.mrf.mxu0  ;;  %v15224_v61 = vadd.f32 %v15223_v17, %v15138_v51  ;;  %v15315_v29 = vadd.f32 %v15314_v22, %v15222_v18  ;;  %v14274_v22 = vadd.f32 %v14269_v20, %v13705_v4  ;;  %v25742_v59 = vand.u32 4294901760, %v15469_v54  ;;  %v20872_v20 = vld [vmem:[%s26966_s2 + $0x38] sm:$0xff] }
 0x6ff   :  { %v15230_v40 = vpop.f32.mrf.mxu1  ;;  %v14842_v15 = vadd.f32 %v14836_v27, %v14273_v11  ;;  %v20873_v11 = vld [vmem:[%s26966_s2 + $0x20] sm:$0xff] }
 0x700   :  { %v15321_v57 = vpop.f32.mrf.mxu0  ;;  %v15231_v24 = vadd.f32 %v15230_v40, %v15144_v33  ;;  %v15317_v28 = vadd.f32 %v15316_v19, %v15224_v61  ;;  %v14843_v25 = vadd.f32 %v14838_v32, %v14274_v22  ;;  %v20762_v61 = vld [vmem:[%s26965_s1 + $0x1c0] sm:$0xff]  ;;  %v25750_v56 = vsub.f32 %v15469_v54, %v25742_v59 }
 0x701   :  { %v15232_v10 = vpop.f32.mrf.mxu1  ;;  %v15466_v26 = vsel %vm103_vm0, %v20762_v61, 0 }
 0x702   :  { %v15233_v34 = vadd.f32 %v15232_v10, %v15146_v62  ;;  %v15323_v9 = vpop.f32.mrf.mxu0  ;;  %v15322_v12 = vadd.f32 %v15321_v57, %v15231_v24  ;;  %v25733_v37 = vand.u32 4294901760, %v15466_v26  ;;  %v15553_v3 = vand.u32 4294901760, %v25750_v56 }
 0x703   :  { %v15397_v45 = vpop.f32.mrf.mxu1 }
 0x704   :  { %v15398_v58 = vadd.f32 %v15397_v45, %v15315_v29  ;;  %v15324_v21 = vadd.f32 %v15323_v9, %v15233_v34  ;;  %v25740_v60 = vsub.f32 %v15466_v26, %v25733_v37 }
 0x705   :  { %v15399_v7 = vpop.f32.mrf.mxu1 }
 0x706   :  { %v15400_v53 = vadd.f32 %v15399_v7, %v15317_v28  ;;  %v15409_v23 = vadd.f32 %v15398_v58, %v14840_v36  ;;  %v15542_v57 = vand.u32 4294901760, %v25740_v60  ;;  %v20874_v7 = vld [vmem:[%s26966_s2 + $0x28] sm:$0xff] }
 0x707   :  { %v15404_v46 = vpop.f32.mrf.mxu1 }
 0x708   :  { %v15405_v1 = vadd.f32 %v15404_v46, %v15322_v12  ;;  %v15410_v35 = vadd.f32 %v15400_v53, %v14841_v14  ;;  %v15415_v51 = vadd.f32 %v15414_v38, %v15409_v23  ;;  %v15543_v63 = vsub.f32 %v25740_v60, %v15542_v57 }
 0x709   :  { %v15406_v17 = vpop.f32.mrf.mxu1 }
 0x70a   :  { %v15411_v8 = vadd.f32 %v15405_v1, %v14842_v15  ;;  %v15407_v50 = vadd.f32 %v15406_v17, %v15324_v21  ;;  %v15416_v19 = vadd.f32 %v15414_v38, %v15410_v35  ;;  %v15419_v42 = vmax.f32 %v15415_v51, 0.0 }
 0x70b   :  { %v15544_v12 = vand.u32 4294901760, %v15543_v63  ;;  %v15554_v21 = vsub.f32 %v25750_v56, %v15553_v3  ;;  %v27305_v51 = vmov 0.0   ;;  %v20878_v63 = vld [vmem:[%s26966_s2] sm:$0xff] }
 0x70c   :  { %v15417_v44 = vadd.f32 %v15414_v38, %v15411_v8  ;;  %v15412_v18 = vadd.f32 %v15407_v50, %v14843_v25  ;;  %v15420_v43 = vmax.f32 %v15416_v19, 0.0  ;;  %v25662_v5 = vadd.f32 %v15419_v42, %v27300_v16 }
 0x70e   :  { %v15421_v49 = vmax.f32 %v15417_v44, 0.0  ;;  %v15418_v41 = vadd.f32 %v15414_v38, %v15412_v18  ;;  %27301 = vst [vmem:[#allocation20_spill] sm:$0xff] %v25662_v5  ;;  %v25667_v33 = vadd.f32 %v15420_v43, %v27302_v30  ;;  %v15555_v18 = vand.u32 4294901760, %v15554_v21  ;;  %v20760_v43 = vld [vmem:[%s26965_s1 + $0x1b0] sm:$0xff] }
 0x70f   :  { %v16012_v54 = vsel %vm103_vm0, %v20760_v43, 0 }
 0x710   :  { %v25654_v55 = vadd.f32 %v15421_v49, %v27296_v47  ;;  %v15422_v13 = vmax.f32 %v15418_v41, 0.0  ;;  %27303 = vst [vmem:[#allocation18_spill] sm:$0xff] %v25667_v33  ;;  %v20875_v49 = vld [vmem:[%s26966_s2 + $0x18] sm:$0xff] }
 0x712   :  { %27297 = vst [vmem:[#allocation21_spill] sm:$0xff] %v25654_v55  ;;  %v25657_v40 = vadd.f32 %v15422_v13, %v27298_v0  ;;  %15448 = vrot.lane.b32.xlu0 %v25654_v55, %s20943_s9 }
 0x714   :  { %27299 = vst [vmem:[#allocation14_spill] sm:$0xff] %v25657_v40  ;;  %15452 = vrot.lane.b32.xlu1 %v25657_v40, %s20943_s9 }
 0x716   :  { %15446 = vrot.lane.b32.xlu0 %v25662_v5, %s20943_s9 }
 0x718   :  { %15450 = vrot.lane.b32.xlu1 %v25667_v33, %s20943_s9  ;;  %s20952_s9 = smov [#allocation7]  }
 0x71a   :  { %15429 = vrot.lane.b32.xlu0 %v25654_v55, %s20945_s14 }
 0x71c   :  { %15433 = vrot.lane.b32.xlu1 %v25657_v40, %s20945_s14 }
 0x71e   :  { %15427 = vrot.lane.b32.xlu0 %v25662_v5, %s20945_s14 }
 0x720   :  { %15431 = vrot.lane.b32.xlu1 %v25667_v33, %s20945_s14 }
 0x722   :  { %16559 = vrot.lane.b32.xlu0 %v25654_v55, %s20946_s0 }
 0x724   :  { %16563 = vrot.lane.b32.xlu1 %v25657_v40, %s20946_s0 }
 0x726   :  { %16557 = vrot.lane.b32.xlu0 %v25662_v5, %s20946_s0 }
 0x728   :  { %16561 = vrot.lane.b32.xlu1 %v25667_v33, %s20946_s0 }
 0x72a   :  { %17128 = vrot.lane.b32.xlu0 %v25654_v55, %s20947_s15 }
 0x72c   :  { %17132 = vrot.lane.b32.xlu1 %v25657_v40, %s20947_s15 }
 0x72e   :  { %17126 = vrot.lane.b32.xlu0 %v25662_v5, %s20947_s15 }
 0x730   :  { %17130 = vrot.lane.b32.xlu1 %v25667_v33, %s20947_s15 }
 0x732   :  { %18250 = vrot.lane.b32.xlu0 %v25654_v55, %s20948_s16 }
 0x734   :  { %18254 = vrot.lane.b32.xlu1 %v25657_v40, %s20948_s16 }
 0x736   :  { %18248 = vrot.lane.b32.xlu0 %v25662_v5, %s20948_s16 }
 0x738   :  { %18252 = vrot.lane.b32.xlu1 %v25667_v33, %s20948_s16 }
 0x73a   :  { %18819 = vrot.lane.b32.xlu0 %v25654_v55, %s20949_s17 }
 0x73c   :  { %18823 = vrot.lane.b32.xlu1 %v25657_v40, %s20949_s17 }
 0x73e   :  { %18817 = vrot.lane.b32.xlu0 %v25662_v5, %s20949_s17 }
 0x740   :  { %18821 = vrot.lane.b32.xlu1 %v25667_v33, %s20949_s17 }
 0x742   :  { %19388 = vrot.lane.b32.xlu0 %v25654_v55, %s20950_s18 }
 0x744   :  { %19392 = vrot.lane.b32.xlu1 %v25657_v40, %s20950_s18 }
 0x746   :  { %19386 = vrot.lane.b32.xlu0 %v25662_v5, %s20950_s18 }
 0x748   :  { %19390 = vrot.lane.b32.xlu1 %v25667_v33, %s20950_s18 }
 0x74a   :  { %19957 = vrot.lane.b32.xlu0 %v25654_v55, %s20951_s19 }
 0x74c   :  { %19961 = vrot.lane.b32.xlu1 %v25657_v40, %s20951_s19 }
 0x74e   :  { %19955 = vrot.lane.b32.xlu0 %v25662_v5, %s20951_s19 }
 0x750   :  { %19959 = vrot.lane.b32.xlu1 %v25667_v33, %s20951_s19 }
 0x784   :  { %v15449_v10 = vpop.permute.xlu0 %15448 }
 0x786   :  { %v15453_v31 = vpop.permute.xlu1 %15452 }
 0x787   :  { %v15455_v29 = vsel %vm86_vm1, %v15449_v10, %v15453_v31  ;;  %v15457_v24 = vsel %vm86_vm1, %v15453_v31, %v15449_v10  ;;  %v20876_v31 = vld [vmem:[%s26966_s2 + $0x10] sm:$0xff] }
 0x788   :  { %v15460_v52 = vmul.f32 %v20871_v39, %v15457_v24  ;;  %v15461_v6 = vmul.f32 %v20872_v20, %v15455_v29  ;;  %v15447_v28 = vpop.permute.xlu0 %15446  ;;  %v20877_v24 = vld [vmem:[%s26966_s2 + $0x8] sm:$0xff]  ;;  %v20761_v20 = vld [vmem:[%s26965_s1 + $0x1b8] sm:$0xff] }
 0x78a   :  { %v25761_v45 = vand.u32 4294901760, %v15461_v6  ;;  %v25763_v27 = vand.u32 4294901760, %v15460_v52  ;;  %v15451_v34 = vpop.permute.xlu1 %15450 }
 0x78b   :  { %v15454_v58 = vsel %vm86_vm1, %v15447_v28, %v15451_v34  ;;  %v15456_v4 = vsel %vm86_vm1, %v15451_v34, %v15447_v28 }
 0x78c   :  { %v25771_v48 = vsub.f32 %v15460_v52, %v25763_v27  ;;  %v15458_v9 = vmul.f32 %v20873_v11, %v15456_v4  ;;  %v15459_v36 = vmul.f32 %v20874_v7, %v15454_v58  ;;  %15500 = vmatprep.subr.mxu0 %v25761_v45  ;;  %v15591_v32 = vsub.f32 %v15461_v6, %v25761_v45  ;;  %v15430_v1 = vpop.permute.xlu0 %15429 }
 0x78d   :  { %15502 = vmatpush1.msra.mxu0 %v25763_v27  ;;  %v25823_v52 = vand.u32 4294901760, %v16012_v54  ;;  %v16015_v58 = vsel %vm103_vm0, %v20761_v20, 0 }
 0x78e   :  { %v15598_v53 = vand.u32 4294901760, %v25771_v48  ;;  %v25783_v22 = vand.u32 4294901760, %v15459_v36  ;;  %v25785_v14 = vand.u32 4294901760, %v15458_v9  ;;  %v15434_v46 = vpop.permute.xlu1 %15433  ;;  %v15592_v15 = vand.u32 4294901760, %v15591_v32 }
 0x78f   :  { %v15436_v17 = vsel %vm63_vm2, %v15430_v1, %v15434_v46  ;;  %v15438_v0 = vsel %vm63_vm2, %v15434_v46, %v15430_v1  ;;  %v25854_v7 = vand.u32 4294901760, %v16015_v58 }
 0x790   :  { %v15609_v23 = vsub.f32 %v15458_v9, %v25785_v14  ;;  %15504 = vmatprep.subr.mxu0 %v25783_v22  ;;  %v15593_v38 = vsub.f32 %v15591_v32, %v15592_v15  ;;  %v15603_v25 = vsub.f32 %v15459_v36, %v25783_v22  ;;  %v15599_v35 = vsub.f32 %v25771_v48, %v15598_v53  ;;  %v15428_v16 = vpop.permute.xlu0 %15427 }
 0x791   :  { %15506 = vmatpush1.msra.mxu0 %v25785_v14  ;;  %v15442_v41 = vmul.f32 %v20875_v49, %v15436_v17  ;;  %v15441_v29 = vmul.f32 %v20876_v31, %v15438_v0  ;;  %v20882_v31 = vld [vmem:[%s26966_s2 + $0x40] sm:$0xff] }
 0x792   :  { %v15610_v8 = vand.u32 4294901760, %v15609_v23  ;;  %15545 = vmatmul.mubr.f32.vlgmr.msra.gmra.mxu0 %v15544_v12  ;;  %15691 = vmatprep.subr.mxu0 %v15591_v32  ;;  %v15594_v50 = vand.u32 4294901760, %v15593_v38  ;;  %v15600_v44 = vand.u32 4294901760, %v15599_v35  ;;  %v15604_v19 = vand.u32 4294901760, %v15603_v25  ;;  %v15432_v42 = vpop.permute.xlu1 %15431 }
 0x793   :  { %15694 = vmatpush1.msra.mxu0 %v25771_v48  ;;  %15550 = vmatprep.mubr.f32.mxu0 %v27305_v51  ;;  %v25807_v26 = vand.u32 4294901760, %v15442_v41  ;;  %v15435_v2 = vsel %vm63_vm2, %v15428_v16, %v15432_v42  ;;  %v15437_v10 = vsel %vm63_vm2, %v15432_v42, %v15428_v16  ;;  %v25836_v34 = vand.u32 4294901760, %v15441_v29  ;;  %v20880_v16 = vld [vmem:[%s26966_s2 + $0x50] sm:$0xff] }
 0x794   :  { %15595 = vmatprep.subr.mxu1 %v15594_v50  ;;  %15697 = vmatprep.subr.mxu0 %v15603_v25  ;;  %v15605_v47 = vsub.f32 %v15603_v25, %v15604_v19  ;;  %v15611_v13 = vsub.f32 %v15609_v23, %v15610_v8  ;;  %v15440_v39 = vmul.f32 %v20877_v24, %v15435_v2 }
 0x795   :  { %15601 = vmatpush1.msra.mxu1 %v15600_v44  ;;  %15700 = vmatpush1.msra.mxu0 %v15609_v23  ;;  %v25829_v6 = vsub.f32 %v15442_v41, %v25807_v26  ;;  %v15439_v28 = vmul.f32 %v20878_v63, %v15437_v10  ;;  %v25845_v48 = vsub.f32 %v16012_v54, %v25823_v52  ;;  %v20765_v54 = vld [vmem:[%s26965_s1 + $0x1d8] sm:$0xff] }
 0x796   :  { %15556 = vmatmul.mubr.f32.gmra.mxu0 %v15555_v18  ;;  %15868 = vmatprep.subr.mxu0 %v15592_v15  ;;  %v15606_v30 = vand.u32 4294901760, %v15605_v47  ;;  %v15612_v61 = vand.u32 4294901760, %v15611_v13  ;;  %v25840_v4 = vand.u32 4294901760, %v15440_v39  ;;  %v25857_v36 = vsub.f32 %v15441_v29, %v25836_v34  ;;  %v16564_v38 = vpop.permute.xlu1 %16563  ;;  %v20879_v18 = vld [vmem:[%s26966_s2 + $0x58] sm:$0xff] }
 0x797   :  { %15733 = vmatprep.mubr.f32.mxu0 %v27305_v51  ;;  %v25847_v11 = vand.u32 4294901760, %v15439_v28  ;;  %v16138_v9 = vand.u32 4294901760, %v25829_v6  ;;  %v16088_v12 = vand.u32 4294901760, %v25845_v48 }
 0x798   :  { %15607 = vmatprep.subr.mxu1 %v15606_v30  ;;  %v25862_v32 = vsub.f32 %v15440_v39, %v25840_v4  ;;  %v16144_v15 = vand.u32 4294901760, %v25857_v36  ;;  %v20881_v30 = vld [vmem:[%s26966_s2 + $0x48] sm:$0xff]  ;;  %v16580_v39 = vsel %vm103_vm0, %v20765_v54, 0 }
 0x799   :  { %15613 = vmatpush1.msra.mxu1 %v15612_v61  ;;  %v16139_v46 = vsub.f32 %v25829_v6, %v16138_v9 }
 0x79a   :  { %15648 = vmatmul.mubr.f32.vlgmr.msra.gmra.mxu1 %v25733_v37  ;;  %15736 = vmatmul.mubr.f32.vlgmr.msra.gmra.mxu0 %v25740_v60  ;;  %v16089_v60 = vsub.f32 %v25845_v48, %v16088_v12  ;;  %v16562_v49 = vpop.permute.xlu1 %16561 }
 0x79b   :  { %15779 = vmatprep.subr.mxu1 %v25761_v45  ;;  %15872 = vmatpush1.msra.mxu0 %v15598_v53  ;;  %v25867_v53 = vsub.f32 %v15439_v28, %v25847_v11  ;;  %v16140_v23 = vand.u32 4294901760, %v16139_v46 }
 0x79c   :  { %15781 = vmatpush1.msra.mxu1 %v25763_v27  ;;  %15876 = vmatprep.subr.mxu0 %v15604_v19 }
 0x79d   :  { %15783 = vmatprep.subr.mxu1 %v25783_v22  ;;  %15880 = vmatpush1.msra.mxu0 %v15610_v8  ;;  %v16156_v21 = vand.u32 4294901760, %v25867_v53 }
 0x79e   :  { %15653 = vmatprep.mubr.f32.mxu1 %v27305_v51  ;;  %15741 = vmatprep.mubr.f32.mxu0 %v27305_v51 }
 0x79f   :  { %15785 = vmatpush1.msra.mxu1 %v25785_v14  ;;  %16046 = vmatprep.subr.mxu0 %v25807_v26  ;;  %v16157_v17 = vsub.f32 %v25867_v53, %v16156_v21 }
 0x7a0   :  { %15655 = vmatmul.mubr.f32.gmra.mxu1 %v25742_v59  ;;  %15744 = vmatmul.mubr.f32.gmra.mxu0 %v25750_v56 }
 0x7a1   :  { %15957 = vmatprep.subr.mxu1 %v25761_v45  ;;  %15818 = vmatprep.mubr.f32.mxu1 %v27305_v51  ;;  %v25874_v45 = vsub.f32 %v16015_v58, %v25854_v7  ;;  %v16158_v50 = vand.u32 4294901760, %v16157_v17  ;;  %v25981_v58 = vand.u32 4294901760, %v16580_v39 }
 0x7a2   :  { %15913 = vmatprep.mubr.f32.mxu0 %v27305_v51 }
 0x7a3   :  { %v26000_v46 = vsub.f32 %v16580_v39, %v25981_v58 }
 0x7a4   :  { %15822 = vmatmul.mubr.f32.vlgmr.msra.gmra.mxu1 %v15542_v57  ;;  %15915 = vmatmul.mubr.f32.vlgmr.msra.gmra.mxu0 %v25733_v37  ;;  %v16150_v57 = vand.u32 4294901760, %v25862_v32 }
 0x7a5   :  { %15959 = vmatpush1.msra.mxu1 %v25763_v27  ;;  %16048 = vmatpush1.msra.mxu0 %v25836_v34  ;;  %v16099_v27 = vand.u32 4294901760, %v25874_v45 }
 0x7a6   :  { %15961 = vmatprep.subr.mxu1 %v25783_v22  ;;  %16050 = vmatprep.subr.mxu0 %v25840_v4  ;;  %v16145_v22 = vsub.f32 %v25857_v36, %v16144_v15  ;;  %v16151_v1 = vsub.f32 %v25862_v32, %v16150_v57 }
 0x7a7   :  { %15963 = vmatpush1.msra.mxu1 %v25785_v14  ;;  %16052 = vmatpush1.msra.mxu0 %v25847_v11  ;;  %v16090_v14 = vand.u32 4294901760, %v16089_v60  ;;  %v16100_v56 = vsub.f32 %v25874_v45, %v16099_v27 }
 0x7a8   :  { %15827 = vmatprep.mubr.f32.mxu1 %v27305_v51  ;;  %15920 = vmatprep.mubr.f32.mxu0 %v27305_v51  ;;  %v16146_v25 = vand.u32 4294901760, %v16145_v22  ;;  %v16152_v8 = vand.u32 4294901760, %v16151_v1 }
 0x7a9   :  { %16141 = vmatprep.subr.mxu1 %v16140_v23  ;;  %16237 = vmatprep.subr.mxu0 %v25829_v6  ;;  %v16101_v44 = vand.u32 4294901760, %v16100_v56  ;;  %v17133_v23 = vpop.permute.xlu1 %17132 }
 0x7aa   :  { %15831 = vmatmul.mubr.f32.gmra.mxu1 %v15553_v3  ;;  %15922 = vmatmul.mubr.f32.gmra.mxu0 %v25742_v59  ;;  %v16560_v3 = vpop.permute.xlu0 %16559 }
 0x7ab   :  { %15996 = vmatprep.mubr.f32.mxu1 %v27305_v51  ;;  %16085 = vmatprep.mubr.f32.mxu0 %v27305_v51  ;;  %v16566_v35 = vsel %vm1204_vm3, %v16560_v3, %v16564_v38  ;;  %v16568_v41 = vsel %vm1204_vm3, %v16564_v38, %v16560_v3  ;;  %v20883_v3 = vld [vmem:[%s26966_s2 + $0x78] sm:$0xff] }
 0x7ac   :  { %v16572_v19 = vmul.f32 %v20879_v18, %v16566_v35 }
 0x7ad   :  { %v17131_v35 = vpop.permute.xlu1 %17130 }
 0x7ae   :  { %15998 = vmatmul.mubr.f32.vlgmr.msra.gmra.mxu1 %v25733_v37  ;;  %16091 = vmatmul.mubr.f32.vlgmr.msra.gmra.mxu0 %v16090_v14  ;;  %v20764_v37 = vld [vmem:[%s26965_s1 + $0x1d0] sm:$0xff]  ;;  %v16558_v42 = vpop.permute.xlu0 %16557  ;;  %v25927_v47 = vand.u32 4294901760, %v16572_v19 }
 0x7af   :  { %16147 = vmatpush1.msra.mxu1 %v16146_v25  ;;  %16240 = vmatpush1.msra.mxu0 %v25857_v36  ;;  %v16565_v13 = vsel %vm1204_vm3, %v16558_v42, %v16562_v49  ;;  %v16577_v43 = vsel %vm103_vm0, %v20764_v37, 0  ;;  %v16567_v0 = vsel %vm1204_vm3, %v16562_v49, %v16558_v42  ;;  %v20884_v37 = vld [vmem:[%s26966_s2 + $0x70] sm:$0xff] }
 0x7b0   :  { %16153 = vmatprep.subr.mxu1 %v16152_v8  ;;  %16243 = vmatprep.subr.mxu0 %v25862_v32  ;;  %v16570_v61 = vmul.f32 %v20881_v30, %v16565_v13  ;;  %v25944_v2 = vand.u32 4294901760, %v16577_v43  ;;  %v25950_v10 = vsub.f32 %v16572_v19, %v25927_v47  ;;  %v16569_v29 = vmul.f32 %v20882_v31, %v16567_v0 }
 0x7b1   :  { %16159 = vmatpush1.msra.mxu1 %v16158_v50  ;;  %16246 = vmatpush1.msra.mxu0 %v25867_v53 }
 0x7b2   :  { %16003 = vmatprep.mubr.f32.mxu1 %v27305_v51  ;;  %16096 = vmatprep.mubr.f32.mxu0 %v27305_v51  ;;  %v25967_v20 = vand.u32 4294901760, %v16570_v61  ;;  %v25972_v6 = vsub.f32 %v16577_v43, %v25944_v2  ;;  %v25974_v63 = vand.u32 4294901760, %v16569_v29  ;;  %v16703_v28 = vand.u32 4294901760, %v25950_v10  ;;  %v20767_v43 = vld [vmem:[%s26965_s1 + $0x1e8] sm:$0xff] }
 0x7b3   :  { %16325 = vmatprep.subr.mxu1 %v25807_v26  ;;  %16414 = vmatprep.subr.mxu0 %v16138_v9 }
 0x7b4   :  { %16005 = vmatmul.mubr.f32.gmra.mxu1 %v25742_v59  ;;  %16102 = vmatmul.mubr.f32.gmra.mxu0 %v16101_v44  ;;  %v16571_v59 = vmul.f32 %v20880_v16, %v16568_v41  ;;  %v25989_v36 = vsub.f32 %v16570_v61, %v25967_v20  ;;  %v25993_v32 = vsub.f32 %v16569_v29, %v25974_v63  ;;  %v20885_v41 = vld [vmem:[%s26966_s2 + $0x68] sm:$0xff]  ;;  %v20886_v16 = vld [vmem:[%s26966_s2 + $0x60] sm:$0xff]  ;;  %v17149_v61 = vsel %vm103_vm0, %v20767_v43, 0 }
 0x7b5   :  { %16192 = vmatprep.mubr.f32.mxu1 %v27305_v51  ;;  %16279 = vmatprep.mubr.f32.mxu0 %v27305_v51  ;;  %v16704_v53 = vsub.f32 %v25950_v10, %v16703_v28  ;;  %v26107_v39 = vand.u32 4294901760, %v17149_v61 }
 0x7b6   :  { %v25961_v24 = vand.u32 4294901760, %v16571_v59  ;;  %v16721_v60 = vand.u32 4294901760, %v25993_v32 }
 0x7b8   :  { %16194 = vmatmul.mubr.f32.vlgmr.msra.gmra.mxu1 %v25823_v52  ;;  %16282 = vmatmul.mubr.f32.vlgmr.msra.gmra.mxu0 %v25845_v48  ;;  %v25984_v9 = vsub.f32 %v16571_v59, %v25961_v24  ;;  %v16722_v22 = vsub.f32 %v25993_v32, %v16721_v60 }
 0x7b9   :  { %16327 = vmatpush1.msra.mxu1 %v25836_v34  ;;  %16418 = vmatpush1.msra.mxu0 %v16144_v15 }
 0x7ba   :  { %16329 = vmatprep.subr.mxu1 %v25840_v4  ;;  %16422 = vmatprep.subr.mxu0 %v16150_v57  ;;  %v16709_v15 = vand.u32 4294901760, %v25984_v9  ;;  %v16705_v57 = vand.u32 4294901760, %v16704_v53  ;;  %v16723_v17 = vand.u32 4294901760, %v16722_v22  ;;  %v26126_v53 = vsub.f32 %v17149_v61, %v26107_v39 }
 0x7bb   :  { %16331 = vmatpush1.msra.mxu1 %v25847_v11  ;;  %16426 = vmatpush1.msra.mxu0 %v16156_v21 }
 0x7bc   :  { %16199 = vmatprep.mubr.f32.mxu1 %v27305_v51  ;;  %16287 = vmatprep.mubr.f32.mxu0 %v27305_v51 }
 0x7bd   :  { %16503 = vmatprep.subr.mxu1 %v25807_v26  ;;  %16611 = vmatprep.subr.mxu0 %v25927_v47  ;;  %v16653_v26 = vand.u32 4294901760, %v25972_v6 }
 0x7be   :  { %16201 = vmatmul.mubr.f32.gmra.mxu1 %v25854_v7  ;;  %16290 = vmatmul.mubr.f32.gmra.mxu0 %v25874_v45 }
 0x7bf   :  { %16364 = vmatprep.mubr.f32.mxu1 %v27305_v51  ;;  %16459 = vmatprep.mubr.f32.mxu0 %v27305_v51  ;;  %v16654_v48 = vsub.f32 %v25972_v6, %v16653_v26 }
 0x7c2   :  { %16368 = vmatmul.mubr.f32.vlgmr.msra.gmra.mxu1 %v16088_v12  ;;  %16461 = vmatmul.mubr.f32.vlgmr.msra.gmra.mxu0 %v25823_v52  ;;  %v16715_v12 = vand.u32 4294901760, %v25989_v36 }
 0x7c3   :  { %16505 = vmatpush1.msra.mxu1 %v25836_v34  ;;  %16613 = vmatpush1.msra.mxu0 %v25961_v24  ;;  %v16664_v34 = vand.u32 4294901760, %v26000_v46 }
 0x7c4   :  { %16507 = vmatprep.subr.mxu1 %v25840_v4  ;;  %16615 = vmatprep.subr.mxu0 %v25967_v20  ;;  %v16710_v4 = vsub.f32 %v25984_v9, %v16709_v15  ;;  %v16716_v21 = vsub.f32 %v25989_v36, %v16715_v12 }
 0x7c5   :  { %16509 = vmatpush1.msra.mxu1 %v25847_v11  ;;  %16617 = vmatpush1.msra.mxu0 %v25974_v63  ;;  %v16655_v11 = vand.u32 4294901760, %v16654_v48  ;;  %v16665_v45 = vsub.f32 %v26000_v46, %v16664_v34 }
 0x7c6   :  { %16373 = vmatprep.mubr.f32.mxu1 %v27305_v51  ;;  %16466 = vmatprep.mubr.f32.mxu0 %v27305_v51  ;;  %v16711_v14 = vand.u32 4294901760, %v16710_v4  ;;  %v16717_v38 = vand.u32 4294901760, %v16716_v21 }
 0x7c7   :  { %16706 = vmatprep.subr.mxu1 %v16705_v57  ;;  %16802 = vmatprep.subr.mxu0 %v25950_v10  ;;  %v16666_v56 = vand.u32 4294901760, %v16665_v45 }
 0x7c8   :  { %16377 = vmatmul.mubr.f32.gmra.mxu1 %v16099_v27  ;;  %16468 = vmatmul.mubr.f32.gmra.mxu0 %v25854_v7  ;;  %v17129_v27 = vpop.permute.xlu0 %17128 }
 0x7c9   :  { %16542 = vmatprep.mubr.f32.mxu1 %v27305_v51  ;;  %16650 = vmatprep.mubr.f32.mxu0 %v27305_v51  ;;  %v17135_v1 = vsel %vm1779_vm4, %v17129_v27, %v17133_v23  ;;  %v17137_v8 = vsel %vm1779_vm4, %v17133_v23, %v17129_v27  ;;  %v26169_v23 = vand.u32 4294901760, %v25657_v40 }
 0x7ca   :  { %v17141_v25 = vmul.f32 %v20883_v3, %v17135_v1 }
 0x7cb   :  { %v26182_v27 = vsub.f32 %v25657_v40, %v26169_v23 }
 0x7cc   :  { %16544 = vmatmul.mubr.f32.vlgmr.msra.gmra.mxu1 %v25823_v52  ;;  %16656 = vmatmul.mubr.f32.vlgmr.msra.gmra.mxu0 %v16655_v11  ;;  %v20766_v52 = vld [vmem:[%s26965_s1 + $0x1e0] sm:$0xff]  ;;  %v17127_v50 = vpop.permute.xlu0 %17126  ;;  %v26053_v44 = vand.u32 4294901760, %v17141_v25 }
 0x7cd   :  { %16712 = vmatpush1.msra.mxu1 %v16711_v14  ;;  %16805 = vmatpush1.msra.mxu0 %v25984_v9  ;;  %v17134_v18 = vsel %vm1779_vm4, %v17127_v50, %v17131_v35  ;;  %v17146_v19 = vsel %vm103_vm0, %v20766_v52, 0  ;;  %v17136_v49 = vsel %vm1779_vm4, %v17131_v35, %v17127_v50  ;;  %v26187_v14 = vand.u32 4294901760, %v25654_v55 }
 0x7ce   :  { %16718 = vmatprep.subr.mxu1 %v16717_v38  ;;  %16808 = vmatprep.subr.mxu0 %v25989_v36  ;;  %v17139_v42 = vmul.f32 %v20885_v41, %v17134_v18  ;;  %v26070_v13 = vand.u32 4294901760, %v17146_v19  ;;  %v26076_v0 = vsub.f32 %v17141_v25, %v26053_v44  ;;  %v17138_v59 = vmul.f32 %v20886_v16, %v17136_v49 }
 0x7cf   :  { %16724 = vmatpush1.msra.mxu1 %v16723_v17  ;;  %16811 = vmatpush1.msra.mxu0 %v25993_v32  ;;  %v26193_v38 = vand.u32 4294901760, %v25667_v33  ;;  %v17825_v3 = vand.u32 4294901760, %v26182_v27  ;;  %v26212_v35 = vsub.f32 %v25654_v55, %v26187_v14 }
 0x7d0   :  { %16549 = vmatprep.mubr.f32.mxu1 %v27305_v51  ;;  %16661 = vmatprep.mubr.f32.mxu0 %v27305_v51  ;;  %v26093_v54 = vand.u32 4294901760, %v17139_v42  ;;  %v26098_v10 = vsub.f32 %v17146_v19, %v26070_v13  ;;  %v26100_v31 = vand.u32 4294901760, %v17138_v59  ;;  %v17272_v29 = vand.u32 4294901760, %v26076_v0 }
 0x7d1   :  { %16890 = vmatprep.subr.mxu1 %v25927_v47  ;;  %16979 = vmatprep.subr.mxu0 %v16703_v28  ;;  %v17826_v50 = vsub.f32 %v26182_v27, %v17825_v3  ;;  %v17831_v19 = vand.u32 4294901760, %v26212_v35 }
 0x7d2   :  { %16551 = vmatmul.mubr.f32.gmra.mxu1 %v25854_v7  ;;  %16667 = vmatmul.mubr.f32.gmra.mxu0 %v16666_v56  ;;  %v17140_v7 = vmul.f32 %v20884_v37, %v17137_v8  ;;  %v26115_v9 = vsub.f32 %v17139_v42, %v26093_v54  ;;  %v26119_v36 = vsub.f32 %v17138_v59, %v26100_v31  ;;  %v26201_v56 = vand.u32 4294901760, %v25662_v5  ;;  %v18255_v59 = vpop.permute.xlu1 %18254 }
 0x7d3   :  { %16757 = vmatprep.mubr.f32.mxu1 %v27305_v51  ;;  %16844 = vmatprep.mubr.f32.mxu0 %v27305_v51  ;;  %v17273_v32 = vsub.f32 %v26076_v0, %v17272_v29  ;;  %v26217_v8 = vsub.f32 %v25667_v33, %v26193_v38  ;;  %v17832_v43 = vsub.f32 %v26212_v35, %v17831_v19 }
 0x7d4   :  { %v26087_v30 = vand.u32 4294901760, %v17140_v7  ;;  %v17290_v48 = vand.u32 4294901760, %v26119_v36 }
 0x7d5   :  { %v17837_v37 = vand.u32 4294901760, %v26217_v8 }
 0x7d6   :  { %16759 = vmatmul.mubr.f32.vlgmr.msra.gmra.mxu1 %v25944_v2  ;;  %16847 = vmatmul.mubr.f32.vlgmr.msra.gmra.mxu0 %v25972_v6  ;;  %v26110_v28 = vsub.f32 %v17140_v7, %v26087_v30  ;;  %v17291_v57 = vsub.f32 %v26119_v36, %v17290_v48  ;;  %v17827_v7 = vand.u32 4294901760, %v17826_v50 }
 0x7d7   :  { %16892 = vmatpush1.msra.mxu1 %v25961_v24  ;;  %16983 = vmatpush1.msra.mxu0 %v16709_v15  ;;  %v17838_v16 = vsub.f32 %v26217_v8, %v17837_v37 }
 0x7d8   :  { %16894 = vmatprep.subr.mxu1 %v25967_v20  ;;  %16987 = vmatprep.subr.mxu0 %v16715_v12  ;;  %v17278_v15 = vand.u32 4294901760, %v26110_v28  ;;  %v17274_v12 = vand.u32 4294901760, %v17273_v32  ;;  %v18253_v32 = vpop.permute.xlu1 %18252 }
 0x7d9   :  { %16896 = vmatpush1.msra.mxu1 %v25974_v63  ;;  %16991 = vmatpush1.msra.mxu0 %v16721_v60 }
 0x7da   :  { %16764 = vmatprep.mubr.f32.mxu1 %v27305_v51  ;;  %16852 = vmatprep.mubr.f32.mxu0 %v27305_v51 }
 0x7db   :  { %17068 = vmatprep.subr.mxu1 %v25927_v47  ;;  %17180 = vmatprep.subr.mxu0 %v26053_v44  ;;  %v17222_v47 = vand.u32 4294901760, %v26098_v10 }
 0x7dc   :  { %16766 = vmatmul.mubr.f32.gmra.mxu1 %v25981_v58  ;;  %16855 = vmatmul.mubr.f32.gmra.mxu0 %v26000_v46 }
 0x7dd   :  { %16929 = vmatprep.mubr.f32.mxu1 %v27305_v51  ;;  %17024 = vmatprep.mubr.f32.mxu0 %v27305_v51  ;;  %v17223_v6 = vsub.f32 %v26098_v10, %v17222_v47 }
 0x7e0   :  { %16933 = vmatmul.mubr.f32.vlgmr.msra.gmra.mxu1 %v16653_v26  ;;  %17026 = vmatmul.mubr.f32.vlgmr.msra.gmra.mxu0 %v25944_v2  ;;  %v17284_v26 = vand.u32 4294901760, %v26115_v9 }
 0x7e1   :  { %17070 = vmatpush1.msra.mxu1 %v25961_v24  ;;  %17182 = vmatpush1.msra.mxu0 %v26087_v30  ;;  %v17233_v24 = vand.u32 4294901760, %v26126_v53 }
 0x7e2   :  { %17072 = vmatprep.subr.mxu1 %v25967_v20  ;;  %17184 = vmatprep.subr.mxu0 %v26093_v54  ;;  %v17279_v20 = vsub.f32 %v26110_v28, %v17278_v15  ;;  %v17285_v60 = vsub.f32 %v26115_v9, %v17284_v26 }
 0x7e3   :  { %17074 = vmatpush1.msra.mxu1 %v25974_v63  ;;  %17186 = vmatpush1.msra.mxu0 %v26100_v31  ;;  %v17224_v63 = vand.u32 4294901760, %v17223_v6  ;;  %v17234_v4 = vsub.f32 %v26126_v53, %v17233_v24 }
 0x7e4   :  { %16938 = vmatprep.mubr.f32.mxu1 %v27305_v51  ;;  %17031 = vmatprep.mubr.f32.mxu0 %v27305_v51  ;;  %v17280_v11 = vand.u32 4294901760, %v17279_v20  ;;  %v17286_v46 = vand.u32 4294901760, %v17285_v60  ;;  %v20889_v20 = vld [vmem:[%s26966_s2 + $0xa8] sm:$0xff] }
 0x7e5   :  { %17275 = vmatprep.subr.mxu1 %v17274_v12  ;;  %17371 = vmatprep.subr.mxu0 %v26076_v0  ;;  %v17235_v21 = vand.u32 4294901760, %v17234_v4 }
 0x7e6   :  { %16942 = vmatmul.mubr.f32.gmra.mxu1 %v16664_v34  ;;  %17033 = vmatmul.mubr.f32.gmra.mxu0 %v25981_v58  ;;  %v17292_v34 = vand.u32 4294901760, %v17291_v57  ;;  %v20771_v57 = vld [vmem:[%s26965_s1 + $0x208] sm:$0xff] }
 0x7e7   :  { %17107 = vmatprep.mubr.f32.mxu1 %v27305_v51  ;;  %17219 = vmatprep.mubr.f32.mxu0 %v27305_v51 }
 0x7ea   :  { %17109 = vmatmul.mubr.f32.vlgmr.msra.gmra.mxu1 %v25944_v2  ;;  %17225 = vmatmul.mubr.f32.vlgmr.msra.gmra.mxu0 %v17224_v63  ;;  %v20768_v2 = vld [vmem:[%s26965_s1 + $0x1f0] sm:$0xff] }
 0x7eb   :  { %17281 = vmatpush1.msra.mxu1 %v17280_v11  ;;  %17374 = vmatpush1.msra.mxu0 %v26110_v28  ;;  %v17699_v22 = vsel %vm103_vm0, %v20768_v2, 0  ;;  %v20890_v11 = vld [vmem:[%s26966_s2 + $0xa0] sm:$0xff] }
 0x7ec   :  { %17287 = vmatprep.subr.mxu1 %v17286_v46  ;;  %17377 = vmatprep.subr.mxu0 %v26115_v9  ;;  %v26174_v45 = vand.u32 4294901760, %v17699_v22 }
 0x7ed   :  { %17293 = vmatpush1.msra.mxu1 %v17292_v34  ;;  %17380 = vmatpush1.msra.mxu0 %v26119_v36 }
 0x7ee   :  { %17114 = vmatprep.mubr.f32.mxu1 %v27305_v51  ;;  %17230 = vmatprep.mubr.f32.mxu0 %v27305_v51  ;;  %v26196_v17 = vsub.f32 %v17699_v22, %v26174_v45 }
 0x7ef   :  { %17459 = vmatprep.subr.mxu1 %v26053_v44  ;;  %17548 = vmatprep.subr.mxu0 %v17272_v29  ;;  %v17839_v29 = vand.u32 4294901760, %v17838_v16 }
 0x7f0   :  { %17116 = vmatmul.mubr.f32.gmra.mxu1 %v25981_v58  ;;  %17236 = vmatmul.mubr.f32.gmra.mxu0 %v17235_v21  ;;  %v20769_v58 = vld [vmem:[%s26965_s1 + $0x1f8] sm:$0xff]  ;;  %v17775_v52 = vand.u32 4294901760, %v26196_v17  ;;  %v18271_v21 = vsel %vm103_vm0, %v20771_v57, 0 }
 0x7f1   :  { %17326 = vmatprep.mubr.f32.mxu1 %v27305_v51  ;;  %17413 = vmatprep.mubr.f32.mxu0 %v27305_v51  ;;  %v17702_v1 = vsel %vm103_vm0, %v20769_v58, 0 }
 0x7f2   :  { %v26206_v25 = vand.u32 4294901760, %v17702_v1  ;;  %v17776_v49 = vsub.f32 %v26196_v17, %v17775_v52 }
 0x7f4   :  { %17328 = vmatmul.mubr.f32.vlgmr.msra.gmra.mxu1 %v26070_v13  ;;  %17416 = vmatmul.mubr.f32.vlgmr.msra.gmra.mxu0 %v26098_v10  ;;  %v26228_v18 = vsub.f32 %v17702_v1, %v26206_v25  ;;  %v17777_v0 = vand.u32 4294901760, %v17776_v49  ;;  %v17833_v10 = vand.u32 4294901760, %v17832_v43  ;;  %v26335_v1 = vand.u32 4294901760, %v18271_v21 }
 0x7f5   :  { %17461 = vmatpush1.msra.mxu1 %v26087_v30  ;;  %17552 = vmatpush1.msra.mxu0 %v17278_v15 }
 0x7f6   :  { %17463 = vmatprep.subr.mxu1 %v26093_v54  ;;  %17556 = vmatprep.subr.mxu0 %v17284_v26  ;;  %v17786_v42 = vand.u32 4294901760, %v26228_v18 }
 0x7f7   :  { %17465 = vmatpush1.msra.mxu1 %v26100_v31  ;;  %17560 = vmatpush1.msra.mxu0 %v17290_v48 }
 0x7f8   :  { %17333 = vmatprep.mubr.f32.mxu1 %v27305_v51  ;;  %17421 = vmatprep.mubr.f32.mxu0 %v27305_v51  ;;  %v17787_v61 = vsub.f32 %v26228_v18, %v17786_v42 }
 0x7f9   :  { %17637 = vmatprep.subr.mxu1 %v26053_v44  ;;  %17733 = vmatprep.subr.mxu0 %v26169_v23  ;;  %v26222_v44 = vsub.f32 %v25662_v5, %v26201_v56 }
 0x7fa   :  { %17335 = vmatmul.mubr.f32.gmra.mxu1 %v26107_v39  ;;  %17424 = vmatmul.mubr.f32.gmra.mxu0 %v26126_v53  ;;  %v17788_v9 = vand.u32 4294901760, %v17787_v61 }
 0x7fb   :  { %17498 = vmatprep.mubr.f32.mxu1 %v27305_v51  ;;  %17593 = vmatprep.mubr.f32.mxu0 %v27305_v51  ;;  %v17843_v41 = vand.u32 4294901760, %v26222_v44 }
 0x7fe   :  { %17502 = vmatmul.mubr.f32.vlgmr.msra.gmra.mxu1 %v17222_v47  ;;  %17595 = vmatmul.mubr.f32.vlgmr.msra.gmra.mxu0 %v26070_v13  ;;  %v20887_v47 = vld [vmem:[%s26966_s2 + $0xb8] sm:$0xff] }
 0x7ff   :  { %17639 = vmatpush1.msra.mxu1 %v26087_v30  ;;  %17735 = vmatpush1.msra.mxu0 %v26187_v14  ;;  %v17844_v30 = vsub.f32 %v26222_v44, %v17843_v41 }
 0x800   :  { %17641 = vmatprep.subr.mxu1 %v26093_v54  ;;  %17737 = vmatprep.subr.mxu0 %v26193_v38  ;;  %v18251_v54 = vpop.permute.xlu0 %18250 }
 0x801   :  { %17643 = vmatpush1.msra.mxu1 %v26100_v31  ;;  %17739 = vmatpush1.msra.mxu0 %v26201_v56  ;;  %v18259_v31 = vsel %vm2907_vm5, %v18255_v59, %v18251_v54  ;;  %v17845_v28 = vand.u32 4294901760, %v17844_v30  ;;  %v18257_v53 = vsel %vm2907_vm5, %v18251_v54, %v18255_v59  ;;  %v20891_v54 = vld [vmem:[%s26966_s2 + $0xd8] sm:$0xff] }
 0x802   :  { %17507 = vmatprep.mubr.f32.mxu1 %v27305_v51  ;;  %17600 = vmatprep.mubr.f32.mxu0 %v27305_v51  ;;  %v18263_v36 = vmul.f32 %v20887_v47, %v18259_v31 }
 0x803   :  { %17828 = vmatprep.subr.mxu1 %v17827_v7  ;;  %17924 = vmatprep.subr.mxu0 %v26182_v27 }
 0x804   :  { %17511 = vmatmul.mubr.f32.gmra.mxu1 %v17233_v24  ;;  %17602 = vmatmul.mubr.f32.gmra.mxu0 %v26107_v39  ;;  %v18249_v15 = vpop.permute.xlu0 %18248  ;;  %v26281_v6 = vand.u32 4294901760, %v18263_v36  ;;  %v20888_v24 = vld [vmem:[%s26966_s2 + $0xb0] sm:$0xff] }
 0x805   :  { %17676 = vmatprep.mubr.f32.mxu1 %v27305_v51  ;;  %17772 = vmatprep.mubr.f32.mxu0 %v27305_v51  ;;  %v18258_v26 = vsel %vm2907_vm5, %v18253_v32, %v18249_v15  ;;  %v18256_v12 = vsel %vm2907_vm5, %v18249_v15, %v18253_v32 }
 0x806   :  { %v18261_v63 = vmul.f32 %v20889_v20, %v18258_v26  ;;  %v26304_v4 = vsub.f32 %v18263_v36, %v26281_v6  ;;  %v18260_v46 = vmul.f32 %v20890_v11, %v18256_v12 }
 0x808   :  { %17678 = vmatmul.mubr.f32.vlgmr.msra.gmra.mxu1 %v26070_v13  ;;  %17778 = vmatmul.mubr.f32.vlgmr.msra.gmra.mxu0 %v17777_v0  ;;  %v20770_v13 = vld [vmem:[%s26965_s1 + $0x200] sm:$0xff]  ;;  %v26321_v2 = vand.u32 4294901760, %v18261_v63  ;;  %v26328_v58 = vand.u32 4294901760, %v18260_v46  ;;  %v18394_v27 = vand.u32 4294901760, %v26304_v4 }
 0x809   :  { %17834 = vmatpush1.msra.mxu1 %v17833_v10  ;;  %17927 = vmatpush1.msra.mxu0 %v26212_v35  ;;  %v18268_v48 = vsel %vm103_vm0, %v20770_v13, 0  ;;  %v20892_v13 = vld [vmem:[%s26966_s2 + $0xd0] sm:$0xff] }
 0x80a   :  { %17840 = vmatprep.subr.mxu1 %v17839_v29  ;;  %17930 = vmatprep.subr.mxu0 %v26217_v8  ;;  %v26298_v60 = vand.u32 4294901760, %v18268_v48  ;;  %v26343_v35 = vsub.f32 %v18261_v63, %v26321_v2  ;;  %v26347_v8 = vsub.f32 %v18260_v46, %v26328_v58  ;;  %v18395_v50 = vsub.f32 %v26304_v4, %v18394_v27 }
 0x80b   :  { %17846 = vmatpush1.msra.mxu1 %v17845_v28  ;;  %17933 = vmatpush1.msra.mxu0 %v26222_v44  ;;  %v26354_v44 = vsub.f32 %v18271_v21, %v26335_v1 }
 0x80c   :  { %17683 = vmatprep.mubr.f32.mxu1 %v27305_v51  ;;  %17783 = vmatprep.mubr.f32.mxu0 %v27305_v51  ;;  %v26326_v22 = vsub.f32 %v18268_v48, %v26298_v60  ;;  %v18412_v49 = vand.u32 4294901760, %v26347_v8  ;;  %v20773_v48 = vld [vmem:[%s26965_s1 + $0x218] sm:$0xff] }
 0x80d   :  { %18012 = vmatprep.subr.mxu1 %v26169_v23  ;;  %18101 = vmatprep.subr.mxu0 %v17825_v3  ;;  %v18840_v63 = vsel %vm103_vm0, %v20773_v48, 0 }
 0x80e   :  { %17685 = vmatmul.mubr.f32.gmra.mxu1 %v26107_v39  ;;  %17789 = vmatmul.mubr.f32.gmra.mxu0 %v17788_v9  ;;  %v18262_v39 = vmul.f32 %v20888_v24, %v18257_v53  ;;  %v18413_v43 = vsub.f32 %v26347_v8, %v18412_v49  ;;  %v20893_v53 = vld [vmem:[%s26966_s2 + $0xc8] sm:$0xff]  ;;  %v20894_v24 = vld [vmem:[%s26966_s2 + $0xc0] sm:$0xff]  ;;  %v26461_v21 = vand.u32 4294901760, %v18840_v63 }
 0x80f   :  { %17879 = vmatprep.mubr.f32.mxu1 %v27305_v51  ;;  %17966 = vmatprep.mubr.f32.mxu0 %v27305_v51 }
 0x810   :  { %v26315_v34 = vand.u32 4294901760, %v18262_v39  ;;  %v18414_v30 = vand.u32 4294901760, %v18413_v43 }
 0x812   :  { %17881 = vmatmul.mubr.f32.vlgmr.msra.gmra.mxu1 %v26174_v45  ;;  %17969 = vmatmul.mubr.f32.vlgmr.msra.gmra.mxu0 %v26196_v17  ;;  %v26338_v3 = vsub.f32 %v18262_v39, %v26315_v34 }
 0x813   :  { %18014 = vmatpush1.msra.mxu1 %v26187_v14  ;;  %18105 = vmatpush1.msra.mxu0 %v17831_v19 }
 0x814   :  { %18016 = vmatprep.subr.mxu1 %v26193_v38  ;;  %18109 = vmatprep.subr.mxu0 %v17837_v37  ;;  %v18400_v19 = vand.u32 4294901760, %v26338_v3  ;;  %v18396_v37 = vand.u32 4294901760, %v18395_v50  ;;  %v26480_v50 = vsub.f32 %v18840_v63, %v26461_v21 }
 0x815   :  { %18018 = vmatpush1.msra.mxu1 %v26201_v56  ;;  %18113 = vmatpush1.msra.mxu0 %v17843_v41  ;;  %v18824_v41 = vpop.permute.xlu1 %18823 }
 0x816   :  { %17886 = vmatprep.mubr.f32.mxu1 %v27305_v51  ;;  %17974 = vmatprep.mubr.f32.mxu0 %v27305_v51 }
 0x817   :  { %18190 = vmatprep.subr.mxu1 %v26169_v23  ;;  %18302 = vmatprep.subr.mxu0 %v26281_v6  ;;  %v18344_v23 = vand.u32 4294901760, %v26326_v22 }
 0x818   :  { %17888 = vmatmul.mubr.f32.gmra.mxu1 %v26206_v25  ;;  %17977 = vmatmul.mubr.f32.gmra.mxu0 %v26228_v18 }
 0x819   :  { %18051 = vmatprep.mubr.f32.mxu1 %v27305_v51  ;;  %18146 = vmatprep.mubr.f32.mxu0 %v27305_v51  ;;  %v18345_v17 = vsub.f32 %v26326_v22, %v18344_v23  ;;  %v18822_v31 = vpop.permute.xlu1 %18821 }
 0x81c   :  { %18055 = vmatmul.mubr.f32.vlgmr.msra.gmra.mxu1 %v17775_v52  ;;  %18148 = vmatmul.mubr.f32.vlgmr.msra.gmra.mxu0 %v26174_v45  ;;  %v18406_v52 = vand.u32 4294901760, %v26343_v35 }
 0x81d   :  { %18192 = vmatpush1.msra.mxu1 %v26187_v14  ;;  %18304 = vmatpush1.msra.mxu0 %v26315_v34  ;;  %v18355_v14 = vand.u32 4294901760, %v26354_v44 }
 0x81e   :  { %18194 = vmatprep.subr.mxu1 %v26193_v38  ;;  %18306 = vmatprep.subr.mxu0 %v26321_v2  ;;  %v18401_v38 = vsub.f32 %v26338_v3, %v18400_v19  ;;  %v18407_v7 = vsub.f32 %v26343_v35, %v18406_v52 }
 0x81f   :  { %18196 = vmatpush1.msra.mxu1 %v26201_v56  ;;  %18308 = vmatpush1.msra.mxu0 %v26328_v58  ;;  %v18346_v56 = vand.u32 4294901760, %v18345_v17  ;;  %v18356_v18 = vsub.f32 %v26354_v44, %v18355_v14 }
 0x820   :  { %18060 = vmatprep.mubr.f32.mxu1 %v27305_v51  ;;  %18153 = vmatprep.mubr.f32.mxu0 %v27305_v51  ;;  %v18402_v0 = vand.u32 4294901760, %v18401_v38  ;;  %v18408_v59 = vand.u32 4294901760, %v18407_v7 }
 0x821   :  { %18397 = vmatprep.subr.mxu1 %v18396_v37  ;;  %18493 = vmatprep.subr.mxu0 %v26304_v4  ;;  %v18357_v61 = vand.u32 4294901760, %v18356_v18  ;;  %v19393_v37 = vpop.permute.xlu1 %19392 }
 0x822   :  { %18064 = vmatmul.mubr.f32.gmra.mxu1 %v17786_v42  ;;  %18155 = vmatmul.mubr.f32.gmra.mxu0 %v26206_v25  ;;  %v18820_v42 = vpop.permute.xlu0 %18819 }
 0x823   :  { %18229 = vmatprep.mubr.f32.mxu1 %v27305_v51  ;;  %18341 = vmatprep.mubr.f32.mxu0 %v27305_v51  ;;  %v18828_v16 = vsel %vm3482_vm6, %v18824_v41, %v18820_v42  ;;  %v18826_v29 = vsel %vm3482_vm6, %v18820_v42, %v18824_v41  ;;  %v20895_v42 = vld [vmem:[%s26966_s2 + $0xf8] sm:$0xff] }
 0x824   :  { %v18832_v10 = vmul.f32 %v20891_v54, %v18828_v16 }
 0x825   :  { %v19391_v16 = vpop.permute.xlu1 %19390 }
 0x826   :  { %18231 = vmatmul.mubr.f32.vlgmr.msra.gmra.mxu1 %v26174_v45  ;;  %18347 = vmatmul.mubr.f32.vlgmr.msra.gmra.mxu0 %v18346_v56  ;;  %v20772_v45 = vld [vmem:[%s26965_s1 + $0x210] sm:$0xff]  ;;  %v18818_v28 = vpop.permute.xlu0 %18817  ;;  %v26407_v9 = vand.u32 4294901760, %v18832_v10 }
 0x827   :  { %18403 = vmatpush1.msra.mxu1 %v18402_v0  ;;  %18496 = vmatpush1.msra.mxu0 %v26338_v3  ;;  %v18827_v47 = vsel %vm3482_vm6, %v18822_v31, %v18818_v28  ;;  %v18837_v36 = vsel %vm103_vm0, %v20772_v45, 0  ;;  %v18825_v32 = vsel %vm3482_vm6, %v18818_v28, %v18822_v31  ;;  %v20896_v45 = vld [vmem:[%s26966_s2 + $0xf0] sm:$0xff] }
 0x828   :  { %18409 = vmatprep.subr.mxu1 %v18408_v59  ;;  %18499 = vmatprep.subr.mxu0 %v26343_v35  ;;  %v18830_v15 = vmul.f32 %v20893_v53, %v18827_v47  ;;  %v26424_v26 = vand.u32 4294901760, %v18837_v36  ;;  %v26430_v12 = vsub.f32 %v18832_v10, %v26407_v9  ;;  %v18829_v39 = vmul.f32 %v20894_v24, %v18825_v32 }
 0x829   :  { %18415 = vmatpush1.msra.mxu1 %v18414_v30  ;;  %18502 = vmatpush1.msra.mxu0 %v26347_v8 }
 0x82a   :  { %18236 = vmatprep.mubr.f32.mxu1 %v27305_v51  ;;  %18352 = vmatprep.mubr.f32.mxu0 %v27305_v51  ;;  %v26447_v57 = vand.u32 4294901760, %v18830_v15  ;;  %v26452_v4 = vsub.f32 %v18837_v36, %v26424_v26  ;;  %v26454_v11 = vand.u32 4294901760, %v18829_v39  ;;  %v18963_v46 = vand.u32 4294901760, %v26430_v12  ;;  %v20775_v36 = vld [vmem:[%s26965_s1 + $0x228] sm:$0xff] }
 0x82b   :  { %18581 = vmatprep.subr.mxu1 %v26281_v6  ;;  %18670 = vmatprep.subr.mxu0 %v18394_v27 }
 0x82c   :  { %18238 = vmatmul.mubr.f32.gmra.mxu1 %v26206_v25  ;;  %18358 = vmatmul.mubr.f32.gmra.mxu0 %v18357_v61  ;;  %v18831_v25 = vmul.f32 %v20892_v13, %v18826_v29  ;;  %v26469_v3 = vsub.f32 %v18830_v15, %v26447_v57  ;;  %v26473_v35 = vsub.f32 %v18829_v39, %v26454_v11  ;;  %v20897_v29 = vld [vmem:[%s26966_s2 + $0xe8] sm:$0xff]  ;;  %v20898_v13 = vld [vmem:[%s26966_s2 + $0xe0] sm:$0xff]  ;;  %v19409_v15 = vsel %vm103_vm0, %v20775_v36, 0 }
 0x82d   :  { %18448 = vmatprep.mubr.f32.mxu1 %v27305_v51  ;;  %18535 = vmatprep.mubr.f32.mxu0 %v27305_v51  ;;  %v18964_v8 = vsub.f32 %v26430_v12, %v18963_v46 }
 0x82e   :  { %v26441_v20 = vand.u32 4294901760, %v18831_v25  ;;  %v18981_v17 = vand.u32 4294901760, %v26473_v35 }
 0x830   :  { %18450 = vmatmul.mubr.f32.vlgmr.msra.gmra.mxu1 %v26298_v60  ;;  %18538 = vmatmul.mubr.f32.vlgmr.msra.gmra.mxu0 %v26326_v22  ;;  %v26464_v27 = vsub.f32 %v18831_v25, %v26441_v20  ;;  %v18982_v38 = vsub.f32 %v26473_v35, %v18981_v17 }
 0x831   :  { %18583 = vmatpush1.msra.mxu1 %v26315_v34  ;;  %18674 = vmatpush1.msra.mxu0 %v18400_v19 }
 0x832   :  { %18585 = vmatprep.subr.mxu1 %v26321_v2  ;;  %18678 = vmatprep.subr.mxu0 %v18406_v52  ;;  %v18969_v19 = vand.u32 4294901760, %v26464_v27  ;;  %v18965_v52 = vand.u32 4294901760, %v18964_v8  ;;  %v18983_v43 = vand.u32 4294901760, %v18982_v38 }
 0x833   :  { %18587 = vmatpush1.msra.mxu1 %v26328_v58  ;;  %18682 = vmatpush1.msra.mxu0 %v18412_v49 }
 0x834   :  { %18455 = vmatprep.mubr.f32.mxu1 %v27305_v51  ;;  %18543 = vmatprep.mubr.f32.mxu0 %v27305_v51 }
 0x835   :  { %18759 = vmatprep.subr.mxu1 %v26281_v6  ;;  %18871 = vmatprep.subr.mxu0 %v26407_v9  ;;  %v18913_v6 = vand.u32 4294901760, %v26452_v4 }
 0x836   :  { %18457 = vmatmul.mubr.f32.gmra.mxu1 %v26335_v1  ;;  %18546 = vmatmul.mubr.f32.gmra.mxu0 %v26354_v44 }
 0x837   :  { %18620 = vmatprep.mubr.f32.mxu1 %v27305_v51  ;;  %18715 = vmatprep.mubr.f32.mxu0 %v27305_v51  ;;  %v18914_v22 = vsub.f32 %v26452_v4, %v18913_v6 }
 0x83a   :  { %18624 = vmatmul.mubr.f32.vlgmr.msra.gmra.mxu1 %v18344_v23  ;;  %18717 = vmatmul.mubr.f32.vlgmr.msra.gmra.mxu0 %v26298_v60  ;;  %v18975_v23 = vand.u32 4294901760, %v26469_v3 }
 0x83b   :  { %18761 = vmatpush1.msra.mxu1 %v26315_v34  ;;  %18873 = vmatpush1.msra.mxu0 %v26441_v20  ;;  %v18924_v34 = vand.u32 4294901760, %v26480_v50 }
 0x83c   :  { %18763 = vmatprep.subr.mxu1 %v26321_v2  ;;  %18875 = vmatprep.subr.mxu0 %v26447_v57  ;;  %v18970_v2 = vsub.f32 %v26464_v27, %v18969_v19  ;;  %v18976_v49 = vsub.f32 %v26469_v3, %v18975_v23 }
 0x83d   :  { %18765 = vmatpush1.msra.mxu1 %v26328_v58  ;;  %18877 = vmatpush1.msra.mxu0 %v26454_v11  ;;  %v18915_v58 = vand.u32 4294901760, %v18914_v22  ;;  %v18925_v44 = vsub.f32 %v26480_v50, %v18924_v34 }
 0x83e   :  { %18629 = vmatprep.mubr.f32.mxu1 %v27305_v51  ;;  %18722 = vmatprep.mubr.f32.mxu0 %v27305_v51  ;;  %v18971_v56 = vand.u32 4294901760, %v18970_v2  ;;  %v18977_v41 = vand.u32 4294901760, %v18976_v49 }
 0x83f   :  { %18966 = vmatprep.subr.mxu1 %v18965_v52  ;;  %19062 = vmatprep.subr.mxu0 %v26430_v12  ;;  %v18926_v18 = vand.u32 4294901760, %v18925_v44 }
 0x840   :  { %18633 = vmatmul.mubr.f32.gmra.mxu1 %v18355_v14  ;;  %18724 = vmatmul.mubr.f32.gmra.mxu0 %v26335_v1  ;;  %v19389_v14 = vpop.permute.xlu0 %19388 }
 0x841   :  { %18798 = vmatprep.mubr.f32.mxu1 %v27305_v51  ;;  %18910 = vmatprep.mubr.f32.mxu0 %v27305_v51  ;;  %v19397_v7 = vsel %vm4057_vm7, %v19393_v37, %v19389_v14  ;;  %v19395_v59 = vsel %vm4057_vm7, %v19389_v14, %v19393_v37 }
 0x842   :  { %v19401_v0 = vmul.f32 %v20895_v42, %v19397_v7  ;;  %v19962_v7 = vpop.permute.xlu1 %19961 }
 0x844   :  { %18800 = vmatmul.mubr.f32.vlgmr.msra.gmra.mxu1 %v26298_v60  ;;  %18916 = vmatmul.mubr.f32.vlgmr.msra.gmra.mxu0 %v18915_v58  ;;  %v20774_v60 = vld [vmem:[%s26965_s1 + $0x220] sm:$0xff]  ;;  %v19387_v30 = vpop.permute.xlu0 %19386  ;;  %v26533_v61 = vand.u32 4294901760, %v19401_v0 }
 0x845   :  { %18972 = vmatpush1.msra.mxu1 %v18971_v56  ;;  %19065 = vmatpush1.msra.mxu0 %v26464_v27  ;;  %v19396_v54 = vsel %vm4057_vm7, %v19391_v16, %v19387_v30  ;;  %v19406_v10 = vsel %vm103_vm0, %v20774_v60, 0  ;;  %v19394_v31 = vsel %vm4057_vm7, %v19387_v30, %v19391_v16  ;;  %v26587_v27 = vand.u32 4294901760, %v19409_v15 }
 0x846   :  { %18978 = vmatprep.subr.mxu1 %v18977_v41  ;;  %19068 = vmatprep.subr.mxu0 %v26469_v3  ;;  %v19399_v28 = vmul.f32 %v20897_v29, %v19396_v54  ;;  %v26550_v47 = vand.u32 4294901760, %v19406_v10  ;;  %v26556_v32 = vsub.f32 %v19401_v0, %v26533_v61  ;;  %v19398_v25 = vmul.f32 %v20898_v13, %v19394_v31 }
 0x847   :  { %18984 = vmatpush1.msra.mxu1 %v18983_v43  ;;  %19071 = vmatpush1.msra.mxu0 %v26473_v35 }
 0x848   :  { %18805 = vmatprep.mubr.f32.mxu1 %v27305_v51  ;;  %18921 = vmatprep.mubr.f32.mxu0 %v27305_v51  ;;  %v26573_v12 = vand.u32 4294901760, %v19399_v28  ;;  %v26578_v24 = vsub.f32 %v19406_v10, %v26550_v47  ;;  %v26580_v39 = vand.u32 4294901760, %v19398_v25  ;;  %v19532_v63 = vand.u32 4294901760, %v26556_v32 }
 0x849   :  { %19150 = vmatprep.subr.mxu1 %v26407_v9  ;;  %19239 = vmatprep.subr.mxu0 %v18963_v46 }
 0x84a   :  { %18807 = vmatmul.mubr.f32.gmra.mxu1 %v26335_v1  ;;  %18927 = vmatmul.mubr.f32.gmra.mxu0 %v18926_v18  ;;  %v19400_v1 = vmul.f32 %v20896_v45, %v19395_v59  ;;  %v19482_v35 = vand.u32 4294901760, %v26578_v24  ;;  %v19533_v22 = vsub.f32 %v26556_v32, %v19532_v63  ;;  %v19958_v18 = vpop.permute.xlu0 %19957 }
 0x84b   :  { %19017 = vmatprep.mubr.f32.mxu1 %v27305_v51  ;;  %19104 = vmatprep.mubr.f32.mxu0 %v27305_v51  ;;  %v19966_v60 = vsel %vm4632_vm8, %v19962_v7, %v19958_v18 }
 0x84c   :  { %v26567_v53 = vand.u32 4294901760, %v19400_v1 }
 0x84e   :  { %19019 = vmatmul.mubr.f32.vlgmr.msra.gmra.mxu1 %v26424_v26  ;;  %19107 = vmatmul.mubr.f32.vlgmr.msra.gmra.mxu0 %v26452_v4  ;;  %v26590_v3 = vsub.f32 %v19400_v1, %v26567_v53  ;;  %v19483_v4 = vsub.f32 %v26578_v24, %v19482_v35 }
 0x84f   :  { %19152 = vmatpush1.msra.mxu1 %v26441_v20  ;;  %19243 = vmatpush1.msra.mxu0 %v18969_v19  ;;  %v26599_v19 = vsub.f32 %v19398_v25, %v26580_v39 }
 0x850   :  { %19154 = vmatprep.subr.mxu1 %v26447_v57  ;;  %19247 = vmatprep.subr.mxu0 %v18975_v23  ;;  %v26608_v23 = vsub.f32 %v19409_v15, %v26587_v27  ;;  %v19538_v52 = vand.u32 4294901760, %v26590_v3  ;;  %v19484_v41 = vand.u32 4294901760, %v19483_v4  ;;  %v19960_v15 = vpop.permute.xlu1 %19959 }
 0x851   :  { %19156 = vmatpush1.msra.mxu1 %v26454_v11  ;;  %19251 = vmatpush1.msra.mxu0 %v18981_v17  ;;  %v19550_v49 = vand.u32 4294901760, %v26599_v19 }
 0x852   :  { %v15546_v48 = vpop.f32.mrf.mxu0  ;;  %19024 = vmatprep.mubr.f32.mxu1 %v27305_v51  ;;  %19112 = vmatprep.mubr.f32.mxu0 %v27305_v51  ;;  %v19539_v14 = vsub.f32 %v26590_v3, %v19538_v52 }
 0x853   :  { %19328 = vmatprep.subr.mxu1 %v26407_v9  ;;  %19440 = vmatprep.subr.mxu0 %v26533_v61  ;;  %v26595_v9 = vsub.f32 %v19399_v28, %v26573_v12  ;;  %v19551_v42 = vsub.f32 %v26599_v19, %v19550_v49  ;;  %v20899_v28 = vld [vmem:[%s26966_s2 + $0x118] sm:$0xff] }
 0x854   :  { %v15548_v46 = vpop.f32.mrf.mxu0  ;;  %19026 = vmatmul.mubr.f32.gmra.mxu1 %v26461_v21  ;;  %19115 = vmatmul.mubr.f32.gmra.mxu0 %v26480_v50  ;;  %v19540_v59 = vand.u32 4294901760, %v19539_v14  ;;  %v19970_v36 = vmul.f32 %v20899_v28, %v19966_v60 }
 0x855   :  { %19189 = vmatprep.mubr.f32.mxu1 %v27305_v51  ;;  %19284 = vmatprep.mubr.f32.mxu0 %v27305_v51  ;;  %v19552_v45 = vand.u32 4294901760, %v19551_v42 }
 0x856   :  { %v15557_v8 = vpop.f32.mrf.mxu0 }
 0x858   :  { %19193 = vmatmul.mubr.f32.vlgmr.msra.gmra.mxu1 %v18913_v6  ;;  %19286 = vmatmul.mubr.f32.vlgmr.msra.gmra.mxu0 %v26424_v26  ;;  %v15559_v17 = vpop.f32.mrf.mxu0  ;;  %v19544_v6 = vand.u32 4294901760, %v26595_v9 }
 0x859   :  { %19330 = vmatpush1.msra.mxu1 %v26441_v20  ;;  %19442 = vmatpush1.msra.mxu0 %v26567_v53  ;;  %v19534_v20 = vand.u32 4294901760, %v19533_v22 }
 0x85a   :  { %19332 = vmatprep.subr.mxu1 %v26447_v57  ;;  %19444 = vmatprep.subr.mxu0 %v26573_v12  ;;  %v15649_v2 = vpop.f32.mrf.mxu1  ;;  %v15737_v58 = vpop.f32.mrf.mxu0  ;;  %v19493_v57 = vand.u32 4294901760, %v26608_v23  ;;  %v19545_v43 = vsub.f32 %v26595_v9, %v19544_v6 }
 0x85b   :  { %19334 = vmatpush1.msra.mxu1 %v26454_v11  ;;  %19446 = vmatpush1.msra.mxu0 %v26580_v39  ;;  %v15650_v37 = vadd.f32 %v15649_v2, %v15546_v48 }
 0x85c   :  { %19198 = vmatprep.mubr.f32.mxu1 %v27305_v51  ;;  %19291 = vmatprep.mubr.f32.mxu0 %v27305_v51  ;;  %v15651_v38 = vpop.f32.mrf.mxu1  ;;  %v15739_v44 = vpop.f32.mrf.mxu0  ;;  %v19494_v50 = vsub.f32 %v26608_v23, %v19493_v57  ;;  %v19546_v54 = vand.u32 4294901760, %v19545_v43  ;;  %v20901_v43 = vld [vmem:[%s26966_s2 + $0x108] sm:$0xff] }
 0x85d   :  { %19535 = vmatprep.subr.mxu1 %v19534_v20  ;;  %19631 = vmatprep.subr.mxu0 %v26556_v32  ;;  %v15652_v11 = vadd.f32 %v15651_v38, %v15548_v46  ;;  %v15738_v56 = vadd.f32 %v15737_v58, %v15650_v37  ;;  %v19964_v58 = vsel %vm4632_vm8, %v19958_v18, %v19962_v7  ;;  %v26662_v20 = vand.u32 4294901760, %v19970_v36  ;;  %v19956_v37 = vpop.permute.xlu0 %19955 }
 0x85e   :  { %19202 = vmatmul.mubr.f32.gmra.mxu1 %v18924_v34  ;;  %19293 = vmatmul.mubr.f32.gmra.mxu0 %v26461_v21  ;;  %v19495_v13 = vand.u32 4294901760, %v19494_v50  ;;  %v19965_v38 = vsel %vm4632_vm8, %v19960_v15, %v19956_v37 }
 0x85f   :  { %19367 = vmatprep.mubr.f32.mxu1 %v27305_v51  ;;  %19479 = vmatprep.mubr.f32.mxu0 %v27305_v51  ;;  %v15740_v0 = vadd.f32 %v15739_v44, %v15652_v11  ;;  %v19963_v44 = vsel %vm4632_vm8, %v19956_v37, %v19960_v15  ;;  %v19968_v18 = vmul.f32 %v20901_v43, %v19965_v38 }
 0x860   :  { %v15656_v34 = vpop.f32.mrf.mxu1  ;;  %v15745_v16 = vpop.f32.mrf.mxu0 }
 0x861   :  { %v15657_v30 = vadd.f32 %v15656_v34, %v15557_v8  ;;  %v20776_v8 = vld [vmem:[%s26965_s1 + $0x230] sm:$0xff] }
 0x862   :  { %19369 = vmatmul.mubr.f32.vlgmr.msra.gmra.mxu1 %v26424_v26  ;;  %19485 = vmatmul.mubr.f32.vlgmr.msra.gmra.mxu0 %v19484_v41  ;;  %v15658_v10 = vpop.f32.mrf.mxu1  ;;  %v15747_v31 = vpop.f32.mrf.mxu0  ;;  %v19975_v32 = vsel %vm103_vm0, %v20776_v8, 0  ;;  %v26676_v41 = vsub.f32 %v19970_v36, %v26662_v20 }
 0x863   :  { %19541 = vmatpush1.msra.mxu1 %v19540_v59  ;;  %19634 = vmatpush1.msra.mxu0 %v26590_v3  ;;  %v15659_v1 = vadd.f32 %v15658_v10, %v15559_v17  ;;  %v15746_v29 = vadd.f32 %v15745_v16, %v15657_v30  ;;  %v26683_v42 = vand.u32 4294901760, %v19975_v32  ;;  %v20902_v16 = vld [vmem:[%s26966_s2 + $0x100] sm:$0xff] }
 0x864   :  { %19547 = vmatprep.subr.mxu1 %v19546_v54  ;;  %19637 = vmatprep.subr.mxu0 %v26595_v9  ;;  %v15823_v26 = vpop.f32.mrf.mxu1  ;;  %v15916_v25 = vpop.f32.mrf.mxu0  ;;  %v19967_v60 = vmul.f32 %v20902_v16, %v19963_v44 }
 0x865   :  { %19553 = vmatpush1.msra.mxu1 %v19552_v45  ;;  %19640 = vmatpush1.msra.mxu0 %v26599_v19  ;;  %v15748_v48 = vadd.f32 %v15747_v31, %v15659_v1  ;;  %v15824_v46 = vadd.f32 %v15823_v26, %v15738_v56  ;;  %v26703_v1 = vand.u32 4294901760, %v19968_v18  ;;  %v26708_v9 = vsub.f32 %v19975_v32, %v26683_v42 }
 0x866   :  { %19374 = vmatprep.mubr.f32.mxu1 %v27305_v51  ;;  %19490 = vmatprep.mubr.f32.mxu0 %v27305_v51  ;;  %v15825_v22 = vpop.f32.mrf.mxu1  ;;  %v15918_v17 = vpop.f32.mrf.mxu0  ;;  %v26710_v28 = vand.u32 4294901760, %v19967_v60  ;;  %v20101_v19 = vand.u32 4294901760, %v26676_v41 }
 0x867   :  { %19719 = vmatprep.subr.mxu1 %v26533_v61  ;;  %19808 = vmatprep.subr.mxu0 %v19532_v63  ;;  %v15826_v4 = vadd.f32 %v15825_v22, %v15740_v0  ;;  %v15917_v2 = vadd.f32 %v15916_v25, %v15824_v46  ;;  %v20777_v0 = vld [vmem:[%s26965_s1 + $0x238] sm:$0xff]  ;;  %v26725_v25 = vsub.f32 %v19968_v18, %v26703_v1  ;;  %v20051_v15 = vand.u32 4294901760, %v26708_v9  ;;  %s26878_s1 = sld [smem:[#allocation2 + $0x3]] }
 0x868   :  { %19376 = vmatmul.mubr.f32.gmra.mxu1 %v26461_v21  ;;  %19496 = vmatmul.mubr.f32.gmra.mxu0 %v19495_v13  ;;  %v20900_v21 = vld [vmem:[%s26966_s2 + $0x110] sm:$0xff]  ;;  %v19978_v45 = vsel %vm103_vm0, %v20777_v0, 0  ;;  %v26729_v8 = vsub.f32 %v19967_v60, %v26710_v28  ;;  %v20102_v22 = vsub.f32 %v26676_v41, %v20101_v19 }
 0x869   :  { %19586 = vmatprep.mubr.f32.mxu1 %v27305_v51  ;;  %19673 = vmatprep.mubr.f32.mxu0 %v27305_v51  ;;  %v15919_v63 = vadd.f32 %v15918_v17, %v15826_v4  ;;  %v19969_v56 = vmul.f32 %v20900_v21, %v19964_v58  ;;  %v26717_v13 = vand.u32 4294901760, %v19978_v45 }
 0x86a   :  { %v15832_v14 = vpop.f32.mrf.mxu1  ;;  %v15923_v11 = vpop.f32.mrf.mxu0 }
 0x86b   :  { %v15833_v7 = vadd.f32 %v15832_v14, %v15746_v29  ;;  %v26697_v31 = vand.u32 4294901760, %v19969_v56  ;;  %v26738_v4 = vsub.f32 %v19978_v45, %v26717_v13  ;;  %v20119_v14 = vand.u32 4294901760, %v26729_v8 }
 0x86c   :  { %19588 = vmatmul.mubr.f32.vlgmr.msra.gmra.mxu1 %v26550_v47  ;;  %19676 = vmatmul.mubr.f32.vlgmr.msra.gmra.mxu0 %v26578_v24  ;;  %v15834_v50 = vpop.f32.mrf.mxu1  ;;  %v15925_v34 = vpop.f32.mrf.mxu0  ;;  %v20052_v24 = vsub.f32 %v26708_v9, %v20051_v15 }
 0x86d   :  { %19721 = vmatpush1.msra.mxu1 %v26567_v53  ;;  %19812 = vmatpush1.msra.mxu0 %v19538_v52  ;;  %v15835_v59 = vadd.f32 %v15834_v50, %v15748_v48  ;;  %v15924_v30 = vadd.f32 %v15923_v11, %v15833_v7  ;;  %v26720_v26 = vsub.f32 %v19969_v56, %v26697_v31 }
 0x86e   :  { %19723 = vmatprep.subr.mxu1 %v26573_v12  ;;  %19816 = vmatprep.subr.mxu0 %v19544_v6  ;;  %v15999_v54 = vpop.f32.mrf.mxu1  ;;  %v16092_v10 = vpop.f32.mrf.mxu0  ;;  %v20053_v0 = vand.u32 4294901760, %v20052_v24 }
 0x86f   :  { %19725 = vmatpush1.msra.mxu1 %v26580_v39  ;;  %19820 = vmatpush1.msra.mxu0 %v19550_v49  ;;  %v15926_v3 = vadd.f32 %v15925_v34, %v15835_v59  ;;  %v16000_v52 = vadd.f32 %v15999_v54, %v15917_v2  ;;  %v20107_v37 = vand.u32 4294901760, %v26720_v26  ;;  %v20120_v34 = vsub.f32 %v26729_v8, %v20119_v14 }
 0x870   :  { %19593 = vmatprep.mubr.f32.mxu1 %v27305_v51  ;;  %19681 = vmatprep.mubr.f32.mxu0 %v27305_v51  ;;  %v16001_v6 = vpop.f32.mrf.mxu1  ;;  %v16094_v29 = vpop.f32.mrf.mxu0 }
 0x871   :  { %19897 = vmatprep.subr.mxu1 %v26533_v61  ;;  %20009 = vmatprep.subr.mxu0 %v26662_v20  ;;  %v16002_v49 = vadd.f32 %v16001_v6, %v15919_v63  ;;  %v16093_v36 = vadd.f32 %v16092_v10, %v16000_v52 }
 0x872   :  { %19595 = vmatmul.mubr.f32.gmra.mxu1 %v26587_v27  ;;  %19684 = vmatmul.mubr.f32.gmra.mxu0 %v26608_v23 }
 0x873   :  { %19758 = vmatprep.mubr.f32.mxu1 %v27305_v51  ;;  %19853 = vmatprep.mubr.f32.mxu0 %v27305_v51  ;;  %v16095_v61 = vadd.f32 %v16094_v29, %v16002_v49 }
 0x874   :  { %v16006_v48 = vpop.f32.mrf.mxu1  ;;  %v16103_v46 = vpop.f32.mrf.mxu0 }
 0x875   :  { %v16007_v17 = vadd.f32 %v16006_v48, %v15924_v30 }
 0x876   :  { %19762 = vmatmul.mubr.f32.vlgmr.msra.gmra.mxu1 %v19482_v35  ;;  %19855 = vmatmul.mubr.f32.vlgmr.msra.gmra.mxu0 %v26550_v47  ;;  %v16008_v2 = vpop.f32.mrf.mxu1  ;;  %v16105_v58 = vpop.f32.mrf.mxu0  ;;  %v20113_v35 = vand.u32 4294901760, %v26725_v25 }
 0x877   :  { %19899 = vmatpush1.msra.mxu1 %v26567_v53  ;;  %20011 = vmatpush1.msra.mxu0 %v26697_v31  ;;  %v16009_v38 = vadd.f32 %v16008_v2, %v15926_v3  ;;  %v16104_v32 = vadd.f32 %v16103_v46, %v16007_v17  ;;  %v20103_v53 = vand.u32 4294901760, %v20102_v22  ;;  %v20121_v3 = vand.u32 4294901760, %v20120_v34 }
 0x878   :  { %19901 = vmatprep.subr.mxu1 %v26573_v12  ;;  %20013 = vmatprep.subr.mxu0 %v26703_v1  ;;  %v16195_v63 = vpop.f32.mrf.mxu1  ;;  %v16283_v44 = vpop.f32.mrf.mxu0  ;;  %v20062_v12 = vand.u32 4294901760, %v26738_v4  ;;  %v20114_v50 = vsub.f32 %v26725_v25, %v20113_v35 }
 0x879   :  { %19903 = vmatpush1.msra.mxu1 %v26580_v39  ;;  %20015 = vmatpush1.msra.mxu0 %v26710_v28  ;;  %v16106_v11 = vadd.f32 %v16105_v58, %v16009_v38  ;;  %v16196_v21 = vadd.f32 %v16195_v63, %v16093_v36  ;;  %v20108_v39 = vsub.f32 %v26720_v26, %v20107_v37 }
 0x87a   :  { %19767 = vmatprep.mubr.f32.mxu1 %v27305_v51  ;;  %19860 = vmatprep.mubr.f32.mxu0 %v27305_v51  ;;  %v16197_v56 = vpop.f32.mrf.mxu1  ;;  %v16285_v7 = vpop.f32.mrf.mxu0  ;;  %v20063_v23 = vsub.f32 %v26738_v4, %v20062_v12  ;;  %v20115_v54 = vand.u32 4294901760, %v20114_v50 }
 0x87b   :  { %20104 = vmatprep.subr.mxu1 %v20103_v53  ;;  %20200 = vmatprep.subr.mxu0 %v26676_v41  ;;  %v16198_v43 = vadd.f32 %v16197_v56, %v16095_v61  ;;  %v16284_v18 = vadd.f32 %v16283_v44, %v16196_v21  ;;  %v20109_v59 = vand.u32 4294901760, %v20108_v39 }
 0x87c   :  { %19771 = vmatmul.mubr.f32.gmra.mxu1 %v19493_v57  ;;  %19862 = vmatmul.mubr.f32.gmra.mxu0 %v26587_v27  ;;  %v20064_v29 = vand.u32 4294901760, %v20063_v23 }
 0x87d   :  { %19936 = vmatprep.mubr.f32.mxu1 %v27305_v51  ;;  %20048 = vmatprep.mubr.f32.mxu0 %v27305_v51  ;;  %v16286_v16 = vadd.f32 %v16285_v7, %v16198_v43 }
 0x87e   :  { %v16202_v57 = vpop.f32.mrf.mxu1  ;;  %v16291_v60 = vpop.f32.mrf.mxu0 }
 0x87f   :  { %v16203_v30 = vadd.f32 %v16202_v57, %v16104_v32 }
 0x880   :  { %19938 = vmatmul.mubr.f32.vlgmr.msra.gmra.mxu1 %v26550_v47  ;;  %20054 = vmatmul.mubr.f32.vlgmr.msra.gmra.mxu0 %v20053_v0  ;;  %v16204_v10 = vpop.f32.mrf.mxu1  ;;  %v16293_v45 = vpop.f32.mrf.mxu0 }
 0x881   :  { %20110 = vmatpush1.msra.mxu1 %v20109_v59  ;;  %20203 = vmatpush1.msra.mxu0 %v26720_v26  ;;  %v16205_v52 = vadd.f32 %v16204_v10, %v16106_v11  ;;  %v16292_v6 = vadd.f32 %v16291_v60, %v16203_v30 }
 0x882   :  { %20116 = vmatprep.subr.mxu1 %v20115_v54  ;;  %20206 = vmatprep.subr.mxu0 %v26725_v25  ;;  %v16369_v49 = vpop.f32.mrf.mxu1  ;;  %v16462_v36 = vpop.f32.mrf.mxu0 }
 0x883   :  { %20122 = vmatpush1.msra.mxu1 %v20121_v3  ;;  %20209 = vmatpush1.msra.mxu0 %v26729_v8  ;;  %v16294_v47 = vadd.f32 %v16293_v45, %v16205_v52  ;;  %v16370_v61 = vadd.f32 %v16369_v49, %v16284_v18 }
 0x884   :  { %19943 = vmatprep.mubr.f32.mxu1 %v27305_v51  ;;  %20059 = vmatprep.mubr.f32.mxu0 %v27305_v51  ;;  %v16371_v48 = vpop.f32.mrf.mxu1  ;;  %v16464_v46 = vpop.f32.mrf.mxu0 }
 0x885   :  { %20288 = vmatprep.subr.mxu1 %v26662_v20  ;;  %20377 = vmatprep.subr.mxu0 %v20101_v19  ;;  %v16372_v22 = vadd.f32 %v16371_v48, %v16286_v16  ;;  %v16463_v17 = vadd.f32 %v16462_v36, %v16370_v61 }
 0x886   :  { %19945 = vmatmul.mubr.f32.gmra.mxu1 %v26587_v27  ;;  %20065 = vmatmul.mubr.f32.gmra.mxu0 %v20064_v29 }
 0x887   :  { %20155 = vmatprep.mubr.f32.mxu1 %v27305_v51  ;;  %20242 = vmatprep.mubr.f32.mxu0 %v27305_v51  ;;  %v16465_v2 = vadd.f32 %v16464_v46, %v16372_v22 }
 0x888   :  { %v16378_v58 = vpop.f32.mrf.mxu1  ;;  %v16469_v38 = vpop.f32.mrf.mxu0 }
 0x889   :  { %v16379_v32 = vadd.f32 %v16378_v58, %v16292_v6 }
 0x88a   :  { %20157 = vmatmul.mubr.f32.vlgmr.msra.gmra.mxu1 %v26683_v42  ;;  %20245 = vmatmul.mubr.f32.vlgmr.msra.gmra.mxu0 %v26708_v9  ;;  %v16380_v24 = vpop.f32.mrf.mxu1  ;;  %v16471_v41 = vpop.f32.mrf.mxu0 }
 0x88b   :  { %20290 = vmatpush1.msra.mxu1 %v26697_v31  ;;  %20381 = vmatpush1.msra.mxu0 %v20107_v37  ;;  %v16381_v27 = vadd.f32 %v16380_v24, %v16294_v47  ;;  %v16470_v19 = vadd.f32 %v16469_v38, %v16379_v32 }
 0x88c   :  { %20292 = vmatprep.subr.mxu1 %v26703_v1  ;;  %20385 = vmatprep.subr.mxu0 %v20113_v35  ;;  %v16545_v63 = vpop.f32.mrf.mxu1  ;;  %v16657_v44 = vpop.f32.mrf.mxu0 }
 0x88d   :  { %20294 = vmatpush1.msra.mxu1 %v26710_v28  ;;  %20389 = vmatpush1.msra.mxu0 %v20119_v14  ;;  %v16472_v53 = vadd.f32 %v16471_v41, %v16381_v27  ;;  %v26796_v11 = vadd.f32 %v16545_v63, %v16463_v17 }
 0x88e   :  { %20162 = vmatprep.mubr.f32.mxu1 %v27305_v51  ;;  %20466 = vmatprep.subr.mxu1 %v26662_v20  ;;  %v16547_v26 = vpop.f32.mrf.mxu1  ;;  %v16659_v37 = vpop.f32.mrf.mxu0 }
 0x88f   :  { %20164 = vmatmul.mubr.f32.gmra.mxu1 %v26717_v13  ;;  %20250 = vmatprep.mubr.f32.mxu0 %v27305_v51  ;;  %v16548_v25 = vadd.f32 %v16547_v26, %v16465_v2 }
 0x890   :  { %20253 = vmatmul.mubr.f32.gmra.mxu0 %v26738_v4  ;;  %20327 = vmatprep.mubr.f32.mxu1 %v27305_v51 }
 0x891   :  { %20422 = vmatprep.mubr.f32.mxu0 %v27305_v51 }
 0x892   :  { %v16552_v8 = vpop.f32.mrf.mxu1  ;;  %v16668_v35 = vpop.f32.mrf.mxu0 }
 0x893   :  { %20331 = vmatmul.mubr.f32.vlgmr.msra.gmra.mxu1 %v20051_v15  ;;  %v16553_v14 = vadd.f32 %v16552_v8, %v16470_v19 }
 0x894   :  { %20468 = vmatpush1.msra.mxu1 %v26697_v31  ;;  %20424 = vmatmul.mubr.f32.vlgmr.msra.gmra.mxu0 %v26683_v42  ;;  %v16554_v20 = vpop.f32.mrf.mxu1  ;;  %v16670_v21 = vpop.f32.mrf.mxu0 }
 0x895   :  { %20470 = vmatprep.subr.mxu1 %v26703_v1  ;;  %20336 = vmatprep.mubr.f32.mxu1 %v27305_v51  ;;  %v16555_v56 = vadd.f32 %v16554_v20, %v16472_v53 }
 0x896   :  { %20472 = vmatpush1.msra.mxu1 %v26710_v28  ;;  %20429 = vmatprep.mubr.f32.mxu0 %v27305_v51  ;;  %v16760_v7 = vpop.f32.mrf.mxu1  ;;  %v16848_v39 = vpop.f32.mrf.mxu0 }
 0x897   :  { %20340 = vmatmul.mubr.f32.gmra.mxu1 %v20062_v12  ;;  %v16761_v9 = vadd.f32 %v16760_v7, %v16657_v44 }
 0x898   :  { %20431 = vmatmul.mubr.f32.gmra.mxu0 %v26717_v13  ;;  %20505 = vmatprep.mubr.f32.mxu1 %v27305_v51  ;;  %v16762_v31 = vpop.f32.mrf.mxu1  ;;  %v16850_v15 = vpop.f32.mrf.mxu0 }
 0x899   :  { %v16763_v1 = vadd.f32 %v16762_v31, %v16659_v37  ;;  %v16849_v43 = vadd.f32 %v16848_v39, %v16761_v9 }
 0x89b   :  { %20507 = vmatmul.mubr.f32.vlgmr.msra.gmra.mxu1 %v26683_v42  ;;  %v16851_v18 = vadd.f32 %v16850_v15, %v16763_v1 }
 0x89c   :  { %20512 = vmatprep.mubr.f32.mxu1 %v27305_v51  ;;  %v16767_v28 = vpop.f32.mrf.mxu1  ;;  %v16856_v0 = vpop.f32.mrf.mxu0 }
 0x89d   :  { %v16768_v50 = vadd.f32 %v16767_v28, %v16668_v35 }
 0x89e   :  { %v16769_v34 = vpop.f32.mrf.mxu1  ;;  %v16858_v4 = vpop.f32.mrf.mxu0 }
 0x89f   :  { %20514 = vmatmul.mubr.f32.gmra.mxu1 %v26717_v13  ;;  %v16770_v12 = vadd.f32 %v16769_v34, %v16670_v21  ;;  %v16857_v16 = vadd.f32 %v16856_v0, %v16768_v50 }
 0x8a0   :  { %v16934_v23 = vpop.f32.mrf.mxu1  ;;  %v17027_v57 = vpop.f32.mrf.mxu0 }
 0x8a1   :  { %v16859_v60 = vadd.f32 %v16858_v4, %v16770_v12  ;;  %v16935_v59 = vadd.f32 %v16934_v23, %v16849_v43 }
 0x8a2   :  { %v16936_v30 = vpop.f32.mrf.mxu1  ;;  %v17029_v54 = vpop.f32.mrf.mxu0 }
 0x8a3   :  { %v16937_v10 = vadd.f32 %v16936_v30, %v16851_v18  ;;  %v17028_v42 = vadd.f32 %v17027_v57, %v16935_v59 }
 0x8a5   :  { %v17030_v45 = vadd.f32 %v17029_v54, %v16937_v10 }
 0x8a6   :  { %v16943_v3 = vpop.f32.mrf.mxu1  ;;  %v17034_v51 = vpop.f32.mrf.mxu0 }
 0x8a7   :  { %v16944_v52 = vadd.f32 %v16943_v3, %v16857_v16 }
 0x8a8   :  { %v16945_v6 = vpop.f32.mrf.mxu1  ;;  %v17036_v29 = vpop.f32.mrf.mxu0 }
 0x8a9   :  { %v16946_v49 = vadd.f32 %v16945_v6, %v16859_v60  ;;  %v17035_v36 = vadd.f32 %v17034_v51, %v16944_v52 }
 0x8aa   :  { %v17110_v47 = vpop.f32.mrf.mxu1  ;;  %v17226_v13 = vpop.f32.mrf.mxu0 }
 0x8ab   :  { %v17037_v61 = vadd.f32 %v17036_v29, %v16946_v49  ;;  %v17111_v48 = vadd.f32 %v17110_v47, %v17028_v42 }
 0x8ac   :  { %v17112_v46 = vpop.f32.mrf.mxu1  ;;  %v17228_v22 = vpop.f32.mrf.mxu0 }
 0x8ad   :  { %v17122_v17 = vadd.f32 %v17111_v48, %v26796_v11  ;;  %v17113_v2 = vadd.f32 %v17112_v46, %v17030_v45 }
 0x8af   :  { %v17123_v58 = vadd.f32 %v17113_v2, %v16548_v25 }
 0x8b0   :  { %v17117_v38 = vpop.f32.mrf.mxu1  ;;  %v17237_v32 = vpop.f32.mrf.mxu0 }
 0x8b1   :  { %v17118_v24 = vadd.f32 %v17117_v38, %v17035_v36 }
 0x8b2   :  { %v17119_v41 = vpop.f32.mrf.mxu1  ;;  %v17239_v27 = vpop.f32.mrf.mxu0 }
 0x8b3   :  { %v17124_v19 = vadd.f32 %v17118_v24, %v16553_v14  ;;  %v17120_v63 = vadd.f32 %v17119_v41, %v17037_v61 }
 0x8b4   :  { %v17329_v44 = vpop.f32.mrf.mxu1  ;;  %v17417_v53 = vpop.f32.mrf.mxu0 }
 0x8b5   :  { %v17125_v26 = vadd.f32 %v17120_v63, %v16555_v56  ;;  %v17330_v37 = vadd.f32 %v17329_v44, %v17226_v13 }
 0x8b6   :  { %v17331_v8 = vpop.f32.mrf.mxu1  ;;  %v17419_v35 = vpop.f32.mrf.mxu0 }
 0x8b7   :  { %v17332_v20 = vadd.f32 %v17331_v8, %v17228_v22  ;;  %v17418_v21 = vadd.f32 %v17417_v53, %v17330_v37 }
 0x8b9   :  { %v17420_v7 = vadd.f32 %v17419_v35, %v17332_v20 }
 0x8ba   :  { %v17336_v39 = vpop.f32.mrf.mxu1  ;;  %v17425_v11 = vpop.f32.mrf.mxu0 }
 0x8bb   :  { %v17337_v9 = vadd.f32 %v17336_v39, %v17237_v32 }
 0x8bc   :  { %v17338_v25 = vpop.f32.mrf.mxu1  ;;  %v17427_v31 = vpop.f32.mrf.mxu0 }
 0x8bd   :  { %v17339_v15 = vadd.f32 %v17338_v25, %v17239_v27  ;;  %v17426_v1 = vadd.f32 %v17425_v11, %v17337_v9 }
 0x8be   :  { %v17503_v43 = vpop.f32.mrf.mxu1  ;;  %v17596_v18 = vpop.f32.mrf.mxu0 }
 0x8bf   :  { %v17428_v14 = vadd.f32 %v17427_v31, %v17339_v15  ;;  %v17504_v28 = vadd.f32 %v17503_v43, %v17418_v21 }
 0x8c0   :  { %v17505_v0 = vpop.f32.mrf.mxu1  ;;  %v17598_v50 = vpop.f32.mrf.mxu0 }
 0x8c1   :  { %v17506_v56 = vadd.f32 %v17505_v0, %v17420_v7  ;;  %v17597_v34 = vadd.f32 %v17596_v18, %v17504_v28 }
 0x8c3   :  { %v17599_v4 = vadd.f32 %v17598_v50, %v17506_v56 }
 0x8c4   :  { %v17512_v12 = vpop.f32.mrf.mxu1  ;;  %v17603_v16 = vpop.f32.mrf.mxu0 }
 0x8c5   :  { %v17513_v23 = vadd.f32 %v17512_v12, %v17426_v1 }
 0x8c6   :  { %v17514_v57 = vpop.f32.mrf.mxu1  ;;  %v17605_v60 = vpop.f32.mrf.mxu0 }
 0x8c7   :  { %v17515_v59 = vadd.f32 %v17514_v57, %v17428_v14  ;;  %v17604_v30 = vadd.f32 %v17603_v16, %v17513_v23 }
 0x8c8   :  { %v17679_v54 = vpop.f32.mrf.mxu1  ;;  %v17779_v10 = vpop.f32.mrf.mxu0 }
 0x8c9   :  { %v17606_v42 = vadd.f32 %v17605_v60, %v17515_v59  ;;  %v17680_v45 = vadd.f32 %v17679_v54, %v17597_v34 }
 0x8ca   :  { %v17681_v3 = vpop.f32.mrf.mxu1  ;;  %v17781_v51 = vpop.f32.mrf.mxu0 }
 0x8cb   :  { %v17691_v52 = vadd.f32 %v17680_v45, %v17122_v17  ;;  %v17682_v6 = vadd.f32 %v17681_v3, %v17599_v4 }
 0x8cd   :  { %v17692_v29 = vadd.f32 %v17682_v6, %v17123_v58 }
 0x8ce   :  { %v17686_v49 = vpop.f32.mrf.mxu1  ;;  %v17790_v36 = vpop.f32.mrf.mxu0 }
 0x8cf   :  { %v17687_v47 = vadd.f32 %v17686_v49, %v17604_v30 }
 0x8d0   :  { %v17688_v13 = vpop.f32.mrf.mxu1  ;;  %v17792_v61 = vpop.f32.mrf.mxu0 }
 0x8d1   :  { %v17693_v48 = vadd.f32 %v17687_v47, %v17124_v19  ;;  %v17689_v46 = vadd.f32 %v17688_v13, %v17606_v42 }
 0x8d2   :  { %v17882_v22 = vpop.f32.mrf.mxu1  ;;  %v17970_v2 = vpop.f32.mrf.mxu0 }
 0x8d3   :  { %v17694_v38 = vadd.f32 %v17689_v46, %v17125_v26  ;;  %v17883_v32 = vadd.f32 %v17882_v22, %v17779_v10 }
 0x8d4   :  { %v17884_v24 = vpop.f32.mrf.mxu1  ;;  %v17972_v41 = vpop.f32.mrf.mxu0 }
 0x8d5   :  { %v17885_v27 = vadd.f32 %v17884_v24, %v17781_v51  ;;  %v17971_v63 = vadd.f32 %v17970_v2, %v17883_v32 }
 0x8d7   :  { %v17973_v44 = vadd.f32 %v17972_v41, %v17885_v27 }
 0x8d8   :  { %v17889_v53 = vpop.f32.mrf.mxu1  ;;  %v17978_v17 = vpop.f32.mrf.mxu0 }
 0x8d9   :  { %v17890_v37 = vadd.f32 %v17889_v53, %v17790_v36 }
 0x8da   :  { %v17891_v58 = vpop.f32.mrf.mxu1  ;;  %v17980_v8 = vpop.f32.mrf.mxu0 }
 0x8db   :  { %v17892_v35 = vadd.f32 %v17891_v58, %v17792_v61  ;;  %v17979_v20 = vadd.f32 %v17978_v17, %v17890_v37 }
 0x8dc   :  { %v18056_v21 = vpop.f32.mrf.mxu1  ;;  %v18149_v7 = vpop.f32.mrf.mxu0 }
 0x8dd   :  { %v17981_v19 = vadd.f32 %v17980_v8, %v17892_v35  ;;  %v18057_v39 = vadd.f32 %v18056_v21, %v17971_v63 }
 0x8de   :  { %v18058_v11 = vpop.f32.mrf.mxu1  ;;  %v18151_v9 = vpop.f32.mrf.mxu0 }
 0x8df   :  { %v18059_v26 = vadd.f32 %v18058_v11, %v17973_v44  ;;  %v18150_v25 = vadd.f32 %v18149_v7, %v18057_v39 }
 0x8e1   :  { %v18152_v31 = vadd.f32 %v18151_v9, %v18059_v26 }
 0x8e2   :  { %v18065_v15 = vpop.f32.mrf.mxu1  ;;  %v18156_v1 = vpop.f32.mrf.mxu0 }
 0x8e3   :  { %v18066_v43 = vadd.f32 %v18065_v15, %v17979_v20 }
 0x8e4   :  { %v18067_v18 = vpop.f32.mrf.mxu1  ;;  %v18158_v14 = vpop.f32.mrf.mxu0 }
 0x8e5   :  { %v18068_v28 = vadd.f32 %v18067_v18, %v17981_v19  ;;  %v18157_v0 = vadd.f32 %v18156_v1, %v18066_v43 }
 0x8e6   :  { %v18232_v50 = vpop.f32.mrf.mxu1  ;;  %v18348_v56 = vpop.f32.mrf.mxu0 }
 0x8e7   :  { %v18159_v34 = vadd.f32 %v18158_v14, %v18068_v28  ;;  %v18233_v4 = vadd.f32 %v18232_v50, %v18150_v25 }
 0x8e8   :  { %v18234_v12 = vpop.f32.mrf.mxu1  ;;  %v18350_v16 = vpop.f32.mrf.mxu0 }
 0x8e9   :  { %v18244_v23 = vadd.f32 %v18233_v4, %v17691_v52  ;;  %v18235_v57 = vadd.f32 %v18234_v12, %v18152_v31 }
 0x8eb   :  { %v18245_v60 = vadd.f32 %v18235_v57, %v17692_v29 }
 0x8ec   :  { %v18239_v59 = vpop.f32.mrf.mxu1  ;;  %v18359_v30 = vpop.f32.mrf.mxu0 }
 0x8ed   :  { %v18240_v54 = vadd.f32 %v18239_v59, %v18157_v0 }
 0x8ee   :  { %v18241_v10 = vpop.f32.mrf.mxu1  ;;  %v18361_v42 = vpop.f32.mrf.mxu0 }
 0x8ef   :  { %v18246_v45 = vadd.f32 %v18240_v54, %v17693_v48  ;;  %v18242_v3 = vadd.f32 %v18241_v10, %v18159_v34 }
 0x8f0   :  { %v18451_v51 = vpop.f32.mrf.mxu1  ;;  %v18539_v6 = vpop.f32.mrf.mxu0 }
 0x8f1   :  { %v18247_v49 = vadd.f32 %v18242_v3, %v17694_v38  ;;  %v18452_v36 = vadd.f32 %v18451_v51, %v18348_v56 }
 0x8f2   :  { %v18453_v47 = vpop.f32.mrf.mxu1  ;;  %v18541_v13 = vpop.f32.mrf.mxu0 }
 0x8f3   :  { %v18454_v61 = vadd.f32 %v18453_v47, %v18350_v16  ;;  %v18540_v46 = vadd.f32 %v18539_v6, %v18452_v36 }
 0x8f5   :  { %v18542_v22 = vadd.f32 %v18541_v13, %v18454_v61 }
 0x8f6   :  { %v18458_v2 = vpop.f32.mrf.mxu1  ;;  %v18547_v52 = vpop.f32.mrf.mxu0 }
 0x8f7   :  { %v18459_v32 = vadd.f32 %v18458_v2, %v18359_v30 }
 0x8f8   :  { %v18460_v29 = vpop.f32.mrf.mxu1  ;;  %v18549_v24 = vpop.f32.mrf.mxu0 }
 0x8f9   :  { %v18461_v41 = vadd.f32 %v18460_v29, %v18361_v42  ;;  %v18548_v27 = vadd.f32 %v18547_v52, %v18459_v32 }
 0x8fa   :  { %v18625_v63 = vpop.f32.mrf.mxu1  ;;  %v18718_v44 = vpop.f32.mrf.mxu0 }
 0x8fb   :  { %v18550_v48 = vadd.f32 %v18549_v24, %v18461_v41  ;;  %v18626_v53 = vadd.f32 %v18625_v63, %v18540_v46 }
 0x8fc   :  { %v18627_v17 = vpop.f32.mrf.mxu1  ;;  %v18720_v37 = vpop.f32.mrf.mxu0 }
 0x8fd   :  { %v18628_v38 = vadd.f32 %v18627_v17, %v18542_v22  ;;  %v18719_v58 = vadd.f32 %v18718_v44, %v18626_v53 }
 0x8ff   :  { %v18721_v8 = vadd.f32 %v18720_v37, %v18628_v38 }
 0x900   :  { %v18634_v35 = vpop.f32.mrf.mxu1  ;;  %v18725_v20 = vpop.f32.mrf.mxu0 }
 0x901   :  { %v18635_v21 = vadd.f32 %v18634_v35, %v18548_v27 }
 0x902   :  { %v18636_v7 = vpop.f32.mrf.mxu1  ;;  %v18727_v19 = vpop.f32.mrf.mxu0 }
 0x903   :  { %v18637_v39 = vadd.f32 %v18636_v7, %v18550_v48  ;;  %v18726_v11 = vadd.f32 %v18725_v20, %v18635_v21 }
 0x904   :  { %v18801_v9 = vpop.f32.mrf.mxu1  ;;  %v26821_v26 = vpop.f32.mrf.mxu0 }
 0x905   :  { %v18728_v25 = vadd.f32 %v18727_v19, %v18637_v39  ;;  %v18802_v31 = vadd.f32 %v18801_v9, %v18719_v58 }
 0x906   :  { %v18803_v15 = vpop.f32.mrf.mxu1  ;;  %v18919_v1 = vpop.f32.mrf.mxu0 }
 0x907   :  { %v26823_v43 = vadd.f32 %v18802_v31, %v18244_v23  ;;  %v18804_v18 = vadd.f32 %v18803_v15, %v18721_v8 }
 0x909   :  { %27306 = vst [vmem:[#allocation32_spill] sm:$0xff] %v26823_v43  ;;  %v26825_v14 = vadd.f32 %v18804_v18, %v18245_v60 }
 0x90a   :  { %v18808_v28 = vpop.f32.mrf.mxu1  ;;  %v26827_v0 = vpop.f32.mrf.mxu0 }
 0x90b   :  { %27307 = vst [vmem:[#allocation15_spill] sm:$0xff] %v26825_v14  ;;  %v18809_v50 = vadd.f32 %v18808_v28, %v18726_v11 }
 0x90c   :  { %v18810_v56 = vpop.f32.mrf.mxu1  ;;  %v26829_v34 = vpop.f32.mrf.mxu0 }
 0x90d   :  { %v26831_v4 = vadd.f32 %v18809_v50, %v18246_v45  ;;  %v18811_v12 = vadd.f32 %v18810_v56, %v18728_v25 }
 0x90e   :  { %v19020_v16 = vpop.f32.mrf.mxu1  ;;  %v19108_v57 = vpop.f32.mrf.mxu0 }
 0x90f   :  { %27308 = vst [vmem:[#allocation36_spill] sm:$0xff] %v26831_v4  ;;  %v26833_v59 = vadd.f32 %v18811_v12, %v18247_v49  ;;  %v19021_v50 = vadd.f32 %v19020_v16, %v26821_v26 }
 0x910   :  { %v19022_v30 = vpop.f32.mrf.mxu1  ;;  %v19110_v23 = vpop.f32.mrf.mxu0 }
 0x911   :  { %27309 = vst [vmem:[#allocation44_spill] sm:$0xff] %v26833_v59  ;;  %v19023_v56 = vadd.f32 %v19022_v30, %v18919_v1  ;;  %v19109_v5 = vadd.f32 %v19108_v57, %v19021_v50 }
 0x913   :  { %v19111_v4 = vadd.f32 %v19110_v23, %v19023_v56 }
 0x914   :  { %v19027_v54 = vpop.f32.mrf.mxu1  ;;  %v19116_v10 = vpop.f32.mrf.mxu0 }
 0x915   :  { %v19028_v59 = vadd.f32 %v19027_v54, %v26827_v0 }
 0x916   :  { %v19029_v60 = vpop.f32.mrf.mxu1  ;;  %v26835_v42 = vpop.f32.mrf.mxu0  ;;  %v27325_v56 = vld [vmem:[#allocation36_spill] sm:$0xff] }
 0x917   :  { %v19117_v1 = vadd.f32 %v19116_v10, %v19028_v59 }
 0x918   :  { %v19194_v3 = vpop.f32.mrf.mxu1  ;;  %v26837_v51 = vpop.f32.mrf.mxu0 }
 0x91a   :  { %v19196_v6 = vpop.f32.mrf.mxu1  ;;  %v26839_v36 = vpop.f32.mrf.mxu0 }
 0x91e   :  { %v26841_v45 = vpop.f32.mrf.mxu1  ;;  %v26843_v47 = vpop.f32.mrf.mxu0 }
 0x920   :  { %v26845_v13 = vpop.f32.mrf.mxu1  ;;  %v26847_v49 = vpop.f32.mrf.mxu0 }
 0x922   :  { %v26849_v61 = vpop.f32.mrf.mxu1  ;;  %v19486_v46 = vpop.f32.mrf.mxu0 }
 0x924   :  { %v26851_v22 = vpop.f32.mrf.mxu1  ;;  %v19488_v2 = vpop.f32.mrf.mxu0 }
 0x928   :  { %v26853_v52 = vpop.f32.mrf.mxu1  ;;  %v19497_v32 = vpop.f32.mrf.mxu0 }
 0x929   :  { %27310 = vst [vmem:[#allocation54_spill] sm:$0xff] %v26853_v52 }
 0x92a   :  { %v26855_v29 = vpop.f32.mrf.mxu1  ;;  %v19499_v24 = vpop.f32.mrf.mxu0 }
 0x92b   :  { %27311 = vst [vmem:[#allocation31_spill] sm:$0xff] %v26855_v29  ;;  %v19030_v29 = vadd.f32 %v19029_v60, %v26829_v34  ;;  %v19204_v34 = vadd.f32 %v26841_v45, %v19117_v1 }
 0x92c   :  { %v19589_v41 = vpop.f32.mrf.mxu1  ;;  %v19677_v27 = vpop.f32.mrf.mxu0 }
 0x92d   :  { %v19590_v40 = vadd.f32 %v19589_v41, %v19486_v46  ;;  %v19119_v0 = vadd.f32 %v26835_v42, %v19030_v29 }
 0x92e   :  { %v19591_v63 = vpop.f32.mrf.mxu1  ;;  %v19679_v44 = vpop.f32.mrf.mxu0 }
 0x92f   :  { %v19206_v10 = vadd.f32 %v26845_v13, %v19119_v0 }
 0x932   :  { %v19596_v48 = vpop.f32.mrf.mxu1  ;;  %v19685_v53 = vpop.f32.mrf.mxu0 }
 0x933   :  { %v19597_v14 = vadd.f32 %v19596_v48, %v19497_v32  ;;  %v27317_v48 = vld [vmem:[#allocation32_spill] sm:$0xff] }
 0x934   :  { %v19598_v17 = vpop.f32.mrf.mxu1  ;;  %v19687_v37 = vpop.f32.mrf.mxu0 }
 0x935   :  { %v19599_v16 = vadd.f32 %v19598_v17, %v19499_v24  ;;  %v27318_v17 = vld [vmem:[#allocation54_spill] sm:$0xff] }
 0x936   :  { %v19763_v38 = vpop.f32.mrf.mxu1  ;;  %v19856_v58 = vpop.f32.mrf.mxu0 }
 0x938   :  { %v19765_v8 = vpop.f32.mrf.mxu1  ;;  %v26857_v35 = vpop.f32.mrf.mxu0 }
 0x93c   :  { %v19772_v20 = vpop.f32.mrf.mxu1  ;;  %v26859_v21 = vpop.f32.mrf.mxu0 }
 0x93d   :  { %27312 = vst [vmem:[#allocation19_spill] sm:$0xff] %v26859_v21  ;;  %v19678_v21 = vadd.f32 %v19677_v27, %v19590_v40 }
 0x93e   :  { %v19774_v7 = vpop.f32.mrf.mxu1  ;;  %v26861_v19 = vpop.f32.mrf.mxu0 }
 0x93f   :  { %27313 = vst [vmem:[#allocation28_spill] sm:$0xff] %v26861_v19  ;;  %v19592_v19 = vadd.f32 %v19591_v63, %v19488_v2  ;;  %v19764_v41 = vadd.f32 %v19763_v38, %v19678_v21 }
 0x940   :  { %v19939_v39 = vpop.f32.mrf.mxu1  ;;  %v20055_v11 = vpop.f32.mrf.mxu0 }
 0x941   :  { %v19680_v46 = vadd.f32 %v19679_v44, %v19592_v19  ;;  %v19857_v42 = vadd.f32 %v19856_v58, %v19764_v41  ;;  %v19297_v44 = vadd.f32 %v26847_v49, %v19206_v10  ;;  %v27322_v19 = vld [vmem:[#allocation31_spill] sm:$0xff] }
 0x942   :  { %v26863_v9 = vpop.f32.mrf.mxu1  ;;  %v20057_v25 = vpop.f32.mrf.mxu0 }
 0x943   :  { %27314 = vst [vmem:[#allocation25_spill] sm:$0xff] %v26863_v9  ;;  %v19766_v40 = vadd.f32 %v19765_v8, %v19680_v46  ;;  %v19940_v27 = vadd.f32 %v19939_v39, %v19857_v42  ;;  %v19380_v39 = vadd.f32 %v27322_v19, %v19297_v44  ;;  %v27331_v44 = vld [vmem:[#allocation14_spill] sm:$0xff] }
 0x945   :  { %v19859_v13 = vadd.f32 %v26857_v35, %v19766_v40  ;;  %v27321_v35 = vld [vmem:[#allocation15_spill] sm:$0xff] }
 0x946   :  { %v26865_v31 = vpop.f32.mrf.mxu1  ;;  %v20066_v15 = vpop.f32.mrf.mxu0 }
 0x947   :  { %27315 = vst [vmem:[#allocation29_spill] sm:$0xff] %v26865_v31  ;;  %v19195_v31 = vadd.f32 %v19194_v3, %v19109_v5  ;;  %v19686_v5 = vadd.f32 %v19685_v53, %v19597_v14 }
 0x948   :  { %v26867_v18 = vpop.f32.mrf.mxu1  ;;  %v20068_v28 = vpop.f32.mrf.mxu0 }
 0x949   :  { %27316 = vst [vmem:[#allocation16_spill] sm:$0xff] %v26867_v18  ;;  %v19197_v18 = vadd.f32 %v19196_v6, %v19111_v4  ;;  %v19288_v23 = vadd.f32 %v26837_v51, %v19195_v31  ;;  %v19773_v2 = vadd.f32 %v19772_v20, %v19686_v5 }
 0x94a   :  { %v20158_v12 = vpop.f32.mrf.mxu1  ;;  %v20246_v62 = vpop.f32.mrf.mxu0 }
 0x94b   :  { %v20159_v52 = vadd.f32 %v20158_v12, %v20055_v11  ;;  %v19290_v4 = vadd.f32 %v26839_v36, %v19197_v18  ;;  %v19371_v6 = vadd.f32 %v26849_v61, %v19288_v23  ;;  %v19295_v36 = vadd.f32 %v26843_v47, %v19204_v34  ;;  %v27320_v47 = vld [vmem:[#allocation25_spill] sm:$0xff]  ;;  %v27323_v11 = vld [vmem:[#allocation28_spill] sm:$0xff] }
 0x94c   :  { %v20160_v55 = vpop.f32.mrf.mxu1  ;;  %v20248_v33 = vpop.f32.mrf.mxu0  ;;  %v19942_v8 = vadd.f32 %v27320_v47, %v19859_v13  ;;  %v27327_v34 = vld [vmem:[#allocation44_spill] sm:$0xff] }
 0x94d   :  { %v20161_v43 = vadd.f32 %v20160_v55, %v20057_v25  ;;  %v20247_v60 = vadd.f32 %v20246_v62, %v20159_v52  ;;  %v19688_v55 = vadd.f32 %v19687_v37, %v19599_v16  ;;  %v19373_v62 = vadd.f32 %v26851_v22, %v19290_v4 }
 0x94e   :  { %v19382_v53 = vadd.f32 %v19371_v6, %v27317_v48  ;;  %v19385_v5 = vadd.f32 %v19380_v39, %v27327_v34 }
 0x94f   :  { %v20165_v9 = vpop.f32.mrf.mxu1  ;;  %v20249_v51 = vadd.f32 %v20248_v33, %v20161_v43  ;;  %v19775_v52 = vadd.f32 %v19774_v7, %v19688_v55  ;;  %v19378_v33 = vadd.f32 %v27318_v17, %v19295_v36  ;;  %v27319_v43 = vld [vmem:[#allocation19_spill] sm:$0xff]  ;;  %v19383_v7 = vadd.f32 %v19373_v62, %v27321_v35 }
 0x950   :  { %v20254_v26 = vpop.f32.mrf.mxu0  ;;  %v20166_v3 = vadd.f32 %v20165_v9, %v20066_v15  ;;  %v19864_v37 = vadd.f32 %v27319_v43, %v19773_v2  ;;  %v27324_v9 = vld [vmem:[#allocation29_spill] sm:$0xff]  ;;  %v19951_v15 = vadd.f32 %v19940_v27, %v19382_v53 }
 0x951   :  { %v20167_v30 = vpop.f32.mrf.mxu1  ;;  %v19866_v49 = vadd.f32 %v27323_v11, %v19775_v52  ;;  %v19384_v12 = vadd.f32 %v19378_v33, %v27325_v56  ;;  %v19952_v41 = vadd.f32 %v19942_v8, %v19383_v7  ;;  %v27330_v27 = vld [vmem:[#allocation21_spill] sm:$0xff] }
 0x952   :  { %v20256_v57 = vpop.f32.mrf.mxu0  ;;  %v20168_v45 = vadd.f32 %v20167_v30, %v20068_v28  ;;  %v20255_v61 = vadd.f32 %v20254_v26, %v20166_v3  ;;  %v19947_v25 = vadd.f32 %v27324_v9, %v19864_v37  ;;  %v27326_v26 = vld [vmem:[#allocation16_spill] sm:$0xff]  ;;  %v20525_v30 = vstv %s26878_s1 }
 0x953   :  { %v20332_v54 = vpop.f32.mrf.mxu1  ;;  %v19949_v1 = vadd.f32 %v27326_v26, %v19866_v49  ;;  %v27333_v9 = vlaneseq }
 0x954   :  { %v20425_v59 = vpop.f32.mrf.mxu0  ;;  %v20333_v14 = vadd.f32 %v20332_v54, %v20247_v60  ;;  %v20257_v22 = vadd.f32 %v20256_v57, %v20168_v45  ;;  %v19953_v54 = vadd.f32 %v19947_v25, %v19384_v12 }
 0x955   :  { %v20334_v32 = vpop.f32.mrf.mxu1  ;;  %v19954_v10 = vadd.f32 %v19949_v1, %v19385_v5  ;;  %v20575_v25 = vshrl.u32 %v27333_v9, 7 }
 0x956   :  { %v20427_v29 = vpop.f32.mrf.mxu0  ;;  %v20335_v63 = vadd.f32 %v20334_v32, %v20249_v51  ;;  %v20426_v20 = vadd.f32 %v20425_v59, %v20333_v14  ;;  %v27328_v51 = vld [vmem:[#allocation20_spill] sm:$0xff] }
 0x957   :  { %v20341_v24 = vpop.f32.mrf.mxu1  ;;  %vm20576_vm9 = vcmp.lt.s32.totalorder %v20575_v25, 7 }
 0x958   :  { %v20432_v58 = vpop.f32.mrf.mxu0  ;;  %v20342_v21 = vadd.f32 %v20341_v24, %v20255_v61  ;;  %v20428_v18 = vadd.f32 %v20427_v29, %v20335_v63  ;;  %v27329_v24 = vld [vmem:[#allocation18_spill] sm:$0xff] }
 0x959   :  { %v20343_v38 = vpop.f32.mrf.mxu1 }
 0x95a   :  { %v20344_v28 = vadd.f32 %v20343_v38, %v20257_v22  ;;  %v20434_v16 = vpop.f32.mrf.mxu0  ;;  %v20433_v57 = vadd.f32 %v20432_v58, %v20342_v21 }
 0x95b   :  { %v20508_v31 = vpop.f32.mrf.mxu1 }
 0x95c   :  { %v20509_v50 = vadd.f32 %v20508_v31, %v20426_v20  ;;  %v20435_v40 = vadd.f32 %v20434_v16, %v20344_v28 }
 0x95d   :  { %v20510_v46 = vpop.f32.mrf.mxu1 }
 0x95e   :  { %v20520_v0 = vadd.f32 %v20509_v50, %v19951_v15  ;;  %v20511_v23 = vadd.f32 %v20510_v46, %v20428_v18 }
 0x95f   :  { %v20515_v4 = vpop.f32.mrf.mxu1 }
 0x960   :  { %v20526_v60 = vadd.f32 %v20525_v30, %v20520_v0  ;;  %v20521_v3 = vadd.f32 %v20511_v23, %v19952_v41  ;;  %v20516_v59 = vadd.f32 %v20515_v4, %v20433_v57  ;;  %v20780_v4 = vld [vmem:[%s26968_s4 + $0x20] sm:$0xff] }
 0x961   :  { %v20517_v6 = vpop.f32.mrf.mxu1 }
 0x962   :  { %v20530_v55 = vmax.f32 %v20526_v60, 0.0  ;;  %v20527_v2 = vadd.f32 %v20525_v30, %v20521_v3  ;;  %v20522_v32 = vadd.f32 %v20516_v59, %v19953_v54  ;;  %v20518_v42 = vadd.f32 %v20517_v6, %v20435_v40  ;;  %v20781_v40 = vld [vmem:[%s26968_s4 + $0x28] sm:$0xff] }
 0x963   :  { %v20591_v6 = vld [vmem:[%s26968_s4 + $0x8] sm:$0xff] }
 0x964   :  { %v20534_v45 = vadd.f32 %v20530_v55, %v27328_v51  ;;  %v20531_v14 = vmax.f32 %v20527_v2, 0.0  ;;  %v20528_v29 = vadd.f32 %v20525_v30, %v20522_v32  ;;  %v20523_v36 = vadd.f32 %v20518_v42, %v19954_v10  ;;  %v20590_v10 = vld [vmem:[%s26968_s4] sm:$0xff]  ;;  %v20782_v55 = vld [vmem:[%s26968_s4 + $0x30] sm:$0xff]  ;;  %v20786_v32 = vld [vmem:[%s26968_s4 + $0x48] sm:$0xff] }
 0x965   :  { %v20785_v2 = vld [vmem:[%s26968_s4 + $0x40] sm:$0xff] }
 0x966   :  { %v20532_v62 = vmax.f32 %v20528_v29, 0.0  ;;  %v20529_v52 = vadd.f32 %v20525_v30, %v20523_v36  ;;  %20538 = vrot.lane.b32.xlu0 %v20534_v45, %s20948_s16  ;;  %v20535_v13 = vadd.f32 %v20531_v14, %v27329_v24  ;;  %v20592_v14 = vld [vmem:[%s26968_s4 + $0x10] sm:$0xff]  ;;  %v20783_v29 = vld [vmem:[%s26968_s4 + $0x38] sm:$0xff] }
 0x968   :  { %v20536_v61 = vadd.f32 %v20532_v62, %v27330_v27  ;;  %v20533_v63 = vmax.f32 %v20529_v52, 0.0  ;;  %v20787_v27 = vld [vmem:[%s26968_s4 + $0x50] sm:$0xff] }
 0x96a   :  { %20540 = vrot.lane.b32.xlu1 %v20536_v61, %s20948_s16  ;;  %20542 = vrot.lane.b32.xlu0 %v20535_v13, %s20948_s16  ;;  %v20537_v48 = vadd.f32 %v20533_v63, %v27331_v44 }
 0x96e   :  { %20544 = vrot.lane.b32.xlu1 %v20537_v48, %s20948_s16 }
 0x9d8   :  { %v20539_v53 = vpop.permute.xlu0 %20538 }
 0x9dc   :  { %v20541_v17 = vpop.permute.xlu1 %20540  ;;  %v20543_v33 = vpop.permute.xlu0 %20542 }
 0x9dd   :  { %v20546_v37 = vsel %vm2907_vm5, %v20539_v53, %v20543_v33  ;;  %v20548_v58 = vsel %vm2907_vm5, %v20543_v33, %v20539_v53 }
 0x9de   :  { %v20550_v38 = vmax.f32 %v20534_v45, %v20546_v37  ;;  %v20551_v22 = vmax.f32 %v20535_v13, %v20548_v58  ;;  %v20593_v13 = vld [vmem:[%s26968_s4 + $0x18] sm:$0xff] }
 0x9e0   :  { %20554 = vrot.lane.b32.xlu0 %v20550_v38, %s20950_s18  ;;  %v20545_v47 = vpop.permute.xlu1 %20544 }
 0x9e1   :  { %v20547_v8 = vsel %vm2907_vm5, %v20541_v17, %v20545_v47  ;;  %v20549_v21 = vsel %vm2907_vm5, %v20545_v47, %v20541_v17  ;;  %v20788_v47 = vld [vmem:[%s26968_s4 + $0x58] sm:$0xff]  ;;  %s20589_s4 = sld [smem:[#allocation5]] }
 0x9e2   :  { %v20552_v20 = vmax.f32 %v20536_v61, %v20547_v8  ;;  %v20553_v35 = vmax.f32 %v20537_v48, %v20549_v21 }
 0x9e4   :  { %20558 = vrot.lane.b32.xlu0 %v20551_v22, %s20950_s18  ;;  %20556 = vrot.lane.b32.xlu1 %v20552_v20, %s20950_s18 }
 0x9e8   :  { %20560 = vrot.lane.b32.xlu1 %v20553_v35, %s20950_s18 }
 0xa52   :  { %v20555_v7 = vpop.permute.xlu0 %20554 }
 0xa56   :  { %v20559_v19 = vpop.permute.xlu0 %20558  ;;  %v20557_v39 = vpop.permute.xlu1 %20556 }
 0xa57   :  { %v20562_v11 = vsel %vm4057_vm7, %v20555_v7, %v20559_v19  ;;  %v20564_v49 = vsel %vm4057_vm7, %v20559_v19, %v20555_v7 }
 0xa58   :  { %v20566_v31 = vmax.f32 %v20550_v38, %v20562_v11  ;;  %v20567_v15 = vmax.f32 %v20551_v22, %v20564_v49 }
 0xa5a   :  { %v20561_v18 = vpop.permute.xlu1 %20560  ;;  %v20570_v26 = vrot.slane %v20566_v31, 1  ;;  %v20571_v1 = vrot.slane %v20567_v15, 1 }
 0xa5b   :  { %v20563_v28 = vsel %vm4057_vm7, %v20557_v39, %v20561_v18  ;;  %v20565_v50 = vsel %vm4057_vm7, %v20561_v18, %v20557_v39 }
 0xa5c   :  { %v20568_v56 = vmax.f32 %v20552_v20, %v20563_v28  ;;  %v20569_v12 = vmax.f32 %v20553_v35, %v20565_v50 }
 0xa5e   :  { %v20572_v16 = vrot.slane %v20568_v56, 1  ;;  %v20573_v30 = vrot.slane %v20569_v12, 1 }
 0xa60   :  { %v20577_v46 = vsel %vm20576_vm9, %v20570_v26, %v20572_v16  ;;  %v20578_v41 = vsel %vm20576_vm9, %v20571_v1, %v20573_v30  ;;  %v20579_v57 = vsel %vm20576_vm9, %v20572_v16, %v20570_v26  ;;  %v20580_v0 = vsel %vm20576_vm9, %v20573_v30, %v20571_v1 }
 0xa61   :  { %v20581_v23 = vmax.f32 %v20566_v31, %v20577_v46  ;;  %v20582_v34 = vmax.f32 %v20567_v15, %v20578_v41  ;;  %v20583_v5 = vmax.f32 %v20568_v56, %v20579_v57  ;;  %v20584_v54 = vmax.f32 %v20569_v12, %v20580_v0 }
 0xa63   :  { %v20585_v60 = vmax.f32 %v20581_v23, 0.0  ;;  %v20586_v3 = vmax.f32 %v20582_v34, 0.0  ;;  %v20587_v59 = vmax.f32 %v20583_v5, 0.0  ;;  %v20588_v42 = vmax.f32 %v20584_v54, 0.0 }
 0xa65   :  { %v20619_v51 = vmul.f32 %v20780_v4, %v20585_v60  ;;  %v20620_v45 = vmul.f32 %v20781_v40, %v20586_v3  ;;  %v20594_v36 = vmul.f32 %v20590_v10, %v20585_v60  ;;  %v20595_v62 = vmul.f32 %v20591_v6, %v20586_v3 }
 0xa66   :  { %v20621_v52 = vmul.f32 %v20782_v55, %v20587_v59  ;;  %v20644_v61 = vmul.f32 %v20785_v2, %v20585_v60  ;;  %v20645_v63 = vmul.f32 %v20786_v32, %v20586_v3  ;;  %v20596_v44 = vmul.f32 %v20592_v14, %v20587_v59 }
 0xa67   :  { %v20623_v24 = vadd.f32 %v20620_v45, %v20619_v51  ;;  %v20598_v48 = vadd.f32 %v20595_v62, %v20594_v36  ;;  %v20622_v53 = vmul.f32 %v20783_v29, %v20588_v42  ;;  %v20597_v43 = vmul.f32 %v20593_v13, %v20588_v42 }
 0xa68   :  { %v20648_v33 = vadd.f32 %v20645_v63, %v20644_v61  ;;  %v20646_v38 = vmul.f32 %v20787_v27, %v20587_v59  ;;  %v20647_v20 = vmul.f32 %v20788_v47, %v20588_v42 }
 0xa69   :  { %v20624_v17 = vadd.f32 %v20623_v24, %v20621_v52  ;;  %v20599_v37 = vadd.f32 %v20598_v48, %v20596_v44 }
 0xa6a   :  { %v20649_v22 = vadd.f32 %v20648_v33, %v20646_v38 }
 0xa6b   :  { %v20625_v58 = vadd.f32 %v20624_v17, %v20622_v53  ;;  %v20600_v8 = vadd.f32 %v20599_v37, %v20597_v43 }
 0xa6c   :  { %v20650_v21 = vadd.f32 %v20649_v22, %v20647_v20 }
 0xa6d   :  { %20626 = vadd.xlane.f32.xlu1 %v20625_v58  ;;  %20601 = vadd.xlane.f32.xlu0 %v20600_v8 }
 0xa71   :  { %20651 = vadd.xlane.f32.xlu0 %v20650_v21 }
 0xaf6   :  { %v20627_v35 = vpop.xlane.xlu1 %20626  ;;  %v20602_v19 = vpop.xlane.xlu0 %20601 }
 0xaf7   :  { %v20628_v7 = vrot.slane %v20627_v35, 4  ;;  %v20603_v39 = vrot.slane %v20602_v19, 4 }
 0xaf9   :  { %v20629_v11 = vadd.f32 %v20628_v7, %v20627_v35  ;;  %v20604_v49 = vadd.f32 %v20603_v39, %v20602_v19 }
 0xafa   :  { %v20652_v25 = vpop.xlane.xlu0 %20651 }
 0xafb   :  { %v20630_v9 = vrot.slane %v20629_v11, 2  ;;  %v20605_v31 = vrot.slane %v20604_v49, 2  ;;  %v20653_v15 = vrot.slane %v20652_v25, 4 }
 0xafd   :  { %v20631_v18 = vadd.f32 %v20630_v9, %v20629_v11  ;;  %v20654_v28 = vadd.f32 %v20653_v15, %v20652_v25  ;;  %v20606_v50 = vadd.f32 %v20605_v31, %v20604_v49 }
 0xaff   :  { %v20632_v56 = vrot.slane %v20631_v18, 1  ;;  %v20655_v12 = vrot.slane %v20654_v28, 2  ;;  %v20607_v26 = vrot.slane %v20606_v50, 1 }
 0xb01   :  { %v20633_v1 = vadd.f32 %v20632_v56, %v20631_v18  ;;  %v20656_v16 = vadd.f32 %v20655_v12, %v20654_v28  ;;  %v20608_v30 = vadd.f32 %v20607_v26, %v20606_v50 }
 0xb03   :  { %20789 = vpush %v20608_v30  ;;  %v20657_v46 = vrot.slane %v20656_v16, 1 }
 0xb04   :  { %20791 = vpush %v20633_v1 }
 0xb05   :  { %v20658_v41 = vadd.f32 %v20657_v46, %v20656_v16 }
 0xb07   :  { %20793 = vpush %v20658_v41 }
 0xb34   :  { %s20790_s11 = spop %20789 }
 0xb35   :  { %s20610_s12 = sadd.f32 %s20790_s11, %s20589_s4  ;;  %s20792_s1 = spop %20791 }
 0xb36   :  { %s20635_s2 = sadd.f32 %s20792_s1, %s20779_s8 }
 0xb37   :  { %20612 = sst [smem:[#allocation7]] %s20610_s12 }
 0xb38   :  { %20637 = sst [smem:[#allocation7 + $0x1]] %s20635_s2  ;;  %s20794_s16 = spop %20793 }
 0xb39   :  { %s20660_s18 = sadd.f32 %s20794_s16, %s20784_s10 }
 0xb3b   :  { %20662 = sst [smem:[#allocation7 + $0x2]] %s20660_s18 }
 0xb3c   :  { %20670 = dma.smem_to_hbm %s20952_s9, 16, %s26970_s6, [#allocation3]  }
 0xb3d   :  { %20939 = dma.done.wait [#allocation3], 16  }
 0xb3e   :  { %20940 = vsyncadd [#allocation3], 4294967280 }
 0xb3f   :  { %20674 = sfence }
 0xb40   :  { %20675 = vsyncpa [#allocation3], 1 }
 0xb41   :  { %20676 = vsyncpa [#allocation4], 1 }
 0xb42   :  { %20677 = vsyncpa [#allocation6], 1 }

</bundles_post_ra>
